<compile_context>
chip_gen: v7x
topology: tpu7x:2x2x1
jax: 0.10.0
libtpu: 0.0.40
codegen_flags: <defaults>
</compile_context>

<pallas_src>
import functools

import jax
import jax.numpy as jnp
from jax.experimental import pallas as pl
from jax.experimental.pallas import tpu as pltpu

# Logical (PyTorch) feature sizes.
D_IN = 784
D_H1 = 400
D_Z = 392
D_H3 = 400
D_OUT = 784

# Lane-aligned (multiple-of-128) padded sizes used inside the kernel.
P_IN = 896   # 7 * 128
P_H1 = 512   # 4 * 128
P_Z = 512
P_H3 = 512
P_OUT = 896

# Batch tile: multiple of 16, working set (weights ~3 MiB bf16 + activation
# double-buffers) fits comfortably inside v7x's 64 MiB VMEM.
TILE_B = 256


def dae_kernel(
    x_ref,      # (TILE_B, P_IN)   f32 input tile (zero-padded feature cols)
    noise_ref,  # (TILE_B, P_IN)   f32 gaussian noise tile
    w1_ref, b1_ref,  # (P_IN, P_H1)  bf16, (1, P_H1)  f32
    w2_ref, b2_ref,  # (P_H1, P_Z)   bf16, (1, P_Z)   f32
    w3_ref, b3_ref,  # (P_Z, P_H3)   bf16, (1, P_H3)  f32
    w4_ref, b4_ref,  # (P_H3, P_OUT) bf16, (1, P_OUT) f32
    out_ref,    # (TILE_B, P_OUT)  f32
):
    # encode: x = x + randn_like(x)   (f32 VPU add; free under the MXU chain)
    xn = x_ref[...] + noise_ref[...]

    # h1 = relu(fc1(x))  -- bf16 MXU inputs, f32 accumulation
    h1 = jnp.dot(xn.astype(jnp.bfloat16), w1_ref[...],
                 preferred_element_type=jnp.float32) + b1_ref[...]
    h1 = jnp.maximum(h1, 0.0)

    # z = fc2(h1)
    z = jnp.dot(h1.astype(jnp.bfloat16), w2_ref[...],
                preferred_element_type=jnp.float32) + b2_ref[...]

    # decode: h3 = relu(fc3(z))
    h3 = jnp.dot(z.astype(jnp.bfloat16), w3_ref[...],
                 preferred_element_type=jnp.float32) + b3_ref[...]
    h3 = jnp.maximum(h3, 0.0)

    # out = sigmoid(fc4(h3))
    logits = jnp.dot(h3.astype(jnp.bfloat16), w4_ref[...],
                     preferred_element_type=jnp.float32) + b4_ref[...]
    out_ref[...] = jax.nn.sigmoid(logits)


@functools.partial(jax.jit, static_argnames=("tile_b",))
def dae_forward(x, noise, kernel_params, tile_b=TILE_B):
    """x, noise: any shape flattening to (-1, 784). kernel_params from pad_params()."""
    x2d = x.reshape(-1, D_IN).astype(jnp.float32)
    noise2d = noise.reshape(-1, D_IN).astype(jnp.float32)
    B = x2d.shape[0]
    Bp = pl.cdiv(B, tile_b) * tile_b

    # Zero-pad batch to a tile multiple and features to lane-aligned width.
    xp = jnp.pad(x2d, ((0, Bp - B), (0, P_IN - D_IN)))
    noisep = jnp.pad(noise2d, ((0, Bp - B), (0, P_IN - D_IN)))

    w1, b1, w2, b2, w3, b3, w4, b4 = kernel_params

    act_spec = pl.BlockSpec((tile_b, P_IN), lambda i: (i, 0))
    const = lambda shape: pl.BlockSpec(shape, lambda i: (0, 0))  # resident params

    out = pl.pallas_call(
        dae_kernel,
        out_shape=jax.ShapeDtypeStruct((Bp, P_OUT), jnp.float32),
        grid=(Bp // tile_b,),
        in_specs=[
            act_spec, act_spec,
            const((P_IN, P_H1)), const((1, P_H1)),
            const((P_H1, P_Z)), const((1, P_Z)),
            const((P_Z, P_H3)), const((1, P_H3)),
            const((P_H3, P_OUT)), const((1, P_OUT)),
        ],
        out_specs=pl.BlockSpec((tile_b, P_OUT), lambda i: (i, 0)),
        compiler_params=pltpu.CompilerParams(
            dimension_semantics=("parallel",),
        ),
    )(xp, noisep, w1, b1, w2, b2, w3, b3, w4, b4)

    # Slice away batch padding and lane padding -> logical (B, 784).
    return out[:B, :D_OUT]


def init_params(key):
    """f32 params at logical PyTorch nn.Linear shapes (weights transposed to (in, out))."""

    def linear(key, fan_in, fan_out):
        kw, kb = jax.random.split(key)
        bound = 1.0 / jnp.sqrt(fan_in)
        w = jax.random.uniform(
            kw, (fan_in, fan_out), jnp.float32, minval=-bound, maxval=bound
        )
        b = jax.random.uniform(
            kb, (1, fan_out), jnp.float32, minval=-bound, maxval=bound
        )
        return w, b

    k1, k2, k3, k4 = jax.random.split(key, 4)
    w1, b1 = linear(k1, D_IN, D_H1)
    w2, b2 = linear(k2, D_H1, D_Z)
    w3, b3 = linear(k3, D_Z, D_H3)
    w4, b4 = linear(k4, D_H3, D_OUT)
    return (w1, b1, w2, b2, w3, b3, w4, b4)


def pad_params(params):
    """Zero-pad params to lane-aligned shapes; weights -> bf16, biases -> f32."""
    w1, b1, w2, b2, w3, b3, w4, b4 = params

    def pad_w(w, rows, cols):
        return jnp.pad(
            w, ((0, rows - w.shape[0]), (0, cols - w.shape[1]))
        ).astype(jnp.bfloat16)

    def pad_b(b, cols):
        return jnp.pad(b, ((0, 0), (0, cols - b.shape[1]))).astype(jnp.float32)

    return (
        pad_w(w1, P_IN, P_H1), pad_b(b1, P_H1),
        pad_w(w2, P_H1, P_Z), pad_b(b2, P_Z),
        pad_w(w3, P_Z, P_H3), pad_b(b3, P_H3),
        pad_w(w4, P_H3, P_OUT), pad_b(b4, P_OUT),
    )


def reference_forward(x, noise, params):
    """Pure-JAX reference matching the kernel numerics (bf16 dots, f32 accum)."""
    w1, b1, w2, b2, w3, b3, w4, b4 = params
    bf = jnp.bfloat16

    def dot(a, w):
        return jnp.dot(a.astype(bf), w.astype(bf), preferred_element_type=jnp.float32)

    xn = x.reshape(-1, D_IN) + noise.reshape(-1, D_IN)
    h1 = jnp.maximum(dot(xn, w1) + b1, 0.0)
    z = dot(h1, w2) + b2
    h3 = jnp.maximum(dot(z, w3) + b3, 0.0)
    return jax.nn.sigmoid(dot(h3, w4) + b4)


if __name__ == "__main__":
    key = jax.random.PRNGKey(0)
    k_params, k_x, k_noise = jax.random.split(key, 3)

    # Small MNIST-like input: batch=8, NCHW (8, 1, 28, 28) -> view(-1, 784)
    x = jax.random.uniform(k_x, (8, 1, 28, 28), jnp.float32)
    # Deterministic replacement for torch.randn_like(x) inside encode().
    noise = jax.random.normal(k_noise, (8, 1, 28, 28), jnp.float32)

    params = init_params(k_params)
    kernel_params = pad_params(params)

    out = dae_forward(x, noise, kernel_params)
    out = jax.block_until_ready(out)

    ref = reference_forward(x, noise, params)
    assert out.shape == (8, D_OUT), out.shape
    assert bool(jnp.all(jnp.isfinite(out))), "non-finite output"
    max_abs_err = float(jnp.max(jnp.abs(out - ref)))
    assert jnp.allclose(out, ref, atol=3e-3, rtol=1e-2), (
        "mismatch vs reference: max|diff|=%e" % max_abs_err
    )

    print("KERNEL_OK")
</pallas_src>

<mosaic_0001>
module attributes {stable_mosaic.version = 11 : i64} {
  func.func @dae_kernel(%arg0: i32, %arg1: memref<256x896xf32, #tpu.memory_space<vmem>>, %arg2: memref<256x896xf32, #tpu.memory_space<vmem>>, %arg3: memref<896x512xbf16, #tpu.memory_space<vmem>>, %arg4: memref<1x512xf32, #tpu.memory_space<vmem>>, %arg5: memref<512x512xbf16, #tpu.memory_space<vmem>>, %arg6: memref<1x512xf32, #tpu.memory_space<vmem>>, %arg7: memref<512x512xbf16, #tpu.memory_space<vmem>>, %arg8: memref<1x512xf32, #tpu.memory_space<vmem>>, %arg9: memref<512x896xbf16, #tpu.memory_space<vmem>>, %arg10: memref<1x896xf32, #tpu.memory_space<vmem>>, %arg11: memref<256x896xf32, #tpu.memory_space<vmem>>) attributes {dimension_semantics = [#tpu.dimension_semantics<parallel>], iteration_bounds = array<i64: 1>, scalar_prefetch = 0 : i64, scratch_operands = 0 : i64, tpu.core_type = #tpu.core_type<tc>, window_params = [{transform_indices = @transform_0, window_bounds = array<i64: 256, 896>}, {transform_indices = @transform_1, window_bounds = array<i64: 256, 896>}, {pipeline_mode = #tpu.pipeline_mode<synchronous>, transform_indices = @transform_2, window_bounds = array<i64: 896, 512>}, {pipeline_mode = #tpu.pipeline_mode<synchronous>, transform_indices = @transform_3, window_bounds = array<i64: 1, 512>}, {pipeline_mode = #tpu.pipeline_mode<synchronous>, transform_indices = @transform_4, window_bounds = array<i64: 512, 512>}, {pipeline_mode = #tpu.pipeline_mode<synchronous>, transform_indices = @transform_5, window_bounds = array<i64: 1, 512>}, {pipeline_mode = #tpu.pipeline_mode<synchronous>, transform_indices = @transform_6, window_bounds = array<i64: 512, 512>}, {pipeline_mode = #tpu.pipeline_mode<synchronous>, transform_indices = @transform_7, window_bounds = array<i64: 1, 512>}, {pipeline_mode = #tpu.pipeline_mode<synchronous>, transform_indices = @transform_8, window_bounds = array<i64: 512, 896>}, {pipeline_mode = #tpu.pipeline_mode<synchronous>, transform_indices = @transform_9, window_bounds = array<i64: 1, 896>}, {transform_indices = @transform_10, window_bounds = array<i64: 256, 896>}]} {
    %c0 = arith.constant 0 : index
    %c0_0 = arith.constant 0 : index
    %0 = vector.load %arg1[%c0, %c0_0] : memref<256x896xf32, #tpu.memory_space<vmem>>, vector<256x896xf32>
    %c0_1 = arith.constant 0 : index
    %c0_2 = arith.constant 0 : index
    %1 = vector.load %arg2[%c0_1, %c0_2] : memref<256x896xf32, #tpu.memory_space<vmem>>, vector<256x896xf32>
    %2 = arith.addf %0, %1 : vector<256x896xf32>
    %3 = arith.truncf %2 : vector<256x896xf32> to vector<256x896xbf16>
    %c0_3 = arith.constant 0 : index
    %c0_4 = arith.constant 0 : index
    %4 = vector.load %arg3[%c0_3, %c0_4] : memref<896x512xbf16, #tpu.memory_space<vmem>>, vector<896x512xbf16>
    %cst = arith.constant dense<0.000000e+00> : vector<256x512xf32>
    %5 = tpu.matmul %3, %4, %cst {dimension_numbers = #tpu.dot_dimension_numbers<[1], [0], [0], [1], [0, 0, 1, 1], [], []>} : vector<256x896xbf16>, vector<896x512xbf16>, vector<256x512xf32> -> vector<256x512xf32>
    %c0_5 = arith.constant 0 : index
    %c0_6 = arith.constant 0 : index
    %6 = vector.load %arg4[%c0_5, %c0_6] : memref<1x512xf32, #tpu.memory_space<vmem>>, vector<1x512xf32>
    %7 = vector.broadcast %6 : vector<1x512xf32> to vector<256x512xf32>
    %8 = arith.addf %5, %7 : vector<256x512xf32>
    %cst_7 = arith.constant 0.000000e+00 : f32
    %9 = vector.broadcast %cst_7 : f32 to vector<256x512xf32>
    %10 = arith.maximumf %8, %9 : vector<256x512xf32>
    %11 = arith.truncf %10 : vector<256x512xf32> to vector<256x512xbf16>
    %c0_8 = arith.constant 0 : index
    %c0_9 = arith.constant 0 : index
    %12 = vector.load %arg5[%c0_8, %c0_9] : memref<512x512xbf16, #tpu.memory_space<vmem>>, vector<512x512xbf16>
    %cst_10 = arith.constant dense<0.000000e+00> : vector<256x512xf32>
    %13 = tpu.matmul %11, %12, %cst_10 {dimension_numbers = #tpu.dot_dimension_numbers<[1], [0], [0], [1], [0, 0, 1, 1], [], []>} : vector<256x512xbf16>, vector<512x512xbf16>, vector<256x512xf32> -> vector<256x512xf32>
    %c0_11 = arith.constant 0 : index
    %c0_12 = arith.constant 0 : index
    %14 = vector.load %arg6[%c0_11, %c0_12] : memref<1x512xf32, #tpu.memory_space<vmem>>, vector<1x512xf32>
    %15 = vector.broadcast %14 : vector<1x512xf32> to vector<256x512xf32>
    %16 = arith.addf %13, %15 : vector<256x512xf32>
    %17 = arith.truncf %16 : vector<256x512xf32> to vector<256x512xbf16>
    %c0_13 = arith.constant 0 : index
    %c0_14 = arith.constant 0 : index
    %18 = vector.load %arg7[%c0_13, %c0_14] : memref<512x512xbf16, #tpu.memory_space<vmem>>, vector<512x512xbf16>
    %cst_15 = arith.constant dense<0.000000e+00> : vector<256x512xf32>
    %19 = tpu.matmul %17, %18, %cst_15 {dimension_numbers = #tpu.dot_dimension_numbers<[1], [0], [0], [1], [0, 0, 1, 1], [], []>} : vector<256x512xbf16>, vector<512x512xbf16>, vector<256x512xf32> -> vector<256x512xf32>
    %c0_16 = arith.constant 0 : index
    %c0_17 = arith.constant 0 : index
    %20 = vector.load %arg8[%c0_16, %c0_17] : memref<1x512xf32, #tpu.memory_space<vmem>>, vector<1x512xf32>
    %21 = vector.broadcast %20 : vector<1x512xf32> to vector<256x512xf32>
    %22 = arith.addf %19, %21 : vector<256x512xf32>
    %cst_18 = arith.constant 0.000000e+00 : f32
    %23 = vector.broadcast %cst_18 : f32 to vector<256x512xf32>
    %24 = arith.maximumf %22, %23 : vector<256x512xf32>
    %25 = arith.truncf %24 : vector<256x512xf32> to vector<256x512xbf16>
    %c0_19 = arith.constant 0 : index
    %c0_20 = arith.constant 0 : index
    %26 = vector.load %arg9[%c0_19, %c0_20] : memref<512x896xbf16, #tpu.memory_space<vmem>>, vector<512x896xbf16>
    %cst_21 = arith.constant dense<0.000000e+00> : vector<256x896xf32>
    %27 = tpu.matmul %25, %26, %cst_21 {dimension_numbers = #tpu.dot_dimension_numbers<[1], [0], [0], [1], [0, 0, 1, 1], [], []>} : vector<256x512xbf16>, vector<512x896xbf16>, vector<256x896xf32> -> vector<256x896xf32>
    %c0_22 = arith.constant 0 : index
    %c0_23 = arith.constant 0 : index
    %28 = vector.load %arg10[%c0_22, %c0_23] : memref<1x896xf32, #tpu.memory_space<vmem>>, vector<1x896xf32>
    %29 = vector.broadcast %28 : vector<1x896xf32> to vector<256x896xf32>
    %30 = arith.addf %27, %29 : vector<256x896xf32>
    %31 = arith.negf %30 : vector<256x896xf32>
    %32 = math.exp %31 : vector<256x896xf32>
    %cst_24 = arith.constant 1.000000e+00 : f32
    %33 = vector.broadcast %cst_24 : f32 to vector<256x896xf32>
    %34 = arith.addf %33, %32 : vector<256x896xf32>
    %35 = arith.divf %33, %34 : vector<256x896xf32>
    %c0_25 = arith.constant 0 : index
    %c0_26 = arith.constant 0 : index
    %36 = vector.load %arg11[%c0_25, %c0_26] : memref<256x896xf32, #tpu.memory_space<vmem>>, vector<256x896xf32>
    tpu.vector_store %arg11[%c0_25, %c0_26], %35 {strides = array<i32>} : memref<256x896xf32, #tpu.memory_space<vmem>>, vector<256x896xf32>,
    return
  }
  func.func @transform_0(%arg0: i32) -> (i32, i32) {
    %c0_i32 = arith.constant 0 : i32
    %c0_i32_0 = arith.constant 0 : i32
    return %arg0, %c0_i32 : i32, i32
  }
  func.func @transform_1(%arg0: i32) -> (i32, i32) {
    %c0_i32 = arith.constant 0 : i32
    %c0_i32_0 = arith.constant 0 : i32
    return %arg0, %c0_i32 : i32, i32
  }
  func.func @transform_2(%arg0: i32) -> (i32, i32) {
    %c0_i32 = arith.constant 0 : i32
    %c0_i32_0 = arith.constant 0 : i32
    %c0_i32_1 = arith.constant 0 : i32
    return %c0_i32, %c0_i32_0 : i32, i32
  }
  func.func @transform_3(%arg0: i32) -> (i32, i32) {
    %c0_i32 = arith.constant 0 : i32
    %c0_i32_0 = arith.constant 0 : i32
    %c0_i32_1 = arith.constant 0 : i32
    return %c0_i32, %c0_i32_0 : i32, i32
  }
  func.func @transform_4(%arg0: i32) -> (i32, i32) {
    %c0_i32 = arith.constant 0 : i32
    %c0_i32_0 = arith.constant 0 : i32
    %c0_i32_1 = arith.constant 0 : i32
    return %c0_i32, %c0_i32_0 : i32, i32
  }
  func.func @transform_5(%arg0: i32) -> (i32, i32) {
    %c0_i32 = arith.constant 0 : i32
    %c0_i32_0 = arith.constant 0 : i32
    %c0_i32_1 = arith.constant 0 : i32
    return %c0_i32, %c0_i32_0 : i32, i32
  }
  func.func @transform_6(%arg0: i32) -> (i32, i32) {
    %c0_i32 = arith.constant 0 : i32
    %c0_i32_0 = arith.constant 0 : i32
    %c0_i32_1 = arith.constant 0 : i32
    return %c0_i32, %c0_i32_0 : i32, i32
  }
  func.func @transform_7(%arg0: i32) -> (i32, i32) {
    %c0_i32 = arith.constant 0 : i32
    %c0_i32_0 = arith.constant 0 : i32
    %c0_i32_1 = arith.constant 0 : i32
    return %c0_i32, %c0_i32_0 : i32, i32
  }
  func.func @transform_8(%arg0: i32) -> (i32, i32) {
    %c0_i32 = arith.constant 0 : i32
    %c0_i32_0 = arith.constant 0 : i32
    %c0_i32_1 = arith.constant 0 : i32
    return %c0_i32, %c0_i32_0 : i32, i32
  }
  func.func @transform_9(%arg0: i32) -> (i32, i32) {
    %c0_i32 = arith.constant 0 : i32
    %c0_i32_0 = arith.constant 0 : i32
    %c0_i32_1 = arith.constant 0 : i32
    return %c0_i32, %c0_i32_0 : i32, i32
  }
  func.func @transform_10(%arg0: i32) -> (i32, i32) {
    %c0_i32 = arith.constant 0 : i32
    %c0_i32_0 = arith.constant 0 : i32
    return %arg0, %c0_i32 : i32, i32
  }
}

</mosaic_0001>

<bundles_post_ra>
// kernel: dae_forward.1
= control target key start
LH: loop header
LB: loop body
LE: loop exit
PB: predicated region body
PF: predicated region fallthrough
CT: control target
= control target key end

     0   :  { %15 = vsyncpa [#allocation3], 0  ;;  %s16339_s13 = smov [#allocation2]   ;;  %s22153_s0 = inlined_call_operand.vmem [shape: f32[256,896], index: 0, kind: input, shape index: {}]   ;;  %s22154_s1 = inlined_call_operand.vmem [shape: f32[256,896], index: 1, kind: input, shape index: {}]   ;;  %s22155_s2 = inlined_call_operand.vmem [shape: bf16[896,512], index: 2, kind: input, shape index: {}]   ;;  %s22156_s3 = inlined_call_operand.vmem [shape: f32[1,512], index: 3, kind: input, shape index: {}]   ;;  %s22157_s4 = inlined_call_operand.vmem [shape: bf16[512,512], index: 4, kind: input, shape index: {}]   ;;  %s22158_s5 = inlined_call_operand.vmem [shape: f32[1,512], index: 5, kind: input, shape index: {}]   ;;  %s22159_s6 = inlined_call_operand.hbm [shape: bf16[512,512], index: 6, kind: input, shape index: {}]   ;;  %s22160_s7 = inlined_call_operand.vmem [shape: f32[1,512], index: 7, kind: input, shape index: {}]   ;;  %s22161_s8 = inlined_call_operand.vmem [shape: bf16[512,896], index: 8, kind: input, shape index: {}]   ;;  %s22162_s9 = inlined_call_operand.vmem [shape: f32[1,896], index: 9, kind: input, shape index: {}]   ;;  %s22163_s10 = inlined_call_operand.vmem [shape: f32[256,896], index: 10, kind: output, shape index: {}]  }
   0x1   :  { %s33_s14 = sshll.u32 %s16339_s13, 4  ;;  %s16315_s17 = scalar_lea.hbm %s22159_s6, 16384  ;;  %s34_s14 = int_to_ptr.vmem [resolvable:$true] %s33_s14 }
   0x2   :  { %p16316_p0 = scmp.ne.s32.totalorder %s22159_s6, %s16315_s17  ;;  %p16319_p1 = scmp.lt.u32.totalorder %s16315_s17, %s22159_s6 }
   0x4   :  { %p16321_p2 = pnand %p16319_p1, %p16316_p0 }
   0x6   :  { %16324 = shalt.err (!%p16321_p2)
}
   0x7   :  { %s16325_s22 = scalar_lea.vmem %s34_s14, 16384  ;;  %p16330_p4 = scmp.lt.s32.totalorder %s34_s14, %s34_s14 }
   0x8   :  { %p16326_p3 = scmp.ne.s32.totalorder %s34_s14, %s16325_s22  ;;  %p16331_p5 = scmp.lt.s32.totalorder %s16325_s22, %s16325_s22 }
   0xa   :  { %p16332_p6 = por %p16331_p5, %p16330_p4 }
   0xc   :  { %p16333_p7 = pnand %p16332_p6, %p16326_p3 }
   0xe   :  { %16336 = shalt.err (!%p16333_p7)
}
   0xf   :  { %s16340_s23 = smov 256   ;;  %s16341_s24 = smov 16  }
  0x10   :  { %39 = dma.hbm_to_vmem [thread:$0]  %s22159_s6, 16384, %s34_s14, [#allocation3], %s16340_s23, %s16340_s23, %s16341_s24  }
  0x11   :  { %16337 = dma.done.wait [#allocation3], 16384  }
  0x12   :  { %16338 = vsyncadd [#allocation3], 4294950912  ;;  %v14378_v0 = vld [vmem:[%s22155_s2 + $0x4] ss:$16 sps:$4 sm:$0xff]   ;;  %v14380_v1 = vld [vmem:[%s22155_s2 + $0xc] ss:$16 sps:$4 sm:$0xff]  }
  0x13   :  { %2200 = vmatprep.subr.bf16.mxu0 %v14378_v0  ;;  %v14382_v2 = vld [vmem:[%s22155_s2] ss:$16 sps:$4 sm:$0xff]   ;;  %v14383_v3 = vld [vmem:[%s22155_s2 + $0x8] ss:$16 sps:$4 sm:$0xff]   ;;  %2972 = vmatprep.subr.bf16.mxu1 %v14380_v1  ;;  %v14384_v4 = vld [vmem:[%s22155_s2 + $0x24] ss:$16 sps:$4 sm:$0xff]  }
  0x14   :  { %2201 = vmatpush1.bf16.msra.mxu0 %v14382_v2  ;;  %2973 = vmatpush1.bf16.msra.mxu1 %v14383_v3  ;;  %v14386_v5 = vld [vmem:[%s22155_s2 + $0x2c] ss:$16 sps:$4 sm:$0xff]   ;;  %v14388_v6 = vld [vmem:[%s22155_s2 + $0x20] ss:$16 sps:$4 sm:$0xff]   ;;  %v14389_v7 = vld [vmem:[%s22155_s2 + $0x28] ss:$16 sps:$4 sm:$0xff]  }
  0x15   :  { %2202 = vmatprep.subr.bf16.mxu0 %v14384_v4  ;;  %2974 = vmatprep.subr.bf16.mxu1 %v14386_v5  ;;  %v14390_v8 = vld [vmem:[%s22155_s2 + $0x44] ss:$16 sps:$4 sm:$0xff]   ;;  %v14392_v9 = vld [vmem:[%s22155_s2 + $0x4c] ss:$16 sps:$4 sm:$0xff]   ;;  %v14394_v10 = vld [vmem:[%s22155_s2 + $0x40] ss:$16 sps:$4 sm:$0xff]  }
  0x16   :  { %v14395_v11 = vld [vmem:[%s22155_s2 + $0x48] ss:$16 sps:$4 sm:$0xff]   ;;  %v14396_v12 = vld [vmem:[%s22155_s2 + $0x64] ss:$16 sps:$4 sm:$0xff]   ;;  %v14398_v13 = vld [vmem:[%s22155_s2 + $0x6c] ss:$16 sps:$4 sm:$0xff]  }
  0x17   :  { %v14400_v14 = vld [vmem:[%s22155_s2 + $0x60] ss:$16 sps:$4 sm:$0xff]   ;;  %v14401_v15 = vld [vmem:[%s22155_s2 + $0x68] ss:$16 sps:$4 sm:$0xff]   ;;  %v14402_v16 = vld [vmem:[%s22155_s2 + $0x84] ss:$16 sps:$4 sm:$0xff]  }
  0x18   :  { %2203 = vmatpush1.bf16.msra.mxu0 %v14388_v6  ;;  %2975 = vmatpush1.bf16.msra.mxu1 %v14389_v7  ;;  %v14404_v17 = vld [vmem:[%s22155_s2 + $0x8c] ss:$16 sps:$4 sm:$0xff]   ;;  %v14406_v18 = vld [vmem:[%s22155_s2 + $0x80] ss:$16 sps:$4 sm:$0xff]   ;;  %v14407_v19 = vld [vmem:[%s22155_s2 + $0x88] ss:$16 sps:$4 sm:$0xff]  }
  0x19   :  { %2204 = vmatprep.subr.bf16.mxu0 %v14390_v8  ;;  %2976 = vmatprep.subr.bf16.mxu1 %v14392_v9  ;;  %v14408_v20 = vld [vmem:[%s22155_s2 + $0xa4] ss:$16 sps:$4 sm:$0xff]   ;;  %v14410_v21 = vld [vmem:[%s22155_s2 + $0xac] ss:$16 sps:$4 sm:$0xff]   ;;  %v14412_v22 = vld [vmem:[%s22155_s2 + $0xa0] ss:$16 sps:$4 sm:$0xff]  }
  0x1a   :  { %v14413_v23 = vld [vmem:[%s22155_s2 + $0xa8] ss:$16 sps:$4 sm:$0xff]   ;;  %v14414_v24 = vld [vmem:[%s22155_s2 + $0xc4] ss:$16 sps:$4 sm:$0xff]   ;;  %v14416_v25 = vld [vmem:[%s22155_s2 + $0xcc] ss:$16 sps:$4 sm:$0xff]  }
  0x1b   :  { %v14418_v26 = vld [vmem:[%s22155_s2 + $0xc0] ss:$16 sps:$4 sm:$0xff]   ;;  %v14419_v27 = vld [vmem:[%s22155_s2 + $0xc8] ss:$16 sps:$4 sm:$0xff]   ;;  %v14420_v28 = vld [vmem:[%s22155_s2 + $0xe4] ss:$16 sps:$4 sm:$0xff]  }
  0x1c   :  { %2205 = vmatpush1.bf16.msra.mxu0 %v14394_v10  ;;  %2977 = vmatpush1.bf16.msra.mxu1 %v14395_v11  ;;  %v14422_v29 = vld [vmem:[%s22155_s2 + $0xec] ss:$16 sps:$4 sm:$0xff]   ;;  %v14424_v30 = vld [vmem:[%s22155_s2 + $0xe0] ss:$16 sps:$4 sm:$0xff]   ;;  %v14425_v31 = vld [vmem:[%s22155_s2 + $0xe8] ss:$16 sps:$4 sm:$0xff]  }
  0x1d   :  { %2206 = vmatprep.subr.bf16.mxu0 %v14396_v12  ;;  %2978 = vmatprep.subr.bf16.mxu1 %v14398_v13  ;;  %v14426_v32 = vld [vmem:[%s22155_s2 + $0x104] ss:$16 sps:$4 sm:$0xff]   ;;  %v14428_v33 = vld [vmem:[%s22155_s2 + $0x10c] ss:$16 sps:$4 sm:$0xff]   ;;  %v14430_v34 = vld [vmem:[%s22155_s2 + $0x100] ss:$16 sps:$4 sm:$0xff]  }
  0x1e   :  { %v14431_v35 = vld [vmem:[%s22155_s2 + $0x108] ss:$16 sps:$4 sm:$0xff]   ;;  %v14432_v36 = vld [vmem:[%s22155_s2 + $0x124] ss:$16 sps:$4 sm:$0xff]   ;;  %v14434_v37 = vld [vmem:[%s22155_s2 + $0x12c] ss:$16 sps:$4 sm:$0xff]  }
  0x1f   :  { %v14436_v38 = vld [vmem:[%s22155_s2 + $0x120] ss:$16 sps:$4 sm:$0xff]   ;;  %v14437_v39 = vld [vmem:[%s22155_s2 + $0x128] ss:$16 sps:$4 sm:$0xff]   ;;  %v14438_v40 = vld [vmem:[%s22155_s2 + $0x144] ss:$16 sps:$4 sm:$0xff]  }
  0x20   :  { %2207 = vmatpush1.bf16.msra.mxu0 %v14400_v14  ;;  %2979 = vmatpush1.bf16.msra.mxu1 %v14401_v15  ;;  %v14440_v41 = vld [vmem:[%s22155_s2 + $0x14c] ss:$16 sps:$4 sm:$0xff]   ;;  %v14442_v42 = vld [vmem:[%s22155_s2 + $0x140] ss:$16 sps:$4 sm:$0xff]   ;;  %v14443_v43 = vld [vmem:[%s22155_s2 + $0x148] ss:$16 sps:$4 sm:$0xff]  }
  0x21   :  { %2208 = vmatprep.subr.bf16.mxu0 %v14402_v16  ;;  %2980 = vmatprep.subr.bf16.mxu1 %v14404_v17  ;;  %v14444_v44 = vld [vmem:[%s22155_s2 + $0x164] ss:$16 sps:$4 sm:$0xff]   ;;  %v14446_v45 = vld [vmem:[%s22155_s2 + $0x16c] ss:$16 sps:$4 sm:$0xff]   ;;  %v14448_v50 = vld [vmem:[%s22155_s2 + $0x160] ss:$16 sps:$4 sm:$0xff]  }
  0x22   :  { %v51_v46 = vld [vmem:[%s22153_s0 + $0x8] sm:$0xff]  ;;  %v58_v47 = vld [vmem:[%s22153_s0 + $0x40] sm:$0xff]  ;;  %v57_v6 = vld [vmem:[%s22153_s0 + $0x38] sm:$0xff] }
  0x23   :  { %v275_v48 = vld [vmem:[%s22154_s1 + $0x8] sm:$0xff]  ;;  %v282_v49 = vld [vmem:[%s22154_s1 + $0x40] sm:$0xff]  ;;  %v281_v8 = vld [vmem:[%s22154_s1 + $0x38] sm:$0xff] }
  0x24   :  { %2209 = vmatpush1.bf16.msra.mxu0 %v14406_v18  ;;  %2981 = vmatpush1.bf16.msra.mxu1 %v14407_v19  ;;  %v14449_v51 = vld [vmem:[%s22155_s2 + $0x168] ss:$16 sps:$4 sm:$0xff]   ;;  %v14450_v52 = vld [vmem:[%s22155_s2 + $0x184] ss:$16 sps:$4 sm:$0xff]   ;;  %v499_v53 = vadd.f32 %v275_v48, %v51_v46  ;;  %v506_v54 = vadd.f32 %v282_v49, %v58_v47  ;;  %v14452_v55 = vld [vmem:[%s22155_s2 + $0x18c] ss:$16 sps:$4 sm:$0xff]   ;;  %v505_v14 = vadd.f32 %v281_v8, %v57_v6 }
  0x25   :  { %2210 = vmatprep.subr.bf16.mxu0 %v14408_v20  ;;  %2982 = vmatprep.subr.bf16.mxu1 %v14410_v21  ;;  %v14454_v57 = vld [vmem:[%s22155_s2 + $0x180] ss:$16 sps:$4 sm:$0xff]   ;;  %v14455_v58 = vld [vmem:[%s22155_s2 + $0x188] ss:$16 sps:$4 sm:$0xff]   ;;  %v14456_v59 = vld [vmem:[%s22155_s2 + $0x1a4] ss:$16 sps:$4 sm:$0xff]  }
  0x26   :  { %v723_v56 = vpack.c.bf16 %v506_v54, %v499_v53  ;;  %v14458_v60 = vld [vmem:[%s22155_s2 + $0x1ac] ss:$16 sps:$4 sm:$0xff]   ;;  %v14460_v61 = vld [vmem:[%s22155_s2 + $0x1a0] ss:$16 sps:$4 sm:$0xff]   ;;  %v14461_v62 = vld [vmem:[%s22155_s2 + $0x1a8] ss:$16 sps:$4 sm:$0xff]  }
  0x27   :  { %v14462_v63 = vld [vmem:[%s22155_s2 + $0x1c4] ss:$16 sps:$4 sm:$0xff]   ;;  %v14464_v0 = vld [vmem:[%s22155_s2 + $0x1cc] ss:$16 sps:$4 sm:$0xff]   ;;  %v14466_v1 = vld [vmem:[%s22155_s2 + $0x1c0] ss:$16 sps:$4 sm:$0xff]  }
  0x28   :  { %2211 = vmatpush1.bf16.msra.mxu0 %v14412_v22  ;;  %2983 = vmatpush1.bf16.msra.mxu1 %v14413_v23  ;;  %v14467_v2 = vld [vmem:[%s22155_s2 + $0x1c8] ss:$16 sps:$4 sm:$0xff]   ;;  %v50_v3 = vld [vmem:[%s22153_s0] sm:$0xff]  ;;  %v14470_v5 = vld [vmem:[%s22155_s2 + $0x1ec] ss:$16 sps:$4 sm:$0xff]  }
  0x29   :  { %2212 = vmatprep.subr.bf16.mxu0 %v14414_v24  ;;  %2984 = vmatprep.subr.bf16.mxu1 %v14416_v25  ;;  %v14468_v4 = vld [vmem:[%s22155_s2 + $0x1e4] ss:$16 sps:$4 sm:$0xff]   ;;  %v65_v9 = vld [vmem:[%s22153_s0 + $0x78] sm:$0xff]  ;;  %v14472_v15 = vld [vmem:[%s22155_s2 + $0x1e0] ss:$16 sps:$4 sm:$0xff]  }
  0x2a   :  { %2232 = vmatprep.mubr.bf16.mxu0 %v723_v56  ;;  %3004 = vmatprep.mubr.bf16.mxu1 %v723_v56  ;;  %v274_v7 = vld [vmem:[%s22154_s1] sm:$0xff]  ;;  %v72_v10 = vld [vmem:[%s22153_s0 + $0xb0] sm:$0xff]  ;;  %v289_v11 = vld [vmem:[%s22154_s1 + $0x78] sm:$0xff] }
  0x2b   :  { %v296_v12 = vld [vmem:[%s22154_s1 + $0xb0] sm:$0xff]  ;;  %v498_v13 = vadd.f32 %v274_v7, %v50_v3  ;;  %v14473_v16 = vld [vmem:[%s22155_s2 + $0x1e8] ss:$16 sps:$4 sm:$0xff]   ;;  %v513_v17 = vadd.f32 %v289_v11, %v65_v9  ;;  %v338_v3 = vld [vmem:[%s22154_s1 + $0x200] sm:$0xff] }
  0x2c   :  { %2213 = vmatpush1.bf16.msra.mxu0 %v14418_v26  ;;  %2985 = vmatpush1.bf16.msra.mxu1 %v14419_v27  ;;  %v520_v18 = vadd.f32 %v296_v12, %v72_v10  ;;  %v14476_v19 = vld [vmem:[%s22155_s2 + $0x204] ss:$16 sps:$4 sm:$0xff]   ;;  %v14474_v20 = vld [vmem:[%s22155_s2 + $0x200] ss:$16 sps:$4 sm:$0xff]   ;;  %v71_v22 = vld [vmem:[%s22153_s0 + $0xa8] sm:$0xff] }
  0x2d   :  { %2214 = vmatprep.subr.bf16.mxu0 %v14420_v28  ;;  %2986 = vmatprep.subr.bf16.mxu1 %v14422_v29  ;;  %v64_v21 = vld [vmem:[%s22153_s0 + $0x70] sm:$0xff]  ;;  %v722_v23 = vpack.c.bf16 %v505_v14, %v498_v13  ;;  %v295_v25 = vld [vmem:[%s22154_s1 + $0xa8] sm:$0xff]  ;;  %v86_v29 = vld [vmem:[%s22153_s0 + $0x120] sm:$0xff] }
  0x2e   :  { %v288_v24 = vld [vmem:[%s22154_s1 + $0x70] sm:$0xff]  ;;  %v730_v27 = vpack.c.bf16 %v520_v18, %v513_v17  ;;  %v79_v28 = vld [vmem:[%s22153_s0 + $0xe8] sm:$0xff]  ;;  %v317_v47 = vld [vmem:[%s22154_s1 + $0x158] sm:$0xff] }
  0x2f   :  { %v14479_v26 = vld [vmem:[%s22155_s2 + $0x224] ss:$16 sps:$4 sm:$0xff]   ;;  %v14483_v54 = vld [vmem:[%s22155_s2 + $0x260] ss:$16 sps:$4 sm:$0xff]   ;;  %v99_v56 = vld [vmem:[%s22153_s0 + $0x188] sm:$0xff] }
  0x30   :  { %2215 = vmatpush1.bf16.msra.mxu0 %v14424_v30  ;;  %2987 = vmatpush1.bf16.msra.mxu1 %v14425_v31  ;;  %v303_v30 = vld [vmem:[%s22154_s1 + $0xe8] sm:$0xff]  ;;  %v310_v31 = vld [vmem:[%s22154_s1 + $0x120] sm:$0xff]  ;;  %v100_v46 = vld [vmem:[%s22153_s0 + $0x190] sm:$0xff] }
  0x31   :  { %2216 = vmatprep.subr.bf16.mxu0 %v14426_v32  ;;  %2988 = vmatprep.subr.bf16.mxu1 %v14428_v33  ;;  %v512_v32 = vadd.f32 %v288_v24, %v64_v21  ;;  %v519_v33 = vadd.f32 %v295_v25, %v71_v22  ;;  %v324_v48 = vld [vmem:[%s22154_s1 + $0x190] sm:$0xff]  ;;  %v14504_v7 = vld [vmem:[%s22155_s2 + $0x228] ss:$16 sps:$4 sm:$0xff]   ;;  %v106_v14 = vld [vmem:[%s22153_s0 + $0x1c0] sm:$0xff] }
  0x32   :  { %v14485_v49 = vld [vmem:[%s22155_s2 + $0x264] ss:$16 sps:$4 sm:$0xff]   ;;  %v548_v53 = vadd.f32 %v324_v48, %v100_v46  ;;  %v14489_v12 = vld [vmem:[%s22155_s2 + $0x2a0] ss:$16 sps:$4 sm:$0xff]   ;;  %v14512_v17 = vld [vmem:[%s22155_s2 + $0x24c] ss:$16 sps:$4 sm:$0xff]  }
  0x33   :  { %v14491_v6 = vld [vmem:[%s22155_s2 + $0x2a4] ss:$16 sps:$4 sm:$0xff]   ;;  %v121_v22 = vld [vmem:[%s22153_s0 + $0x238] sm:$0xff]  ;;  %v359_v46 = vld [vmem:[%s22154_s1 + $0x2a8] sm:$0xff] }
  0x34   :  { %2217 = vmatpush1.bf16.msra.mxu0 %v14430_v34  ;;  %2989 = vmatpush1.bf16.msra.mxu1 %v14431_v35  ;;  %v14477_v34 = vld [vmem:[%s22155_s2 + $0x220] ss:$16 sps:$4 sm:$0xff]   ;;  %v527_v35 = vadd.f32 %v303_v30, %v79_v28  ;;  %v14494_v13 = vld [vmem:[%s22155_s2 + $0x2c4] ss:$16 sps:$4 sm:$0xff]   ;;  %v345_v24 = vld [vmem:[%s22154_s1 + $0x238] sm:$0xff] }
  0x35   :  { %2218 = vmatprep.subr.bf16.mxu0 %v14432_v36  ;;  %2990 = vmatprep.subr.bf16.mxu1 %v14434_v37  ;;  %v534_v36 = vadd.f32 %v310_v31, %v86_v29  ;;  %v14482_v37 = vld [vmem:[%s22155_s2 + $0x244] ss:$16 sps:$4 sm:$0xff]   ;;  %v14513_v29 = vld [vmem:[%s22155_s2 + $0x268] ss:$16 sps:$4 sm:$0xff]   ;;  %v14498_v48 = vld [vmem:[%s22155_s2 + $0x300] ss:$16 sps:$4 sm:$0xff]  }
  0x36   :  { %v352_v25 = vld [vmem:[%s22154_s1 + $0x270] sm:$0xff] }
  0x37   :  { %v14497_v28 = vld [vmem:[%s22155_s2 + $0x2e4] ss:$16 sps:$4 sm:$0xff]  }
  0x38   :  { %2219 = vmatpush1.bf16.msra.mxu0 %v14436_v38  ;;  %2991 = vmatpush1.bf16.msra.mxu1 %v14437_v39  ;;  %v78_v38 = vld [vmem:[%s22153_s0 + $0xe0] sm:$0xff]  ;;  %v85_v39 = vld [vmem:[%s22153_s0 + $0x118] sm:$0xff] }
  0x39   :  { %2220 = vmatprep.subr.bf16.mxu0 %v14438_v40  ;;  %2992 = vmatprep.subr.bf16.mxu1 %v14440_v41  ;;  %v729_v40 = vpack.c.bf16 %v519_v33, %v512_v32  ;;  %v302_v41 = vld [vmem:[%s22154_s1 + $0xe0] sm:$0xff]  ;;  %v569_v32 = vadd.f32 %v345_v24, %v121_v22 }
  0x3a   :  { %v170_v24 = vld [vmem:[%s22153_s0 + $0x3c0] sm:$0xff] }
  0x3c   :  { %2221 = vmatpush1.bf16.msra.mxu0 %v14442_v42  ;;  %2993 = vmatpush1.bf16.msra.mxu1 %v14443_v43  ;;  %v309_v42 = vld [vmem:[%s22154_s1 + $0x118] sm:$0xff]  ;;  %v14480_v43 = vld [vmem:[%s22155_s2 + $0x240] ss:$16 sps:$4 sm:$0xff]  }
  0x3d   :  { %2222 = vmatprep.subr.bf16.mxu0 %v14444_v44  ;;  %2994 = vmatprep.subr.bf16.mxu1 %v14446_v45  ;;  %v737_v44 = vpack.c.bf16 %v534_v36, %v527_v35  ;;  %v93_v45 = vld [vmem:[%s22153_s0 + $0x158] sm:$0xff]  ;;  %v120_v36 = vld [vmem:[%s22153_s0 + $0x230] sm:$0xff] }
  0x3e   :  { %v14521_v35 = vld [vmem:[%s22155_s2 + $0x28c] ss:$16 sps:$4 sm:$0xff]  }
  0x40   :  { %2223 = vmatpush1.bf16.msra.mxu0 %v14448_v50  ;;  %2995 = vmatpush1.bf16.msra.mxu1 %v14449_v51  ;;  %v526_v50 = vadd.f32 %v302_v41, %v78_v38  ;;  %v533_v51 = vadd.f32 %v309_v42, %v85_v39  ;;  %v344_v38 = vld [vmem:[%s22154_s1 + $0x230] sm:$0xff]  ;;  %v351_v42 = vld [vmem:[%s22154_s1 + $0x268] sm:$0xff] }
  0x41   :  { %2224 = vmatprep.subr.bf16.mxu0 %v14450_v52  ;;  %2996 = vmatprep.subr.bf16.mxu1 %v14452_v55  ;;  %v541_v52 = vadd.f32 %v317_v47, %v93_v45  ;;  %v92_v55 = vld [vmem:[%s22153_s0 + $0x150] sm:$0xff]  ;;  %v366_v47 = vld [vmem:[%s22154_s1 + $0x2e0] sm:$0xff] }
  0x42   :  { %v14500_v39 = vld [vmem:[%s22155_s2 + $0x304] ss:$16 sps:$4 sm:$0xff]  }
  0x44   :  { %2225 = vmatpush1.bf16.msra.mxu0 %v14454_v57  ;;  %2997 = vmatpush1.bf16.msra.mxu1 %v14455_v58  ;;  %v316_v57 = vld [vmem:[%s22154_s1 + $0x150] sm:$0xff]  ;;  %v323_v58 = vld [vmem:[%s22154_s1 + $0x188] sm:$0xff] }
  0x45   :  { %2226 = vmatprep.subr.bf16.mxu0 %v14456_v59  ;;  %2998 = vmatprep.subr.bf16.mxu1 %v14458_v60  ;;  %v14488_v59 = vld [vmem:[%s22155_s2 + $0x284] ss:$16 sps:$4 sm:$0xff]   ;;  %v736_v60 = vpack.c.bf16 %v533_v51, %v526_v50  ;;  %v540_v8 = vadd.f32 %v316_v57, %v92_v55  ;;  %v547_v9 = vadd.f32 %v323_v58, %v99_v56  ;;  %v14522_v51 = vld [vmem:[%s22155_s2 + $0x2a8] ss:$16 sps:$4 sm:$0xff]   ;;  %v14507_v57 = vld [vmem:[%s22155_s2 + $0x320] ss:$16 sps:$4 sm:$0xff]  }
  0x46   :  { %v14509_v50 = vld [vmem:[%s22155_s2 + $0x324] ss:$16 sps:$4 sm:$0xff]  }
  0x47   :  { %v743_v18 = vpack.c.bf16 %v547_v9, %v540_v8  ;;  %v134_v58 = vld [vmem:[%s22153_s0 + $0x2a0] sm:$0xff]  ;;  %v14531_v9 = vld [vmem:[%s22155_s2 + $0x2e8] ss:$16 sps:$4 sm:$0xff]  }
  0x48   :  { %2227 = vmatpush1.bf16.msra.mxu0 %v14460_v61  ;;  %2999 = vmatpush1.bf16.msra.mxu1 %v14461_v62  ;;  %v107_v61 = vld [vmem:[%s22153_s0 + $0x1c8] sm:$0xff]  ;;  %v114_v62 = vld [vmem:[%s22153_s0 + $0x200] sm:$0xff] }
  0x49   :  { %2228 = vmatprep.subr.bf16.mxu0 %v14462_v63  ;;  %3000 = vmatprep.subr.bf16.mxu1 %v14464_v0  ;;  %v14501_v63 = vld [vmem:[%s22155_s2 + $0x208] ss:$16 sps:$4 sm:$0xff]   ;;  %v14503_v0 = vld [vmem:[%s22155_s2 + $0x20c] ss:$16 sps:$4 sm:$0xff]   ;;  %v562_v11 = vadd.f32 %v338_v3, %v114_v62  ;;  %v14518_v62 = vld [vmem:[%s22155_s2 + $0x344] ss:$16 sps:$4 sm:$0xff]  }
  0x4a   :  { %v373_v3 = vld [vmem:[%s22154_s1 + $0x318] sm:$0xff]  ;;  %v14527_v8 = vld [vmem:[%s22155_s2 + $0x364] ss:$16 sps:$4 sm:$0xff]  }
  0x4c   :  { %2229 = vmatpush1.bf16.msra.mxu0 %v14466_v1  ;;  %3001 = vmatpush1.bf16.msra.mxu1 %v14467_v2  ;;  %v744_v1 = vpack.c.bf16 %v548_v53, %v541_v52  ;;  %v331_v2 = vld [vmem:[%s22154_s1 + $0x1c8] sm:$0xff]  ;;  %v568_v52 = vadd.f32 %v344_v38, %v120_v36  ;;  %v162_v38 = vld [vmem:[%s22153_s0 + $0x380] sm:$0xff] }
  0x4d   :  { %2230 = vmatprep.subr.bf16.mxu0 %v14468_v4  ;;  %3002 = vmatprep.subr.bf16.mxu1 %v14470_v5  ;;  %v14486_v4 = vld [vmem:[%s22155_s2 + $0x280] ss:$16 sps:$4 sm:$0xff]   ;;  %v14506_v5 = vld [vmem:[%s22155_s2 + $0x22c] ss:$16 sps:$4 sm:$0xff]   ;;  %v555_v10 = vadd.f32 %v331_v2, %v107_v61 }
  0x4e   :  { %v365_v61 = vld [vmem:[%s22154_s1 + $0x2d8] sm:$0xff]  ;;  %v156_v2 = vld [vmem:[%s22153_s0 + $0x350] sm:$0xff] }
  0x4f   :  { %v751_v21 = vpack.c.bf16 %v562_v11, %v555_v10 }
  0x50   :  { %2231 = vmatpush1.bf16.msra.mxu0 %v14472_v15  ;;  %3003 = vmatpush1.bf16.msra.mxu1 %v14473_v16  ;;  %v113_v15 = vld [vmem:[%s22153_s0 + $0x1f8] sm:$0xff] }
  0x51   :  { %2393 = vmatprep.subr.bf16.mxu0 %v14476_v19  ;;  %3165 = vmatprep.subr.bf16.mxu1 %v14503_v0  ;;  %v14510_v16 = vld [vmem:[%s22155_s2 + $0x248] ss:$16 sps:$4 sm:$0xff]   ;;  %v330_v19 = vld [vmem:[%s22154_s1 + $0x1c0] sm:$0xff] }
  0x52   :  { %v554_v30 = vadd.f32 %v330_v19, %v106_v14  ;;  %v379_v19 = vld [vmem:[%s22154_s1 + $0x348] sm:$0xff] }
  0x53   :  { %2233 = vmatmul.mubr.bf16.vlgmr.msra.gmra.mrb[0].mxu0 %v722_v23  ;;  %3005 = vmatmul.mubr.bf16.vlgmr.msra.gmra.mrb[0].mxu1 %v722_v23  ;;  %v128_v23 = vld [vmem:[%s22153_s0 + $0x270] sm:$0xff] }
  0x54   :  { %2394 = vmatpush1.bf16.msra.mxu0 %v14474_v20  ;;  %2242 = vmatprep.mubr.bf16.mxu0 %v730_v27  ;;  %v337_v20 = vld [vmem:[%s22154_s1 + $0x1f8] sm:$0xff]  ;;  %v576_v33 = vadd.f32 %v352_v25, %v128_v23  ;;  %v163_v23 = vld [vmem:[%s22153_s0 + $0x388] sm:$0xff] }
  0x55   :  { %3014 = vmatprep.mubr.bf16.mxu1 %v730_v27  ;;  %2395 = vmatprep.subr.bf16.mxu0 %v14479_v26  ;;  %v14492_v26 = vld [vmem:[%s22155_s2 + $0x2c0] ss:$16 sps:$4 sm:$0xff]   ;;  %v14515_v27 = vld [vmem:[%s22155_s2 + $0x26c] ss:$16 sps:$4 sm:$0xff]   ;;  %v561_v31 = vadd.f32 %v337_v20, %v113_v15  ;;  %v14536_v20 = vld [vmem:[%s22155_s2 + $0x384] ss:$16 sps:$4 sm:$0xff]  }
  0x56   :  { %3166 = vmatpush1.bf16.msra.mxu1 %v14501_v63  ;;  %v758_v45 = vpack.c.bf16 %v576_v33, %v569_v32  ;;  %v14528_v63 = vld [vmem:[%s22155_s2 + $0x2c8] ss:$16 sps:$4 sm:$0xff]   ;;  %v14525_v15 = vld [vmem:[%s22155_s2 + $0x360] ss:$16 sps:$4 sm:$0xff]  }
  0x57   :  { %3167 = vmatprep.subr.bf16.mxu1 %v14506_v5  ;;  %v750_v41 = vpack.c.bf16 %v561_v31, %v554_v30  ;;  %v387_v25 = vld [vmem:[%s22154_s1 + $0x388] sm:$0xff]  ;;  %v14545_v31 = vld [vmem:[%s22155_s2 + $0x3a4] ss:$16 sps:$4 sm:$0xff]  }
  0x58   :  { %2396 = vmatpush1.bf16.msra.mxu0 %v14477_v34  ;;  %v14495_v34 = vld [vmem:[%s22155_s2 + $0x2e0] ss:$16 sps:$4 sm:$0xff]   ;;  %v14540_v30 = vld [vmem:[%s22155_s2 + $0x328] ss:$16 sps:$4 sm:$0xff]  }
  0x59   :  { %2397 = vmatprep.subr.bf16.mxu0 %v14482_v37  ;;  %v127_v37 = vld [vmem:[%s22153_s0 + $0x268] sm:$0xff] }
  0x5a   :  { %3168 = vmatpush1.bf16.msra.mxu1 %v14504_v7  ;;  %v575_v53 = vadd.f32 %v351_v42, %v127_v37  ;;  %v14533_v7 = vld [vmem:[%s22155_s2 + $0x2ec] ss:$16 sps:$4 sm:$0xff]   ;;  %v14543_v37 = vld [vmem:[%s22155_s2 + $0x3a0] ss:$16 sps:$4 sm:$0xff]   ;;  %v14546_v42 = vld [vmem:[%s22155_s2 + $0x348] ss:$16 sps:$4 sm:$0xff]  }
  0x5b   :  { %2243 = vmatmul.mubr.bf16.gmra.mrb[4].mxu0 %v729_v40  ;;  %3015 = vmatmul.mubr.bf16.gmra.mrb[4].mxu1 %v729_v40  ;;  %v14519_v40 = vld [vmem:[%s22155_s2 + $0x288] ss:$16 sps:$4 sm:$0xff]  }
  0x5c   :  { %2252 = vmatprep.mubr.bf16.mxu0 %v737_v44  ;;  %3024 = vmatprep.mubr.bf16.mxu1 %v737_v44  ;;  %v142_v44 = vld [vmem:[%s22153_s0 + $0x2e0] sm:$0xff]  ;;  %v757_v0 = vpack.c.bf16 %v575_v53, %v568_v52  ;;  %v14549_v52 = vld [vmem:[%s22155_s2 + $0x368] ss:$16 sps:$4 sm:$0xff]  }
  0x5d   :  { %2398 = vmatpush1.bf16.msra.mxu0 %v14480_v43  ;;  %3169 = vmatprep.subr.bf16.mxu1 %v14512_v17  ;;  %v135_v43 = vld [vmem:[%s22153_s0 + $0x2a8] sm:$0xff]  ;;  %v590_v56 = vadd.f32 %v366_v47, %v142_v44 }
  0x5e   :  { %2399 = vmatprep.subr.bf16.mxu0 %v14485_v49  ;;  %3170 = vmatpush1.bf16.msra.mxu1 %v14510_v16  ;;  %v14524_v49 = vld [vmem:[%s22155_s2 + $0x2ac] ss:$16 sps:$4 sm:$0xff]   ;;  %v583_v55 = vadd.f32 %v359_v46, %v135_v43  ;;  %v148_v16 = vld [vmem:[%s22153_s0 + $0x310] sm:$0xff] }
  0x5f   :  { %3171 = vmatprep.subr.bf16.mxu1 %v14515_v27  ;;  %v155_v17 = vld [vmem:[%s22153_s0 + $0x348] sm:$0xff]  ;;  %v14554_v43 = vld [vmem:[%s22155_s2 + $0x3c4] ss:$16 sps:$4 sm:$0xff]  }
  0x60   :  { %v765_v5 = vpack.c.bf16 %v590_v56, %v583_v55  ;;  %v603_v33 = vadd.f32 %v379_v19, %v155_v17  ;;  %v184_v46 = vld [vmem:[%s22153_s0 + $0x430] sm:$0xff]  ;;  %v14557_v55 = vld [vmem:[%s22155_s2 + $0x38c] ss:$16 sps:$4 sm:$0xff]   ;;  %v414_v19 = vld [vmem:[%s22154_s1 + $0x460] sm:$0xff] }
  0x61   :  { %2400 = vmatpush1.bf16.msra.mxu0 %v14483_v54  ;;  %v14530_v54 = vld [vmem:[%s22155_s2 + $0x2cc] ss:$16 sps:$4 sm:$0xff]  }
  0x62   :  { %2401 = vmatprep.subr.bf16.mxu0 %v14488_v59  ;;  %3172 = vmatpush1.bf16.msra.mxu1 %v14513_v29  ;;  %v141_v59 = vld [vmem:[%s22153_s0 + $0x2d8] sm:$0xff] }
  0x63   :  { %2253 = vmatmul.mubr.bf16.gmra.mrb[8].mxu0 %v736_v60  ;;  %3025 = vmatmul.mubr.bf16.gmra.mrb[8].mxu1 %v736_v60  ;;  %v358_v60 = vld [vmem:[%s22154_s1 + $0x2a0] sm:$0xff]  ;;  %v589_v11 = vadd.f32 %v365_v61, %v141_v59  ;;  %v14542_v29 = vld [vmem:[%s22155_s2 + $0x32c] ss:$16 sps:$4 sm:$0xff]   ;;  %v14555_v61 = vld [vmem:[%s22155_s2 + $0x388] ss:$16 sps:$4 sm:$0xff]  }
  0x64   :  { %2262 = vmatprep.mubr.bf16.mxu0 %v744_v1  ;;  %3034 = vmatprep.mubr.bf16.mxu1 %v744_v1  ;;  %v149_v1 = vld [vmem:[%s22153_s0 + $0x318] sm:$0xff]  ;;  %v582_v10 = vadd.f32 %v358_v60, %v134_v58  ;;  %v14561_v58 = vld [vmem:[%s22155_s2 + $0x3e0] ss:$16 sps:$4 sm:$0xff]   ;;  %v14563_v59 = vld [vmem:[%s22155_s2 + $0x3e4] ss:$16 sps:$4 sm:$0xff]  }
  0x65   :  { %2402 = vmatpush1.bf16.msra.mxu0 %v14486_v4  ;;  %3173 = vmatprep.subr.bf16.mxu1 %v14521_v35  ;;  %v380_v4 = vld [vmem:[%s22154_s1 + $0x350] sm:$0xff]  ;;  %v611_v35 = vadd.f32 %v387_v25, %v163_v23 }
  0x66   :  { %2403 = vmatprep.subr.bf16.mxu0 %v14491_v6  ;;  %3174 = vmatpush1.bf16.msra.mxu1 %v14519_v40  ;;  %v14516_v6 = vld [vmem:[%s22155_s2 + $0x340] ss:$16 sps:$4 sm:$0xff]   ;;  %v604_v14 = vadd.f32 %v380_v4, %v156_v2  ;;  %v764_v22 = vpack.c.bf16 %v589_v11, %v582_v10  ;;  %v407_v2 = vld [vmem:[%s22154_s1 + $0x428] sm:$0xff] }
  0x67   :  { %3175 = vmatprep.subr.bf16.mxu1 %v14524_v49  ;;  %v386_v40 = vld [vmem:[%s22154_s1 + $0x380] sm:$0xff]  ;;  %v408_v49 = vld [vmem:[%s22154_s1 + $0x430] sm:$0xff]  ;;  %v14566_v11 = vld [vmem:[%s22155_s2 + $0x3cc] ss:$16 sps:$4 sm:$0xff]  }
  0x68   :  { %v610_v53 = vadd.f32 %v386_v40, %v162_v38  ;;  %v176_v60 = vld [vmem:[%s22153_s0 + $0x3f0] sm:$0xff]  ;;  %v198_v4 = vld [vmem:[%s22153_s0 + $0x4a0] sm:$0xff]  ;;  %v219_v38 = vld [vmem:[%s22153_s0 + $0x548] sm:$0xff] }
  0x69   :  { %2404 = vmatpush1.bf16.msra.mxu0 %v14489_v12  ;;  %v14539_v12 = vld [vmem:[%s22155_s2 + $0x30c] ss:$16 sps:$4 sm:$0xff]   ;;  %v212_v23 = vld [vmem:[%s22153_s0 + $0x510] sm:$0xff] }
  0x6a   :  { %2405 = vmatprep.subr.bf16.mxu0 %v14494_v13  ;;  %3176 = vmatpush1.bf16.msra.mxu1 %v14522_v51  ;;  %v597_v13 = vadd.f32 %v373_v3, %v149_v1  ;;  %v14552_v51 = vld [vmem:[%s22155_s2 + $0x3c0] ss:$16 sps:$4 sm:$0xff]   ;;  %v191_v3 = vld [vmem:[%s22153_s0 + $0x468] sm:$0xff] }
  0x6b   :  { %2263 = vmatmul.mubr.bf16.gmra.mrb[12].mxu0 %v743_v18  ;;  %3035 = vmatmul.mubr.bf16.gmra.mrb[12].mxu1 %v743_v18  ;;  %v372_v18 = vld [vmem:[%s22154_s1 + $0x310] sm:$0xff]  ;;  %v443_v40 = vld [vmem:[%s22154_s1 + $0x548] sm:$0xff] }
  0x6c   :  { %2272 = vmatprep.mubr.bf16.mxu0 %v751_v21  ;;  %3044 = vmatprep.mubr.bf16.mxu1 %v751_v21  ;;  %v14537_v21 = vld [vmem:[%s22155_s2 + $0x308] ss:$16 sps:$4 sm:$0xff]   ;;  %v772_v27 = vpack.c.bf16 %v604_v14, %v597_v13  ;;  %v596_v32 = vadd.f32 %v372_v18, %v148_v16  ;;  %v436_v25 = vld [vmem:[%s22154_s1 + $0x510] sm:$0xff] }
  0x6d   :  { %2406 = vmatpush1.bf16.msra.mxu0 %v14492_v26  ;;  %3177 = vmatprep.subr.bf16.mxu1 %v14530_v54  ;;  %v394_v26 = vld [vmem:[%s22154_s1 + $0x3c0] sm:$0xff]  ;;  %v14564_v16 = vld [vmem:[%s22155_s2 + $0x3c8] ss:$16 sps:$4 sm:$0xff]  }
  0x6e   :  { %2407 = vmatprep.subr.bf16.mxu0 %v14497_v28  ;;  %3178 = vmatpush1.bf16.msra.mxu1 %v14528_v63  ;;  %v14534_v28 = vld [vmem:[%s22155_s2 + $0x380] ss:$16 sps:$4 sm:$0xff]   ;;  %v618_v36 = vadd.f32 %v394_v26, %v170_v24  ;;  %v771_v44 = vpack.c.bf16 %v603_v33, %v596_v32  ;;  %v183_v63 = vld [vmem:[%s22153_s0 + $0x428] sm:$0xff]  ;;  %v197_v18 = vld [vmem:[%s22153_s0 + $0x498] sm:$0xff] }
  0x6f   :  { %3179 = vmatprep.subr.bf16.mxu1 %v14533_v7  ;;  %v14560_v7 = vld [vmem:[%s22155_s2 + $0x3ac] ss:$16 sps:$4 sm:$0xff]   ;;  %v631_v10 = vadd.f32 %v407_v2, %v183_v63  ;;  %v204_v33 = vld [vmem:[%s22153_s0 + $0x4d0] sm:$0xff] }
  0x70   :  { %v779_v47 = vpack.c.bf16 %v618_v36, %v611_v35  ;;  %v429_v24 = vld [vmem:[%s22154_s1 + $0x4d8] sm:$0xff]  ;;  %v428_v36 = vld [vmem:[%s22154_s1 + $0x4d0] sm:$0xff]  ;;  %v247_v2 = vld [vmem:[%s22153_s0 + $0x628] sm:$0xff] }
  0x71   :  { %2408 = vmatpush1.bf16.msra.mxu0 %v14495_v34  ;;  %v14548_v34 = vld [vmem:[%s22155_s2 + $0x34c] ss:$16 sps:$4 sm:$0xff]  }
  0x72   :  { %2409 = vmatprep.subr.bf16.mxu0 %v14500_v39  ;;  %3180 = vmatpush1.bf16.msra.mxu1 %v14531_v9  ;;  %v169_v39 = vld [vmem:[%s22153_s0 + $0x3b8] sm:$0xff] }
  0x73   :  { %2273 = vmatmul.mubr.bf16.gmra.mrb[16].mxu0 %v750_v41  ;;  %3045 = vmatmul.mubr.bf16.gmra.mrb[16].mxu1 %v750_v41  ;;  %v393_v41 = vld [vmem:[%s22154_s1 + $0x3b8] sm:$0xff] }
  0x74   :  { %2282 = vmatprep.mubr.bf16.mxu0 %v758_v45  ;;  %3054 = vmatprep.mubr.bf16.mxu1 %v758_v45  ;;  %v177_v45 = vld [vmem:[%s22153_s0 + $0x3f8] sm:$0xff]  ;;  %v617_v54 = vadd.f32 %v393_v41, %v169_v39  ;;  %v226_v39 = vld [vmem:[%s22153_s0 + $0x580] sm:$0xff] }
  0x75   :  { %2410 = vmatpush1.bf16.msra.mxu0 %v14498_v48  ;;  %3181 = vmatprep.subr.bf16.mxu1 %v14539_v12  ;;  %v401_v48 = vld [vmem:[%s22154_s1 + $0x3f8] sm:$0xff]  ;;  %v14572_v12 = vld [vmem:[%s22155_s2 + $0x404] ss:$16 sps:$4 sm:$0xff]  }
  0x76   :  { %2411 = vmatprep.subr.bf16.mxu0 %v14509_v50  ;;  %3182 = vmatpush1.bf16.msra.mxu1 %v14537_v21  ;;  %v14551_v50 = vld [vmem:[%s22155_s2 + $0x36c] ss:$16 sps:$4 sm:$0xff]   ;;  %v625_v56 = vadd.f32 %v401_v48, %v177_v45  ;;  %v450_v41 = vld [vmem:[%s22154_s1 + $0x580] sm:$0xff] }
  0x77   :  { %3183 = vmatprep.subr.bf16.mxu1 %v14542_v29  ;;  %v421_v21 = vld [vmem:[%s22154_s1 + $0x498] sm:$0xff]  ;;  %v674_v45 = vadd.f32 %v450_v41, %v226_v39  ;;  %v52_v39 = vld [vmem:[%s22153_s0 + $0x10] sm:$0xff] }
  0x78   :  { %v14569_v26 = vld [vmem:[%s22155_s2 + $0x3ec] ss:$16 sps:$4 sm:$0xff]   ;;  %v645_v29 = vadd.f32 %v421_v21, %v197_v18  ;;  %v268_v18 = vld [vmem:[%s22153_s0 + $0x6d0] sm:$0xff] }
  0x79   :  { %2412 = vmatpush1.bf16.msra.mxu0 %v14507_v57  ;;  %v632_v57 = vadd.f32 %v408_v49, %v184_v46  ;;  %v225_v48 = vld [vmem:[%s22153_s0 + $0x578] sm:$0xff]  ;;  %v276_v41 = vld [vmem:[%s22154_s1 + $0x10] sm:$0xff] }
  0x7a   :  { %2413 = vmatprep.subr.bf16.mxu0 %v14518_v62  ;;  %3184 = vmatpush1.bf16.msra.mxu1 %v14540_v30  ;;  %v778_v62 = vpack.c.bf16 %v617_v54, %v610_v53  ;;  %v240_v53 = vld [vmem:[%s22153_s0 + $0x5f0] sm:$0xff]  ;;  %v457_v54 = vld [vmem:[%s22154_s1 + $0x5b8] sm:$0xff] }
  0x7b   :  { %2283 = vmatmul.mubr.bf16.gmra.mrb[20].mxu0 %v757_v0  ;;  %3055 = vmatmul.mubr.bf16.gmra.mrb[20].mxu1 %v757_v0  ;;  %v400_v0 = vld [vmem:[%s22154_s1 + $0x3f0] sm:$0xff]  ;;  %v786_v1 = vpack.c.bf16 %v632_v57, %v625_v56 }
  0x7c   :  { %2292 = vmatprep.mubr.bf16.mxu0 %v765_v5  ;;  %3064 = vmatprep.mubr.bf16.mxu1 %v765_v5  ;;  %v415_v5 = vld [vmem:[%s22154_s1 + $0x468] sm:$0xff]  ;;  %v624_v9 = vadd.f32 %v400_v0, %v176_v60  ;;  %v456_v0 = vld [vmem:[%s22154_s1 + $0x5b0] sm:$0xff] }
  0x7d   :  { %2414 = vmatpush1.bf16.msra.mxu0 %v14516_v6  ;;  %3185 = vmatprep.subr.bf16.mxu1 %v14548_v34  ;;  %v422_v6 = vld [vmem:[%s22154_s1 + $0x4a0] sm:$0xff]  ;;  %v639_v13 = vadd.f32 %v415_v5, %v191_v3  ;;  %v211_v34 = vld [vmem:[%s22153_s0 + $0x508] sm:$0xff] }
  0x7e   :  { %2415 = vmatprep.subr.bf16.mxu0 %v14527_v8  ;;  %3186 = vmatpush1.bf16.msra.mxu1 %v14546_v42  ;;  %v14558_v8 = vld [vmem:[%s22155_s2 + $0x3a8] ss:$16 sps:$4 sm:$0xff]   ;;  %v646_v14 = vadd.f32 %v422_v6, %v198_v4  ;;  %v785_v17 = vpack.c.bf16 %v631_v10, %v624_v9  ;;  %v652_v42 = vadd.f32 %v428_v36, %v204_v33  ;;  %v254_v3 = vld [vmem:[%s22153_s0 + $0x660] sm:$0xff]  ;;  %v14599_v10 = vld [vmem:[%s22155_s2 + $0x40c] ss:$16 sps:$4 sm:$0xff]  }
  0x7f   :  { %3187 = vmatprep.subr.bf16.mxu1 %v14551_v50  ;;  %v442_v50 = vld [vmem:[%s22154_s1 + $0x540] sm:$0xff]  ;;  %v471_v4 = vld [vmem:[%s22154_s1 + $0x628] sm:$0xff]  ;;  %v277_v33 = vld [vmem:[%s22154_s1 + $0x18] sm:$0xff] }
  0x80   :  { %v478_v5 = vld [vmem:[%s22154_s1 + $0x660] sm:$0xff] }
  0x81   :  { %2416 = vmatpush1.bf16.msra.mxu0 %v14525_v15  ;;  %v190_v15 = vld [vmem:[%s22153_s0 + $0x460] sm:$0xff]  ;;  %v702_v9 = vadd.f32 %v478_v5, %v254_v3 }
  0x82   :  { %2417 = vmatprep.subr.bf16.mxu0 %v14536_v20  ;;  %3188 = vmatpush1.bf16.msra.mxu1 %v14549_v52  ;;  %v793_v20 = vpack.c.bf16 %v646_v14, %v639_v13  ;;  %v233_v52 = vld [vmem:[%s22153_s0 + $0x5b8] sm:$0xff]  ;;  %v470_v14 = vld [vmem:[%s22154_s1 + $0x620] sm:$0xff] }
  0x83   :  { %2293 = vmatmul.mubr.bf16.gmra.mrb[24].mxu0 %v764_v22  ;;  %3065 = vmatmul.mubr.bf16.gmra.mrb[24].mxu1 %v764_v22  ;;  %v205_v22 = vld [vmem:[%s22153_s0 + $0x4d8] sm:$0xff]  ;;  %v14573_v5 = vld [vmem:[%s22155_s2 + $0x420] ss:$16 sps:$4 sm:$0xff]  }
  0x84   :  { %2302 = vmatprep.mubr.bf16.mxu0 %v772_v27  ;;  %3074 = vmatprep.mubr.bf16.mxu1 %v772_v27  ;;  %v14567_v27 = vld [vmem:[%s22155_s2 + $0x3e8] ss:$16 sps:$4 sm:$0xff]   ;;  %v653_v30 = vadd.f32 %v429_v24, %v205_v22 }
  0x85   :  { %2418 = vmatpush1.bf16.msra.mxu0 %v14534_v28  ;;  %3189 = vmatprep.subr.bf16.mxu1 %v14557_v55  ;;  %v638_v28 = vadd.f32 %v414_v19, %v190_v15  ;;  %v464_v55 = vld [vmem:[%s22154_s1 + $0x5f0] sm:$0xff]  ;;  %v253_v13 = vld [vmem:[%s22153_s0 + $0x658] sm:$0xff] }
  0x86   :  { %2419 = vmatprep.subr.bf16.mxu0 %v14545_v31  ;;  %3190 = vmatpush1.bf16.msra.mxu1 %v14555_v61  ;;  %v660_v31 = vadd.f32 %v436_v25, %v212_v23  ;;  %v232_v61 = vld [vmem:[%s22153_s0 + $0x5b0] sm:$0xff]  ;;  %v477_v15 = vld [vmem:[%s22154_s1 + $0x658] sm:$0xff] }
  0x87   :  { %3191 = vmatprep.subr.bf16.mxu1 %v14560_v7  ;;  %v792_v32 = vpack.c.bf16 %v645_v29, %v638_v28  ;;  %v680_v6 = vadd.f32 %v456_v0, %v232_v61  ;;  %v485_v19 = vld [vmem:[%s22154_s1 + $0x698] sm:$0xff]  ;;  %v701_v22 = vadd.f32 %v477_v15, %v253_v13  ;;  %v260_v25 = vld [vmem:[%s22153_s0 + $0x690] sm:$0xff]  ;;  %v491_v29 = vld [vmem:[%s22154_s1 + $0x6c8] sm:$0xff] }
  0x88   :  { %v800_v35 = vpack.c.bf16 %v660_v31, %v653_v30  ;;  %v53_v30 = vld [vmem:[%s22153_s0 + $0x18] sm:$0xff]  ;;  %v60_v31 = vld [vmem:[%s22153_s0 + $0x50] sm:$0xff] }
  0x89   :  { %2420 = vmatpush1.bf16.msra.mxu0 %v14543_v37  ;;  %v435_v37 = vld [vmem:[%s22154_s1 + $0x508] sm:$0xff]  ;;  %v81_v61 = vld [vmem:[%s22153_s0 + $0xf8] sm:$0xff]  ;;  %v312_v0 = vld [vmem:[%s22154_s1 + $0x130] sm:$0xff] }
  0x8a   :  { %2421 = vmatprep.subr.bf16.mxu0 %v14554_v43  ;;  %3192 = vmatpush1.bf16.msra.mxu1 %v14558_v8  ;;  %v659_v43 = vadd.f32 %v435_v37, %v211_v34  ;;  %v695_v8 = vadd.f32 %v471_v4, %v247_v2  ;;  %v284_v34 = vld [vmem:[%s22154_s1 + $0x50] sm:$0xff]  ;;  %v501_v37 = vadd.f32 %v277_v33, %v53_v30  ;;  %v14602_v4 = vld [vmem:[%s22155_s2 + $0x42c] ss:$16 sps:$4 sm:$0xff]   ;;  %v94_v30 = vld [vmem:[%s22153_s0 + $0x160] sm:$0xff] }
  0x8b   :  { %2303 = vmatmul.mubr.bf16.gmra.mrb[28].mxu0 %v771_v44  ;;  %3075 = vmatmul.mubr.bf16.gmra.mrb[28].mxu1 %v771_v44  ;;  %v667_v44 = vadd.f32 %v443_v40, %v219_v38  ;;  %v508_v38 = vadd.f32 %v284_v34, %v60_v31  ;;  %v59_v40 = vld [vmem:[%s22153_s0 + $0x48] sm:$0xff]  ;;  %v304_v13 = vld [vmem:[%s22154_s1 + $0xf0] sm:$0xff]  ;;  %v101_v31 = vld [vmem:[%s22153_s0 + $0x198] sm:$0xff] }
  0x8c   :  { %2312 = vmatprep.mubr.bf16.mxu0 %v779_v47  ;;  %3084 = vmatprep.mubr.bf16.mxu1 %v779_v47  ;;  %v799_v46 = vpack.c.bf16 %v659_v43, %v652_v42  ;;  %v218_v47 = vld [vmem:[%s22153_s0 + $0x540] sm:$0xff]  ;;  %v283_v42 = vld [vmem:[%s22154_s1 + $0x48] sm:$0xff] }
  0x8d   :  { %2422 = vmatpush1.bf16.msra.mxu0 %v14552_v51  ;;  %3193 = vmatprep.subr.bf16.mxu1 %v14566_v11  ;;  %v807_v49 = vpack.c.bf16 %v674_v45, %v667_v44  ;;  %v449_v51 = vld [vmem:[%s22154_s1 + $0x578] sm:$0xff]  ;;  %v666_v56 = vadd.f32 %v442_v50, %v218_v47  ;;  %v246_v11 = vld [vmem:[%s22153_s0 + $0x620] sm:$0xff]  ;;  %v67_v44 = vld [vmem:[%s22153_s0 + $0x88] sm:$0xff]  ;;  %v507_v50 = vadd.f32 %v283_v42, %v59_v40 }
  0x8e   :  { %2423 = vmatprep.subr.bf16.mxu0 %v14563_v59  ;;  %3194 = vmatpush1.bf16.msra.mxu1 %v14564_v16  ;;  %v673_v57 = vadd.f32 %v449_v51, %v225_v48  ;;  %v688_v59 = vadd.f32 %v464_v55, %v240_v53  ;;  %v821_v16 = vpack.c.bf16 %v702_v9, %v695_v8  ;;  %v74_v45 = vld [vmem:[%s22153_s0 + $0xc0] sm:$0xff]  ;;  %v291_v47 = vld [vmem:[%s22154_s1 + $0x88] sm:$0xff]  ;;  %v73_v55 = vld [vmem:[%s22153_s0 + $0xb8] sm:$0xff] }
  0x8f   :  { %3195 = vmatprep.subr.bf16.mxu1 %v14569_v26  ;;  %v694_v21 = vadd.f32 %v470_v14, %v246_v11  ;;  %v267_v26 = vld [vmem:[%s22153_s0 + $0x6c8] sm:$0xff]  ;;  %v298_v48 = vld [vmem:[%s22154_s1 + $0xc0] sm:$0xff]  ;;  %v515_v51 = vadd.f32 %v291_v47, %v67_v44  ;;  %v80_v9 = vld [vmem:[%s22153_s0 + $0xf0] sm:$0xff] }
  0x90   :  { %v806_v60 = vpack.c.bf16 %v673_v57, %v666_v56  ;;  %v715_v36 = vadd.f32 %v491_v29, %v267_v26  ;;  %v14570_v53 = vld [vmem:[%s22155_s2 + $0x400] ss:$16 sps:$4 sm:$0xff]   ;;  %v14578_v8 = vld [vmem:[%s22155_s2 + $0x444] ss:$16 sps:$4 sm:$0xff]   ;;  %v14600_v11 = vld [vmem:[%s22155_s2 + $0x428] ss:$16 sps:$4 sm:$0xff]  }
  0x91   :  { %2424 = vmatpush1.bf16.msra.mxu0 %v14561_v58  ;;  %v681_v58 = vadd.f32 %v457_v54, %v233_v52  ;;  %v820_v28 = vpack.c.bf16 %v701_v22, %v694_v21  ;;  %v522_v52 = vadd.f32 %v298_v48, %v74_v45  ;;  %v66_v54 = vld [vmem:[%s22153_s0 + $0x80] sm:$0xff]  ;;  %v311_v14 = vld [vmem:[%s22154_s1 + $0x128] sm:$0xff]  ;;  %v333_v40 = vld [vmem:[%s22154_s1 + $0x1d8] sm:$0xff] }
  0x92   :  { %2586 = vmatprep.subr.bf16.mxu0 %v14572_v12  ;;  %3196 = vmatpush1.bf16.msra.mxu1 %v14567_v27  ;;  %v484_v27 = vld [vmem:[%s22154_s1 + $0x690] sm:$0xff]  ;;  %v290_v56 = vld [vmem:[%s22154_s1 + $0x80] sm:$0xff]  ;;  %v14608_v21 = vld [vmem:[%s22155_s2 + $0x44c] ss:$16 sps:$4 sm:$0xff]  }
  0x93   :  { %2313 = vmatmul.mubr.bf16.gmra.mrb[32].mxu0 %v778_v62  ;;  %3085 = vmatmul.mubr.bf16.gmra.mrb[32].mxu1 %v778_v62  ;;  %v239_v62 = vld [vmem:[%s22153_s0 + $0x5e8] sm:$0xff]  ;;  %v814_v63 = vpack.c.bf16 %v688_v59, %v681_v58  ;;  %v297_v58 = vld [vmem:[%s22154_s1 + $0xb8] sm:$0xff]  ;;  %v14575_v59 = vld [vmem:[%s22155_s2 + $0x424] ss:$16 sps:$4 sm:$0xff]   ;;  %v514_v2 = vadd.f32 %v290_v56, %v66_v54 }
  0x94   :  { %2322 = vmatprep.mubr.bf16.mxu0 %v786_v1  ;;  %3094 = vmatprep.mubr.bf16.mxu1 %v786_v1  ;;  %v463_v1 = vld [vmem:[%s22154_s1 + $0x5e8] sm:$0xff]  ;;  %v521_v3 = vadd.f32 %v297_v58, %v73_v55  ;;  %v14581_v22 = vld [vmem:[%s22155_s2 + $0x464] ss:$16 sps:$4 sm:$0xff]   ;;  %v14579_v29 = vld [vmem:[%s22155_s2 + $0x460] ss:$16 sps:$4 sm:$0xff]  }
  0x95   :  { %v687_v7 = vadd.f32 %v463_v1, %v239_v62  ;;  %3358 = vmatprep.subr.bf16.mxu1 %v14599_v10  ;;  %v88_v62 = vld [vmem:[%s22153_s0 + $0x130] sm:$0xff]  ;;  %v14597_v1 = vld [vmem:[%s22155_s2 + $0x408] ss:$16 sps:$4 sm:$0xff]   ;;  %v14611_v26 = vld [vmem:[%s22155_s2 + $0x46c] ss:$16 sps:$4 sm:$0xff]  }
  0x96   :  { %v87_v10 = vld [vmem:[%s22153_s0 + $0x128] sm:$0xff]  ;;  %v14584_v33 = vld [vmem:[%s22155_s2 + $0x484] ss:$16 sps:$4 sm:$0xff]   ;;  %v14582_v42 = vld [vmem:[%s22155_s2 + $0x480] ss:$16 sps:$4 sm:$0xff]  }
  0x97   :  { %v813_v12 = vpack.c.bf16 %v687_v7, %v680_v6  ;;  %v536_v7 = vadd.f32 %v312_v0, %v88_v62  ;;  %v14609_v34 = vld [vmem:[%s22155_s2 + $0x468] ss:$16 sps:$4 sm:$0xff]   ;;  %v14587_v44 = vld [vmem:[%s22155_s2 + $0x4a4] ss:$16 sps:$4 sm:$0xff]   ;;  %v14620_v48 = vld [vmem:[%s22155_s2 + $0x4ac] ss:$16 sps:$4 sm:$0xff]  }
  0x98   :  { %v14615_v45 = vld [vmem:[%s22155_s2 + $0x488] ss:$16 sps:$4 sm:$0xff]   ;;  %v332_v54 = vld [vmem:[%s22154_s1 + $0x1d0] sm:$0xff] }
  0x99   :  { %v14590_v55 = vld [vmem:[%s22155_s2 + $0x4c4] ss:$16 sps:$4 sm:$0xff]   ;;  %v14618_v56 = vld [vmem:[%s22155_s2 + $0x4a8] ss:$16 sps:$4 sm:$0xff]   ;;  %v14588_v0 = vld [vmem:[%s22155_s2 + $0x4c0] ss:$16 sps:$4 sm:$0xff]  }
  0x9a   :  { %v339_v58 = vld [vmem:[%s22154_s1 + $0x208] sm:$0xff] }
  0x9b   :  { %2323 = vmatmul.mubr.bf16.gmra.mrb[36].mxu0 %v785_v17  ;;  %3095 = vmatmul.mubr.bf16.gmra.mrb[36].mxu1 %v785_v17  ;;  %v261_v17 = vld [vmem:[%s22153_s0 + $0x698] sm:$0xff]  ;;  %v347_v62 = vld [vmem:[%s22154_s1 + $0x248] sm:$0xff] }
  0x9c   :  { %2332 = vmatprep.mubr.bf16.mxu0 %v793_v20  ;;  %3104 = vmatprep.mubr.bf16.mxu1 %v793_v20  ;;  %v492_v20 = vld [vmem:[%s22154_s1 + $0x6d0] sm:$0xff]  ;;  %v709_v23 = vadd.f32 %v485_v19, %v261_v17  ;;  %v95_v17 = vld [vmem:[%s22153_s0 + $0x168] sm:$0xff] }
  0x9d   :  { %v716_v24 = vadd.f32 %v492_v20, %v268_v18  ;;  %v102_v18 = vld [vmem:[%s22153_s0 + $0x1a0] sm:$0xff]  ;;  %v319_v19 = vld [vmem:[%s22154_s1 + $0x168] sm:$0xff] }
  0x9e   :  { %v326_v20 = vld [vmem:[%s22154_s1 + $0x1a0] sm:$0xff] }
  0xa3   :  { %2333 = vmatmul.mubr.bf16.gmra.mrb[40].mxu0 %v792_v32  ;;  %3105 = vmatmul.mubr.bf16.gmra.mrb[40].mxu1 %v792_v32  ;;  %v828_v32 = vpack.c.bf16 %v716_v24, %v709_v23  ;;  %v14606_v23 = vld [vmem:[%s22155_s2 + $0x448] ss:$16 sps:$4 sm:$0xff]   ;;  %v528_v24 = vadd.f32 %v304_v13, %v80_v9  ;;  %v14591_v9 = vld [vmem:[%s22155_s2 + $0x4e0] ss:$16 sps:$4 sm:$0xff]  }
  0xa4   :  { %2342 = vmatprep.mubr.bf16.mxu0 %v800_v35  ;;  %3114 = vmatprep.mubr.bf16.mxu1 %v800_v35  ;;  %v708_v35 = vadd.f32 %v484_v27, %v260_v25  ;;  %v535_v25 = vadd.f32 %v311_v14, %v87_v10  ;;  %v543_v27 = vadd.f32 %v319_v19, %v95_v17  ;;  %v122_v10 = vld [vmem:[%s22153_s0 + $0x240] sm:$0xff]  ;;  %v14627_v13 = vld [vmem:[%s22155_s2 + $0x4e8] ss:$16 sps:$4 sm:$0xff]   ;;  %v144_v19 = vld [vmem:[%s22153_s0 + $0x2f0] sm:$0xff] }
  0xa6   :  { %v827_v43 = vpack.c.bf16 %v715_v36, %v708_v35  ;;  %v738_v35 = vpack.c.bf16 %v535_v25, %v528_v24  ;;  %v325_v36 = vld [vmem:[%s22154_s1 + $0x198] sm:$0xff]  ;;  %v14605_v24 = vld [vmem:[%s22155_s2 + $0x524] ss:$16 sps:$4 sm:$0xff]  }
  0xa7   :  { %v549_v47 = vadd.f32 %v325_v36, %v101_v31  ;;  %v14633_v25 = vld [vmem:[%s22155_s2 + $0x508] ss:$16 sps:$4 sm:$0xff]   ;;  %v14603_v31 = vld [vmem:[%s22155_s2 + $0x520] ss:$16 sps:$4 sm:$0xff]   ;;  %v14614_v36 = vld [vmem:[%s22155_s2 + $0x544] ss:$16 sps:$4 sm:$0xff]  }
  0xab   :  { %2343 = vmatmul.mubr.bf16.gmra.mrb[44].mxu0 %v799_v46  ;;  %3115 = vmatmul.mubr.bf16.gmra.mrb[44].mxu1 %v799_v46  ;;  %v725_v46 = vpack.c.bf16 %v508_v38, %v501_v37  ;;  %v109_v37 = vld [vmem:[%s22153_s0 + $0x1d8] sm:$0xff]  ;;  %v116_v38 = vld [vmem:[%s22153_s0 + $0x210] sm:$0xff] }
  0xac   :  { %2352 = vmatprep.mubr.bf16.mxu0 %v807_v49  ;;  %3124 = vmatprep.mubr.bf16.mxu1 %v807_v49  ;;  %v500_v49 = vadd.f32 %v276_v41, %v52_v39  ;;  %v340_v41 = vld [vmem:[%s22154_s1 + $0x210] sm:$0xff] }
  0xae   :  { %v724_v57 = vpack.c.bf16 %v507_v50, %v500_v49  ;;  %v557_v49 = vadd.f32 %v333_v40, %v109_v37  ;;  %v564_v50 = vadd.f32 %v340_v41, %v116_v38  ;;  %v14636_v37 = vld [vmem:[%s22155_s2 + $0x528] ss:$16 sps:$4 sm:$0xff]   ;;  %v158_v40 = vld [vmem:[%s22153_s0 + $0x360] sm:$0xff] }
  0xaf   :  { %v375_v41 = vld [vmem:[%s22154_s1 + $0x328] sm:$0xff] }
  0xb3   :  { %2353 = vmatmul.mubr.bf16.gmra.mrb[48].mxu0 %v806_v60  ;;  %3125 = vmatmul.mubr.bf16.gmra.mrb[48].mxu1 %v806_v60  ;;  %v732_v60 = vpack.c.bf16 %v522_v52, %v515_v51  ;;  %v14585_v51 = vld [vmem:[%s22155_s2 + $0x4a0] ss:$16 sps:$4 sm:$0xff]  }
  0xb4   :  { %2362 = vmatprep.mubr.bf16.mxu0 %v814_v63  ;;  %3134 = vmatprep.mubr.bf16.mxu1 %v814_v63  ;;  %v305_v63 = vld [vmem:[%s22154_s1 + $0xf8] sm:$0xff]  ;;  %v108_v52 = vld [vmem:[%s22153_s0 + $0x1d0] sm:$0xff] }
  0xb5   :  { %v529_v6 = vadd.f32 %v305_v63, %v81_v61  ;;  %v753_v61 = vpack.c.bf16 %v564_v50, %v557_v49  ;;  %v354_v63 = vld [vmem:[%s22154_s1 + $0x280] sm:$0xff]  ;;  %v14647_v50 = vld [vmem:[%s22155_s2 + $0x56c] ss:$16 sps:$4 sm:$0xff]  }
  0xb7   :  { %v739_v15 = vpack.c.bf16 %v536_v7, %v529_v6  ;;  %v14629_v6 = vld [vmem:[%s22155_s2 + $0x4ec] ss:$16 sps:$4 sm:$0xff]  }
  0xbb   :  { %2363 = vmatmul.mubr.bf16.gmra.mrb[52].mxu0 %v813_v12  ;;  %3135 = vmatmul.mubr.bf16.gmra.mrb[52].mxu1 %v813_v12  ;;  %v731_v12 = vpack.c.bf16 %v521_v3, %v514_v2  ;;  %v14593_v2 = vld [vmem:[%s22155_s2 + $0x4e4] ss:$16 sps:$4 sm:$0xff]   ;;  %v14624_v3 = vld [vmem:[%s22155_s2 + $0x4c8] ss:$16 sps:$4 sm:$0xff]  }
  0xbc   :  { %2372 = vmatprep.mubr.bf16.mxu0 %v821_v16  ;;  %3144 = vmatprep.mubr.bf16.mxu1 %v821_v16  ;;  %v14576_v16 = vld [vmem:[%s22155_s2 + $0x440] ss:$16 sps:$4 sm:$0xff]  }
  0xc3   :  { %2373 = vmatmul.mubr.bf16.gmra.mrb[56].mxu0 %v820_v28  ;;  %3145 = vmatmul.mubr.bf16.gmra.mrb[56].mxu1 %v820_v28  ;;  %v550_v28 = vadd.f32 %v326_v20, %v102_v18  ;;  %v137_v18 = vld [vmem:[%s22153_s0 + $0x2b8] sm:$0xff] }
  0xc4   :  { %2382 = vmatprep.mubr.bf16.mxu0 %v828_v32  ;;  %3154 = vmatprep.mubr.bf16.mxu1 %v828_v32  ;;  %v318_v32 = vld [vmem:[%s22154_s1 + $0x160] sm:$0xff]  ;;  %v361_v20 = vld [vmem:[%s22154_s1 + $0x2b8] sm:$0xff] }
  0xc5   :  { %v746_v39 = vpack.c.bf16 %v550_v28, %v543_v27  ;;  %v14638_v28 = vld [vmem:[%s22155_s2 + $0x52c] ss:$16 sps:$4 sm:$0xff]  }
  0xcb   :  { %2383 = vmatmul.mubr.bf16.gmra.mrb[60].mxu0 %v827_v43  ;;  %3155 = vmatmul.mubr.bf16.gmra.mrb[60].mxu1 %v827_v43  ;;  %v14617_v43 = vld [vmem:[%s22155_s2 + $0x48c] ss:$16 sps:$4 sm:$0xff]  }
  0xcc   :  { %2425 = vmatprep.mubr.bf16.mxu0 %v725_v46  ;;  %3197 = vmatprep.mubr.bf16.mxu1 %v725_v46  ;;  %v542_v46 = vadd.f32 %v318_v32, %v94_v30  ;;  %v136_v32 = vld [vmem:[%s22153_s0 + $0x2b0] sm:$0xff] }
  0xd3   :  { %2426 = vmatmul.mubr.bf16.vlgmr.msra.gmra.mrb[0].mxu0 %v724_v57  ;;  %3198 = vmatmul.mubr.bf16.vlgmr.msra.gmra.mrb[0].mxu1 %v724_v57  ;;  %v745_v57 = vpack.c.bf16 %v549_v47, %v542_v46  ;;  %v14642_v46 = vld [vmem:[%s22155_s2 + $0x548] ss:$16 sps:$4 sm:$0xff]   ;;  %v14644_v47 = vld [vmem:[%s22155_s2 + $0x54c] ss:$16 sps:$4 sm:$0xff]  }
  0xd4   :  { %2587 = vmatpush1.bf16.msra.mxu0 %v14570_v53  ;;  %2435 = vmatprep.mubr.bf16.mxu0 %v732_v60  ;;  %v115_v53 = vld [vmem:[%s22153_s0 + $0x208] sm:$0xff] }
  0xd5   :  { %3207 = vmatprep.mubr.bf16.mxu1 %v732_v60  ;;  %2588 = vmatprep.subr.bf16.mxu0 %v14575_v59  ;;  %v123_v59 = vld [vmem:[%s22153_s0 + $0x248] sm:$0xff]  ;;  %v130_v60 = vld [vmem:[%s22153_s0 + $0x280] sm:$0xff] }
  0xd6   :  { %3359 = vmatpush1.bf16.msra.mxu1 %v14597_v1  ;;  %v14626_v1 = vld [vmem:[%s22155_s2 + $0x4cc] ss:$16 sps:$4 sm:$0xff]   ;;  %v571_v7 = vadd.f32 %v347_v62, %v123_v59  ;;  %v172_v62 = vld [vmem:[%s22153_s0 + $0x3d0] sm:$0xff] }
  0xd7   :  { %3360 = vmatprep.subr.bf16.mxu1 %v14602_v4  ;;  %v556_v4 = vadd.f32 %v332_v54, %v108_v52  ;;  %v14632_v54 = vld [vmem:[%s22155_s2 + $0x584] ss:$16 sps:$4 sm:$0xff]   ;;  %v381_v59 = vld [vmem:[%s22154_s1 + $0x358] sm:$0xff] }
  0xd8   :  { %2589 = vmatpush1.bf16.msra.mxu0 %v14573_v5  ;;  %v563_v5 = vadd.f32 %v339_v58, %v115_v53  ;;  %v14621_v53 = vld [vmem:[%s22155_s2 + $0x560] ss:$16 sps:$4 sm:$0xff]  }
  0xd9   :  { %2590 = vmatprep.subr.bf16.mxu0 %v14578_v8  ;;  %v578_v8 = vadd.f32 %v354_v63, %v130_v60  ;;  %v374_v58 = vld [vmem:[%s22154_s1 + $0x320] sm:$0xff]  ;;  %v389_v63 = vld [vmem:[%s22154_s1 + $0x398] sm:$0xff] }
  0xda   :  { %3361 = vmatpush1.bf16.msra.mxu1 %v14600_v11  ;;  %v129_v11 = vld [vmem:[%s22153_s0 + $0x278] sm:$0xff]  ;;  %v752_v14 = vpack.c.bf16 %v563_v5, %v556_v4  ;;  %v14641_v4 = vld [vmem:[%s22155_s2 + $0x5a4] ss:$16 sps:$4 sm:$0xff]  }
  0xdb   :  { %2436 = vmatmul.mubr.bf16.gmra.mrb[4].mxu0 %v731_v12  ;;  %3208 = vmatmul.mubr.bf16.gmra.mrb[4].mxu1 %v731_v12  ;;  %v14596_v12 = vld [vmem:[%s22155_s2 + $0x504] ss:$16 sps:$4 sm:$0xff]   ;;  %v760_v17 = vpack.c.bf16 %v578_v8, %v571_v7  ;;  %v14651_v5 = vld [vmem:[%s22155_s2 + $0x588] ss:$16 sps:$4 sm:$0xff]   ;;  %v14656_v8 = vld [vmem:[%s22155_s2 + $0x5ac] ss:$16 sps:$4 sm:$0xff]  }
  0xdc   :  { %2445 = vmatprep.mubr.bf16.mxu0 %v739_v15  ;;  %3217 = vmatprep.mubr.bf16.mxu1 %v739_v15  ;;  %v346_v15 = vld [vmem:[%s22154_s1 + $0x240] sm:$0xff] }
  0xdd   :  { %2591 = vmatpush1.bf16.msra.mxu0 %v14576_v16  ;;  %3362 = vmatprep.subr.bf16.mxu1 %v14608_v21  ;;  %v353_v16 = vld [vmem:[%s22154_s1 + $0x278] sm:$0xff]  ;;  %v368_v21 = vld [vmem:[%s22154_s1 + $0x2f0] sm:$0xff] }
  0xde   :  { %2592 = vmatprep.subr.bf16.mxu0 %v14581_v22  ;;  %3363 = vmatpush1.bf16.msra.mxu1 %v14606_v23  ;;  %v14594_v22 = vld [vmem:[%s22155_s2 + $0x500] ss:$16 sps:$4 sm:$0xff]   ;;  %v14635_v23 = vld [vmem:[%s22155_s2 + $0x50c] ss:$16 sps:$4 sm:$0xff]   ;;  %v577_v27 = vadd.f32 %v353_v16, %v129_v11  ;;  %v592_v30 = vadd.f32 %v368_v21, %v144_v19 }
  0xdf   :  { %3364 = vmatprep.subr.bf16.mxu1 %v14611_v26  ;;  %v570_v26 = vadd.f32 %v346_v15, %v122_v10  ;;  %v14639_v11 = vld [vmem:[%s22155_s2 + $0x5a0] ss:$16 sps:$4 sm:$0xff]   ;;  %v395_v16 = vld [vmem:[%s22154_s1 + $0x3c8] sm:$0xff] }
  0xe0   :  { %v388_v15 = vld [vmem:[%s22154_s1 + $0x390] sm:$0xff]  ;;  %v179_v19 = vld [vmem:[%s22153_s0 + $0x408] sm:$0xff] }
  0xe1   :  { %2593 = vmatpush1.bf16.msra.mxu0 %v14579_v29  ;;  %v585_v29 = vadd.f32 %v361_v20, %v137_v18  ;;  %v759_v38 = vpack.c.bf16 %v577_v27, %v570_v26  ;;  %v186_v20 = vld [vmem:[%s22153_s0 + $0x440] sm:$0xff]  ;;  %v403_v21 = vld [vmem:[%s22154_s1 + $0x408] sm:$0xff] }
  0xe2   :  { %2594 = vmatprep.subr.bf16.mxu0 %v14584_v33  ;;  %3365 = vmatpush1.bf16.msra.mxu1 %v14609_v34  ;;  %v143_v33 = vld [vmem:[%s22153_s0 + $0x2e8] sm:$0xff]  ;;  %v360_v34 = vld [vmem:[%s22154_s1 + $0x2b0] sm:$0xff] }
  0xe3   :  { %2446 = vmatmul.mubr.bf16.gmra.mrb[8].mxu0 %v738_v35  ;;  %3218 = vmatmul.mubr.bf16.gmra.mrb[8].mxu1 %v738_v35  ;;  %v367_v35 = vld [vmem:[%s22154_s1 + $0x2e8] sm:$0xff]  ;;  %v14659_v26 = vld [vmem:[%s22155_s2 + $0x5e4] ss:$16 sps:$4 sm:$0xff]  }
  0xe4   :  { %2455 = vmatprep.mubr.bf16.mxu0 %v746_v39  ;;  %3227 = vmatprep.mubr.bf16.mxu1 %v746_v39  ;;  %v151_v39 = vld [vmem:[%s22153_s0 + $0x328] sm:$0xff]  ;;  %v591_v49 = vadd.f32 %v367_v35, %v143_v33  ;;  %v14657_v33 = vld [vmem:[%s22155_s2 + $0x5e0] ss:$16 sps:$4 sm:$0xff]   ;;  %v14668_v35 = vld [vmem:[%s22155_s2 + $0x604] ss:$16 sps:$4 sm:$0xff]  }
  0xe5   :  { %2595 = vmatpush1.bf16.msra.mxu0 %v14582_v42  ;;  %3366 = vmatprep.subr.bf16.mxu1 %v14617_v43  ;;  %v382_v42 = vld [vmem:[%s22154_s1 + $0x360] sm:$0xff]  ;;  %v767_v43 = vpack.c.bf16 %v592_v30, %v585_v29  ;;  %v14660_v27 = vld [vmem:[%s22155_s2 + $0x5c8] ss:$16 sps:$4 sm:$0xff]   ;;  %v14665_v30 = vld [vmem:[%s22155_s2 + $0x5ec] ss:$16 sps:$4 sm:$0xff]  }
  0xe6   :  { %2596 = vmatprep.subr.bf16.mxu0 %v14587_v44  ;;  %3367 = vmatpush1.bf16.msra.mxu1 %v14615_v45  ;;  %v14612_v44 = vld [vmem:[%s22155_s2 + $0x540] ss:$16 sps:$4 sm:$0xff]   ;;  %v14623_v45 = vld [vmem:[%s22155_s2 + $0x564] ss:$16 sps:$4 sm:$0xff]   ;;  %v606_v52 = vadd.f32 %v382_v42, %v158_v40 }
  0xe7   :  { %3368 = vmatprep.subr.bf16.mxu1 %v14620_v48  ;;  %v584_v48 = vadd.f32 %v360_v34, %v136_v32  ;;  %v14663_v34 = vld [vmem:[%s22155_s2 + $0x5e8] ss:$16 sps:$4 sm:$0xff]   ;;  %v200_v42 = vld [vmem:[%s22153_s0 + $0x4b0] sm:$0xff] }
  0xe9   :  { %2597 = vmatpush1.bf16.msra.mxu0 %v14585_v51  ;;  %v599_v51 = vadd.f32 %v375_v41, %v151_v39  ;;  %v766_v60 = vpack.c.bf16 %v591_v49, %v584_v48  ;;  %v409_v39 = vld [vmem:[%s22154_s1 + $0x438] sm:$0xff] }
  0xea   :  { %2598 = vmatprep.subr.bf16.mxu0 %v14590_v55  ;;  %3369 = vmatpush1.bf16.msra.mxu1 %v14618_v56  ;;  %v14645_v55 = vld [vmem:[%s22155_s2 + $0x568] ss:$16 sps:$4 sm:$0xff]   ;;  %v150_v56 = vld [vmem:[%s22153_s0 + $0x320] sm:$0xff] }
  0xeb   :  { %2456 = vmatmul.mubr.bf16.gmra.mrb[12].mxu0 %v745_v57  ;;  %3228 = vmatmul.mubr.bf16.gmra.mrb[12].mxu1 %v745_v57  ;;  %v157_v57 = vld [vmem:[%s22153_s0 + $0x358] sm:$0xff] }
  0xec   :  { %2465 = vmatprep.mubr.bf16.mxu0 %v753_v61  ;;  %3237 = vmatprep.mubr.bf16.mxu1 %v753_v61  ;;  %v165_v61 = vld [vmem:[%s22153_s0 + $0x398] sm:$0xff]  ;;  %v605_v7 = vadd.f32 %v381_v59, %v157_v57  ;;  %v431_v57 = vld [vmem:[%s22154_s1 + $0x4e8] sm:$0xff] }
  0xed   :  { %2599 = vmatpush1.bf16.msra.mxu0 %v14588_v0  ;;  %3370 = vmatprep.subr.bf16.mxu1 %v14626_v1  ;;  %v396_v0 = vld [vmem:[%s22154_s1 + $0x3d0] sm:$0xff]  ;;  %v193_v41 = vld [vmem:[%s22153_s0 + $0x478] sm:$0xff] }
  0xee   :  { %2600 = vmatprep.subr.bf16.mxu0 %v14593_v2  ;;  %3371 = vmatpush1.bf16.msra.mxu1 %v14624_v3  ;;  %v14630_v1 = vld [vmem:[%s22155_s2 + $0x580] ss:$16 sps:$4 sm:$0xff]   ;;  %v14653_v2 = vld [vmem:[%s22155_s2 + $0x58c] ss:$16 sps:$4 sm:$0xff]   ;;  %v774_v3 = vpack.c.bf16 %v606_v52, %v599_v51  ;;  %v620_v10 = vadd.f32 %v396_v0, %v172_v62 }
  0xef   :  { %3372 = vmatprep.subr.bf16.mxu1 %v14629_v6  ;;  %v598_v6 = vadd.f32 %v374_v58, %v150_v56  ;;  %v199_v51 = vld [vmem:[%s22153_s0 + $0x4a8] sm:$0xff]  ;;  %v416_v52 = vld [vmem:[%s22154_s1 + $0x470] sm:$0xff]  ;;  %v214_v56 = vld [vmem:[%s22153_s0 + $0x520] sm:$0xff] }
  0xf0   :  { %v438_v58 = vld [vmem:[%s22154_s1 + $0x520] sm:$0xff] }
  0xf1   :  { %2601 = vmatpush1.bf16.msra.mxu0 %v14591_v9  ;;  %v613_v9 = vadd.f32 %v389_v63, %v165_v61  ;;  %v773_v18 = vpack.c.bf16 %v605_v7, %v598_v6  ;;  %v662_v63 = vadd.f32 %v438_v58, %v214_v56  ;;  %v206_v0 = vld [vmem:[%s22153_s0 + $0x4e0] sm:$0xff]  ;;  %v228_v6 = vld [vmem:[%s22153_s0 + $0x590] sm:$0xff]  ;;  %v445_v7 = vld [vmem:[%s22154_s1 + $0x558] sm:$0xff] }
  0xf2   :  { %2602 = vmatprep.subr.bf16.mxu0 %v14596_v12  ;;  %3373 = vmatpush1.bf16.msra.mxu1 %v14627_v13  ;;  %v14650_v12 = vld [vmem:[%s22155_s2 + $0x5c4] ss:$16 sps:$4 sm:$0xff]   ;;  %v269_v58 = vld [vmem:[%s22153_s0 + $0x6d8] sm:$0xff] }
  0xf3   :  { %2466 = vmatmul.mubr.bf16.gmra.mrb[16].mxu0 %v752_v14  ;;  %3238 = vmatmul.mubr.bf16.gmra.mrb[16].mxu1 %v752_v14  ;;  %v164_v13 = vld [vmem:[%s22153_s0 + $0x390] sm:$0xff]  ;;  %v171_v14 = vld [vmem:[%s22153_s0 + $0x3c8] sm:$0xff] }
  0xf4   :  { %2475 = vmatprep.mubr.bf16.mxu0 %v760_v17  ;;  %3247 = vmatprep.mubr.bf16.mxu1 %v760_v17  ;;  %v14654_v17 = vld [vmem:[%s22155_s2 + $0x5a8] ss:$16 sps:$4 sm:$0xff]   ;;  %v619_v29 = vadd.f32 %v395_v16, %v171_v14  ;;  %v220_v14 = vld [vmem:[%s22153_s0 + $0x550] sm:$0xff] }
  0xf5   :  { %2603 = vmatpush1.bf16.msra.mxu0 %v14594_v22  ;;  %3374 = vmatprep.subr.bf16.mxu1 %v14635_v23  ;;  %v410_v22 = vld [vmem:[%s22154_s1 + $0x440] sm:$0xff]  ;;  %v444_v16 = vld [vmem:[%s22154_s1 + $0x550] sm:$0xff] }
  0xf6   :  { %2604 = vmatprep.subr.bf16.mxu0 %v14605_v24  ;;  %3375 = vmatpush1.bf16.msra.mxu1 %v14633_v25  ;;  %v14648_v23 = vld [vmem:[%s22155_s2 + $0x5c0] ss:$16 sps:$4 sm:$0xff]   ;;  %v14662_v24 = vld [vmem:[%s22155_s2 + $0x5cc] ss:$16 sps:$4 sm:$0xff]   ;;  %v781_v25 = vpack.c.bf16 %v620_v10, %v613_v9  ;;  %v634_v32 = vadd.f32 %v410_v22, %v186_v20 }
  0xf7   :  { %3376 = vmatprep.subr.bf16.mxu1 %v14638_v28  ;;  %v612_v28 = vadd.f32 %v388_v15, %v164_v13  ;;  %v227_v15 = vld [vmem:[%s22153_s0 + $0x588] sm:$0xff]  ;;  %v242_v20 = vld [vmem:[%s22153_s0 + $0x600] sm:$0xff] }
  0xf8   :  { %v466_v22 = vld [vmem:[%s22154_s1 + $0x600] sm:$0xff] }
  0xf9   :  { %2605 = vmatpush1.bf16.msra.mxu0 %v14603_v31  ;;  %v627_v31 = vadd.f32 %v403_v21, %v179_v19  ;;  %v780_v40 = vpack.c.bf16 %v619_v29, %v612_v28  ;;  %v235_v19 = vld [vmem:[%s22153_s0 + $0x5c8] sm:$0xff]  ;;  %v234_v28 = vld [vmem:[%s22153_s0 + $0x5c0] sm:$0xff]  ;;  %v241_v29 = vld [vmem:[%s22153_s0 + $0x5f8] sm:$0xff] }
  0xfa   :  { %2606 = vmatprep.subr.bf16.mxu0 %v14614_v36  ;;  %3377 = vmatpush1.bf16.msra.mxu1 %v14636_v37  ;;  %v178_v36 = vld [vmem:[%s22153_s0 + $0x400] sm:$0xff]  ;;  %v185_v37 = vld [vmem:[%s22153_s0 + $0x438] sm:$0xff]  ;;  %v459_v21 = vld [vmem:[%s22154_s1 + $0x5c8] sm:$0xff] }
  0xfb   :  { %2476 = vmatmul.mubr.bf16.gmra.mrb[20].mxu0 %v759_v38  ;;  %3248 = vmatmul.mubr.bf16.gmra.mrb[20].mxu1 %v759_v38  ;;  %v402_v38 = vld [vmem:[%s22154_s1 + $0x400] sm:$0xff] }
  0xfc   :  { %2485 = vmatprep.mubr.bf16.mxu0 %v767_v43  ;;  %3257 = vmatprep.mubr.bf16.mxu1 %v767_v43  ;;  %v417_v43 = vld [vmem:[%s22154_s1 + $0x478] sm:$0xff] }
  0xfd   :  { %2607 = vmatpush1.bf16.msra.mxu0 %v14612_v44  ;;  %3378 = vmatprep.subr.bf16.mxu1 %v14644_v47  ;;  %v424_v44 = vld [vmem:[%s22154_s1 + $0x4b0] sm:$0xff]  ;;  %v633_v47 = vadd.f32 %v409_v39, %v185_v37  ;;  %v641_v48 = vadd.f32 %v417_v43, %v193_v41 }
  0xfe   :  { %2608 = vmatprep.subr.bf16.mxu0 %v14623_v45  ;;  %3379 = vmatpush1.bf16.msra.mxu1 %v14642_v46  ;;  %v788_v45 = vpack.c.bf16 %v634_v32, %v627_v31  ;;  %v626_v46 = vadd.f32 %v402_v38, %v178_v36  ;;  %v648_v49 = vadd.f32 %v424_v44, %v200_v42  ;;  %v465_v31 = vld [vmem:[%s22154_s1 + $0x5f8] sm:$0xff]  ;;  %v480_v36 = vld [vmem:[%s22154_s1 + $0x670] sm:$0xff]  ;;  %v255_v44 = vld [vmem:[%s22153_s0 + $0x668] sm:$0xff] }
  0xff   :  { %3380 = vmatprep.subr.bf16.mxu1 %v14647_v50  ;;  %v192_v50 = vld [vmem:[%s22153_s0 + $0x470] sm:$0xff]  ;;  %v14689_v38 = vld [vmem:[%s22155_s2 + $0x60c] ss:$16 sps:$4 sm:$0xff]  }
 0x100   :  { %v795_v59 = vpack.c.bf16 %v648_v49, %v641_v48  ;;  %v248_v43 = vld [vmem:[%s22153_s0 + $0x630] sm:$0xff]  ;;  %v263_v48 = vld [vmem:[%s22153_s0 + $0x6a8] sm:$0xff]  ;;  %v270_v49 = vld [vmem:[%s22153_s0 + $0x6e0] sm:$0xff] }
 0x101   :  { %2609 = vmatpush1.bf16.msra.mxu0 %v14621_v53  ;;  %v423_v53 = vld [vmem:[%s22154_s1 + $0x4a8] sm:$0xff] }
 0x102   :  { %2610 = vmatprep.subr.bf16.mxu0 %v14632_v54  ;;  %3381 = vmatpush1.bf16.msra.mxu1 %v14645_v55  ;;  %v787_v54 = vpack.c.bf16 %v633_v47, %v626_v46  ;;  %v207_v55 = vld [vmem:[%s22153_s0 + $0x4e8] sm:$0xff]  ;;  %v647_v61 = vadd.f32 %v423_v53, %v199_v51 }
 0x103   :  { %2486 = vmatmul.mubr.bf16.gmra.mrb[24].mxu0 %v766_v60  ;;  %3258 = vmatmul.mubr.bf16.gmra.mrb[24].mxu1 %v766_v60  ;;  %v640_v60 = vadd.f32 %v416_v52, %v192_v50  ;;  %v655_v62 = vadd.f32 %v431_v57, %v207_v55  ;;  %v479_v46 = vld [vmem:[%s22154_s1 + $0x668] sm:$0xff]  ;;  %v494_v52 = vld [vmem:[%s22154_s1 + $0x6e0] sm:$0xff] }
 0x104   :  { %2495 = vmatprep.mubr.bf16.mxu0 %v774_v3  ;;  %3267 = vmatprep.mubr.bf16.mxu1 %v774_v3  ;;  %v437_v3 = vld [vmem:[%s22154_s1 + $0x518] sm:$0xff]  ;;  %v487_v50 = vld [vmem:[%s22154_s1 + $0x6a8] sm:$0xff]  ;;  %v718_v56 = vadd.f32 %v494_v52, %v270_v49  ;;  %v262_v57 = vld [vmem:[%s22153_s0 + $0x6a0] sm:$0xff] }
 0x105   :  { %2611 = vmatpush1.bf16.msra.mxu0 %v14630_v1  ;;  %3382 = vmatprep.subr.bf16.mxu1 %v14653_v2  ;;  %v213_v1 = vld [vmem:[%s22153_s0 + $0x518] sm:$0xff]  ;;  %v430_v2 = vld [vmem:[%s22154_s1 + $0x4e0] sm:$0xff]  ;;  %v802_v9 = vpack.c.bf16 %v662_v63, %v655_v62  ;;  %v711_v55 = vadd.f32 %v487_v50, %v263_v48  ;;  %v55_v62 = vld [vmem:[%s22153_s0 + $0x28] sm:$0xff] }
 0x106   :  { %2612 = vmatprep.subr.bf16.mxu0 %v14641_v4  ;;  %3383 = vmatpush1.bf16.msra.mxu1 %v14651_v5  ;;  %v794_v4 = vpack.c.bf16 %v647_v61, %v640_v60  ;;  %v221_v5 = vld [vmem:[%s22153_s0 + $0x558] sm:$0xff]  ;;  %v654_v10 = vadd.f32 %v430_v2, %v206_v0  ;;  %v62_v63 = vld [vmem:[%s22153_s0 + $0x60] sm:$0xff]  ;;  %v279_v0 = vld [vmem:[%s22154_s1 + $0x28] sm:$0xff] }
 0x107   :  { %3384 = vmatprep.subr.bf16.mxu1 %v14656_v8  ;;  %v452_v8 = vld [vmem:[%s22154_s1 + $0x590] sm:$0xff]  ;;  %v493_v60 = vld [vmem:[%s22154_s1 + $0x6d8] sm:$0xff]  ;;  %v286_v2 = vld [vmem:[%s22154_s1 + $0x60] sm:$0xff] }
 0x108   :  { %v676_v13 = vadd.f32 %v452_v8, %v228_v6  ;;  %v510_v6 = vadd.f32 %v286_v2, %v62_v63  ;;  %v61_v8 = vld [vmem:[%s22153_s0 + $0x58] sm:$0xff]  ;;  %v104_v48 = vld [vmem:[%s22153_s0 + $0x1b0] sm:$0xff] }
 0x109   :  { %2613 = vmatpush1.bf16.msra.mxu0 %v14639_v11  ;;  %v661_v11 = vadd.f32 %v437_v3, %v213_v1  ;;  %v830_v1 = vpack.c.bf16 %v718_v56, %v711_v55  ;;  %v321_v49 = vld [vmem:[%s22154_s1 + $0x178] sm:$0xff]  ;;  %v328_v50 = vld [vmem:[%s22154_s1 + $0x1b0] sm:$0xff] }
 0x10a   :  { %2614 = vmatprep.subr.bf16.mxu0 %v14650_v12  ;;  %3385 = vmatpush1.bf16.msra.mxu1 %v14654_v17  ;;  %v669_v12 = vadd.f32 %v445_v7, %v221_v5  ;;  %v451_v17 = vld [vmem:[%s22154_s1 + $0x588] sm:$0xff]  ;;  %v503_v5 = vadd.f32 %v279_v0, %v55_v62  ;;  %v54_v7 = vld [vmem:[%s22153_s0 + $0x20] sm:$0xff]  ;;  %v96_v0 = vld [vmem:[%s22153_s0 + $0x170] sm:$0xff] }
 0x10b   :  { %2496 = vmatmul.mubr.bf16.gmra.mrb[28].mxu0 %v773_v18  ;;  %3268 = vmatmul.mubr.bf16.gmra.mrb[28].mxu1 %v773_v18  ;;  %v801_v18 = vpack.c.bf16 %v661_v11, %v654_v10  ;;  %v285_v10 = vld [vmem:[%s22154_s1 + $0x58] sm:$0xff]  ;;  %v14680_v62 = vld [vmem:[%s22155_s2 + $0x684] ss:$16 sps:$4 sm:$0xff]  }
 0x10c   :  { %2505 = vmatprep.mubr.bf16.mxu0 %v781_v25  ;;  %3277 = vmatprep.mubr.bf16.mxu1 %v781_v25  ;;  %v675_v25 = vadd.f32 %v451_v17, %v227_v15  ;;  %v727_v15 = vpack.c.bf16 %v510_v6, %v503_v5  ;;  %v14695_v52 = vld [vmem:[%s22155_s2 + $0x64c] ss:$16 sps:$4 sm:$0xff]   ;;  %v14693_v55 = vld [vmem:[%s22155_s2 + $0x648] ss:$16 sps:$4 sm:$0xff]   ;;  %v320_v2 = vld [vmem:[%s22154_s1 + $0x170] sm:$0xff] }
 0x10d   :  { %2615 = vmatpush1.bf16.msra.mxu0 %v14648_v23  ;;  %3386 = vmatprep.subr.bf16.mxu1 %v14662_v24  ;;  %v809_v23 = vpack.c.bf16 %v676_v13, %v669_v12  ;;  %v668_v24 = vadd.f32 %v444_v16, %v220_v14  ;;  %v69_v12 = vld [vmem:[%s22153_s0 + $0x98] sm:$0xff]  ;;  %v76_v13 = vld [vmem:[%s22153_s0 + $0xd0] sm:$0xff]  ;;  %v111_v5 = vld [vmem:[%s22153_s0 + $0x1e8] sm:$0xff] }
 0x10e   :  { %2616 = vmatprep.subr.bf16.mxu0 %v14659_v26  ;;  %3387 = vmatpush1.bf16.msra.mxu1 %v14660_v27  ;;  %v683_v26 = vadd.f32 %v459_v21, %v235_v19  ;;  %v690_v27 = vadd.f32 %v466_v22, %v242_v20  ;;  %v293_v14 = vld [vmem:[%s22154_s1 + $0x98] sm:$0xff]  ;;  %v300_v16 = vld [vmem:[%s22154_s1 + $0xd0] sm:$0xff]  ;;  %v118_v6 = vld [vmem:[%s22153_s0 + $0x220] sm:$0xff] }
 0x10f   :  { %3388 = vmatprep.subr.bf16.mxu1 %v14665_v30  ;;  %v458_v30 = vld [vmem:[%s22154_s1 + $0x5c0] sm:$0xff]  ;;  %v808_v32 = vpack.c.bf16 %v675_v25, %v668_v24  ;;  %v517_v19 = vadd.f32 %v293_v14, %v69_v12  ;;  %v524_v20 = vadd.f32 %v300_v16, %v76_v13  ;;  %v68_v22 = vld [vmem:[%s22153_s0 + $0x90] sm:$0xff]  ;;  %v299_v25 = vld [vmem:[%s22154_s1 + $0xc8] sm:$0xff] }
 0x110   :  { %v816_v37 = vpack.c.bf16 %v690_v27, %v683_v26  ;;  %v682_v39 = vadd.f32 %v458_v30, %v234_v28  ;;  %v14666_v21 = vld [vmem:[%s22155_s2 + $0x600] ss:$16 sps:$4 sm:$0xff]   ;;  %v83_v27 = vld [vmem:[%s22153_s0 + $0x108] sm:$0xff]  ;;  %v14683_v12 = vld [vmem:[%s22155_s2 + $0x6a4] ss:$16 sps:$4 sm:$0xff]  }
 0x111   :  { %2617 = vmatpush1.bf16.msra.mxu0 %v14657_v33  ;;  %v249_v33 = vld [vmem:[%s22153_s0 + $0x638] sm:$0xff]  ;;  %v292_v24 = vld [vmem:[%s22154_s1 + $0x90] sm:$0xff]  ;;  %v90_v28 = vld [vmem:[%s22153_s0 + $0x140] sm:$0xff] }
 0x112   :  { %3389 = vmatpush1.bf16.msra.mxu1 %v14663_v34  ;;  %2779 = vmatprep.subr.bf16.mxu0 %v14668_v35  ;;  %v256_v34 = vld [vmem:[%s22153_s0 + $0x670] sm:$0xff]  ;;  %v473_v35 = vld [vmem:[%s22154_s1 + $0x638] sm:$0xff]  ;;  %v314_v30 = vld [vmem:[%s22154_s1 + $0x140] sm:$0xff] }
 0x113   :  { %2506 = vmatmul.mubr.bf16.gmra.mrb[32].mxu0 %v780_v40  ;;  %3278 = vmatmul.mubr.bf16.gmra.mrb[32].mxu1 %v780_v40  ;;  %v689_v40 = vadd.f32 %v465_v31, %v241_v29  ;;  %v697_v41 = vadd.f32 %v473_v35, %v249_v33  ;;  %v704_v42 = vadd.f32 %v480_v36, %v256_v34  ;;  %v307_v29 = vld [vmem:[%s22154_s1 + $0x108] sm:$0xff]  ;;  %v14671_v31 = vld [vmem:[%s22155_s2 + $0x624] ss:$16 sps:$4 sm:$0xff]  }
 0x114   :  { %2515 = vmatprep.mubr.bf16.mxu0 %v788_v45  ;;  %3287 = vmatprep.mubr.bf16.mxu1 %v788_v45  ;;  %v472_v45 = vld [vmem:[%s22154_s1 + $0x630] sm:$0xff]  ;;  %v14687_v33 = vld [vmem:[%s22155_s2 + $0x608] ss:$16 sps:$4 sm:$0xff]   ;;  %v14692_v34 = vld [vmem:[%s22155_s2 + $0x62c] ss:$16 sps:$4 sm:$0xff]   ;;  %v516_v35 = vadd.f32 %v292_v24, %v68_v22 }
 0x115   :  { %3551 = vmatprep.subr.bf16.mxu1 %v14689_v38  ;;  %v815_v47 = vpack.c.bf16 %v689_v40, %v682_v39  ;;  %v823_v51 = vpack.c.bf16 %v704_v42, %v697_v41  ;;  %v696_v53 = vadd.f32 %v472_v45, %v248_v43  ;;  %v538_v38 = vadd.f32 %v314_v30, %v90_v28  ;;  %v14669_v39 = vld [vmem:[%s22155_s2 + $0x620] ss:$16 sps:$4 sm:$0xff]   ;;  %v14674_v40 = vld [vmem:[%s22155_s2 + $0x644] ss:$16 sps:$4 sm:$0xff]   ;;  %v14690_v41 = vld [vmem:[%s22155_s2 + $0x628] ss:$16 sps:$4 sm:$0xff]  }
 0x116   :  { %v82_v42 = vld [vmem:[%s22153_s0 + $0x100] sm:$0xff]  ;;  %v89_v43 = vld [vmem:[%s22153_s0 + $0x138] sm:$0xff]  ;;  %v132_v28 = vld [vmem:[%s22153_s0 + $0x290] sm:$0xff] }
 0x117   :  { %v313_v45 = vld [vmem:[%s22154_s1 + $0x138] sm:$0xff]  ;;  %v110_v22 = vld [vmem:[%s22153_s0 + $0x1e0] sm:$0xff]  ;;  %v356_v30 = vld [vmem:[%s22154_s1 + $0x290] sm:$0xff] }
 0x118   :  { %v14698_v56 = vld [vmem:[%s22155_s2 + $0x66c] ss:$16 sps:$4 sm:$0xff]   ;;  %v14696_v63 = vld [vmem:[%s22155_s2 + $0x668] ss:$16 sps:$4 sm:$0xff]   ;;  %v334_v24 = vld [vmem:[%s22154_s1 + $0x1e0] sm:$0xff] }
 0x119   :  { %v14702_v13 = vld [vmem:[%s22155_s2 + $0x688] ss:$16 sps:$4 sm:$0xff]   ;;  %v14707_v14 = vld [vmem:[%s22155_s2 + $0x6ac] ss:$16 sps:$4 sm:$0xff]  }
 0x11b   :  { %2516 = vmatmul.mubr.bf16.gmra.mrb[36].mxu0 %v787_v54  ;;  %3288 = vmatmul.mubr.bf16.gmra.mrb[36].mxu1 %v787_v54  ;;  %v703_v54 = vadd.f32 %v479_v46, %v255_v44  ;;  %v306_v44 = vld [vmem:[%s22154_s1 + $0x100] sm:$0xff] }
 0x11c   :  { %2525 = vmatprep.mubr.bf16.mxu0 %v795_v59  ;;  %3297 = vmatprep.mubr.bf16.mxu1 %v795_v59  ;;  %v486_v59 = vld [vmem:[%s22154_s1 + $0x6a0] sm:$0xff] }
 0x11d   :  { %v822_v61 = vpack.c.bf16 %v703_v54, %v696_v53  ;;  %v710_v3 = vadd.f32 %v486_v59, %v262_v57  ;;  %v14677_v54 = vld [vmem:[%s22155_s2 + $0x664] ss:$16 sps:$4 sm:$0xff]   ;;  %v530_v57 = vadd.f32 %v306_v44, %v82_v42  ;;  %v14711_v42 = vld [vmem:[%s22155_s2 + $0x6e8] ss:$16 sps:$4 sm:$0xff]  }
 0x11e   :  { %v131_v44 = vld [vmem:[%s22153_s0 + $0x288] sm:$0xff] }
 0x123   :  { %2526 = vmatmul.mubr.bf16.gmra.mrb[40].mxu0 %v794_v4  ;;  %3298 = vmatmul.mubr.bf16.gmra.mrb[40].mxu1 %v794_v4  ;;  %v717_v4 = vadd.f32 %v493_v60, %v269_v58  ;;  %v537_v58 = vadd.f32 %v313_v45, %v89_v43  ;;  %v552_v60 = vadd.f32 %v328_v50, %v104_v48  ;;  %v124_v43 = vld [vmem:[%s22153_s0 + $0x250] sm:$0xff]  ;;  %v139_v48 = vld [vmem:[%s22153_s0 + $0x2c8] sm:$0xff] }
 0x124   :  { %2535 = vmatprep.mubr.bf16.mxu0 %v802_v9  ;;  %3307 = vmatprep.mubr.bf16.mxu1 %v802_v9  ;;  %v278_v9 = vld [vmem:[%s22154_s1 + $0x20] sm:$0xff]  ;;  %v348_v45 = vld [vmem:[%s22154_s1 + $0x250] sm:$0xff]  ;;  %v363_v50 = vld [vmem:[%s22154_s1 + $0x2c8] sm:$0xff] }
 0x125   :  { %v829_v11 = vpack.c.bf16 %v717_v4, %v710_v3  ;;  %v502_v17 = vadd.f32 %v278_v9, %v54_v7  ;;  %v327_v3 = vld [vmem:[%s22154_s1 + $0x1a8] sm:$0xff]  ;;  %v740_v4 = vpack.c.bf16 %v537_v58, %v530_v57  ;;  %v14678_v9 = vld [vmem:[%s22155_s2 + $0x680] ss:$16 sps:$4 sm:$0xff]   ;;  %v145_v58 = vld [vmem:[%s22153_s0 + $0x2f8] sm:$0xff] }
 0x126   :  { %v335_v7 = vld [vmem:[%s22154_s1 + $0x1e8] sm:$0xff]  ;;  %v138_v57 = vld [vmem:[%s22153_s0 + $0x2c0] sm:$0xff] }
 0x12b   :  { %2536 = vmatmul.mubr.bf16.gmra.mrb[44].mxu0 %v801_v18  ;;  %3308 = vmatmul.mubr.bf16.gmra.mrb[44].mxu1 %v801_v18  ;;  %v509_v18 = vadd.f32 %v285_v10, %v61_v8  ;;  %v342_v8 = vld [vmem:[%s22154_s1 + $0x220] sm:$0xff]  ;;  %v14704_v10 = vld [vmem:[%s22155_s2 + $0x68c] ss:$16 sps:$4 sm:$0xff]  }
 0x12c   :  { %2545 = vmatprep.mubr.bf16.mxu0 %v809_v23  ;;  %3317 = vmatprep.mubr.bf16.mxu1 %v809_v23  ;;  %v75_v23 = vld [vmem:[%s22153_s0 + $0xc8] sm:$0xff] }
 0x12d   :  { %v726_v26 = vpack.c.bf16 %v509_v18, %v502_v17  ;;  %v523_v36 = vadd.f32 %v299_v25, %v75_v23  ;;  %v559_v17 = vadd.f32 %v335_v7, %v111_v5  ;;  %v566_v18 = vadd.f32 %v342_v8, %v118_v6  ;;  %v117_v23 = vld [vmem:[%s22153_s0 + $0x218] sm:$0xff]  ;;  %v152_v7 = vld [vmem:[%s22153_s0 + $0x330] sm:$0xff]  ;;  %v159_v8 = vld [vmem:[%s22153_s0 + $0x368] sm:$0xff] }
 0x12e   :  { %v341_v25 = vld [vmem:[%s22154_s1 + $0x218] sm:$0xff] }
 0x12f   :  { %v733_v46 = vpack.c.bf16 %v523_v36, %v516_v35  ;;  %v14708_v35 = vld [vmem:[%s22155_s2 + $0x6c8] ss:$16 sps:$4 sm:$0xff]   ;;  %v14713_v36 = vld [vmem:[%s22155_s2 + $0x6ec] ss:$16 sps:$4 sm:$0xff]  }
 0x133   :  { %2546 = vmatmul.mubr.bf16.gmra.mrb[48].mxu0 %v808_v32  ;;  %3318 = vmatmul.mubr.bf16.gmra.mrb[48].mxu1 %v808_v32  ;;  %v734_v32 = vpack.c.bf16 %v524_v20, %v517_v19  ;;  %v14681_v19 = vld [vmem:[%s22155_s2 + $0x6a0] ss:$16 sps:$4 sm:$0xff]   ;;  %v14686_v20 = vld [vmem:[%s22155_s2 + $0x6c4] ss:$16 sps:$4 sm:$0xff]  }
 0x134   :  { %2555 = vmatprep.mubr.bf16.mxu0 %v816_v37  ;;  %3327 = vmatprep.mubr.bf16.mxu1 %v816_v37  ;;  %v531_v37 = vadd.f32 %v307_v29, %v83_v27  ;;  %v125_v27 = vld [vmem:[%s22153_s0 + $0x258] sm:$0xff] }
 0x135   :  { %v349_v29 = vld [vmem:[%s22154_s1 + $0x258] sm:$0xff] }
 0x136   :  { %v741_v53 = vpack.c.bf16 %v538_v38, %v531_v37  ;;  %v558_v37 = vadd.f32 %v334_v24, %v110_v22  ;;  %v565_v38 = vadd.f32 %v341_v25, %v117_v23  ;;  %v173_v22 = vld [vmem:[%s22153_s0 + $0x3d8] sm:$0xff]  ;;  %v390_v23 = vld [vmem:[%s22154_s1 + $0x3a0] sm:$0xff] }
 0x137   :  { %v397_v24 = vld [vmem:[%s22154_s1 + $0x3d8] sm:$0xff] }
 0x13b   :  { %2556 = vmatmul.mubr.bf16.gmra.mrb[52].mxu0 %v815_v47  ;;  %3328 = vmatmul.mubr.bf16.gmra.mrb[52].mxu1 %v815_v47  ;;  %v97_v47 = vld [vmem:[%s22153_s0 + $0x178] sm:$0xff] }
 0x13c   :  { %2565 = vmatprep.mubr.bf16.mxu0 %v823_v51  ;;  %3337 = vmatprep.mubr.bf16.mxu1 %v823_v51  ;;  %v14672_v51 = vld [vmem:[%s22155_s2 + $0x640] ss:$16 sps:$4 sm:$0xff]   ;;  %v545_v59 = vadd.f32 %v321_v49, %v97_v47  ;;  %v754_v47 = vpack.c.bf16 %v565_v38, %v558_v37  ;;  %v411_v38 = vld [vmem:[%s22154_s1 + $0x448] sm:$0xff] }
 0x13d   :  { %v146_v49 = vld [vmem:[%s22153_s0 + $0x300] sm:$0xff]  ;;  %v404_v37 = vld [vmem:[%s22154_s1 + $0x410] sm:$0xff] }
 0x143   :  { %2566 = vmatmul.mubr.bf16.gmra.mrb[56].mxu0 %v822_v61  ;;  %3338 = vmatmul.mubr.bf16.gmra.mrb[56].mxu1 %v822_v61  ;;  %v14675_v61 = vld [vmem:[%s22155_s2 + $0x660] ss:$16 sps:$4 sm:$0xff]  }
 0x144   :  { %2575 = vmatprep.mubr.bf16.mxu0 %v830_v1  ;;  %3347 = vmatprep.mubr.bf16.mxu1 %v830_v1  ;;  %v103_v1 = vld [vmem:[%s22153_s0 + $0x1a8] sm:$0xff] }
 0x145   :  { %v551_v16 = vadd.f32 %v327_v3, %v103_v1  ;;  %v384_v1 = vld [vmem:[%s22154_s1 + $0x370] sm:$0xff] }
 0x14b   :  { %2576 = vmatmul.mubr.bf16.gmra.mrb[60].mxu0 %v829_v11  ;;  %3348 = vmatmul.mubr.bf16.gmra.mrb[60].mxu1 %v829_v11  ;;  %v748_v11 = vpack.c.bf16 %v552_v60, %v545_v59  ;;  %v362_v59 = vld [vmem:[%s22154_s1 + $0x2c0] sm:$0xff]  ;;  %v369_v60 = vld [vmem:[%s22154_s1 + $0x2f8] sm:$0xff] }
 0x14c   :  { %2618 = vmatprep.mubr.bf16.mxu0 %v727_v15  ;;  %3390 = vmatprep.mubr.bf16.mxu1 %v727_v15  ;;  %v544_v15 = vadd.f32 %v320_v2, %v96_v0  ;;  %v377_v0 = vld [vmem:[%s22154_s1 + $0x338] sm:$0xff]  ;;  %v586_v3 = vadd.f32 %v362_v59, %v138_v57  ;;  %v440_v57 = vld [vmem:[%s22154_s1 + $0x530] sm:$0xff] }
 0x153   :  { %2619 = vmatmul.mubr.bf16.vlgmr.msra.gmra.mrb[0].mxu0 %v726_v26  ;;  %3391 = vmatmul.mubr.bf16.vlgmr.msra.gmra.mrb[0].mxu1 %v726_v26  ;;  %v747_v26 = vpack.c.bf16 %v551_v16, %v544_v15  ;;  %v398_v15 = vld [vmem:[%s22154_s1 + $0x3e0] sm:$0xff] }
 0x154   :  { %2780 = vmatpush1.bf16.msra.mxu0 %v14666_v21  ;;  %2628 = vmatprep.mubr.bf16.mxu0 %v734_v32  ;;  %v14705_v21 = vld [vmem:[%s22155_s2 + $0x6a8] ss:$16 sps:$4 sm:$0xff]  }
 0x155   :  { %3400 = vmatprep.mubr.bf16.mxu1 %v734_v32  ;;  %2781 = vmatprep.subr.bf16.mxu0 %v14671_v31  ;;  %v14684_v31 = vld [vmem:[%s22155_s2 + $0x6c0] ss:$16 sps:$4 sm:$0xff]   ;;  %v14710_v32 = vld [vmem:[%s22155_s2 + $0x6cc] ss:$16 sps:$4 sm:$0xff]  }
 0x156   :  { %3552 = vmatpush1.bf16.msra.mxu1 %v14687_v33  ;;  %v755_v33 = vpack.c.bf16 %v566_v18, %v559_v17 }
 0x157   :  { %3553 = vmatprep.subr.bf16.mxu1 %v14692_v34  ;;  %v14701_v34 = vld [vmem:[%s22155_s2 + $0x6e4] ss:$16 sps:$4 sm:$0xff]  }
 0x158   :  { %2782 = vmatpush1.bf16.msra.mxu0 %v14669_v39  ;;  %v573_v39 = vadd.f32 %v349_v29, %v125_v27  ;;  %v188_v27 = vld [vmem:[%s22153_s0 + $0x450] sm:$0xff] }
 0x159   :  { %2783 = vmatprep.subr.bf16.mxu0 %v14674_v40  ;;  %v580_v40 = vadd.f32 %v356_v30, %v132_v28  ;;  %v405_v28 = vld [vmem:[%s22154_s1 + $0x418] sm:$0xff]  ;;  %v412_v29 = vld [vmem:[%s22154_s1 + $0x450] sm:$0xff] }
 0x15a   :  { %3554 = vmatpush1.bf16.msra.mxu1 %v14690_v41  ;;  %v14699_v41 = vld [vmem:[%s22155_s2 + $0x6e0] ss:$16 sps:$4 sm:$0xff]  }
 0x15b   :  { %2629 = vmatmul.mubr.bf16.gmra.mrb[4].mxu0 %v733_v46  ;;  %3401 = vmatmul.mubr.bf16.gmra.mrb[4].mxu1 %v733_v46  ;;  %v355_v46 = vld [vmem:[%s22154_s1 + $0x288] sm:$0xff] }
 0x15c   :  { %2638 = vmatprep.mubr.bf16.mxu0 %v741_v53  ;;  %3410 = vmatprep.mubr.bf16.mxu1 %v741_v53  ;;  %v572_v53 = vadd.f32 %v348_v45, %v124_v43  ;;  %v426_v43 = vld [vmem:[%s22154_s1 + $0x4c0] sm:$0xff] }
 0x15d   :  { %2784 = vmatpush1.bf16.msra.mxu0 %v14672_v51  ;;  %3555 = vmatprep.subr.bf16.mxu1 %v14695_v52  ;;  %v370_v51 = vld [vmem:[%s22154_s1 + $0x300] sm:$0xff]  ;;  %v762_v52 = vpack.c.bf16 %v580_v40, %v573_v39  ;;  %v195_v40 = vld [vmem:[%s22153_s0 + $0x488] sm:$0xff] }
 0x15e   :  { %2785 = vmatprep.subr.bf16.mxu0 %v14677_v54  ;;  %3556 = vmatpush1.bf16.msra.mxu1 %v14693_v55  ;;  %v579_v54 = vadd.f32 %v355_v46, %v131_v44  ;;  %v587_v55 = vadd.f32 %v363_v50, %v139_v48  ;;  %v201_v50 = vld [vmem:[%s22153_s0 + $0x4b8] sm:$0xff] }
 0x15f   :  { %3557 = vmatprep.subr.bf16.mxu1 %v14698_v56  ;;  %v594_v56 = vadd.f32 %v370_v51, %v146_v49  ;;  %v194_v49 = vld [vmem:[%s22153_s0 + $0x480] sm:$0xff] }
 0x160   :  { %v418_v51 = vld [vmem:[%s22154_s1 + $0x480] sm:$0xff] }
 0x161   :  { %2786 = vmatpush1.bf16.msra.mxu0 %v14675_v61  ;;  %v761_v61 = vpack.c.bf16 %v579_v54, %v572_v53  ;;  %v769_v2 = vpack.c.bf16 %v594_v56, %v587_v55  ;;  %v209_v54 = vld [vmem:[%s22153_s0 + $0x4f8] sm:$0xff]  ;;  %v216_v55 = vld [vmem:[%s22153_s0 + $0x530] sm:$0xff]  ;;  %v642_v59 = vadd.f32 %v418_v51, %v194_v49 }
 0x162   :  { %2787 = vmatprep.subr.bf16.mxu0 %v14680_v62  ;;  %3558 = vmatpush1.bf16.msra.mxu1 %v14696_v63  ;;  %v153_v62 = vld [vmem:[%s22153_s0 + $0x338] sm:$0xff]  ;;  %v160_v63 = vld [vmem:[%s22153_s0 + $0x370] sm:$0xff] }
 0x163   :  { %2639 = vmatmul.mubr.bf16.gmra.mrb[8].mxu0 %v740_v4  ;;  %3411 = vmatmul.mubr.bf16.gmra.mrb[8].mxu1 %v740_v4  ;;  %v593_v4 = vadd.f32 %v369_v60, %v145_v58  ;;  %v601_v5 = vadd.f32 %v377_v0, %v153_v62  ;;  %v608_v6 = vadd.f32 %v384_v1, %v160_v63  ;;  %v433_v56 = vld [vmem:[%s22154_s1 + $0x4f8] sm:$0xff]  ;;  %v208_v63 = vld [vmem:[%s22153_s0 + $0x4f0] sm:$0xff]  ;;  %v215_v0 = vld [vmem:[%s22153_s0 + $0x528] sm:$0xff] }
 0x164   :  { %2648 = vmatprep.mubr.bf16.mxu0 %v748_v11  ;;  %3420 = vmatprep.mubr.bf16.mxu1 %v748_v11  ;;  %v664_v62 = vadd.f32 %v440_v57, %v216_v55  ;;  %v432_v1 = vld [vmem:[%s22154_s1 + $0x4f0] sm:$0xff]  ;;  %v489_v49 = vld [vmem:[%s22154_s1 + $0x6b8] sm:$0xff]  ;;  %v271_v57 = vld [vmem:[%s22153_s0 + $0x6e8] sm:$0xff] }
 0x165   :  { %2788 = vmatpush1.bf16.msra.mxu0 %v14678_v9  ;;  %3559 = vmatprep.subr.bf16.mxu1 %v14704_v10  ;;  %v376_v9 = vld [vmem:[%s22154_s1 + $0x330] sm:$0xff]  ;;  %v383_v10 = vld [vmem:[%s22154_s1 + $0x368] sm:$0xff]  ;;  %v768_v11 = vpack.c.bf16 %v593_v4, %v586_v3  ;;  %v776_v16 = vpack.c.bf16 %v608_v6, %v601_v5  ;;  %v230_v5 = vld [vmem:[%s22153_s0 + $0x5a0] sm:$0xff] }
 0x166   :  { %2789 = vmatprep.subr.bf16.mxu0 %v14683_v12  ;;  %3560 = vmatpush1.bf16.msra.mxu1 %v14702_v13  ;;  %v167_v12 = vld [vmem:[%s22153_s0 + $0x3a8] sm:$0xff]  ;;  %v174_v13 = vld [vmem:[%s22153_s0 + $0x3e0] sm:$0xff]  ;;  %v600_v17 = vadd.f32 %v376_v9, %v152_v7  ;;  %v607_v18 = vadd.f32 %v383_v10, %v159_v8  ;;  %v656_v9 = vadd.f32 %v432_v1, %v208_v63 }
 0x167   :  { %3561 = vmatprep.subr.bf16.mxu1 %v14707_v14  ;;  %v391_v14 = vld [vmem:[%s22154_s1 + $0x3a8] sm:$0xff]  ;;  %v454_v7 = vld [vmem:[%s22154_s1 + $0x5a0] sm:$0xff] }
 0x168   :  { %v775_v25 = vpack.c.bf16 %v607_v18, %v600_v17  ;;  %v223_v4 = vld [vmem:[%s22153_s0 + $0x568] sm:$0xff]  ;;  %v237_v18 = vld [vmem:[%s22153_s0 + $0x5d8] sm:$0xff] }
 0x169   :  { %2790 = vmatpush1.bf16.msra.mxu0 %v14681_v19  ;;  %v615_v19 = vadd.f32 %v391_v14, %v167_v12  ;;  %v447_v6 = vld [vmem:[%s22154_s1 + $0x568] sm:$0xff]  ;;  %v678_v12 = vadd.f32 %v454_v7, %v230_v5  ;;  %v229_v14 = vld [vmem:[%s22153_s0 + $0x598] sm:$0xff]  ;;  %v16342_v7 = vmov 0  }
 0x16a   :  { %2791 = vmatprep.subr.bf16.mxu0 %v14686_v20  ;;  %3562 = vmatpush1.bf16.msra.mxu1 %v14705_v21  ;;  %v622_v20 = vadd.f32 %v398_v15, %v174_v13  ;;  %v166_v21 = vld [vmem:[%s22153_s0 + $0x3a0] sm:$0xff]  ;;  %v63_v1 = vld [vmem:[%s22153_s0 + $0x68] sm:$0xff] }
 0x16b   :  { %2649 = vmatmul.mubr.bf16.gmra.mrb[12].mxu0 %v747_v26  ;;  %3421 = vmatmul.mubr.bf16.gmra.mrb[12].mxu1 %v747_v26  ;;  %v181_v26 = vld [vmem:[%s22153_s0 + $0x418] sm:$0xff]  ;;  %v222_v13 = vld [vmem:[%s22153_s0 + $0x560] sm:$0xff] }
 0x16c   :  { %2658 = vmatprep.mubr.bf16.mxu0 %v755_v33  ;;  %3430 = vmatprep.mubr.bf16.mxu1 %v755_v33  ;;  %v783_v30 = vpack.c.bf16 %v622_v20, %v615_v19  ;;  %v629_v33 = vadd.f32 %v405_v28, %v181_v26  ;;  %v446_v15 = vld [vmem:[%s22154_s1 + $0x560] sm:$0xff]  ;;  %v244_v19 = vld [vmem:[%s22153_s0 + $0x610] sm:$0xff]  ;;  %v461_v20 = vld [vmem:[%s22154_s1 + $0x5d8] sm:$0xff] }
 0x16d   :  { %2792 = vmatpush1.bf16.msra.mxu0 %v14684_v31  ;;  %3563 = vmatprep.subr.bf16.mxu1 %v14710_v32  ;;  %v614_v31 = vadd.f32 %v390_v23, %v166_v21  ;;  %v621_v32 = vadd.f32 %v397_v24, %v173_v22  ;;  %v468_v21 = vld [vmem:[%s22154_s1 + $0x610] sm:$0xff]  ;;  %v670_v23 = vadd.f32 %v446_v15, %v222_v13  ;;  %v301_v13 = vld [vmem:[%s22154_s1 + $0xd8] sm:$0xff] }
 0x16e   :  { %2793 = vmatprep.subr.bf16.mxu0 %v14701_v34  ;;  %3564 = vmatpush1.bf16.msra.mxu1 %v14708_v35  ;;  %v636_v34 = vadd.f32 %v412_v29, %v188_v27  ;;  %v180_v35 = vld [vmem:[%s22153_s0 + $0x410] sm:$0xff]  ;;  %v685_v26 = vadd.f32 %v461_v20, %v237_v18  ;;  %v692_v27 = vadd.f32 %v468_v21, %v244_v19  ;;  %v243_v29 = vld [vmem:[%s22153_s0 + $0x608] sm:$0xff] }
 0x16f   :  { %3565 = vmatprep.subr.bf16.mxu1 %v14713_v36  ;;  %v187_v36 = vld [vmem:[%s22153_s0 + $0x448] sm:$0xff]  ;;  %v782_v39 = vpack.c.bf16 %v621_v32, %v614_v31  ;;  %v628_v45 = vadd.f32 %v404_v37, %v180_v35  ;;  %v236_v28 = vld [vmem:[%s22153_s0 + $0x5d0] sm:$0xff] }
 0x170   :  { %v790_v44 = vpack.c.bf16 %v636_v34, %v629_v33  ;;  %v635_v46 = vadd.f32 %v411_v38, %v187_v36  ;;  %v467_v31 = vld [vmem:[%s22154_s1 + $0x608] sm:$0xff]  ;;  %v258_v34 = vld [vmem:[%s22153_s0 + $0x680] sm:$0xff]  ;;  %v818_v37 = vpack.c.bf16 %v692_v27, %v685_v26  ;;  %v308_v27 = vld [vmem:[%s22154_s1 + $0x110] sm:$0xff] }
 0x171   :  { %2794 = vmatpush1.bf16.msra.mxu0 %v14699_v41  ;;  %v202_v41 = vld [vmem:[%s22153_s0 + $0x4c0] sm:$0xff]  ;;  %v251_v33 = vld [vmem:[%s22153_s0 + $0x648] sm:$0xff] }
 0x172   :  { %3566 = vmatpush1.bf16.msra.mxu1 %v14711_v42  ;;  %v419_v42 = vld [vmem:[%s22154_s1 + $0x488] sm:$0xff]  ;;  %v650_v48 = vadd.f32 %v426_v43, %v202_v41  ;;  %v789_v53 = vpack.c.bf16 %v635_v46, %v628_v45  ;;  %v482_v36 = vld [vmem:[%s22154_s1 + $0x680] sm:$0xff]  ;;  %v257_v43 = vld [vmem:[%s22153_s0 + $0x678] sm:$0xff] }
 0x173   :  { %2659 = vmatmul.mubr.bf16.gmra.mrb[16].mxu0 %v754_v47  ;;  %3431 = vmatmul.mubr.bf16.gmra.mrb[16].mxu1 %v754_v47  ;;  %v643_v47 = vadd.f32 %v419_v42, %v195_v40  ;;  %v475_v35 = vld [vmem:[%s22154_s1 + $0x648] sm:$0xff]  ;;  %v706_v41 = vadd.f32 %v482_v36, %v258_v34  ;;  %v250_v42 = vld [vmem:[%s22153_s0 + $0x640] sm:$0xff]  ;;  %v481_v45 = vld [vmem:[%s22154_s1 + $0x678] sm:$0xff] }
 0x174   :  { %2668 = vmatprep.mubr.bf16.mxu0 %v762_v52  ;;  %3440 = vmatprep.mubr.bf16.mxu1 %v762_v52  ;;  %v425_v52 = vld [vmem:[%s22154_s1 + $0x4b8] sm:$0xff]  ;;  %v699_v40 = vadd.f32 %v475_v35, %v251_v33  ;;  %v14717_v20 = vld [vmem:[%s22157_s4 + $0x20] ss:$16 sps:$4 sm:$0xff]   ;;  %v91_v26 = vld [vmem:[%s22153_s0 + $0x148] sm:$0xff] }
 0x175   :  { %v797_v58 = vpack.c.bf16 %v650_v48, %v643_v47  ;;  %v649_v60 = vadd.f32 %v425_v52, %v201_v50  ;;  %v265_v47 = vld [vmem:[%s22153_s0 + $0x6b8] sm:$0xff]  ;;  %v272_v48 = vld [vmem:[%s22153_s0 + $0x6f0] sm:$0xff] }
 0x176   :  { %v496_v50 = vld [vmem:[%s22154_s1 + $0x6f0] sm:$0xff]  ;;  %v825_v51 = vpack.c.bf16 %v706_v41, %v699_v40  ;;  %v14741_v15 = vld [vmem:[%s22157_s4 + $0x8] ss:$16 sps:$4 sm:$0xff]   ;;  %v322_v41 = vld [vmem:[%s22154_s1 + $0x180] sm:$0xff] }
 0x177   :  { %v796_v3 = vpack.c.bf16 %v649_v60, %v642_v59  ;;  %v720_v55 = vadd.f32 %v496_v50, %v272_v48  ;;  %v495_v59 = vld [vmem:[%s22154_s1 + $0x6e8] sm:$0xff]  ;;  %v14723_v35 = vld [vmem:[%s22157_s4 + $0x60] ss:$16 sps:$4 sm:$0xff]   ;;  %v105_v40 = vld [vmem:[%s22153_s0 + $0x1b8] sm:$0xff] }
 0x178   :  { %v719_v63 = vadd.f32 %v495_v59, %v271_v57  ;;  %v14744_v21 = vld [vmem:[%s22157_s4 + $0x28] ss:$16 sps:$4 sm:$0xff]   ;;  %v14729_v50 = vld [vmem:[%s22157_s4 + $0xa0] ss:$16 sps:$4 sm:$0xff]  }
 0x179   :  { %v14753_v36 = vld [vmem:[%s22157_s4 + $0x68] ss:$16 sps:$4 sm:$0xff]   ;;  %v14732_v59 = vld [vmem:[%s22157_s4 + $0xc0] ss:$16 sps:$4 sm:$0xff]  }
 0x17a   :  { %v343_v57 = vld [vmem:[%s22154_s1 + $0x228] sm:$0xff] }
 0x17b   :  { %2669 = vmatmul.mubr.bf16.gmra.mrb[20].mxu0 %v761_v61  ;;  %3441 = vmatmul.mubr.bf16.gmra.mrb[20].mxu1 %v761_v61  ;;  %v657_v61 = vadd.f32 %v433_v56, %v209_v54  ;;  %v713_v54 = vadd.f32 %v489_v49, %v265_v47  ;;  %v264_v56 = vld [vmem:[%s22153_s0 + $0x6b0] sm:$0xff]  ;;  %v14764_v47 = vld [vmem:[%s22157_s4 + $0xac] ss:$16 sps:$4 sm:$0xff]  }
 0x17c   :  { %2678 = vmatprep.mubr.bf16.mxu0 %v769_v2  ;;  %3450 = vmatprep.mubr.bf16.mxu1 %v769_v2  ;;  %v439_v2 = vld [vmem:[%s22154_s1 + $0x528] sm:$0xff] }
 0x17d   :  { %v804_v8 = vpack.c.bf16 %v664_v62, %v657_v61  ;;  %v663_v10 = vadd.f32 %v439_v2, %v215_v0  ;;  %v832_v61 = vpack.c.bf16 %v720_v55, %v713_v54  ;;  %v56_v0 = vld [vmem:[%s22153_s0 + $0x30] sm:$0xff]  ;;  %v119_v55 = vld [vmem:[%s22153_s0 + $0x228] sm:$0xff] }
 0x17e   :  { %v280_v2 = vld [vmem:[%s22154_s1 + $0x30] sm:$0xff] }
 0x17f   :  { %v803_v17 = vpack.c.bf16 %v663_v10, %v656_v9  ;;  %v504_v5 = vadd.f32 %v280_v2, %v56_v0  ;;  %v70_v10 = vld [vmem:[%s22153_s0 + $0xa0] sm:$0xff]  ;;  %v112_v54 = vld [vmem:[%s22153_s0 + $0x1f0] sm:$0xff]  ;;  %v567_v0 = vadd.f32 %v343_v57, %v119_v55  ;;  %v14771_v2 = vld [vmem:[%s22157_s4 + $0xe8] ss:$16 sps:$4 sm:$0xff]  }
 0x180   :  { %v14792_v55 = vld [vmem:[%s22157_s4 + $0x1c0] ss:$16 sps:$4 sm:$0xff]  }
 0x183   :  { %2679 = vmatmul.mubr.bf16.gmra.mrb[24].mxu0 %v768_v11  ;;  %3451 = vmatmul.mubr.bf16.gmra.mrb[24].mxu1 %v768_v11  ;;  %v671_v11 = vadd.f32 %v447_v6, %v223_v4 }
 0x184   :  { %2688 = vmatprep.mubr.bf16.mxu0 %v776_v16  ;;  %3460 = vmatprep.mubr.bf16.mxu1 %v776_v16  ;;  %v453_v16 = vld [vmem:[%s22154_s1 + $0x598] sm:$0xff] }
 0x185   :  { %v811_v22 = vpack.c.bf16 %v678_v12, %v671_v11  ;;  %v677_v24 = vadd.f32 %v453_v16, %v229_v14  ;;  %v77_v11 = vld [vmem:[%s22153_s0 + $0xd8] sm:$0xff]  ;;  %v294_v12 = vld [vmem:[%s22154_s1 + $0xa0] sm:$0xff] }
 0x186   :  { %v14714_v14 = vld [vmem:[%s22157_s4] ss:$16 sps:$4 sm:$0xff]   ;;  %v14719_v16 = vld [vmem:[%s22157_s4 + $0x24] ss:$16 sps:$4 sm:$0xff]   ;;  %v518_v18 = vadd.f32 %v294_v12, %v70_v10  ;;  %v525_v19 = vadd.f32 %v301_v13, %v77_v11  ;;  %v14777_v12 = vld [vmem:[%s22157_s4 + $0x108] ss:$16 sps:$4 sm:$0xff]  }
 0x187   :  { %v810_v32 = vpack.c.bf16 %v677_v24, %v670_v23  ;;  %v14752_v23 = vld [vmem:[%s22157_s4 + $0x4c] ss:$16 sps:$4 sm:$0xff]   ;;  %v14738_v11 = vld [vmem:[%s22157_s4 + $0x100] ss:$16 sps:$4 sm:$0xff]   ;;  %v14749_v13 = vld [vmem:[%s22157_s4 + $0x124] ss:$16 sps:$4 sm:$0xff]  }
 0x188   :  { %v735_v24 = vpack.c.bf16 %v525_v19, %v518_v18  ;;  %v14780_v18 = vld [vmem:[%s22157_s4 + $0x128] ss:$16 sps:$4 sm:$0xff]   ;;  %v14758_v19 = vld [vmem:[%s22157_s4 + $0x144] ss:$16 sps:$4 sm:$0xff]  }
 0x18b   :  { %2689 = vmatmul.mubr.bf16.gmra.mrb[28].mxu0 %v775_v25  ;;  %3461 = vmatmul.mubr.bf16.gmra.mrb[28].mxu1 %v775_v25  ;;  %v14716_v25 = vld [vmem:[%s22157_s4 + $0x4] ss:$16 sps:$4 sm:$0xff]  }
 0x18c   :  { %2698 = vmatprep.mubr.bf16.mxu0 %v783_v30  ;;  %3470 = vmatprep.mubr.bf16.mxu1 %v783_v30  ;;  %v460_v30 = vld [vmem:[%s22154_s1 + $0x5d0] sm:$0xff] }
 0x18d   :  { %4726 = vmatprep.subr.bf16.mxu0 %v14716_v25  ;;  %v684_v38 = vadd.f32 %v460_v30, %v236_v28  ;;  %v84_v25 = vld [vmem:[%s22153_s0 + $0x110] sm:$0xff]  ;;  %v315_v28 = vld [vmem:[%s22154_s1 + $0x148] sm:$0xff] }
 0x18e   :  { %v14750_v30 = vld [vmem:[%s22157_s4 + $0x48] ss:$16 sps:$4 sm:$0xff]   ;;  %v532_v33 = vadd.f32 %v308_v27, %v84_v25  ;;  %v539_v34 = vadd.f32 %v315_v28, %v91_v26  ;;  %v14756_v26 = vld [vmem:[%s22157_s4 + $0x140] ss:$16 sps:$4 sm:$0xff]   ;;  %v14767_v28 = vld [vmem:[%s22157_s4 + $0x164] ss:$16 sps:$4 sm:$0xff]  }
 0x18f   :  { %v14786_v27 = vld [vmem:[%s22157_s4 + $0x148] ss:$16 sps:$4 sm:$0xff]  }
 0x193   :  { %2699 = vmatmul.mubr.bf16.gmra.mrb[32].mxu0 %v782_v39  ;;  %3471 = vmatmul.mubr.bf16.gmra.mrb[32].mxu1 %v782_v39  ;;  %v691_v39 = vadd.f32 %v467_v31, %v243_v29  ;;  %v14720_v29 = vld [vmem:[%s22157_s4 + $0x40] ss:$16 sps:$4 sm:$0xff]   ;;  %v14725_v31 = vld [vmem:[%s22157_s4 + $0x64] ss:$16 sps:$4 sm:$0xff]  }
 0x194   :  { %2708 = vmatprep.mubr.bf16.mxu0 %v790_v44  ;;  %3480 = vmatprep.mubr.bf16.mxu1 %v790_v44  ;;  %v474_v44 = vld [vmem:[%s22154_s1 + $0x640] sm:$0xff] }
 0x195   :  { %v817_v46 = vpack.c.bf16 %v691_v39, %v684_v38  ;;  %v698_v52 = vadd.f32 %v474_v44, %v250_v42  ;;  %v14761_v38 = vld [vmem:[%s22157_s4 + $0x8c] ss:$16 sps:$4 sm:$0xff]   ;;  %v98_v39 = vld [vmem:[%s22153_s0 + $0x180] sm:$0xff] }
 0x196   :  { %v329_v42 = vld [vmem:[%s22154_s1 + $0x1b8] sm:$0xff]  ;;  %v14726_v44 = vld [vmem:[%s22157_s4 + $0x80] ss:$16 sps:$4 sm:$0xff]   ;;  %v546_v48 = vadd.f32 %v322_v41, %v98_v39 }
 0x197   :  { %v553_v49 = vadd.f32 %v329_v42, %v105_v40  ;;  %v378_v39 = vld [vmem:[%s22154_s1 + $0x340] sm:$0xff]  ;;  %v385_v40 = vld [vmem:[%s22154_s1 + $0x378] sm:$0xff] }
 0x198   :  { %v14774_v41 = vld [vmem:[%s22157_s4 + $0x180] ss:$16 sps:$4 sm:$0xff]   ;;  %v14795_v42 = vld [vmem:[%s22157_s4 + $0x188] ss:$16 sps:$4 sm:$0xff]  }
 0x19b   :  { %2709 = vmatmul.mubr.bf16.gmra.mrb[36].mxu0 %v789_v53  ;;  %3481 = vmatmul.mubr.bf16.gmra.mrb[36].mxu1 %v789_v53  ;;  %v705_v53 = vadd.f32 %v481_v45, %v257_v43  ;;  %v742_v43 = vpack.c.bf16 %v539_v34, %v532_v33  ;;  %v14759_v45 = vld [vmem:[%s22157_s4 + $0x88] ss:$16 sps:$4 sm:$0xff]   ;;  %v14776_v34 = vld [vmem:[%s22157_s4 + $0x184] ss:$16 sps:$4 sm:$0xff]  }
 0x19c   :  { %2718 = vmatprep.mubr.bf16.mxu0 %v797_v58  ;;  %3490 = vmatprep.mubr.bf16.mxu1 %v797_v58  ;;  %v488_v58 = vld [vmem:[%s22154_s1 + $0x6b0] sm:$0xff]  ;;  %v14789_v33 = vld [vmem:[%s22157_s4 + $0x168] ss:$16 sps:$4 sm:$0xff]  }
 0x19d   :  { %v824_v60 = vpack.c.bf16 %v705_v53, %v698_v52  ;;  %v712_v62 = vadd.f32 %v488_v58, %v264_v56  ;;  %v14734_v52 = vld [vmem:[%s22157_s4 + $0xc4] ss:$16 sps:$4 sm:$0xff]   ;;  %v14770_v53 = vld [vmem:[%s22157_s4 + $0xcc] ss:$16 sps:$4 sm:$0xff]   ;;  %v749_v58 = vpack.c.bf16 %v553_v49, %v546_v48  ;;  %v14798_v48 = vld [vmem:[%s22157_s4 + $0x1a8] ss:$16 sps:$4 sm:$0xff]  }
 0x19e   :  { %v336_v56 = vld [vmem:[%s22154_s1 + $0x1f0] sm:$0xff] }
 0x19f   :  { %v831_v4 = vpack.c.bf16 %v719_v63, %v712_v62  ;;  %v14773_v62 = vld [vmem:[%s22157_s4 + $0xec] ss:$16 sps:$4 sm:$0xff]   ;;  %v560_v63 = vadd.f32 %v336_v56, %v112_v54  ;;  %v14794_v49 = vld [vmem:[%s22157_s4 + $0x1c4] ss:$16 sps:$4 sm:$0xff]  }
 0x1a0   :  { %v399_v54 = vld [vmem:[%s22154_s1 + $0x3e8] sm:$0xff] }
 0x1a1   :  { %v756_v10 = vpack.c.bf16 %v567_v0, %v560_v63 }
 0x1a3   :  { %2719 = vmatmul.mubr.bf16.gmra.mrb[40].mxu0 %v796_v3  ;;  %3491 = vmatmul.mubr.bf16.gmra.mrb[40].mxu1 %v796_v3  ;;  %v287_v3 = vld [vmem:[%s22154_s1 + $0x68] sm:$0xff] }
 0x1a4   :  { %2728 = vmatprep.mubr.bf16.mxu0 %v804_v8  ;;  %3500 = vmatprep.mubr.bf16.mxu1 %v804_v8  ;;  %v511_v6 = vadd.f32 %v287_v3, %v63_v1  ;;  %v14743_v8 = vld [vmem:[%s22157_s4 + $0xc] ss:$16 sps:$4 sm:$0xff]   ;;  %v14735_v1 = vld [vmem:[%s22157_s4 + $0xe0] ss:$16 sps:$4 sm:$0xff]   ;;  %v14740_v3 = vld [vmem:[%s22157_s4 + $0x104] ss:$16 sps:$4 sm:$0xff]  }
 0x1a5   :  { %5112 = vmatprep.subr.bf16.mxu1 %v14743_v8  ;;  %v350_v8 = vld [vmem:[%s22154_s1 + $0x260] sm:$0xff] }
 0x1a6   :  { %v728_v9 = vpack.c.bf16 %v511_v6, %v504_v5  ;;  %v126_v5 = vld [vmem:[%s22153_s0 + $0x260] sm:$0xff]  ;;  %v133_v6 = vld [vmem:[%s22153_s0 + $0x298] sm:$0xff] }
 0x1ab   :  { %2729 = vmatmul.mubr.bf16.gmra.mrb[44].mxu0 %v803_v17  ;;  %3501 = vmatmul.mubr.bf16.gmra.mrb[44].mxu1 %v803_v17  ;;  %v14746_v17 = vld [vmem:[%s22157_s4 + $0x2c] ss:$16 sps:$4 sm:$0xff]  }
 0x1ac   :  { %2738 = vmatprep.mubr.bf16.mxu0 %v811_v22  ;;  %3510 = vmatprep.mubr.bf16.mxu1 %v811_v22  ;;  %v14722_v22 = vld [vmem:[%s22157_s4 + $0x44] ss:$16 sps:$4 sm:$0xff]  }
 0x1b3   :  { %2739 = vmatmul.mubr.bf16.gmra.mrb[48].mxu0 %v810_v32  ;;  %3511 = vmatmul.mubr.bf16.gmra.mrb[48].mxu1 %v810_v32  ;;  %v14755_v32 = vld [vmem:[%s22157_s4 + $0x6c] ss:$16 sps:$4 sm:$0xff]  }
 0x1b4   :  { %2748 = vmatprep.mubr.bf16.mxu0 %v818_v37  ;;  %3520 = vmatprep.mubr.bf16.mxu1 %v818_v37  ;;  %v14728_v37 = vld [vmem:[%s22157_s4 + $0x84] ss:$16 sps:$4 sm:$0xff]  }
 0x1bb   :  { %2749 = vmatmul.mubr.bf16.gmra.mrb[52].mxu0 %v817_v46  ;;  %3521 = vmatmul.mubr.bf16.gmra.mrb[52].mxu1 %v817_v46  ;;  %v14731_v46 = vld [vmem:[%s22157_s4 + $0xa4] ss:$16 sps:$4 sm:$0xff]  }
 0x1bc   :  { %2758 = vmatprep.mubr.bf16.mxu0 %v825_v51  ;;  %3530 = vmatprep.mubr.bf16.mxu1 %v825_v51  ;;  %v14762_v51 = vld [vmem:[%s22157_s4 + $0xa8] ss:$16 sps:$4 sm:$0xff]  }
 0x1c3   :  { %2759 = vmatmul.mubr.bf16.gmra.mrb[56].mxu0 %v824_v60  ;;  %3531 = vmatmul.mubr.bf16.gmra.mrb[56].mxu1 %v824_v60  ;;  %v14768_v60 = vld [vmem:[%s22157_s4 + $0xc8] ss:$16 sps:$4 sm:$0xff]  }
 0x1c4   :  { %2768 = vmatprep.mubr.bf16.mxu0 %v832_v61  ;;  %3540 = vmatprep.mubr.bf16.mxu1 %v832_v61  ;;  %v14737_v61 = vld [vmem:[%s22157_s4 + $0xe4] ss:$16 sps:$4 sm:$0xff]  }
 0x1cb   :  { %2769 = vmatmul.mubr.bf16.gmra.mrb[60].mxu0 %v831_v4  ;;  %3541 = vmatmul.mubr.bf16.gmra.mrb[60].mxu1 %v831_v4  ;;  %v14779_v4 = vld [vmem:[%s22157_s4 + $0x10c] ss:$16 sps:$4 sm:$0xff]  }
 0x1cc   :  { %2811 = vmatprep.mubr.bf16.mxu0 %v16342_v7  ;;  %3583 = vmatprep.mubr.bf16.mxu1 %v16342_v7 }
 0x1d3   :  { %2812 = vmatmul.mubr.bf16.vlgmr.msra.gmra.mrb[0].mxu0 %v728_v9  ;;  %3584 = vmatmul.mubr.bf16.vlgmr.msra.gmra.mrb[0].mxu1 %v728_v9  ;;  %v357_v9 = vld [vmem:[%s22154_s1 + $0x298] sm:$0xff] }
 0x1d4   :  { %2821 = vmatprep.mubr.bf16.mxu0 %v16342_v7  ;;  %3593 = vmatprep.mubr.bf16.mxu1 %v16342_v7 }
 0x1d5   :  { %4727 = vmatpush1.bf16.msra.mxu0 %v14714_v14  ;;  %5113 = vmatpush1.bf16.msra.mxu1 %v14741_v15  ;;  %v14782_v14 = vld [vmem:[%s22157_s4 + $0x12c] ss:$16 sps:$4 sm:$0xff]   ;;  %v574_v15 = vadd.f32 %v350_v8, %v126_v5 }
 0x1d6   :  { %4728 = vmatprep.subr.bf16.mxu0 %v14719_v16  ;;  %5114 = vmatprep.subr.bf16.mxu1 %v14746_v17  ;;  %v581_v16 = vadd.f32 %v357_v9, %v133_v6  ;;  %v14747_v17 = vld [vmem:[%s22157_s4 + $0x120] ss:$16 sps:$4 sm:$0xff]   ;;  %v427_v5 = vld [vmem:[%s22154_s1 + $0x4c8] sm:$0xff] }
 0x1d8   :  { %v763_v25 = vpack.c.bf16 %v581_v16, %v574_v15 }
 0x1d9   :  { %4729 = vmatpush1.bf16.msra.mxu0 %v14717_v20  ;;  %5115 = vmatpush1.bf16.msra.mxu1 %v14744_v21  ;;  %v14788_v20 = vld [vmem:[%s22157_s4 + $0x14c] ss:$16 sps:$4 sm:$0xff]   ;;  %v140_v21 = vld [vmem:[%s22153_s0 + $0x2d0] sm:$0xff] }
 0x1da   :  { %4730 = vmatprep.subr.bf16.mxu0 %v14722_v22  ;;  %5116 = vmatprep.subr.bf16.mxu1 %v14752_v23  ;;  %v147_v22 = vld [vmem:[%s22153_s0 + $0x308] sm:$0xff]  ;;  %v364_v23 = vld [vmem:[%s22154_s1 + $0x2d0] sm:$0xff] }
 0x1db   :  { %2822 = vmatmul.mubr.bf16.gmra.mrb[4].mxu0 %v735_v24  ;;  %3594 = vmatmul.mubr.bf16.gmra.mrb[4].mxu1 %v735_v24  ;;  %v371_v24 = vld [vmem:[%s22154_s1 + $0x308] sm:$0xff] }
 0x1dc   :  { %2831 = vmatprep.mubr.bf16.mxu0 %v16342_v7  ;;  %3603 = vmatprep.mubr.bf16.mxu1 %v16342_v7 }
 0x1dd   :  { %4731 = vmatpush1.bf16.msra.mxu0 %v14720_v29  ;;  %5117 = vmatpush1.bf16.msra.mxu1 %v14750_v30  ;;  %v14791_v29 = vld [vmem:[%s22157_s4 + $0x16c] ss:$16 sps:$4 sm:$0xff]   ;;  %v588_v30 = vadd.f32 %v364_v23, %v140_v21 }
 0x1de   :  { %4732 = vmatprep.subr.bf16.mxu0 %v14725_v31  ;;  %5118 = vmatprep.subr.bf16.mxu1 %v14755_v32  ;;  %v595_v31 = vadd.f32 %v371_v24, %v147_v22  ;;  %v14765_v32 = vld [vmem:[%s22157_s4 + $0x160] ss:$16 sps:$4 sm:$0xff]   ;;  %v455_v21 = vld [vmem:[%s22154_s1 + $0x5a8] sm:$0xff] }
 0x1df   :  { %v14804_v22 = vld [vmem:[%s22157_s4 + $0x1c8] ss:$16 sps:$4 sm:$0xff]  }
 0x1e1   :  { %4733 = vmatpush1.bf16.msra.mxu0 %v14723_v35  ;;  %5119 = vmatpush1.bf16.msra.mxu1 %v14753_v36  ;;  %v14797_v35 = vld [vmem:[%s22157_s4 + $0x18c] ss:$16 sps:$4 sm:$0xff]   ;;  %v770_v36 = vpack.c.bf16 %v595_v31, %v588_v30  ;;  %v238_v30 = vld [vmem:[%s22153_s0 + $0x5e0] sm:$0xff] }
 0x1e2   :  { %4734 = vmatprep.subr.bf16.mxu0 %v14728_v37  ;;  %5120 = vmatprep.subr.bf16.mxu1 %v14761_v38  ;;  %v154_v37 = vld [vmem:[%s22153_s0 + $0x340] sm:$0xff]  ;;  %v161_v38 = vld [vmem:[%s22153_s0 + $0x378] sm:$0xff] }
 0x1e3   :  { %2832 = vmatmul.mubr.bf16.gmra.mrb[8].mxu0 %v742_v43  ;;  %3604 = vmatmul.mubr.bf16.gmra.mrb[8].mxu1 %v742_v43  ;;  %v14785_v43 = vld [vmem:[%s22157_s4 + $0x1a4] ss:$16 sps:$4 sm:$0xff]   ;;  %v245_v31 = vld [vmem:[%s22153_s0 + $0x618] sm:$0xff] }
 0x1e4   :  { %2841 = vmatprep.mubr.bf16.mxu0 %v16342_v7  ;;  %3613 = vmatprep.mubr.bf16.mxu1 %v16342_v7 }
 0x1e5   :  { %4735 = vmatpush1.bf16.msra.mxu0 %v14726_v44  ;;  %5121 = vmatpush1.bf16.msra.mxu1 %v14759_v45  ;;  %v14800_v44 = vld [vmem:[%s22157_s4 + $0x1ac] ss:$16 sps:$4 sm:$0xff]   ;;  %v602_v45 = vadd.f32 %v378_v39, %v154_v37 }
 0x1e6   :  { %4736 = vmatprep.subr.bf16.mxu0 %v14731_v46  ;;  %5122 = vmatprep.subr.bf16.mxu1 %v14764_v47  ;;  %v609_v46 = vadd.f32 %v385_v40, %v161_v38  ;;  %v14783_v47 = vld [vmem:[%s22157_s4 + $0x1a0] ss:$16 sps:$4 sm:$0xff]   ;;  %v259_v39 = vld [vmem:[%s22153_s0 + $0x688] sm:$0xff] }
 0x1e7   :  { %v252_v38 = vld [vmem:[%s22153_s0 + $0x650] sm:$0xff] }
 0x1e8   :  { %v476_v40 = vld [vmem:[%s22154_s1 + $0x650] sm:$0xff] }
 0x1e9   :  { %4737 = vmatpush1.bf16.msra.mxu0 %v14729_v50  ;;  %5123 = vmatpush1.bf16.msra.mxu1 %v14762_v51  ;;  %v777_v50 = vpack.c.bf16 %v609_v46, %v602_v45  ;;  %v168_v51 = vld [vmem:[%s22153_s0 + $0x3b0] sm:$0xff]  ;;  %v266_v45 = vld [vmem:[%s22153_s0 + $0x6c0] sm:$0xff]  ;;  %v273_v46 = vld [vmem:[%s22153_s0 + $0x6f8] sm:$0xff] }
 0x1ea   :  { %4738 = vmatprep.subr.bf16.mxu0 %v14734_v52  ;;  %5124 = vmatprep.subr.bf16.mxu1 %v14770_v53  ;;  %v175_v52 = vld [vmem:[%s22153_s0 + $0x3e8] sm:$0xff]  ;;  %v392_v53 = vld [vmem:[%s22154_s1 + $0x3b0] sm:$0xff] }
 0x1eb   :  { %2842 = vmatmul.mubr.bf16.gmra.mrb[12].mxu0 %v749_v58  ;;  %3614 = vmatmul.mubr.bf16.gmra.mrb[12].mxu1 %v749_v58  ;;  %v616_v56 = vadd.f32 %v392_v53, %v168_v51  ;;  %v623_v57 = vadd.f32 %v399_v54, %v175_v52  ;;  %v14839_v52 = vld [vmem:[%s22157_s4 + $0x20c] ss:$16 sps:$4 sm:$0xff]   ;;  %v1060_v53 = vlaneseq }
 0x1ec   :  { %2851 = vmatprep.mubr.bf16.mxu0 %v16342_v7  ;;  %3623 = vmatprep.mubr.bf16.mxu1 %v16342_v7 }
 0x1ed   :  { %4739 = vmatpush1.bf16.msra.mxu0 %v14732_v59  ;;  %5125 = vmatpush1.bf16.msra.mxu1 %v14768_v60  ;;  %v784_v58 = vpack.c.bf16 %v623_v57, %v616_v56  ;;  %v182_v59 = vld [vmem:[%s22153_s0 + $0x420] sm:$0xff]  ;;  %v189_v60 = vld [vmem:[%s22153_s0 + $0x458] sm:$0xff]  ;;  %v18656_v54 = vshrl.u32 %v1060_v53, 7 }
 0x1ee   :  { %4740 = vmatprep.subr.bf16.mxu0 %v14737_v61  ;;  %5126 = vmatprep.subr.bf16.mxu1 %v14773_v62  ;;  %v406_v61 = vld [vmem:[%s22154_s1 + $0x420] sm:$0xff]  ;;  %v413_v62 = vld [vmem:[%s22154_s1 + $0x458] sm:$0xff] }
 0x1ef   :  { %v630_v63 = vadd.f32 %v406_v61, %v182_v59  ;;  %v637_v0 = vadd.f32 %v413_v62, %v189_v60  ;;  %22230 = vst [vmem:[#allocation5_spill] sm:$0xff] %v18656_v54  ;;  %v18662_v56 = vsub.s32 2, %v18656_v54  ;;  %v18668_v57 = vsub.s32 1, %v18656_v54 }
 0x1f1   :  { %4741 = vmatpush1.bf16.msra.mxu0 %v14735_v1  ;;  %5127 = vmatpush1.bf16.msra.mxu1 %v14771_v2  ;;  %v791_v1 = vpack.c.bf16 %v637_v0, %v630_v63  ;;  %v196_v2 = vld [vmem:[%s22153_s0 + $0x490] sm:$0xff]  ;;  %22232 = vst [vmem:[#allocation7_spill] sm:$0xff] %v18662_v56  ;;  %22233 = vst [vmem:[#allocation8_spill] sm:$0xff] %v18668_v57 }
 0x1f2   :  { %4742 = vmatprep.subr.bf16.mxu0 %v14740_v3  ;;  %5128 = vmatprep.subr.bf16.mxu1 %v14779_v4  ;;  %v203_v3 = vld [vmem:[%s22153_s0 + $0x4c8] sm:$0xff]  ;;  %v420_v4 = vld [vmem:[%s22154_s1 + $0x490] sm:$0xff] }
 0x1f3   :  { %2852 = vmatmul.mubr.bf16.gmra.mrb[16].mxu0 %v756_v10  ;;  %3624 = vmatmul.mubr.bf16.gmra.mrb[16].mxu1 %v756_v10  ;;  %v644_v6 = vadd.f32 %v420_v4, %v196_v2  ;;  %v651_v8 = vadd.f32 %v427_v5, %v203_v3  ;;  %v210_v10 = vld [vmem:[%s22153_s0 + $0x500] sm:$0xff] }
 0x1f4   :  { %2861 = vmatprep.mubr.bf16.mxu0 %v16342_v7  ;;  %3633 = vmatprep.mubr.bf16.mxu1 %v16342_v7 }
 0x1f5   :  { %4743 = vmatpush1.bf16.msra.mxu0 %v14738_v11  ;;  %5129 = vmatpush1.bf16.msra.mxu1 %v14777_v12  ;;  %v798_v9 = vpack.c.bf16 %v651_v8, %v644_v6  ;;  %v217_v11 = vld [vmem:[%s22153_s0 + $0x538] sm:$0xff]  ;;  %v434_v12 = vld [vmem:[%s22154_s1 + $0x500] sm:$0xff] }
 0x1f6   :  { %4744 = vmatprep.subr.bf16.mxu0 %v14749_v13  ;;  %5130 = vmatprep.subr.bf16.mxu1 %v14782_v14  ;;  %v441_v13 = vld [vmem:[%s22154_s1 + $0x538] sm:$0xff]  ;;  %v658_v14 = vadd.f32 %v434_v12, %v210_v10 }
 0x1f7   :  { %v665_v15 = vadd.f32 %v441_v13, %v217_v11 }
 0x1f9   :  { %4745 = vmatpush1.bf16.msra.mxu0 %v14747_v17  ;;  %5131 = vmatpush1.bf16.msra.mxu1 %v14780_v18  ;;  %v805_v16 = vpack.c.bf16 %v665_v15, %v658_v14  ;;  %v224_v17 = vld [vmem:[%s22153_s0 + $0x570] sm:$0xff]  ;;  %v231_v18 = vld [vmem:[%s22153_s0 + $0x5a8] sm:$0xff] }
 0x1fa   :  { %4746 = vmatprep.subr.bf16.mxu0 %v14758_v19  ;;  %5132 = vmatprep.subr.bf16.mxu1 %v14788_v20  ;;  %v14806_v19 = vld [vmem:[%s22157_s4 + $0x1cc] ss:$16 sps:$4 sm:$0xff]   ;;  %v448_v20 = vld [vmem:[%s22154_s1 + $0x570] sm:$0xff]  ;;  %v679_v24 = vadd.f32 %v455_v21, %v231_v18 }
 0x1fb   :  { %2862 = vmatmul.mubr.bf16.gmra.mrb[20].mxu0 %v763_v25  ;;  %3634 = vmatmul.mubr.bf16.gmra.mrb[20].mxu1 %v763_v25  ;;  %v672_v23 = vadd.f32 %v448_v20, %v224_v17  ;;  %v14803_v25 = vld [vmem:[%s22157_s4 + $0x1e4] ss:$16 sps:$4 sm:$0xff]  }
 0x1fc   :  { %2871 = vmatprep.mubr.bf16.mxu0 %v16342_v7  ;;  %3643 = vmatprep.mubr.bf16.mxu1 %v16342_v7 }
 0x1fd   :  { %4747 = vmatpush1.bf16.msra.mxu0 %v14756_v26  ;;  %5133 = vmatpush1.bf16.msra.mxu1 %v14786_v27  ;;  %v14809_v26 = vld [vmem:[%s22157_s4 + $0x1ec] ss:$16 sps:$4 sm:$0xff]   ;;  %v14801_v27 = vld [vmem:[%s22157_s4 + $0x1e0] ss:$16 sps:$4 sm:$0xff]  }
 0x1fe   :  { %4748 = vmatprep.subr.bf16.mxu0 %v14767_v28  ;;  %5134 = vmatprep.subr.bf16.mxu1 %v14791_v29  ;;  %v14807_v28 = vld [vmem:[%s22157_s4 + $0x1e8] ss:$16 sps:$4 sm:$0xff]   ;;  %v812_v29 = vpack.c.bf16 %v679_v24, %v672_v23 }
 0x201   :  { %4749 = vmatpush1.bf16.msra.mxu0 %v14765_v32  ;;  %5135 = vmatpush1.bf16.msra.mxu1 %v14789_v33  ;;  %v462_v32 = vld [vmem:[%s22154_s1 + $0x5e0] sm:$0xff]  ;;  %v469_v33 = vld [vmem:[%s22154_s1 + $0x618] sm:$0xff] }
 0x202   :  { %4750 = vmatprep.subr.bf16.mxu0 %v14776_v34  ;;  %5136 = vmatprep.subr.bf16.mxu1 %v14797_v35  ;;  %v686_v34 = vadd.f32 %v462_v32, %v238_v30  ;;  %v693_v35 = vadd.f32 %v469_v33, %v245_v31  ;;  %v14837_v30 = vld [vmem:[%s22157_s4 + $0x208] ss:$16 sps:$4 sm:$0xff]  }
 0x203   :  { %2872 = vmatmul.mubr.bf16.gmra.mrb[24].mxu0 %v770_v36  ;;  %3644 = vmatmul.mubr.bf16.gmra.mrb[24].mxu1 %v770_v36  ;;  %v14812_v36 = vld [vmem:[%s22157_s4 + $0x204] ss:$16 sps:$4 sm:$0xff]  }
 0x204   :  { %2881 = vmatprep.mubr.bf16.mxu0 %v16342_v7  ;;  %3653 = vmatprep.mubr.bf16.mxu1 %v16342_v7  ;;  %v819_v37 = vpack.c.bf16 %v693_v35, %v686_v34 }
 0x205   :  { %4751 = vmatpush1.bf16.msra.mxu0 %v14774_v41  ;;  %5137 = vmatpush1.bf16.msra.mxu1 %v14795_v42  ;;  %v483_v41 = vld [vmem:[%s22154_s1 + $0x688] sm:$0xff]  ;;  %v700_v42 = vadd.f32 %v476_v40, %v252_v38 }
 0x206   :  { %4752 = vmatprep.subr.bf16.mxu0 %v14785_v43  ;;  %5138 = vmatprep.subr.bf16.mxu1 %v14800_v44  ;;  %v707_v43 = vadd.f32 %v483_v41, %v259_v39 }
 0x208   :  { %v826_v44 = vpack.c.bf16 %v707_v43, %v700_v42 }
 0x209   :  { %4753 = vmatpush1.bf16.msra.mxu0 %v14783_v47  ;;  %5139 = vmatpush1.bf16.msra.mxu1 %v14798_v48  ;;  %v490_v47 = vld [vmem:[%s22154_s1 + $0x6c0] sm:$0xff]  ;;  %v497_v48 = vld [vmem:[%s22154_s1 + $0x6f8] sm:$0xff] }
 0x20a   :  { %4754 = vmatprep.subr.bf16.mxu0 %v14794_v49  ;;  %5140 = vmatprep.subr.bf16.mxu1 %v14806_v19  ;;  %v714_v49 = vadd.f32 %v490_v47, %v266_v45 }
 0x20b   :  { %2882 = vmatmul.mubr.bf16.gmra.mrb[28].mxu0 %v777_v50  ;;  %3654 = vmatmul.mubr.bf16.gmra.mrb[28].mxu1 %v777_v50  ;;  %v721_v50 = vadd.f32 %v497_v48, %v273_v46  ;;  %v14813_v48 = vld [vmem:[%s22157_s4 + $0x220] ss:$16 sps:$4 sm:$0xff]  }
 0x20c   :  { %2891 = vmatprep.mubr.bf16.mxu0 %v16342_v7  ;;  %3663 = vmatprep.mubr.bf16.mxu1 %v16342_v7 }
 0x20d   :  { %4755 = vmatpush1.bf16.msra.mxu0 %v14792_v55  ;;  %5141 = vmatpush1.bf16.msra.mxu1 %v14804_v22  ;;  %v833_v51 = vpack.c.bf16 %v721_v50, %v714_v49  ;;  %v18659_v55 = vsub.s32 0, %v18656_v54  ;;  %v14818_v49 = vld [vmem:[%s22157_s4 + $0x244] ss:$16 sps:$4 sm:$0xff]   ;;  %v14840_v50 = vld [vmem:[%s22157_s4 + $0x228] ss:$16 sps:$4 sm:$0xff]  }
 0x20e   :  { %4756 = vmatprep.subr.bf16.mxu0 %v14803_v25  ;;  %5142 = vmatprep.subr.bf16.mxu1 %v14809_v26 }
 0x20f   :  { %22231 = vst [vmem:[#allocation6_spill] sm:$0xff] %v18659_v55 }
 0x211   :  { %4757 = vmatpush1.bf16.msra.mxu0 %v14801_v27  ;;  %5143 = vmatpush1.bf16.msra.mxu1 %v14807_v28 }
 0x212   :  { %4919 = vmatprep.subr.bf16.mxu0 %v14812_v36  ;;  %5305 = vmatprep.subr.bf16.mxu1 %v14839_v52  ;;  %v14815_v36 = vld [vmem:[%s22157_s4 + $0x224] ss:$16 sps:$4 sm:$0xff]  }
 0x213   :  { %2892 = vmatmul.mubr.bf16.gmra.mrb[32].mxu0 %v784_v58  ;;  %3664 = vmatmul.mubr.bf16.gmra.mrb[32].mxu1 %v784_v58  ;;  %v18671_v58 = vsub.s32 3, %v18656_v54 }
 0x214   :  { %2901 = vmatprep.mubr.bf16.mxu0 %v16342_v7  ;;  %3673 = vmatprep.mubr.bf16.mxu1 %v16342_v7 }
 0x215   :  { %22234 = vst [vmem:[#allocation9_spill] sm:$0xff] %v18671_v58 }
 0x21b   :  { %2902 = vmatmul.mubr.bf16.gmra.mrb[36].mxu0 %v791_v1  ;;  %3674 = vmatmul.mubr.bf16.gmra.mrb[36].mxu1 %v791_v1 }
 0x21c   :  { %2911 = vmatprep.mubr.bf16.mxu0 %v16342_v7  ;;  %3683 = vmatprep.mubr.bf16.mxu1 %v16342_v7 }
 0x223   :  { %2912 = vmatmul.mubr.bf16.gmra.mrb[40].mxu0 %v798_v9  ;;  %3684 = vmatmul.mubr.bf16.gmra.mrb[40].mxu1 %v798_v9 }
 0x224   :  { %2921 = vmatprep.mubr.bf16.mxu0 %v16342_v7  ;;  %3693 = vmatprep.mubr.bf16.mxu1 %v16342_v7 }
 0x22b   :  { %2922 = vmatmul.mubr.bf16.gmra.mrb[44].mxu0 %v805_v16  ;;  %3694 = vmatmul.mubr.bf16.gmra.mrb[44].mxu1 %v805_v16 }
 0x22c   :  { %2931 = vmatprep.mubr.bf16.mxu0 %v16342_v7  ;;  %3703 = vmatprep.mubr.bf16.mxu1 %v16342_v7 }
 0x233   :  { %2932 = vmatmul.mubr.bf16.gmra.mrb[48].mxu0 %v812_v29  ;;  %3704 = vmatmul.mubr.bf16.gmra.mrb[48].mxu1 %v812_v29  ;;  %v14810_v29 = vld [vmem:[%s22157_s4 + $0x200] ss:$16 sps:$4 sm:$0xff]  }
 0x234   :  { %2941 = vmatprep.mubr.bf16.mxu0 %v16342_v7  ;;  %3713 = vmatprep.mubr.bf16.mxu1 %v16342_v7 }
 0x23b   :  { %2942 = vmatmul.mubr.bf16.gmra.mrb[52].mxu0 %v819_v37  ;;  %3714 = vmatmul.mubr.bf16.gmra.mrb[52].mxu1 %v819_v37  ;;  %v14842_v37 = vld [vmem:[%s22157_s4 + $0x22c] ss:$16 sps:$4 sm:$0xff]  }
 0x23c   :  { %2951 = vmatprep.mubr.bf16.mxu0 %v16342_v7  ;;  %3723 = vmatprep.mubr.bf16.mxu1 %v16342_v7 }
 0x243   :  { %2952 = vmatmul.mubr.bf16.gmra.mrb[56].mxu0 %v826_v44  ;;  %3724 = vmatmul.mubr.bf16.gmra.mrb[56].mxu1 %v826_v44 }
 0x244   :  { %2961 = vmatprep.mubr.bf16.mxu0 %v16342_v7  ;;  %3733 = vmatprep.mubr.bf16.mxu1 %v16342_v7  ;;  %v1058_v7 = vld [vmem:[%s22156_s3] sm:$0xf] }
 0x245   :  { %v18674_v59 = vrot.slane %v1058_v7, %v18659_v55  ;;  %v18677_v60 = vrot.slane %v1058_v7, %v18662_v56  ;;  %v18680_v61 = vrot.slane %v1058_v7, %v18668_v57  ;;  %v18683_v62 = vrot.slane %v1058_v7, %v18671_v58 }
 0x24b   :  { %2962 = vmatmul.mubr.bf16.gmra.mrb[60].mxu0 %v833_v51  ;;  %3734 = vmatmul.mubr.bf16.gmra.mrb[60].mxu1 %v833_v51 }
 0x2a6   :  { %v2813_v63 = vpop.f32.mrb[0].mxu0  ;;  %v3585_v0 = vpop.f32.mrb[0].mxu1 }
 0x2a7   :  { %v12966_v1 = vadd.f32 %v2813_v63, %v18674_v59  ;;  %v13030_v2 = vadd.f32 %v3585_v0, %v18677_v60  ;;  %v2815_v3 = vpop.f32.mrb[1].mxu0  ;;  %v3587_v4 = vpop.f32.mrb[1].mxu1  ;;  %v14848_v63 = vld [vmem:[%s22157_s4 + $0x24c] ss:$16 sps:$4 sm:$0xff]  }
 0x2a8   :  { %v12967_v5 = vadd.f32 %v2815_v3, %v18680_v61  ;;  %v13031_v6 = vadd.f32 %v3587_v4, %v18683_v62  ;;  %v2817_v8 = vpop.f32.mrb[2].mxu0  ;;  %v3589_v9 = vpop.f32.mrb[2].mxu1 }
 0x2a9   :  { %v12968_v10 = vadd.f32 %v2817_v8, %v18674_v59  ;;  %v13032_v11 = vadd.f32 %v3589_v9, %v18677_v60  ;;  %v2819_v12 = vpop.f32.mrb[3].mxu0  ;;  %v3591_v13 = vpop.f32.mrb[3].mxu1  ;;  %v3744_v16 = vmax.f32 %v12966_v1, 0.0  ;;  %v3746_v17 = vmax.f32 %v13030_v2, 0.0 }
 0x2aa   :  { %v12969_v14 = vadd.f32 %v2819_v12, %v18680_v61  ;;  %v13033_v15 = vadd.f32 %v3591_v13, %v18683_v62  ;;  %v3747_v20 = vmax.f32 %v13031_v6, 0.0  ;;  %v3745_v22 = vmax.f32 %v12967_v5, 0.0 }
 0x2ab   :  { %v3748_v18 = vmax.f32 %v12968_v10, 0.0  ;;  %v3750_v19 = vmax.f32 %v13032_v11, 0.0  ;;  %v14816_v10 = vld [vmem:[%s22157_s4 + $0x240] ss:$16 sps:$4 sm:$0xff]   ;;  %v14846_v11 = vld [vmem:[%s22157_s4 + $0x248] ss:$16 sps:$4 sm:$0xff]  }
 0x2ac   :  { %v3751_v21 = vmax.f32 %v13033_v15, 0.0  ;;  %v3749_v23 = vmax.f32 %v12969_v14, 0.0 }
 0x2ad   :  { %v3872_v24 = vpack.c.bf16 %v3748_v18, %v3744_v16  ;;  %v18693_v25 = vpack.c.bf16 %v3750_v19, %v3746_v17  ;;  %v14821_v17 = vld [vmem:[%s22157_s4 + $0x264] ss:$16 sps:$4 sm:$0xff]   ;;  %v14851_v18 = vld [vmem:[%s22157_s4 + $0x26c] ss:$16 sps:$4 sm:$0xff]  }
 0x2ae   :  { %v2823_v26 = vpop.f32.mrb[4].mxu0  ;;  %v3595_v27 = vpop.f32.mrb[4].mxu1  ;;  %v3873_v28 = vpack.c.bf16 %v3749_v23, %v3745_v22  ;;  %v18701_v31 = vpack.c.bf16 %v3751_v21, %v3747_v20 }
 0x2af   :  { %v12970_v32 = vadd.f32 %v2823_v26, %v18674_v59  ;;  %v13034_v33 = vadd.f32 %v3595_v27, %v18677_v60  ;;  %v2825_v34 = vpop.f32.mrb[5].mxu0  ;;  %v3597_v35 = vpop.f32.mrb[5].mxu1 }
 0x2b0   :  { %v12971_v38 = vadd.f32 %v2825_v34, %v18680_v61  ;;  %v13035_v39 = vadd.f32 %v3597_v35, %v18683_v62  ;;  %v2827_v40 = vpop.f32.mrb[6].mxu0  ;;  %v3599_v41 = vpop.f32.mrb[6].mxu1  ;;  %4758 = vmatprep.mubr.bf16.mxu0 %v3873_v28  ;;  %5144 = vmatprep.mubr.bf16.mxu1 %v3873_v28 }
 0x2b1   :  { %v12972_v42 = vadd.f32 %v2827_v40, %v18674_v59  ;;  %v13036_v43 = vadd.f32 %v3599_v41, %v18677_v60  ;;  %v2829_v44 = vpop.f32.mrb[7].mxu0  ;;  %v3601_v45 = vpop.f32.mrb[7].mxu1  ;;  %4759 = vmatmul.mubr.bf16.vlgmr.msra.gmra.mrb[64].mxu0 %v3872_v24  ;;  %5145 = vmatmul.mubr.bf16.vlgmr.msra.gmra.mrb[64].mxu1 %v3872_v24  ;;  %v3754_v51 = vmax.f32 %v13034_v33, 0.0  ;;  %v3752_v53 = vmax.f32 %v12970_v32, 0.0  ;;  %v14824_v32 = vld [vmem:[%s22157_s4 + $0x284] ss:$16 sps:$4 sm:$0xff]  }
 0x2b2   :  { %v12973_v46 = vadd.f32 %v2829_v44, %v18680_v61  ;;  %v13037_v47 = vadd.f32 %v3601_v45, %v18683_v62  ;;  %4920 = vmatpush1.bf16.msra.mxu0 %v14810_v29  ;;  %5306 = vmatpush1.bf16.msra.mxu1 %v14837_v30  ;;  %v3755_v0 = vmax.f32 %v13035_v39, 0.0  ;;  %v3753_v2 = vmax.f32 %v12971_v38, 0.0  ;;  %v14819_v30 = vld [vmem:[%s22157_s4 + $0x260] ss:$16 sps:$4 sm:$0xff]   ;;  %v14849_v33 = vld [vmem:[%s22157_s4 + $0x268] ss:$16 sps:$4 sm:$0xff]  }
 0x2b3   :  { %v3758_v52 = vmax.f32 %v13036_v43, 0.0  ;;  %v3756_v7 = vmax.f32 %v12972_v42, 0.0  ;;  %4921 = vmatprep.subr.bf16.mxu0 %v14815_v36  ;;  %5307 = vmatprep.subr.bf16.mxu1 %v14842_v37  ;;  %v14857_v38 = vld [vmem:[%s22157_s4 + $0x28c] ss:$16 sps:$4 sm:$0xff]  }
 0x2b4   :  { %v3759_v1 = vmax.f32 %v13037_v47, 0.0  ;;  %v3757_v3 = vmax.f32 %v12973_v46, 0.0 }
 0x2b5   :  { %v3876_v4 = vpack.c.bf16 %v3756_v7, %v3752_v53  ;;  %v18729_v5 = vpack.c.bf16 %v3758_v52, %v3754_v51 }
 0x2b6   :  { %v2833_v6 = vpop.f32.mrb[8].mxu0  ;;  %v3605_v8 = vpop.f32.mrb[8].mxu1  ;;  %v3877_v9 = vpack.c.bf16 %v3757_v3, %v3753_v2  ;;  %4922 = vmatpush1.bf16.msra.mxu0 %v14813_v48  ;;  %5308 = vmatpush1.bf16.msra.mxu1 %v14840_v50  ;;  %v18737_v12 = vpack.c.bf16 %v3759_v1, %v3755_v0  ;;  %v14822_v48 = vld [vmem:[%s22157_s4 + $0x280] ss:$16 sps:$4 sm:$0xff]   ;;  %v14860_v0 = vld [vmem:[%s22157_s4 + $0x2ac] ss:$16 sps:$4 sm:$0xff]  }
 0x2b7   :  { %v12974_v13 = vadd.f32 %v2833_v6, %v18674_v59  ;;  %v13038_v14 = vadd.f32 %v3605_v8, %v18677_v60  ;;  %v2835_v15 = vpop.f32.mrb[9].mxu0  ;;  %v3607_v16 = vpop.f32.mrb[9].mxu1  ;;  %4923 = vmatprep.subr.bf16.mxu0 %v14818_v49  ;;  %5309 = vmatprep.subr.bf16.mxu1 %v14848_v63  ;;  %v14855_v49 = vld [vmem:[%s22157_s4 + $0x288] ss:$16 sps:$4 sm:$0xff]   ;;  %v14827_v63 = vld [vmem:[%s22157_s4 + $0x2a4] ss:$16 sps:$4 sm:$0xff]  }
 0x2b8   :  { %v12975_v19 = vadd.f32 %v2835_v15, %v18680_v61  ;;  %v13039_v20 = vadd.f32 %v3607_v16, %v18683_v62  ;;  %v2837_v21 = vpop.f32.mrb[10].mxu0  ;;  %v3609_v22 = vpop.f32.mrb[10].mxu1  ;;  %4768 = vmatprep.mubr.bf16.mxu0 %v3877_v9  ;;  %5154 = vmatprep.mubr.bf16.mxu1 %v3877_v9  ;;  %v14830_v15 = vld [vmem:[%s22157_s4 + $0x2c4] ss:$16 sps:$4 sm:$0xff]   ;;  %v14858_v16 = vld [vmem:[%s22157_s4 + $0x2a8] ss:$16 sps:$4 sm:$0xff]  }
 0x2b9   :  { %v12976_v23 = vadd.f32 %v2837_v21, %v18674_v59  ;;  %v13040_v24 = vadd.f32 %v3609_v22, %v18677_v60  ;;  %v2839_v26 = vpop.f32.mrb[11].mxu0  ;;  %v3611_v27 = vpop.f32.mrb[11].mxu1  ;;  %4769 = vmatmul.mubr.bf16.gmra.mrb[68].mxu0 %v3876_v4  ;;  %5155 = vmatmul.mubr.bf16.gmra.mrb[68].mxu1 %v3876_v4  ;;  %v3762_v34 = vmax.f32 %v13038_v14, 0.0  ;;  %v3760_v36 = vmax.f32 %v12974_v13, 0.0  ;;  %v14825_v14 = vld [vmem:[%s22157_s4 + $0x2a0] ss:$16 sps:$4 sm:$0xff]  }
 0x2ba   :  { %v12977_v28 = vadd.f32 %v2839_v26, %v18680_v61  ;;  %v13041_v29 = vadd.f32 %v3611_v27, %v18683_v62  ;;  %4924 = vmatpush1.bf16.msra.mxu0 %v14816_v10  ;;  %5310 = vmatpush1.bf16.msra.mxu1 %v14846_v11  ;;  %v3763_v39 = vmax.f32 %v13039_v20, 0.0  ;;  %v3761_v41 = vmax.f32 %v12975_v19, 0.0  ;;  %v14866_v21 = vld [vmem:[%s22157_s4 + $0x2cc] ss:$16 sps:$4 sm:$0xff]  }
 0x2bb   :  { %v3766_v35 = vmax.f32 %v13040_v24, 0.0  ;;  %v3764_v37 = vmax.f32 %v12976_v23, 0.0  ;;  %4925 = vmatprep.subr.bf16.mxu0 %v14821_v17  ;;  %5311 = vmatprep.subr.bf16.mxu1 %v14851_v18 }
 0x2bc   :  { %v3767_v40 = vmax.f32 %v13041_v29, 0.0  ;;  %v3765_v42 = vmax.f32 %v12977_v28, 0.0 }
 0x2bd   :  { %v3880_v43 = vpack.c.bf16 %v3764_v37, %v3760_v36  ;;  %v18765_v44 = vpack.c.bf16 %v3766_v35, %v3762_v34  ;;  %v14864_v34 = vld [vmem:[%s22157_s4 + $0x2c8] ss:$16 sps:$4 sm:$0xff]  }
 0x2be   :  { %v2843_v45 = vpop.f32.mrb[12].mxu0  ;;  %v3615_v46 = vpop.f32.mrb[12].mxu1  ;;  %v3881_v47 = vpack.c.bf16 %v3765_v42, %v3761_v41  ;;  %4926 = vmatpush1.bf16.msra.mxu0 %v14819_v30  ;;  %5312 = vmatpush1.bf16.msra.mxu1 %v14849_v33  ;;  %v18773_v50 = vpack.c.bf16 %v3767_v40, %v3763_v39  ;;  %v14828_v33 = vld [vmem:[%s22157_s4 + $0x2c0] ss:$16 sps:$4 sm:$0xff]   ;;  %v14833_v40 = vld [vmem:[%s22157_s4 + $0x2e4] ss:$16 sps:$4 sm:$0xff]  }
 0x2bf   :  { %v12978_v51 = vadd.f32 %v2843_v45, %v18674_v59  ;;  %v13042_v52 = vadd.f32 %v3615_v46, %v18677_v60  ;;  %v2845_v53 = vpop.f32.mrb[13].mxu0  ;;  %v3617_v7 = vpop.f32.mrb[13].mxu1  ;;  %4927 = vmatprep.subr.bf16.mxu0 %v14824_v32  ;;  %5313 = vmatprep.subr.bf16.mxu1 %v14857_v38  ;;  %v14869_v41 = vld [vmem:[%s22157_s4 + $0x2ec] ss:$16 sps:$4 sm:$0xff]  }
 0x2c0   :  { %v12979_v1 = vadd.f32 %v2845_v53, %v18680_v61  ;;  %v13043_v2 = vadd.f32 %v3617_v7, %v18683_v62  ;;  %v2847_v3 = vpop.f32.mrb[14].mxu0  ;;  %v3619_v4 = vpop.f32.mrb[14].mxu1  ;;  %4778 = vmatprep.mubr.bf16.mxu0 %v3881_v47  ;;  %5164 = vmatprep.mubr.bf16.mxu1 %v3881_v47  ;;  %v14831_v7 = vld [vmem:[%s22157_s4 + $0x2e0] ss:$16 sps:$4 sm:$0xff]  }
 0x2c1   :  { %v12980_v6 = vadd.f32 %v2847_v3, %v18674_v59  ;;  %v13044_v8 = vadd.f32 %v3619_v4, %v18677_v60  ;;  %v2849_v9 = vpop.f32.mrb[15].mxu0  ;;  %v3621_v10 = vpop.f32.mrb[15].mxu1  ;;  %4779 = vmatmul.mubr.bf16.gmra.mrb[72].mxu0 %v3880_v43  ;;  %5165 = vmatmul.mubr.bf16.gmra.mrb[72].mxu1 %v3880_v43  ;;  %v3770_v17 = vmax.f32 %v13042_v52, 0.0  ;;  %v3768_v19 = vmax.f32 %v12978_v51, 0.0 }
 0x2c2   :  { %v12981_v11 = vadd.f32 %v2849_v9, %v18680_v61  ;;  %v13045_v13 = vadd.f32 %v3621_v10, %v18683_v62  ;;  %4928 = vmatpush1.bf16.msra.mxu0 %v14822_v48  ;;  %5314 = vmatpush1.bf16.msra.mxu1 %v14855_v49  ;;  %v3771_v22 = vmax.f32 %v13043_v2, 0.0  ;;  %v3769_v24 = vmax.f32 %v12979_v1, 0.0 }
 0x2c3   :  { %v3774_v18 = vmax.f32 %v13044_v8, 0.0  ;;  %v3772_v20 = vmax.f32 %v12980_v6, 0.0  ;;  %4929 = vmatprep.subr.bf16.mxu0 %v14827_v63  ;;  %5315 = vmatprep.subr.bf16.mxu1 %v14860_v0  ;;  %v14836_v63 = vld [vmem:[%s22157_s4 + $0x304] ss:$16 sps:$4 sm:$0xff]   ;;  %v14867_v0 = vld [vmem:[%s22157_s4 + $0x2e8] ss:$16 sps:$4 sm:$0xff]  }
 0x2c4   :  { %v3775_v23 = vmax.f32 %v13045_v13, 0.0  ;;  %v3773_v26 = vmax.f32 %v12981_v11, 0.0  ;;  %v14875_v6 = vld [vmem:[%s22157_s4 + $0x30c] ss:$16 sps:$4 sm:$0xff]  }
 0x2c5   :  { %v3884_v27 = vpack.c.bf16 %v3772_v20, %v3768_v19  ;;  %v18801_v28 = vpack.c.bf16 %v3774_v18, %v3770_v17  ;;  %v14834_v18 = vld [vmem:[%s22157_s4 + $0x300] ss:$16 sps:$4 sm:$0xff]   ;;  %v14873_v19 = vld [vmem:[%s22157_s4 + $0x308] ss:$16 sps:$4 sm:$0xff]  }
 0x2c6   :  { %v2853_v29 = vpop.f32.mrb[16].mxu0  ;;  %v3625_v30 = vpop.f32.mrb[16].mxu1  ;;  %v3885_v32 = vpack.c.bf16 %v3773_v26, %v3769_v24  ;;  %4930 = vmatpush1.bf16.msra.mxu0 %v14825_v14  ;;  %5316 = vmatpush1.bf16.msra.mxu1 %v14858_v16  ;;  %v18809_v35 = vpack.c.bf16 %v3775_v23, %v3771_v22  ;;  %v14845_v26 = vld [vmem:[%s22157_s4 + $0x324] ss:$16 sps:$4 sm:$0xff]  }
 0x2c7   :  { %v12982_v36 = vadd.f32 %v2853_v29, %v18674_v59  ;;  %v13046_v37 = vadd.f32 %v3625_v30, %v18677_v60  ;;  %v2855_v38 = vpop.f32.mrb[17].mxu0  ;;  %v3627_v39 = vpop.f32.mrb[17].mxu1  ;;  %4931 = vmatprep.subr.bf16.mxu0 %v14830_v15  ;;  %5317 = vmatprep.subr.bf16.mxu1 %v14866_v21 }
 0x2c8   :  { %v12983_v42 = vadd.f32 %v2855_v38, %v18680_v61  ;;  %v13047_v43 = vadd.f32 %v3627_v39, %v18683_v62  ;;  %v2857_v45 = vpop.f32.mrb[18].mxu0  ;;  %v3629_v46 = vpop.f32.mrb[18].mxu1  ;;  %4788 = vmatprep.mubr.bf16.mxu0 %v3885_v32  ;;  %5174 = vmatprep.mubr.bf16.mxu1 %v3885_v32 }
 0x2c9   :  { %v12984_v47 = vadd.f32 %v2857_v45, %v18674_v59  ;;  %v13048_v48 = vadd.f32 %v3629_v46, %v18677_v60  ;;  %v2859_v49 = vpop.f32.mrb[19].mxu0  ;;  %v3631_v51 = vpop.f32.mrb[19].mxu1  ;;  %4789 = vmatmul.mubr.bf16.gmra.mrb[76].mxu0 %v3884_v27  ;;  %5175 = vmatmul.mubr.bf16.gmra.mrb[76].mxu1 %v3884_v27  ;;  %v3778_v1 = vmax.f32 %v13046_v37, 0.0  ;;  %v3776_v3 = vmax.f32 %v12982_v36, 0.0  ;;  %v14878_v27 = vld [vmem:[%s22157_s4 + $0x32c] ss:$16 sps:$4 sm:$0xff]  }
 0x2ca   :  { %v12985_v52 = vadd.f32 %v2859_v49, %v18680_v61  ;;  %v13049_v53 = vadd.f32 %v3631_v51, %v18683_v62  ;;  %4932 = vmatpush1.bf16.msra.mxu0 %v14828_v33  ;;  %5318 = vmatpush1.bf16.msra.mxu1 %v14864_v34  ;;  %v3779_v8 = vmax.f32 %v13047_v43, 0.0  ;;  %v3777_v10 = vmax.f32 %v12983_v42, 0.0  ;;  %v14854_v42 = vld [vmem:[%s22157_s4 + $0x344] ss:$16 sps:$4 sm:$0xff]   ;;  %v14876_v43 = vld [vmem:[%s22157_s4 + $0x328] ss:$16 sps:$4 sm:$0xff]  }
 0x2cb   :  { %v3782_v2 = vmax.f32 %v13048_v48, 0.0  ;;  %v3780_v4 = vmax.f32 %v12984_v47, 0.0  ;;  %4933 = vmatprep.subr.bf16.mxu0 %v14833_v40  ;;  %5319 = vmatprep.subr.bf16.mxu1 %v14869_v41  ;;  %v14843_v41 = vld [vmem:[%s22157_s4 + $0x320] ss:$16 sps:$4 sm:$0xff]   ;;  %v14884_v49 = vld [vmem:[%s22157_s4 + $0x34c] ss:$16 sps:$4 sm:$0xff]  }
 0x2cc   :  { %v3783_v9 = vmax.f32 %v13049_v53, 0.0  ;;  %v3781_v11 = vmax.f32 %v12985_v52, 0.0 }
 0x2cd   :  { %v3888_v13 = vpack.c.bf16 %v3780_v4, %v3776_v3  ;;  %v18837_v14 = vpack.c.bf16 %v3782_v2, %v3778_v1  ;;  %v14852_v4 = vld [vmem:[%s22157_s4 + $0x340] ss:$16 sps:$4 sm:$0xff]  }
 0x2ce   :  { %v2863_v15 = vpop.f32.mrb[20].mxu0  ;;  %v3635_v16 = vpop.f32.mrb[20].mxu1  ;;  %v3889_v17 = vpack.c.bf16 %v3781_v11, %v3777_v10  ;;  %4934 = vmatpush1.bf16.msra.mxu0 %v14831_v7  ;;  %5320 = vmatpush1.bf16.msra.mxu1 %v14867_v0  ;;  %v18845_v20 = vpack.c.bf16 %v3783_v9, %v3779_v8 }
 0x2cf   :  { %v12986_v21 = vadd.f32 %v2863_v15, %v18674_v59  ;;  %v13050_v22 = vadd.f32 %v3635_v16, %v18677_v60  ;;  %v2865_v23 = vpop.f32.mrb[21].mxu0  ;;  %v3637_v24 = vpop.f32.mrb[21].mxu1  ;;  %4935 = vmatprep.subr.bf16.mxu0 %v14836_v63  ;;  %5321 = vmatprep.subr.bf16.mxu1 %v14875_v6  ;;  %v14882_v6 = vld [vmem:[%s22157_s4 + $0x348] ss:$16 sps:$4 sm:$0xff]   ;;  %v14863_v15 = vld [vmem:[%s22157_s4 + $0x364] ss:$16 sps:$4 sm:$0xff]  }
 0x2d0   :  { %v12987_v29 = vadd.f32 %v2865_v23, %v18680_v61  ;;  %v13051_v30 = vadd.f32 %v3637_v24, %v18683_v62  ;;  %v2867_v32 = vpop.f32.mrb[22].mxu0  ;;  %v3639_v33 = vpop.f32.mrb[22].mxu1  ;;  %4798 = vmatprep.mubr.bf16.mxu0 %v3889_v17  ;;  %5184 = vmatprep.mubr.bf16.mxu1 %v3889_v17  ;;  %v14887_v16 = vld [vmem:[%s22157_s4 + $0x36c] ss:$16 sps:$4 sm:$0xff]  }
 0x2d1   :  { %v12988_v34 = vadd.f32 %v2867_v32, %v18674_v59  ;;  %v13052_v36 = vadd.f32 %v3639_v33, %v18677_v60  ;;  %v2869_v37 = vpop.f32.mrb[23].mxu0  ;;  %v3641_v38 = vpop.f32.mrb[23].mxu1  ;;  %4799 = vmatmul.mubr.bf16.gmra.mrb[80].mxu0 %v3888_v13  ;;  %5185 = vmatmul.mubr.bf16.gmra.mrb[80].mxu1 %v3888_v13  ;;  %v3786_v45 = vmax.f32 %v13050_v22, 0.0  ;;  %v3784_v47 = vmax.f32 %v12986_v21, 0.0  ;;  %v14872_v32 = vld [vmem:[%s22157_s4 + $0x384] ss:$16 sps:$4 sm:$0xff]  }
 0x2d2   :  { %v12989_v39 = vadd.f32 %v2869_v37, %v18680_v61  ;;  %v13053_v40 = vadd.f32 %v3641_v38, %v18683_v62  ;;  %4936 = vmatpush1.bf16.msra.mxu0 %v14834_v18  ;;  %5322 = vmatpush1.bf16.msra.mxu1 %v14873_v19  ;;  %v3787_v51 = vmax.f32 %v13051_v30, 0.0  ;;  %v3785_v53 = vmax.f32 %v12987_v29, 0.0  ;;  %v14861_v30 = vld [vmem:[%s22157_s4 + $0x360] ss:$16 sps:$4 sm:$0xff]   ;;  %v14885_v33 = vld [vmem:[%s22157_s4 + $0x368] ss:$16 sps:$4 sm:$0xff]  }
 0x2d3   :  { %v3790_v46 = vmax.f32 %v13052_v36, 0.0  ;;  %v3788_v48 = vmax.f32 %v12988_v34, 0.0  ;;  %4937 = vmatprep.subr.bf16.mxu0 %v14845_v26  ;;  %5323 = vmatprep.subr.bf16.mxu1 %v14878_v27 }
 0x2d4   :  { %v3791_v52 = vmax.f32 %v13053_v40, 0.0  ;;  %v3789_v7 = vmax.f32 %v12989_v39, 0.0  ;;  %v14893_v39 = vld [vmem:[%s22157_s4 + $0x38c] ss:$16 sps:$4 sm:$0xff]  }
 0x2d5   :  { %v3892_v63 = vpack.c.bf16 %v3788_v48, %v3784_v47  ;;  %v18873_v0 = vpack.c.bf16 %v3790_v46, %v3786_v45 }
 0x2d6   :  { %v2873_v1 = vpop.f32.mrb[24].mxu0  ;;  %v3645_v2 = vpop.f32.mrb[24].mxu1  ;;  %v3893_v3 = vpack.c.bf16 %v3789_v7, %v3785_v53  ;;  %4938 = vmatpush1.bf16.msra.mxu0 %v14843_v41  ;;  %5324 = vmatpush1.bf16.msra.mxu1 %v14876_v43  ;;  %v18881_v8 = vpack.c.bf16 %v3791_v52, %v3787_v51  ;;  %v14870_v51 = vld [vmem:[%s22157_s4 + $0x380] ss:$16 sps:$4 sm:$0xff]   ;;  %v14891_v52 = vld [vmem:[%s22157_s4 + $0x388] ss:$16 sps:$4 sm:$0xff]  }
 0x2d7   :  { %v12990_v9 = vadd.f32 %v2873_v1, %v18674_v59  ;;  %v13054_v10 = vadd.f32 %v3645_v2, %v18677_v60  ;;  %v2875_v11 = vpop.f32.mrb[25].mxu0  ;;  %v3647_v13 = vpop.f32.mrb[25].mxu1  ;;  %4939 = vmatprep.subr.bf16.mxu0 %v14854_v42  ;;  %5325 = vmatprep.subr.bf16.mxu1 %v14884_v49 }
 0x2d8   :  { %v12991_v17 = vadd.f32 %v2875_v11, %v18680_v61  ;;  %v13055_v18 = vadd.f32 %v3647_v13, %v18683_v62  ;;  %v2877_v19 = vpop.f32.mrb[26].mxu0  ;;  %v3649_v21 = vpop.f32.mrb[26].mxu1  ;;  %4808 = vmatprep.mubr.bf16.mxu0 %v3893_v3  ;;  %5194 = vmatprep.mubr.bf16.mxu1 %v3893_v3  ;;  %v14881_v3 = vld [vmem:[%s22157_s4 + $0x3a4] ss:$16 sps:$4 sm:$0xff]  }
 0x2d9   :  { %v12992_v22 = vadd.f32 %v2877_v19, %v18674_v59  ;;  %v13056_v23 = vadd.f32 %v3649_v21, %v18677_v60  ;;  %v2879_v24 = vpop.f32.mrb[27].mxu0  ;;  %v3651_v26 = vpop.f32.mrb[27].mxu1  ;;  %4809 = vmatmul.mubr.bf16.gmra.mrb[84].mxu0 %v3892_v63  ;;  %5195 = vmatmul.mubr.bf16.gmra.mrb[84].mxu1 %v3892_v63  ;;  %v3794_v34 = vmax.f32 %v13054_v10, 0.0  ;;  %v3792_v37 = vmax.f32 %v12990_v9, 0.0  ;;  %v14879_v21 = vld [vmem:[%s22157_s4 + $0x3a0] ss:$16 sps:$4 sm:$0xff]  }
 0x2da   :  { %v12993_v27 = vadd.f32 %v2879_v24, %v18680_v61  ;;  %v13057_v29 = vadd.f32 %v3651_v26, %v18683_v62  ;;  %4940 = vmatpush1.bf16.msra.mxu0 %v14852_v4  ;;  %5326 = vmatpush1.bf16.msra.mxu1 %v14882_v6  ;;  %v3795_v40 = vmax.f32 %v13055_v18, 0.0  ;;  %v3793_v42 = vmax.f32 %v12991_v17, 0.0  ;;  %v14896_v4 = vld [vmem:[%s22157_s4 + $0x3ac] ss:$16 sps:$4 sm:$0xff]  }
 0x2db   :  { %v3798_v36 = vmax.f32 %v13056_v23, 0.0  ;;  %v3796_v38 = vmax.f32 %v12992_v22, 0.0  ;;  %4941 = vmatprep.subr.bf16.mxu0 %v14863_v15  ;;  %5327 = vmatprep.subr.bf16.mxu1 %v14887_v16  ;;  %v14890_v22 = vld [vmem:[%s22157_s4 + $0x3c4] ss:$16 sps:$4 sm:$0xff]   ;;  %v14894_v23 = vld [vmem:[%s22157_s4 + $0x3a8] ss:$16 sps:$4 sm:$0xff]  }
 0x2dc   :  { %v3799_v41 = vmax.f32 %v13057_v29, 0.0  ;;  %v3797_v43 = vmax.f32 %v12993_v27, 0.0 }
 0x2dd   :  { %v3896_v45 = vpack.c.bf16 %v3796_v38, %v3792_v37  ;;  %v18909_v46 = vpack.c.bf16 %v3798_v36, %v3794_v34 }
 0x2de   :  { %v2883_v47 = vpop.f32.mrb[28].mxu0  ;;  %v3655_v48 = vpop.f32.mrb[28].mxu1  ;;  %v3897_v49 = vpack.c.bf16 %v3797_v43, %v3793_v42  ;;  %4942 = vmatpush1.bf16.msra.mxu0 %v14861_v30  ;;  %5328 = vmatpush1.bf16.msra.mxu1 %v14885_v33  ;;  %v18917_v53 = vpack.c.bf16 %v3799_v41, %v3795_v40  ;;  %v14902_v30 = vld [vmem:[%s22157_s4 + $0x3cc] ss:$16 sps:$4 sm:$0xff]   ;;  %v14888_v42 = vld [vmem:[%s22157_s4 + $0x3c0] ss:$16 sps:$4 sm:$0xff]  }
 0x2df   :  { %v12994_v7 = vadd.f32 %v2883_v47, %v18674_v59  ;;  %v13058_v63 = vadd.f32 %v3655_v48, %v18677_v60  ;;  %v2885_v1 = vpop.f32.mrb[29].mxu0  ;;  %v3657_v2 = vpop.f32.mrb[29].mxu1  ;;  %4943 = vmatprep.subr.bf16.mxu0 %v14872_v32  ;;  %5329 = vmatprep.subr.bf16.mxu1 %v14893_v39  ;;  %v14900_v43 = vld [vmem:[%s22157_s4 + $0x3c8] ss:$16 sps:$4 sm:$0xff]  }
 0x2e0   :  { %v12995_v6 = vadd.f32 %v2885_v1, %v18680_v61  ;;  %v13059_v9 = vadd.f32 %v3657_v2, %v18683_v62  ;;  %v2887_v10 = vpop.f32.mrb[30].mxu0  ;;  %v3659_v11 = vpop.f32.mrb[30].mxu1  ;;  %4818 = vmatprep.mubr.bf16.mxu0 %v3897_v49  ;;  %5204 = vmatprep.mubr.bf16.mxu1 %v3897_v49 }
 0x2e1   :  { %v12996_v13 = vadd.f32 %v2887_v10, %v18674_v59  ;;  %v13060_v15 = vadd.f32 %v3659_v11, %v18677_v60  ;;  %v2889_v16 = vpop.f32.mrb[31].mxu0  ;;  %v3661_v17 = vpop.f32.mrb[31].mxu1  ;;  %4819 = vmatmul.mubr.bf16.gmra.mrb[88].mxu0 %v3896_v45  ;;  %5205 = vmatmul.mubr.bf16.gmra.mrb[88].mxu1 %v3896_v45  ;;  %v3802_v24 = vmax.f32 %v13058_v63, 0.0  ;;  %v3800_v27 = vmax.f32 %v12994_v7, 0.0  ;;  %v14905_v7 = vld [vmem:[%s22157_s4 + $0x3ec] ss:$16 sps:$4 sm:$0xff]  }
 0x2e2   :  { %v12997_v18 = vadd.f32 %v2889_v16, %v18680_v61  ;;  %v13061_v19 = vadd.f32 %v3661_v17, %v18683_v62  ;;  %4944 = vmatpush1.bf16.msra.mxu0 %v14870_v51  ;;  %5330 = vmatpush1.bf16.msra.mxu1 %v14891_v52  ;;  %v3803_v32 = vmax.f32 %v13059_v9, 0.0  ;;  %v3801_v34 = vmax.f32 %v12995_v6, 0.0  ;;  %v14899_v52 = vld [vmem:[%s22157_s4 + $0x3e4] ss:$16 sps:$4 sm:$0xff]   ;;  %v14903_v16 = vld [vmem:[%s22157_s4 + $0x3e8] ss:$16 sps:$4 sm:$0xff]  }
 0x2e3   :  { %v3806_v26 = vmax.f32 %v13060_v15, 0.0  ;;  %v3804_v29 = vmax.f32 %v12996_v13, 0.0  ;;  %4945 = vmatprep.subr.bf16.mxu0 %v14881_v3  ;;  %5331 = vmatprep.subr.bf16.mxu1 %v14896_v4  ;;  %v14897_v15 = vld [vmem:[%s22157_s4 + $0x3e0] ss:$16 sps:$4 sm:$0xff]  }
 0x2e4   :  { %v3807_v33 = vmax.f32 %v13061_v19, 0.0  ;;  %v3805_v36 = vmax.f32 %v12997_v18, 0.0 }
 0x2e5   :  { %v3900_v37 = vpack.c.bf16 %v3804_v29, %v3800_v27  ;;  %v18945_v38 = vpack.c.bf16 %v3806_v26, %v3802_v24 }
 0x2e6   :  { %v2893_v39 = vpop.f32.mrb[32].mxu0  ;;  %v3665_v40 = vpop.f32.mrb[32].mxu1  ;;  %v3901_v41 = vpack.c.bf16 %v3805_v36, %v3801_v34  ;;  %4946 = vmatpush1.bf16.msra.mxu0 %v14879_v21  ;;  %5332 = vmatpush1.bf16.msra.mxu1 %v14894_v23  ;;  %v18953_v45 = vpack.c.bf16 %v3807_v33, %v3803_v32 }
 0x2e7   :  { %v12998_v47 = vadd.f32 %v2893_v39, %v18674_v59  ;;  %v13062_v48 = vadd.f32 %v3665_v40, %v18677_v60  ;;  %v2895_v49 = vpop.f32.mrb[33].mxu0  ;;  %v3667_v51 = vpop.f32.mrb[33].mxu1  ;;  %4947 = vmatprep.subr.bf16.mxu0 %v14890_v22  ;;  %5333 = vmatprep.subr.bf16.mxu1 %v14902_v30 }
 0x2e8   :  { %v12999_v63 = vadd.f32 %v2895_v49, %v18680_v61  ;;  %v13063_v1 = vadd.f32 %v3667_v51, %v18683_v62  ;;  %v2897_v2 = vpop.f32.mrb[34].mxu0  ;;  %v3669_v3 = vpop.f32.mrb[34].mxu1  ;;  %4828 = vmatprep.mubr.bf16.mxu0 %v3901_v41  ;;  %5214 = vmatprep.mubr.bf16.mxu1 %v3901_v41 }
 0x2e9   :  { %v13000_v4 = vadd.f32 %v2897_v2, %v18674_v59  ;;  %v13064_v6 = vadd.f32 %v3669_v3, %v18677_v60  ;;  %v2899_v9 = vpop.f32.mrb[35].mxu0  ;;  %v3671_v10 = vpop.f32.mrb[35].mxu1  ;;  %4829 = vmatmul.mubr.bf16.gmra.mrb[92].mxu0 %v3900_v37  ;;  %5215 = vmatmul.mubr.bf16.gmra.mrb[92].mxu1 %v3900_v37  ;;  %v3810_v17 = vmax.f32 %v13062_v48, 0.0  ;;  %v3808_v19 = vmax.f32 %v12998_v47, 0.0 }
 0x2ea   :  { %v13001_v11 = vadd.f32 %v2899_v9, %v18680_v61  ;;  %v13065_v13 = vadd.f32 %v3671_v10, %v18683_v62  ;;  %4948 = vmatpush1.bf16.msra.mxu0 %v14888_v42  ;;  %5334 = vmatpush1.bf16.msra.mxu1 %v14900_v43  ;;  %v3811_v22 = vmax.f32 %v13063_v1, 0.0  ;;  %v3809_v24 = vmax.f32 %v12999_v63, 0.0 }
 0x2eb   :  { %v3814_v18 = vmax.f32 %v13064_v6, 0.0  ;;  %v3812_v21 = vmax.f32 %v13000_v4, 0.0  ;;  %4949 = vmatprep.subr.bf16.mxu0 %v14899_v52  ;;  %5335 = vmatprep.subr.bf16.mxu1 %v14905_v7 }
 0x2ec   :  { %v3815_v23 = vmax.f32 %v13065_v13, 0.0  ;;  %v3813_v26 = vmax.f32 %v13001_v11, 0.0 }
 0x2ed   :  { %v3904_v27 = vpack.c.bf16 %v3812_v21, %v3808_v19  ;;  %v18975_v29 = vpack.c.bf16 %v3814_v18, %v3810_v17 }
 0x2ee   :  { %v2903_v30 = vpop.f32.mrb[36].mxu0  ;;  %v3675_v32 = vpop.f32.mrb[36].mxu1  ;;  %v3905_v33 = vpack.c.bf16 %v3813_v26, %v3809_v24  ;;  %4950 = vmatpush1.bf16.msra.mxu0 %v14897_v15  ;;  %5336 = vmatpush1.bf16.msra.mxu1 %v14903_v16  ;;  %v18977_v34 = vpack.c.bf16 %v3815_v23, %v3811_v22 }
 0x2ef   :  { %v13002_v36 = vadd.f32 %v2903_v30, %v18674_v59  ;;  %v13066_v37 = vadd.f32 %v3675_v32, %v18677_v60  ;;  %v2905_v39 = vpop.f32.mrb[37].mxu0  ;;  %v3677_v40 = vpop.f32.mrb[37].mxu1 }
 0x2f0   :  { %v13003_v41 = vadd.f32 %v2905_v39, %v18680_v61  ;;  %v13067_v42 = vadd.f32 %v3677_v40, %v18683_v62  ;;  %v2907_v43 = vpop.f32.mrb[38].mxu0  ;;  %v3679_v47 = vpop.f32.mrb[38].mxu1  ;;  %4838 = vmatprep.mubr.bf16.mxu0 %v3905_v33  ;;  %5224 = vmatprep.mubr.bf16.mxu1 %v3905_v33 }
 0x2f1   :  { %v13004_v48 = vadd.f32 %v2907_v43, %v18674_v59  ;;  %v13068_v49 = vadd.f32 %v3679_v47, %v18677_v60  ;;  %v2909_v51 = vpop.f32.mrb[39].mxu0  ;;  %v3681_v52 = vpop.f32.mrb[39].mxu1  ;;  %4839 = vmatmul.mubr.bf16.gmra.mrb[96].mxu0 %v3904_v27  ;;  %5225 = vmatmul.mubr.bf16.gmra.mrb[96].mxu1 %v3904_v27  ;;  %v3818_v1 = vmax.f32 %v13066_v37, 0.0  ;;  %v3816_v3 = vmax.f32 %v13002_v36, 0.0 }
 0x2f2   :  { %v13005_v7 = vadd.f32 %v2909_v51, %v18680_v61  ;;  %v13069_v63 = vadd.f32 %v3681_v52, %v18683_v62  ;;  %v3819_v6 = vmax.f32 %v13067_v42, 0.0  ;;  %v3817_v10 = vmax.f32 %v13003_v41, 0.0 }
 0x2f3   :  { %v3822_v2 = vmax.f32 %v13068_v49, 0.0  ;;  %v3820_v4 = vmax.f32 %v13004_v48, 0.0 }
 0x2f4   :  { %v3823_v9 = vmax.f32 %v13069_v63, 0.0  ;;  %v3821_v11 = vmax.f32 %v13005_v7, 0.0 }
 0x2f5   :  { %v3908_v13 = vpack.c.bf16 %v3820_v4, %v3816_v3  ;;  %v18987_v15 = vpack.c.bf16 %v3822_v2, %v3818_v1 }
 0x2f6   :  { %v2913_v16 = vpop.f32.mrb[40].mxu0  ;;  %v3685_v17 = vpop.f32.mrb[40].mxu1  ;;  %v3909_v18 = vpack.c.bf16 %v3821_v11, %v3817_v10  ;;  %v18989_v19 = vpack.c.bf16 %v3823_v9, %v3819_v6 }
 0x2f7   :  { %v13006_v21 = vadd.f32 %v2913_v16, %v18674_v59  ;;  %v13070_v22 = vadd.f32 %v3685_v17, %v18677_v60  ;;  %v2915_v23 = vpop.f32.mrb[41].mxu0  ;;  %v3687_v24 = vpop.f32.mrb[41].mxu1 }
 0x2f8   :  { %v13007_v26 = vadd.f32 %v2915_v23, %v18680_v61  ;;  %v13071_v27 = vadd.f32 %v3687_v24, %v18683_v62  ;;  %v2917_v30 = vpop.f32.mrb[42].mxu0  ;;  %v3689_v32 = vpop.f32.mrb[42].mxu1  ;;  %4848 = vmatprep.mubr.bf16.mxu0 %v3909_v18  ;;  %5234 = vmatprep.mubr.bf16.mxu1 %v3909_v18 }
 0x2f9   :  { %v13008_v33 = vadd.f32 %v2917_v30, %v18674_v59  ;;  %v13072_v36 = vadd.f32 %v3689_v32, %v18677_v60  ;;  %v2919_v37 = vpop.f32.mrb[43].mxu0  ;;  %v3691_v39 = vpop.f32.mrb[43].mxu1  ;;  %4849 = vmatmul.mubr.bf16.gmra.mrb[100].mxu0 %v3908_v13  ;;  %5235 = vmatmul.mubr.bf16.gmra.mrb[100].mxu1 %v3908_v13  ;;  %v3826_v42 = vmax.f32 %v13070_v22, 0.0  ;;  %v3824_v47 = vmax.f32 %v13006_v21, 0.0 }
 0x2fa   :  { %v13009_v40 = vadd.f32 %v2919_v37, %v18680_v61  ;;  %v13073_v41 = vadd.f32 %v3691_v39, %v18683_v62  ;;  %v3827_v49 = vmax.f32 %v13071_v27, 0.0  ;;  %v3825_v52 = vmax.f32 %v13007_v26, 0.0 }
 0x2fb   :  { %v3830_v43 = vmax.f32 %v13072_v36, 0.0  ;;  %v3828_v48 = vmax.f32 %v13008_v33, 0.0 }
 0x2fc   :  { %v3831_v51 = vmax.f32 %v13073_v41, 0.0  ;;  %v3829_v7 = vmax.f32 %v13009_v40, 0.0 }
 0x2fd   :  { %v3912_v63 = vpack.c.bf16 %v3828_v48, %v3824_v47  ;;  %v18999_v1 = vpack.c.bf16 %v3830_v43, %v3826_v42 }
 0x2fe   :  { %v2923_v2 = vpop.f32.mrb[44].mxu0  ;;  %v3695_v3 = vpop.f32.mrb[44].mxu1  ;;  %v3913_v4 = vpack.c.bf16 %v3829_v7, %v3825_v52  ;;  %v19001_v6 = vpack.c.bf16 %v3831_v51, %v3827_v49 }
 0x2ff   :  { %v13010_v9 = vadd.f32 %v2923_v2, %v18674_v59  ;;  %v13074_v10 = vadd.f32 %v3695_v3, %v18677_v60  ;;  %v2925_v11 = vpop.f32.mrb[45].mxu0  ;;  %v3697_v13 = vpop.f32.mrb[45].mxu1 }
 0x300   :  { %v13011_v16 = vadd.f32 %v2925_v11, %v18680_v61  ;;  %v13075_v17 = vadd.f32 %v3697_v13, %v18683_v62  ;;  %v2927_v18 = vpop.f32.mrb[46].mxu0  ;;  %v3699_v21 = vpop.f32.mrb[46].mxu1  ;;  %4858 = vmatprep.mubr.bf16.mxu0 %v3913_v4  ;;  %5244 = vmatprep.mubr.bf16.mxu1 %v3913_v4 }
 0x301   :  { %v13012_v22 = vadd.f32 %v2927_v18, %v18674_v59  ;;  %v13076_v23 = vadd.f32 %v3699_v21, %v18677_v60  ;;  %v2929_v24 = vpop.f32.mrb[47].mxu0  ;;  %v3701_v26 = vpop.f32.mrb[47].mxu1  ;;  %4859 = vmatmul.mubr.bf16.gmra.mrb[104].mxu0 %v3912_v63  ;;  %5245 = vmatmul.mubr.bf16.gmra.mrb[104].mxu1 %v3912_v63  ;;  %v3834_v32 = vmax.f32 %v13074_v10, 0.0  ;;  %v3832_v36 = vmax.f32 %v13010_v9, 0.0 }
 0x302   :  { %v13013_v27 = vadd.f32 %v2929_v24, %v18680_v61  ;;  %v13077_v30 = vadd.f32 %v3701_v26, %v18683_v62  ;;  %v3835_v39 = vmax.f32 %v13075_v17, 0.0  ;;  %v3833_v41 = vmax.f32 %v13011_v16, 0.0 }
 0x303   :  { %v3838_v33 = vmax.f32 %v13076_v23, 0.0  ;;  %v3836_v37 = vmax.f32 %v13012_v22, 0.0  ;;  %v14908_v23 = vld [vmem:[#allocation2 + $0x4] ss:$16 sps:$4 sm:$0xff]  }
 0x304   :  { %v3839_v40 = vmax.f32 %v13077_v30, 0.0  ;;  %v3837_v42 = vmax.f32 %v13013_v27, 0.0  ;;  %6352 = vmatprep.subr.bf16.mxu0 %v14908_v23 }
 0x305   :  { %v3916_v43 = vpack.c.bf16 %v3836_v37, %v3832_v36  ;;  %v19011_v47 = vpack.c.bf16 %v3838_v33, %v3834_v32 }
 0x306   :  { %v2933_v48 = vpop.f32.mrb[48].mxu0  ;;  %v3705_v49 = vpop.f32.mrb[48].mxu1  ;;  %v3917_v51 = vpack.c.bf16 %v3837_v42, %v3833_v41  ;;  %v19013_v52 = vpack.c.bf16 %v3839_v40, %v3835_v39 }
 0x307   :  { %v13014_v7 = vadd.f32 %v2933_v48, %v18674_v59  ;;  %v13078_v63 = vadd.f32 %v3705_v49, %v18677_v60  ;;  %v2935_v2 = vpop.f32.mrb[49].mxu0  ;;  %v3707_v3 = vpop.f32.mrb[49].mxu1 }
 0x308   :  { %v13015_v4 = vadd.f32 %v2935_v2, %v18680_v61  ;;  %v13079_v9 = vadd.f32 %v3707_v3, %v18683_v62  ;;  %v2937_v10 = vpop.f32.mrb[50].mxu0  ;;  %v3709_v11 = vpop.f32.mrb[50].mxu1  ;;  %4868 = vmatprep.mubr.bf16.mxu0 %v3917_v51  ;;  %5254 = vmatprep.mubr.bf16.mxu1 %v3917_v51 }
 0x309   :  { %v13016_v13 = vadd.f32 %v2937_v10, %v18674_v59  ;;  %v13080_v16 = vadd.f32 %v3709_v11, %v18677_v60  ;;  %v2939_v17 = vpop.f32.mrb[51].mxu0  ;;  %v3711_v18 = vpop.f32.mrb[51].mxu1  ;;  %4869 = vmatmul.mubr.bf16.gmra.mrb[108].mxu0 %v3916_v43  ;;  %5255 = vmatmul.mubr.bf16.gmra.mrb[108].mxu1 %v3916_v43  ;;  %v3842_v24 = vmax.f32 %v13078_v63, 0.0  ;;  %v3840_v27 = vmax.f32 %v13014_v7, 0.0 }
 0x30a   :  { %v13017_v21 = vadd.f32 %v2939_v17, %v18680_v61  ;;  %v13081_v22 = vadd.f32 %v3711_v18, %v18683_v62  ;;  %v3843_v32 = vmax.f32 %v13079_v9, 0.0  ;;  %v3841_v36 = vmax.f32 %v13015_v4, 0.0 }
 0x30b   :  { %v3846_v26 = vmax.f32 %v13080_v16, 0.0  ;;  %v3844_v30 = vmax.f32 %v13016_v13, 0.0 }
 0x30c   :  { %v3847_v33 = vmax.f32 %v13081_v22, 0.0  ;;  %v3845_v37 = vmax.f32 %v13017_v21, 0.0 }
 0x30d   :  { %v3920_v39 = vpack.c.bf16 %v3844_v30, %v3840_v27  ;;  %v19023_v40 = vpack.c.bf16 %v3846_v26, %v3842_v24 }
 0x30e   :  { %v2943_v41 = vpop.f32.mrb[52].mxu0  ;;  %v3715_v42 = vpop.f32.mrb[52].mxu1  ;;  %v3921_v43 = vpack.c.bf16 %v3845_v37, %v3841_v36  ;;  %v19025_v48 = vpack.c.bf16 %v3847_v33, %v3843_v32 }
 0x30f   :  { %v13018_v49 = vadd.f32 %v2943_v41, %v18674_v59  ;;  %v13082_v51 = vadd.f32 %v3715_v42, %v18677_v60  ;;  %v2945_v63 = vpop.f32.mrb[53].mxu0  ;;  %v3717_v7 = vpop.f32.mrb[53].mxu1 }
 0x310   :  { %v13019_v2 = vadd.f32 %v2945_v63, %v18680_v61  ;;  %v13083_v3 = vadd.f32 %v3717_v7, %v18683_v62  ;;  %v2947_v4 = vpop.f32.mrb[54].mxu0  ;;  %v3719_v9 = vpop.f32.mrb[54].mxu1  ;;  %4878 = vmatprep.mubr.bf16.mxu0 %v3921_v43  ;;  %5264 = vmatprep.mubr.bf16.mxu1 %v3921_v43 }
 0x311   :  { %v13020_v10 = vadd.f32 %v2947_v4, %v18674_v59  ;;  %v13084_v11 = vadd.f32 %v3719_v9, %v18677_v60  ;;  %v2949_v13 = vpop.f32.mrb[55].mxu0  ;;  %v3721_v16 = vpop.f32.mrb[55].mxu1  ;;  %4879 = vmatmul.mubr.bf16.gmra.mrb[112].mxu0 %v3920_v39  ;;  %5265 = vmatmul.mubr.bf16.gmra.mrb[112].mxu1 %v3920_v39  ;;  %v3850_v21 = vmax.f32 %v13082_v51, 0.0  ;;  %v3848_v23 = vmax.f32 %v13018_v49, 0.0 }
 0x312   :  { %v13021_v17 = vadd.f32 %v2949_v13, %v18680_v61  ;;  %v13085_v18 = vadd.f32 %v3721_v16, %v18683_v62  ;;  %v3851_v26 = vmax.f32 %v13083_v3, 0.0  ;;  %v3849_v30 = vmax.f32 %v13019_v2, 0.0 }
 0x313   :  { %v3854_v22 = vmax.f32 %v13084_v11, 0.0  ;;  %v3852_v24 = vmax.f32 %v13020_v10, 0.0 }
 0x314   :  { %v3855_v27 = vmax.f32 %v13085_v18, 0.0  ;;  %v3853_v32 = vmax.f32 %v13021_v17, 0.0 }
 0x315   :  { %v3924_v33 = vpack.c.bf16 %v3852_v24, %v3848_v23  ;;  %v19035_v36 = vpack.c.bf16 %v3854_v22, %v3850_v21 }
 0x316   :  { %v2953_v37 = vpop.f32.mrb[56].mxu0  ;;  %v3725_v41 = vpop.f32.mrb[56].mxu1  ;;  %v3925_v42 = vpack.c.bf16 %v3853_v32, %v3849_v30  ;;  %v19037_v43 = vpack.c.bf16 %v3855_v27, %v3851_v26 }
 0x317   :  { %v13022_v39 = vadd.f32 %v2953_v37, %v18674_v59  ;;  %v13086_v63 = vadd.f32 %v3725_v41, %v18677_v60  ;;  %v2955_v51 = vpop.f32.mrb[57].mxu0  ;;  %v3727_v7 = vpop.f32.mrb[57].mxu1 }
 0x318   :  { %v13023_v49 = vadd.f32 %v2955_v51, %v18680_v61  ;;  %v13087_v3 = vadd.f32 %v3727_v7, %v18683_v62  ;;  %v2957_v2 = vpop.f32.mrb[58].mxu0  ;;  %v3729_v4 = vpop.f32.mrb[58].mxu1  ;;  %4888 = vmatprep.mubr.bf16.mxu0 %v3925_v42  ;;  %5274 = vmatprep.mubr.bf16.mxu1 %v3925_v42 }
 0x319   :  { %v13024_v9 = vadd.f32 %v2957_v2, %v18674_v59  ;;  %v13088_v10 = vadd.f32 %v3729_v4, %v18677_v60  ;;  %v2959_v11 = vpop.f32.mrb[59].mxu0  ;;  %v3731_v13 = vpop.f32.mrb[59].mxu1  ;;  %4889 = vmatmul.mubr.bf16.gmra.mrb[116].mxu0 %v3924_v33  ;;  %5275 = vmatmul.mubr.bf16.gmra.mrb[116].mxu1 %v3924_v33  ;;  %v3858_v18 = vmax.f32 %v13086_v63, 0.0  ;;  %v3856_v22 = vmax.f32 %v13022_v39, 0.0 }
 0x31a   :  { %v13025_v16 = vadd.f32 %v2959_v11, %v18680_v61  ;;  %v13089_v17 = vadd.f32 %v3731_v13, %v18683_v62  ;;  %v3859_v24 = vmax.f32 %v13087_v3, 0.0  ;;  %v3857_v27 = vmax.f32 %v13023_v49, 0.0 }
 0x31b   :  { %v3862_v21 = vmax.f32 %v13088_v10, 0.0  ;;  %v3860_v23 = vmax.f32 %v13024_v9, 0.0 }
 0x31c   :  { %v3863_v26 = vmax.f32 %v13089_v17, 0.0  ;;  %v3861_v30 = vmax.f32 %v13025_v16, 0.0 }
 0x31d   :  { %v3928_v32 = vpack.c.bf16 %v3860_v23, %v3856_v22  ;;  %v19047_v37 = vpack.c.bf16 %v3862_v21, %v3858_v18 }
 0x31e   :  { %v2963_v41 = vpop.f32.mrb[60].mxu0  ;;  %v3735_v42 = vpop.f32.mrb[60].mxu1  ;;  %v3929_v51 = vpack.c.bf16 %v3861_v30, %v3857_v27  ;;  %v19049_v7 = vpack.c.bf16 %v3863_v26, %v3859_v24 }
 0x31f   :  { %v13026_v33 = vadd.f32 %v2963_v41, %v18674_v59  ;;  %v13090_v2 = vadd.f32 %v3735_v42, %v18677_v60  ;;  %v2965_v63 = vpop.f32.mrb[61].mxu0  ;;  %v3737_v4 = vpop.f32.mrb[61].mxu1 }
 0x320   :  { %v13027_v39 = vadd.f32 %v2965_v63, %v18680_v61  ;;  %v13091_v3 = vadd.f32 %v3737_v4, %v18683_v62  ;;  %v2967_v49 = vpop.f32.mrb[62].mxu0  ;;  %v3739_v9 = vpop.f32.mrb[62].mxu1  ;;  %4898 = vmatprep.mubr.bf16.mxu0 %v3929_v51  ;;  %5284 = vmatprep.mubr.bf16.mxu1 %v3929_v51  ;;  %v14909_v63 = vld [vmem:[#allocation2 + $0x20] ss:$16 sps:$4 sm:$0xff]   ;;  %v14936_v4 = vld [vmem:[#allocation2 + $0x28] ss:$16 sps:$4 sm:$0xff]  }
 0x321   :  { %v13028_v10 = vadd.f32 %v2967_v49, %v18674_v59  ;;  %v13092_v11 = vadd.f32 %v3739_v9, %v18677_v60  ;;  %v2969_v13 = vpop.f32.mrb[63].mxu0  ;;  %v3741_v16 = vpop.f32.mrb[63].mxu1  ;;  %4899 = vmatmul.mubr.bf16.gmra.mrb[120].mxu0 %v3928_v32  ;;  %5285 = vmatmul.mubr.bf16.gmra.mrb[120].mxu1 %v3928_v32  ;;  %v3866_v21 = vmax.f32 %v13090_v2, 0.0  ;;  %v3864_v23 = vmax.f32 %v13026_v33, 0.0  ;;  %v14933_v32 = vld [vmem:[#allocation2 + $0x8] ss:$16 sps:$4 sm:$0xff]  }
 0x322   :  { %v13029_v17 = vadd.f32 %v2969_v13, %v18680_v61  ;;  %v13093_v18 = vadd.f32 %v3741_v16, %v18683_v62  ;;  %v3867_v26 = vmax.f32 %v13091_v3, 0.0  ;;  %v3865_v30 = vmax.f32 %v13027_v39, 0.0  ;;  %v14935_v61 = vld [vmem:[#allocation2 + $0xc] ss:$16 sps:$4 sm:$0xff]   ;;  %v14906_v62 = vld [vmem:[#allocation2] ss:$16 sps:$4 sm:$0xff]  }
 0x323   :  { %v3870_v22 = vmax.f32 %v13092_v11, 0.0  ;;  %v3868_v24 = vmax.f32 %v13028_v10, 0.0  ;;  %6738 = vmatprep.subr.bf16.mxu1 %v14935_v61  ;;  %v14911_v33 = vld [vmem:[#allocation2 + $0x24] ss:$16 sps:$4 sm:$0xff]   ;;  %v14938_v2 = vld [vmem:[#allocation2 + $0x2c] ss:$16 sps:$4 sm:$0xff]  }
 0x324   :  { %v3871_v27 = vmax.f32 %v13093_v18, 0.0  ;;  %v3869_v41 = vmax.f32 %v13029_v17, 0.0  ;;  %v14944_v39 = vld [vmem:[#allocation2 + $0x4c] ss:$16 sps:$4 sm:$0xff]   ;;  %v14912_v3 = vld [vmem:[#allocation2 + $0x40] ss:$16 sps:$4 sm:$0xff]  }
 0x325   :  { %v3932_v42 = vpack.c.bf16 %v3868_v24, %v3864_v23  ;;  %v19059_v59 = vpack.c.bf16 %v3870_v22, %v3866_v21  ;;  %v14942_v49 = vld [vmem:[#allocation2 + $0x48] ss:$16 sps:$4 sm:$0xff]   ;;  %v14917_v9 = vld [vmem:[#allocation2 + $0x64] ss:$16 sps:$4 sm:$0xff]   ;;  %v14953_v13 = vld [vmem:[#allocation2 + $0x8c] ss:$16 sps:$4 sm:$0xff]  }
 0x326   :  { %v3933_v60 = vpack.c.bf16 %v3869_v41, %v3865_v30  ;;  %v19061_v51 = vpack.c.bf16 %v3871_v27, %v3867_v26  ;;  %v14945_v10 = vld [vmem:[#allocation2 + $0x68] ss:$16 sps:$4 sm:$0xff]   ;;  %v14920_v11 = vld [vmem:[#allocation2 + $0x84] ss:$16 sps:$4 sm:$0xff]   ;;  %v14918_v16 = vld [vmem:[#allocation2 + $0x80] ss:$16 sps:$4 sm:$0xff]  }
 0x327   :  { %v14951_v17 = vld [vmem:[#allocation2 + $0x88] ss:$16 sps:$4 sm:$0xff]   ;;  %v14923_v18 = vld [vmem:[#allocation2 + $0xa4] ss:$16 sps:$4 sm:$0xff]   ;;  %v14962_v23 = vld [vmem:[#allocation2 + $0xcc] ss:$16 sps:$4 sm:$0xff]  }
 0x328   :  { %4908 = vmatprep.mubr.bf16.mxu0 %v3933_v60  ;;  %5294 = vmatprep.mubr.bf16.mxu1 %v3933_v60  ;;  %v14954_v21 = vld [vmem:[#allocation2 + $0xa8] ss:$16 sps:$4 sm:$0xff]   ;;  %v14926_v22 = vld [vmem:[#allocation2 + $0xc4] ss:$16 sps:$4 sm:$0xff]   ;;  %v14924_v24 = vld [vmem:[#allocation2 + $0xc0] ss:$16 sps:$4 sm:$0xff]  }
 0x329   :  { %4909 = vmatmul.mubr.bf16.gmra.mrb[124].mxu0 %v3932_v42  ;;  %5295 = vmatmul.mubr.bf16.gmra.mrb[124].mxu1 %v3932_v42  ;;  %v14960_v26 = vld [vmem:[#allocation2 + $0xc8] ss:$16 sps:$4 sm:$0xff]   ;;  %v14929_v27 = vld [vmem:[#allocation2 + $0xe4] ss:$16 sps:$4 sm:$0xff]   ;;  %v14971_v42 = vld [vmem:[#allocation2 + $0x10c] ss:$16 sps:$4 sm:$0xff]  }
 0x32a   :  { %4951 = vmatprep.mubr.bf16.mxu0 %v18701_v31  ;;  %5337 = vmatprep.mubr.bf16.mxu1 %v18701_v31  ;;  %v14914_v31 = vld [vmem:[#allocation2 + $0x44] ss:$16 sps:$4 sm:$0xff]   ;;  %v14963_v30 = vld [vmem:[#allocation2 + $0xe8] ss:$16 sps:$4 sm:$0xff]   ;;  %v14930_v60 = vld [vmem:[#allocation2 + $0x100] ss:$16 sps:$4 sm:$0xff]  }
 0x32b   :  { %v14932_v41 = vld [vmem:[#allocation2 + $0x104] ss:$16 sps:$4 sm:$0xff]   ;;  %v14969_v61 = vld [vmem:[#allocation2 + $0x108] ss:$16 sps:$4 sm:$0xff]  }
 0x331   :  { %4952 = vmatmul.mubr.bf16.vlgmr.msra.gmra.mrb[64].mxu0 %v18693_v25  ;;  %5338 = vmatmul.mubr.bf16.vlgmr.msra.gmra.mrb[64].mxu1 %v18693_v25  ;;  %v14947_v25 = vld [vmem:[#allocation2 + $0x6c] ss:$16 sps:$4 sm:$0xff]  }
 0x332   :  { %4961 = vmatprep.mubr.bf16.mxu0 %v18737_v12  ;;  %5347 = vmatprep.mubr.bf16.mxu1 %v18737_v12  ;;  %v14915_v12 = vld [vmem:[#allocation2 + $0x60] ss:$16 sps:$4 sm:$0xff]  }
 0x333   :  { %6353 = vmatpush1.bf16.msra.mxu0 %v14906_v62  ;;  %6739 = vmatpush1.bf16.msra.mxu1 %v14933_v32  ;;  %v14941_v62 = vld [vmem:[#allocation2 + $0x124] ss:$16 sps:$4 sm:$0xff]   ;;  %v14972_v32 = vld [vmem:[#allocation2 + $0x128] ss:$16 sps:$4 sm:$0xff]  }
 0x334   :  { %6354 = vmatprep.subr.bf16.mxu0 %v14911_v33  ;;  %6740 = vmatprep.subr.bf16.mxu1 %v14938_v2  ;;  %v14950_v33 = vld [vmem:[#allocation2 + $0x144] ss:$16 sps:$4 sm:$0xff]   ;;  %v14980_v2 = vld [vmem:[#allocation2 + $0x14c] ss:$16 sps:$4 sm:$0xff]  }
 0x337   :  { %6355 = vmatpush1.bf16.msra.mxu0 %v14909_v63  ;;  %6741 = vmatpush1.bf16.msra.mxu1 %v14936_v4  ;;  %v14948_v63 = vld [vmem:[#allocation2 + $0x140] ss:$16 sps:$4 sm:$0xff]   ;;  %v14978_v4 = vld [vmem:[#allocation2 + $0x148] ss:$16 sps:$4 sm:$0xff]  }
 0x338   :  { %6356 = vmatprep.subr.bf16.mxu0 %v14914_v31  ;;  %6742 = vmatprep.subr.bf16.mxu1 %v14944_v39  ;;  %v14959_v31 = vld [vmem:[#allocation2 + $0x164] ss:$16 sps:$4 sm:$0xff]   ;;  %v14981_v39 = vld [vmem:[#allocation2 + $0x168] ss:$16 sps:$4 sm:$0xff]  }
 0x339   :  { %4962 = vmatmul.mubr.bf16.gmra.mrb[68].mxu0 %v18729_v5  ;;  %5348 = vmatmul.mubr.bf16.gmra.mrb[68].mxu1 %v18729_v5  ;;  %v14956_v5 = vld [vmem:[#allocation2 + $0xac] ss:$16 sps:$4 sm:$0xff]  }
 0x33a   :  { %4971 = vmatprep.mubr.bf16.mxu0 %v18773_v50  ;;  %5357 = vmatprep.mubr.bf16.mxu1 %v18773_v50  ;;  %v14921_v50 = vld [vmem:[#allocation2 + $0xa0] ss:$16 sps:$4 sm:$0xff]  }
 0x33b   :  { %6357 = vmatpush1.bf16.msra.mxu0 %v14912_v3  ;;  %6743 = vmatpush1.bf16.msra.mxu1 %v14942_v49  ;;  %v14968_v3 = vld [vmem:[#allocation2 + $0x184] ss:$16 sps:$4 sm:$0xff]   ;;  %v14989_v49 = vld [vmem:[#allocation2 + $0x18c] ss:$16 sps:$4 sm:$0xff]  }
 0x33c   :  { %6358 = vmatprep.subr.bf16.mxu0 %v14917_v9  ;;  %6744 = vmatprep.subr.bf16.mxu1 %v14947_v25  ;;  %v14966_v9 = vld [vmem:[#allocation2 + $0x180] ss:$16 sps:$4 sm:$0xff]   ;;  %v14987_v25 = vld [vmem:[#allocation2 + $0x188] ss:$16 sps:$4 sm:$0xff]  }
 0x33f   :  { %6359 = vmatpush1.bf16.msra.mxu0 %v14915_v12  ;;  %6745 = vmatpush1.bf16.msra.mxu1 %v14945_v10  ;;  %v14977_v12 = vld [vmem:[#allocation2 + $0x1a4] ss:$16 sps:$4 sm:$0xff]   ;;  %v14990_v10 = vld [vmem:[#allocation2 + $0x1a8] ss:$16 sps:$4 sm:$0xff]  }
 0x340   :  { %6360 = vmatprep.subr.bf16.mxu0 %v14920_v11  ;;  %6746 = vmatprep.subr.bf16.mxu1 %v14953_v13  ;;  %v14986_v11 = vld [vmem:[#allocation2 + $0x1c4] ss:$16 sps:$4 sm:$0xff]   ;;  %v14984_v13 = vld [vmem:[#allocation2 + $0x1c0] ss:$16 sps:$4 sm:$0xff]  }
 0x341   :  { %4972 = vmatmul.mubr.bf16.gmra.mrb[72].mxu0 %v18765_v44  ;;  %5358 = vmatmul.mubr.bf16.gmra.mrb[72].mxu1 %v18765_v44  ;;  %v14965_v44 = vld [vmem:[#allocation2 + $0xec] ss:$16 sps:$4 sm:$0xff]  }
 0x342   :  { %4981 = vmatprep.mubr.bf16.mxu0 %v18809_v35  ;;  %5367 = vmatprep.mubr.bf16.mxu1 %v18809_v35  ;;  %v14927_v35 = vld [vmem:[#allocation2 + $0xe0] ss:$16 sps:$4 sm:$0xff]  }
 0x343   :  { %6361 = vmatpush1.bf16.msra.mxu0 %v14918_v16  ;;  %6747 = vmatpush1.bf16.msra.mxu1 %v14951_v17 }
 0x344   :  { %6362 = vmatprep.subr.bf16.mxu0 %v14923_v18  ;;  %6748 = vmatprep.subr.bf16.mxu1 %v14956_v5 }
 0x347   :  { %6363 = vmatpush1.bf16.msra.mxu0 %v14921_v50  ;;  %6749 = vmatpush1.bf16.msra.mxu1 %v14954_v21 }
 0x348   :  { %6364 = vmatprep.subr.bf16.mxu0 %v14926_v22  ;;  %6750 = vmatprep.subr.bf16.mxu1 %v14962_v23 }
 0x349   :  { %4982 = vmatmul.mubr.bf16.gmra.mrb[76].mxu0 %v18801_v28  ;;  %5368 = vmatmul.mubr.bf16.gmra.mrb[76].mxu1 %v18801_v28  ;;  %v14974_v28 = vld [vmem:[#allocation2 + $0x12c] ss:$16 sps:$4 sm:$0xff]  }
 0x34a   :  { %4991 = vmatprep.mubr.bf16.mxu0 %v18845_v20  ;;  %5377 = vmatprep.mubr.bf16.mxu1 %v18845_v20  ;;  %v14939_v20 = vld [vmem:[#allocation2 + $0x120] ss:$16 sps:$4 sm:$0xff]  }
 0x34b   :  { %6365 = vmatpush1.bf16.msra.mxu0 %v14924_v24  ;;  %6751 = vmatpush1.bf16.msra.mxu1 %v14960_v26 }
 0x34c   :  { %6366 = vmatprep.subr.bf16.mxu0 %v14929_v27  ;;  %6752 = vmatprep.subr.bf16.mxu1 %v14965_v44 }
 0x34f   :  { %6367 = vmatpush1.bf16.msra.mxu0 %v14927_v35  ;;  %6753 = vmatpush1.bf16.msra.mxu1 %v14963_v30  ;;  %v15002_v30 = vld [vmem:[#allocation2 + $0x200] ss:$16 sps:$4 sm:$0xff]  }
 0x350   :  { %6368 = vmatprep.subr.bf16.mxu0 %v14932_v41  ;;  %6754 = vmatprep.subr.bf16.mxu1 %v14971_v42  ;;  %v15029_v41 = vld [vmem:[#allocation2 + $0x208] ss:$16 sps:$4 sm:$0xff]  }
 0x351   :  { %4992 = vmatmul.mubr.bf16.gmra.mrb[80].mxu0 %v18837_v14  ;;  %5378 = vmatmul.mubr.bf16.gmra.mrb[80].mxu1 %v18837_v14  ;;  %v14983_v14 = vld [vmem:[#allocation2 + $0x16c] ss:$16 sps:$4 sm:$0xff]  }
 0x352   :  { %5001 = vmatprep.mubr.bf16.mxu0 %v18881_v8  ;;  %5387 = vmatprep.mubr.bf16.mxu1 %v18881_v8  ;;  %v14957_v8 = vld [vmem:[#allocation2 + $0x160] ss:$16 sps:$4 sm:$0xff]  }
 0x353   :  { %6369 = vmatpush1.bf16.msra.mxu0 %v14930_v60  ;;  %6755 = vmatpush1.bf16.msra.mxu1 %v14969_v61  ;;  %v15007_v60 = vld [vmem:[#allocation2 + $0x224] ss:$16 sps:$4 sm:$0xff]   ;;  %v15034_v61 = vld [vmem:[#allocation2 + $0x22c] ss:$16 sps:$4 sm:$0xff]  }
 0x354   :  { %6370 = vmatprep.subr.bf16.mxu0 %v14941_v62  ;;  %6756 = vmatprep.subr.bf16.mxu1 %v14974_v28 }
 0x357   :  { %6371 = vmatpush1.bf16.msra.mxu0 %v14939_v20  ;;  %6757 = vmatpush1.bf16.msra.mxu1 %v14972_v32 }
 0x358   :  { %6372 = vmatprep.subr.bf16.mxu0 %v14950_v33  ;;  %6758 = vmatprep.subr.bf16.mxu1 %v14980_v2 }
 0x359   :  { %5002 = vmatmul.mubr.bf16.gmra.mrb[84].mxu0 %v18873_v0  ;;  %5388 = vmatmul.mubr.bf16.gmra.mrb[84].mxu1 %v18873_v0  ;;  %v14992_v0 = vld [vmem:[#allocation2 + $0x1ac] ss:$16 sps:$4 sm:$0xff]  }
 0x35a   :  { %5011 = vmatprep.mubr.bf16.mxu0 %v18917_v53  ;;  %5397 = vmatprep.mubr.bf16.mxu1 %v18917_v53  ;;  %v14975_v53 = vld [vmem:[#allocation2 + $0x1a0] ss:$16 sps:$4 sm:$0xff]  }
 0x35b   :  { %6373 = vmatpush1.bf16.msra.mxu0 %v14948_v63  ;;  %6759 = vmatpush1.bf16.msra.mxu1 %v14978_v4  ;;  %v15005_v4 = vld [vmem:[#allocation2 + $0x220] ss:$16 sps:$4 sm:$0xff]  }
 0x35c   :  { %6374 = vmatprep.subr.bf16.mxu0 %v14959_v31  ;;  %6760 = vmatprep.subr.bf16.mxu1 %v14983_v14  ;;  %v15032_v31 = vld [vmem:[#allocation2 + $0x228] ss:$16 sps:$4 sm:$0xff]  }
 0x35f   :  { %6375 = vmatpush1.bf16.msra.mxu0 %v14957_v8  ;;  %6761 = vmatpush1.bf16.msra.mxu1 %v14981_v39 }
 0x360   :  { %6376 = vmatprep.subr.bf16.mxu0 %v14968_v3  ;;  %6762 = vmatprep.subr.bf16.mxu1 %v14989_v49 }
 0x361   :  { %5012 = vmatmul.mubr.bf16.gmra.mrb[88].mxu0 %v18909_v46  ;;  %5398 = vmatmul.mubr.bf16.gmra.mrb[88].mxu1 %v18909_v46  ;;  %v14998_v46 = vld [vmem:[#allocation2 + $0x1cc] ss:$16 sps:$4 sm:$0xff]  }
 0x362   :  { %5021 = vmatprep.mubr.bf16.mxu0 %v18953_v45  ;;  %5407 = vmatprep.mubr.bf16.mxu1 %v18953_v45  ;;  %v14995_v45 = vld [vmem:[#allocation2 + $0x1e4] ss:$16 sps:$4 sm:$0xff]  }
 0x363   :  { %6377 = vmatpush1.bf16.msra.mxu0 %v14966_v9  ;;  %6763 = vmatpush1.bf16.msra.mxu1 %v14987_v25  ;;  %v15010_v9 = vld [vmem:[#allocation2 + $0x244] ss:$16 sps:$4 sm:$0xff]   ;;  %v15040_v25 = vld [vmem:[#allocation2 + $0x24c] ss:$16 sps:$4 sm:$0xff]  }
 0x364   :  { %6378 = vmatprep.subr.bf16.mxu0 %v14977_v12  ;;  %6764 = vmatprep.subr.bf16.mxu1 %v14992_v0 }
 0x367   :  { %6379 = vmatpush1.bf16.msra.mxu0 %v14975_v53  ;;  %6765 = vmatpush1.bf16.msra.mxu1 %v14990_v10 }
 0x368   :  { %6380 = vmatprep.subr.bf16.mxu0 %v14986_v11  ;;  %6766 = vmatprep.subr.bf16.mxu1 %v14998_v46 }
 0x369   :  { %5022 = vmatmul.mubr.bf16.gmra.mrb[92].mxu0 %v18945_v38  ;;  %5408 = vmatmul.mubr.bf16.gmra.mrb[92].mxu1 %v18945_v38  ;;  %v14996_v38 = vld [vmem:[#allocation2 + $0x1c8] ss:$16 sps:$4 sm:$0xff]  }
 0x36a   :  { %5031 = vmatprep.mubr.bf16.mxu0 %v18977_v34  ;;  %5417 = vmatprep.mubr.bf16.mxu1 %v18977_v34  ;;  %v15001_v34 = vld [vmem:[#allocation2 + $0x1ec] ss:$16 sps:$4 sm:$0xff]  }
 0x36b   :  { %6381 = vmatpush1.bf16.msra.mxu0 %v14984_v13  ;;  %6767 = vmatpush1.bf16.msra.mxu1 %v14996_v38  ;;  %v15008_v38 = vld [vmem:[#allocation2 + $0x240] ss:$16 sps:$4 sm:$0xff]  }
 0x36c   :  { %6382 = vmatprep.subr.bf16.mxu0 %v14995_v45  ;;  %6768 = vmatprep.subr.bf16.mxu1 %v15001_v34  ;;  %v15038_v45 = vld [vmem:[#allocation2 + $0x248] ss:$16 sps:$4 sm:$0xff]   ;;  %v15013_v34 = vld [vmem:[#allocation2 + $0x264] ss:$16 sps:$4 sm:$0xff]  }
 0x371   :  { %5032 = vmatmul.mubr.bf16.gmra.mrb[96].mxu0 %v18975_v29  ;;  %5418 = vmatmul.mubr.bf16.gmra.mrb[96].mxu1 %v18975_v29  ;;  %v14993_v29 = vld [vmem:[#allocation2 + $0x1e0] ss:$16 sps:$4 sm:$0xff]  }
 0x372   :  { %5041 = vmatprep.mubr.bf16.mxu0 %v18989_v19  ;;  %5427 = vmatprep.mubr.bf16.mxu1 %v18989_v19  ;;  %v15004_v19 = vld [vmem:[#allocation2 + $0x204] ss:$16 sps:$4 sm:$0xff]  }
 0x373   :  { %6383 = vmatpush1.bf16.msra.mxu0 %v14993_v29 }
 0x374   :  { %6545 = vmatprep.subr.bf16.mxu0 %v15004_v19 }
 0x379   :  { %5042 = vmatmul.mubr.bf16.gmra.mrb[100].mxu0 %v18987_v15  ;;  %5428 = vmatmul.mubr.bf16.gmra.mrb[100].mxu1 %v18987_v15  ;;  %v14999_v15 = vld [vmem:[#allocation2 + $0x1e8] ss:$16 sps:$4 sm:$0xff]  }
 0x37a   :  { %5051 = vmatprep.mubr.bf16.mxu0 %v19001_v6  ;;  %5437 = vmatprep.mubr.bf16.mxu1 %v19001_v6  ;;  %v4064_v6 = vld [vmem:[%s22158_s5] sm:$0xf] }
 0x37b   :  { %6769 = vmatpush1.bf16.msra.mxu1 %v14999_v15  ;;  %v15043_v15 = vld [vmem:[#allocation2 + $0x26c] ss:$16 sps:$4 sm:$0xff]  }
 0x381   :  { %5052 = vmatmul.mubr.bf16.gmra.mrb[104].mxu0 %v18999_v1  ;;  %5438 = vmatmul.mubr.bf16.gmra.mrb[104].mxu1 %v18999_v1  ;;  %v15031_v1 = vld [vmem:[#allocation2 + $0x20c] ss:$16 sps:$4 sm:$0xff]  }
 0x382   :  { %5061 = vmatprep.mubr.bf16.mxu0 %v19013_v52  ;;  %5447 = vmatprep.mubr.bf16.mxu1 %v19013_v52  ;;  %v19134_v52 = vrot.slane %v4064_v6, %v18662_v56 }
 0x383   :  { %6931 = vmatprep.subr.bf16.mxu1 %v15031_v1 }
 0x389   :  { %5062 = vmatmul.mubr.bf16.gmra.mrb[108].mxu0 %v19011_v47  ;;  %5448 = vmatmul.mubr.bf16.gmra.mrb[108].mxu1 %v19011_v47  ;;  %v19131_v47 = vrot.slane %v4064_v6, %v18659_v55 }
 0x38a   :  { %5071 = vmatprep.mubr.bf16.mxu0 %v19025_v48  ;;  %5457 = vmatprep.mubr.bf16.mxu1 %v19025_v48 }
 0x391   :  { %5072 = vmatmul.mubr.bf16.gmra.mrb[112].mxu0 %v19023_v40  ;;  %5458 = vmatmul.mubr.bf16.gmra.mrb[112].mxu1 %v19023_v40 }
 0x392   :  { %5081 = vmatprep.mubr.bf16.mxu0 %v19037_v43  ;;  %5467 = vmatprep.mubr.bf16.mxu1 %v19037_v43  ;;  %v19140_v43 = vrot.slane %v4064_v6, %v18671_v58 }
 0x399   :  { %5082 = vmatmul.mubr.bf16.gmra.mrb[116].mxu0 %v19035_v36  ;;  %5468 = vmatmul.mubr.bf16.gmra.mrb[116].mxu1 %v19035_v36  ;;  %v19137_v36 = vrot.slane %v4064_v6, %v18668_v57 }
 0x39a   :  { %5091 = vmatprep.mubr.bf16.mxu0 %v19049_v7  ;;  %5477 = vmatprep.mubr.bf16.mxu1 %v19049_v7 }
 0x3a1   :  { %5092 = vmatmul.mubr.bf16.gmra.mrb[120].mxu0 %v19047_v37  ;;  %5478 = vmatmul.mubr.bf16.gmra.mrb[120].mxu1 %v19047_v37 }
 0x3a2   :  { %5101 = vmatprep.mubr.bf16.mxu0 %v19061_v51  ;;  %5487 = vmatprep.mubr.bf16.mxu1 %v19061_v51 }
 0x3a9   :  { %5102 = vmatmul.mubr.bf16.gmra.mrb[124].mxu0 %v19059_v59  ;;  %5488 = vmatmul.mubr.bf16.gmra.mrb[124].mxu1 %v19059_v59 }
 0x404   :  { %v4953_v40 = vpop.f32.mrb[64].mxu0  ;;  %v5339_v48 = vpop.f32.mrb[64].mxu1 }
 0x405   :  { %v4955_v37 = vpop.f32.mrb[65].mxu0  ;;  %v5341_v7 = vpop.f32.mrb[65].mxu1  ;;  %v13094_v16 = vadd.f32 %v4953_v40, %v19131_v47  ;;  %v13158_v17 = vadd.f32 %v5339_v48, %v19134_v52 }
 0x406   :  { %v4957_v59 = vpop.f32.mrb[66].mxu0  ;;  %v5343_v51 = vpop.f32.mrb[66].mxu1  ;;  %v13095_v22 = vadd.f32 %v4955_v37, %v19137_v36  ;;  %v13159_v23 = vadd.f32 %v5341_v7, %v19140_v43 }
 0x407   :  { %v13096_v18 = vadd.f32 %v4957_v59, %v19131_v47  ;;  %v13160_v5 = vadd.f32 %v5343_v51, %v19134_v52  ;;  %v4959_v50 = vpop.f32.mrb[67].mxu0  ;;  %v5345_v21 = vpop.f32.mrb[67].mxu1  ;;  %v15011_v59 = vld [vmem:[#allocation2 + $0x260] ss:$16 sps:$4 sm:$0xff]   ;;  %v15041_v51 = vld [vmem:[#allocation2 + $0x268] ss:$16 sps:$4 sm:$0xff]  }
 0x408   :  { %v13097_v24 = vadd.f32 %v4959_v50, %v19137_v36  ;;  %v13161_v26 = vadd.f32 %v5345_v21, %v19140_v43  ;;  %v15016_v21 = vld [vmem:[#allocation2 + $0x284] ss:$16 sps:$4 sm:$0xff]  }
 0x409   :  { %v5498_v27 = vpack.c.bf16 %v13096_v18, %v13094_v16  ;;  %v19150_v44 = vpack.c.bf16 %v13160_v5, %v13158_v17 }
 0x40a   :  { %v5499_v35 = vpack.c.bf16 %v13097_v24, %v13095_v22  ;;  %v19152_v42 = vpack.c.bf16 %v13161_v26, %v13159_v23  ;;  %v15049_v22 = vld [vmem:[#allocation2 + $0x28c] ss:$16 sps:$4 sm:$0xff]  }
 0x40c   :  { %v4963_v62 = vpop.f32.mrb[68].mxu0  ;;  %v5349_v28 = vpop.f32.mrb[68].mxu1  ;;  %6384 = vmatprep.mubr.bf16.mxu0 %v5499_v35  ;;  %6770 = vmatprep.mubr.bf16.mxu1 %v5499_v35 }
 0x40d   :  { %v4965_v20 = vpop.f32.mrb[69].mxu0  ;;  %v5351_v32 = vpop.f32.mrb[69].mxu1  ;;  %6385 = vmatmul.mubr.bf16.vlgmr.msra.gmra.mrb[128].mxu0 %v5498_v27  ;;  %6771 = vmatmul.mubr.bf16.vlgmr.msra.gmra.mrb[128].mxu1 %v5498_v27  ;;  %v13098_v33 = vadd.f32 %v4963_v62, %v19131_v47  ;;  %v13162_v14 = vadd.f32 %v5349_v28, %v19134_v52  ;;  %v15019_v28 = vld [vmem:[#allocation2 + $0x2a4] ss:$16 sps:$4 sm:$0xff]  }
 0x40e   :  { %v4967_v2 = vpop.f32.mrb[70].mxu0  ;;  %v5353_v63 = vpop.f32.mrb[70].mxu1  ;;  %6546 = vmatpush1.bf16.msra.mxu0 %v15002_v30  ;;  %6932 = vmatpush1.bf16.msra.mxu1 %v15029_v41  ;;  %v13099_v12 = vadd.f32 %v4965_v20, %v19137_v36  ;;  %v13163_v0 = vadd.f32 %v5351_v32, %v19140_v43  ;;  %v15052_v20 = vld [vmem:[#allocation2 + $0x2ac] ss:$16 sps:$4 sm:$0xff]  }
 0x40f   :  { %v13100_v8 = vadd.f32 %v4967_v2, %v19131_v47  ;;  %v13164_v39 = vadd.f32 %v5353_v63, %v19134_v52  ;;  %v4969_v3 = vpop.f32.mrb[71].mxu0  ;;  %v5355_v49 = vpop.f32.mrb[71].mxu1  ;;  %6547 = vmatprep.subr.bf16.mxu0 %v15007_v60  ;;  %6933 = vmatprep.subr.bf16.mxu1 %v15034_v61  ;;  %v15014_v60 = vld [vmem:[#allocation2 + $0x280] ss:$16 sps:$4 sm:$0xff]   ;;  %v15047_v61 = vld [vmem:[#allocation2 + $0x288] ss:$16 sps:$4 sm:$0xff]  }
 0x410   :  { %v13101_v53 = vadd.f32 %v4969_v3, %v19137_v36  ;;  %v13165_v10 = vadd.f32 %v5355_v49, %v19140_v43 }
 0x411   :  { %v5502_v11 = vpack.c.bf16 %v13100_v8, %v13098_v33  ;;  %v19162_v13 = vpack.c.bf16 %v13164_v39, %v13162_v14  ;;  %v15017_v8 = vld [vmem:[#allocation2 + $0x2a0] ss:$16 sps:$4 sm:$0xff]   ;;  %v15050_v39 = vld [vmem:[#allocation2 + $0x2a8] ss:$16 sps:$4 sm:$0xff]  }
 0x412   :  { %v5503_v46 = vpack.c.bf16 %v13101_v53, %v13099_v12  ;;  %6548 = vmatpush1.bf16.msra.mxu0 %v15005_v4  ;;  %6934 = vmatpush1.bf16.msra.mxu1 %v15032_v31  ;;  %v19164_v29 = vpack.c.bf16 %v13165_v10, %v13163_v0  ;;  %v15022_v0 = vld [vmem:[#allocation2 + $0x2c4] ss:$16 sps:$4 sm:$0xff]   ;;  %v15058_v53 = vld [vmem:[#allocation2 + $0x2cc] ss:$16 sps:$4 sm:$0xff]  }
 0x413   :  { %6549 = vmatprep.subr.bf16.mxu0 %v15010_v9  ;;  %6935 = vmatprep.subr.bf16.mxu1 %v15040_v25 }
 0x414   :  { %v4973_v19 = vpop.f32.mrb[72].mxu0  ;;  %v5359_v1 = vpop.f32.mrb[72].mxu1  ;;  %6394 = vmatprep.mubr.bf16.mxu0 %v5503_v46  ;;  %6780 = vmatprep.mubr.bf16.mxu1 %v5503_v46 }
 0x415   :  { %v4975_v6 = vpop.f32.mrb[73].mxu0  ;;  %v5361_v40 = vpop.f32.mrb[73].mxu1  ;;  %6395 = vmatmul.mubr.bf16.gmra.mrb[132].mxu0 %v5502_v11  ;;  %6781 = vmatmul.mubr.bf16.gmra.mrb[132].mxu1 %v5502_v11  ;;  %v13102_v48 = vadd.f32 %v4973_v19, %v19131_v47  ;;  %v13166_v16 = vadd.f32 %v5359_v1, %v19134_v52  ;;  %v15020_v19 = vld [vmem:[#allocation2 + $0x2c0] ss:$16 sps:$4 sm:$0xff]   ;;  %v15056_v1 = vld [vmem:[#allocation2 + $0x2c8] ss:$16 sps:$4 sm:$0xff]  }
 0x416   :  { %v4977_v37 = vpop.f32.mrb[74].mxu0  ;;  %v5363_v7 = vpop.f32.mrb[74].mxu1  ;;  %6550 = vmatpush1.bf16.msra.mxu0 %v15008_v38  ;;  %6936 = vmatpush1.bf16.msra.mxu1 %v15038_v45  ;;  %v13103_v23 = vadd.f32 %v4975_v6, %v19137_v36  ;;  %v13167_v24 = vadd.f32 %v5361_v40, %v19140_v43  ;;  %v15025_v40 = vld [vmem:[#allocation2 + $0x2e4] ss:$16 sps:$4 sm:$0xff]  }
 0x417   :  { %v13104_v17 = vadd.f32 %v4977_v37, %v19131_v47  ;;  %v13168_v18 = vadd.f32 %v5363_v7, %v19134_v52  ;;  %v4979_v5 = vpop.f32.mrb[75].mxu0  ;;  %v5365_v50 = vpop.f32.mrb[75].mxu1  ;;  %6551 = vmatprep.subr.bf16.mxu0 %v15013_v34  ;;  %6937 = vmatprep.subr.bf16.mxu1 %v15043_v15 }
 0x418   :  { %v13105_v26 = vadd.f32 %v4979_v5, %v19137_v36  ;;  %v13169_v27 = vadd.f32 %v5365_v50, %v19140_v43  ;;  %v15023_v5 = vld [vmem:[#allocation2 + $0x2e0] ss:$16 sps:$4 sm:$0xff]   ;;  %v15059_v50 = vld [vmem:[#allocation2 + $0x2e8] ss:$16 sps:$4 sm:$0xff]  }
 0x419   :  { %v5506_v35 = vpack.c.bf16 %v13104_v17, %v13102_v48  ;;  %v19174_v30 = vpack.c.bf16 %v13168_v18, %v13166_v16  ;;  %v15061_v48 = vld [vmem:[#allocation2 + $0x2ec] ss:$16 sps:$4 sm:$0xff]  }
 0x41a   :  { %v5507_v41 = vpack.c.bf16 %v13105_v26, %v13103_v23  ;;  %6552 = vmatpush1.bf16.msra.mxu0 %v15011_v59  ;;  %6938 = vmatpush1.bf16.msra.mxu1 %v15041_v51  ;;  %v19176_v62 = vpack.c.bf16 %v13169_v27, %v13167_v24  ;;  %v15028_v27 = vld [vmem:[#allocation2 + $0x304] ss:$16 sps:$4 sm:$0xff]  }
 0x41b   :  { %6553 = vmatprep.subr.bf16.mxu0 %v15016_v21  ;;  %6939 = vmatprep.subr.bf16.mxu1 %v15049_v22 }
 0x41c   :  { %v4983_v32 = vpop.f32.mrb[76].mxu0  ;;  %v5369_v33 = vpop.f32.mrb[76].mxu1  ;;  %6404 = vmatprep.mubr.bf16.mxu0 %v5507_v41  ;;  %6790 = vmatprep.mubr.bf16.mxu1 %v5507_v41 }
 0x41d   :  { %v4985_v2 = vpop.f32.mrb[77].mxu0  ;;  %v5371_v63 = vpop.f32.mrb[77].mxu1  ;;  %6405 = vmatmul.mubr.bf16.gmra.mrb[136].mxu0 %v5506_v35  ;;  %6791 = vmatmul.mubr.bf16.gmra.mrb[136].mxu1 %v5506_v35  ;;  %v13106_v4 = vadd.f32 %v4983_v32, %v19131_v47  ;;  %v13170_v3 = vadd.f32 %v5369_v33, %v19134_v52  ;;  %v15067_v35 = vld [vmem:[#allocation2 + $0x30c] ss:$16 sps:$4 sm:$0xff]  }
 0x41e   :  { %v4987_v31 = vpop.f32.mrb[78].mxu0  ;;  %v5373_v14 = vpop.f32.mrb[78].mxu1  ;;  %6554 = vmatpush1.bf16.msra.mxu0 %v15014_v60  ;;  %6940 = vmatpush1.bf16.msra.mxu1 %v15047_v61  ;;  %v13107_v10 = vadd.f32 %v4985_v2, %v19137_v36  ;;  %v13171_v11 = vadd.f32 %v5371_v63, %v19140_v43  ;;  %v15026_v2 = vld [vmem:[#allocation2 + $0x300] ss:$16 sps:$4 sm:$0xff]   ;;  %v15065_v63 = vld [vmem:[#allocation2 + $0x308] ss:$16 sps:$4 sm:$0xff]  }
 0x41f   :  { %v13108_v49 = vadd.f32 %v4987_v31, %v19131_v47  ;;  %v13172_v9 = vadd.f32 %v5373_v14, %v19134_v52  ;;  %v4989_v25 = vpop.f32.mrb[79].mxu0  ;;  %v5375_v12 = vpop.f32.mrb[79].mxu1  ;;  %6555 = vmatprep.subr.bf16.mxu0 %v15019_v28  ;;  %6941 = vmatprep.subr.bf16.mxu1 %v15052_v20  ;;  %v15037_v31 = vld [vmem:[#allocation2 + $0x324] ss:$16 sps:$4 sm:$0xff]   ;;  %v15070_v14 = vld [vmem:[#allocation2 + $0x32c] ss:$16 sps:$4 sm:$0xff]  }
 0x420   :  { %v13109_v46 = vadd.f32 %v4989_v25, %v19137_v36  ;;  %v13173_v38 = vadd.f32 %v5375_v12, %v19140_v43 }
 0x421   :  { %v5510_v45 = vpack.c.bf16 %v13108_v49, %v13106_v4  ;;  %v19186_v34 = vpack.c.bf16 %v13172_v9, %v13170_v3 }
 0x422   :  { %v5511_v15 = vpack.c.bf16 %v13109_v46, %v13107_v10  ;;  %6556 = vmatpush1.bf16.msra.mxu0 %v15017_v8  ;;  %6942 = vmatpush1.bf16.msra.mxu1 %v15050_v39  ;;  %v19188_v6 = vpack.c.bf16 %v13173_v38, %v13171_v11 }
 0x423   :  { %6557 = vmatprep.subr.bf16.mxu0 %v15022_v0  ;;  %6943 = vmatprep.subr.bf16.mxu1 %v15058_v53  ;;  %v15035_v0 = vld [vmem:[#allocation2 + $0x320] ss:$16 sps:$4 sm:$0xff]   ;;  %v15068_v53 = vld [vmem:[#allocation2 + $0x328] ss:$16 sps:$4 sm:$0xff]  }
 0x424   :  { %v4993_v37 = vpop.f32.mrb[80].mxu0  ;;  %v5379_v7 = vpop.f32.mrb[80].mxu1  ;;  %6414 = vmatprep.mubr.bf16.mxu0 %v5511_v15  ;;  %6800 = vmatprep.mubr.bf16.mxu1 %v5511_v15  ;;  %v15046_v15 = vld [vmem:[#allocation2 + $0x344] ss:$16 sps:$4 sm:$0xff]  }
 0x425   :  { %v4995_v59 = vpop.f32.mrb[81].mxu0  ;;  %v5381_v51 = vpop.f32.mrb[81].mxu1  ;;  %6415 = vmatmul.mubr.bf16.gmra.mrb[140].mxu0 %v5510_v45  ;;  %6801 = vmatmul.mubr.bf16.gmra.mrb[140].mxu1 %v5510_v45  ;;  %v13110_v16 = vadd.f32 %v4993_v37, %v19131_v47  ;;  %v13174_v21 = vadd.f32 %v5379_v7, %v19134_v52 }
 0x426   :  { %v4997_v17 = vpop.f32.mrb[82].mxu0  ;;  %v5383_v18 = vpop.f32.mrb[82].mxu1  ;;  %6558 = vmatpush1.bf16.msra.mxu0 %v15020_v19  ;;  %6944 = vmatpush1.bf16.msra.mxu1 %v15056_v1  ;;  %v13111_v41 = vadd.f32 %v4995_v59, %v19137_v36  ;;  %v13175_v60 = vadd.f32 %v5381_v51, %v19140_v43  ;;  %v15076_v19 = vld [vmem:[#allocation2 + $0x34c] ss:$16 sps:$4 sm:$0xff]  }
 0x427   :  { %v13112_v22 = vadd.f32 %v4997_v17, %v19131_v47  ;;  %v13176_v23 = vadd.f32 %v5383_v18, %v19134_v52  ;;  %v4999_v24 = vpop.f32.mrb[83].mxu0  ;;  %v5385_v26 = vpop.f32.mrb[83].mxu1  ;;  %6559 = vmatprep.subr.bf16.mxu0 %v15025_v40  ;;  %6945 = vmatprep.subr.bf16.mxu1 %v15061_v48  ;;  %v15074_v17 = vld [vmem:[#allocation2 + $0x348] ss:$16 sps:$4 sm:$0xff]  }
 0x428   :  { %v13113_v61 = vadd.f32 %v4999_v24, %v19137_v36  ;;  %v13177_v28 = vadd.f32 %v5385_v26, %v19140_v43 }
 0x429   :  { %v5514_v20 = vpack.c.bf16 %v13112_v22, %v13110_v16  ;;  %v19198_v32 = vpack.c.bf16 %v13176_v23, %v13174_v21  ;;  %v15044_v16 = vld [vmem:[#allocation2 + $0x340] ss:$16 sps:$4 sm:$0xff]  }
 0x42a   :  { %v5515_v33 = vpack.c.bf16 %v13113_v61, %v13111_v41  ;;  %6560 = vmatpush1.bf16.msra.mxu0 %v15023_v5  ;;  %6946 = vmatpush1.bf16.msra.mxu1 %v15059_v50  ;;  %v19200_v4 = vpack.c.bf16 %v13177_v28, %v13175_v60  ;;  %v15055_v5 = vld [vmem:[#allocation2 + $0x364] ss:$16 sps:$4 sm:$0xff]   ;;  %v15079_v50 = vld [vmem:[#allocation2 + $0x36c] ss:$16 sps:$4 sm:$0xff]   ;;  %v15053_v41 = vld [vmem:[#allocation2 + $0x360] ss:$16 sps:$4 sm:$0xff]  }
 0x42b   :  { %6561 = vmatprep.subr.bf16.mxu0 %v15028_v27  ;;  %6947 = vmatprep.subr.bf16.mxu1 %v15067_v35  ;;  %v15077_v60 = vld [vmem:[#allocation2 + $0x368] ss:$16 sps:$4 sm:$0xff]  }
 0x42c   :  { %v5003_v8 = vpop.f32.mrb[84].mxu0  ;;  %v5389_v39 = vpop.f32.mrb[84].mxu1  ;;  %6424 = vmatprep.mubr.bf16.mxu0 %v5515_v33  ;;  %6810 = vmatprep.mubr.bf16.mxu1 %v5515_v33 }
 0x42d   :  { %v5005_v3 = vpop.f32.mrb[85].mxu0  ;;  %v5391_v49 = vpop.f32.mrb[85].mxu1  ;;  %6425 = vmatmul.mubr.bf16.gmra.mrb[144].mxu0 %v5514_v20  ;;  %6811 = vmatmul.mubr.bf16.gmra.mrb[144].mxu1 %v5514_v20  ;;  %v13114_v9 = vadd.f32 %v5003_v8, %v19131_v47  ;;  %v13178_v10 = vadd.f32 %v5389_v39, %v19134_v52 }
 0x42e   :  { %v5007_v25 = vpop.f32.mrb[86].mxu0  ;;  %v5393_v12 = vpop.f32.mrb[86].mxu1  ;;  %6562 = vmatpush1.bf16.msra.mxu0 %v15026_v2  ;;  %6948 = vmatpush1.bf16.msra.mxu1 %v15065_v63  ;;  %v13115_v1 = vadd.f32 %v5005_v3, %v19137_v36  ;;  %v13179_v40 = vadd.f32 %v5391_v49, %v19140_v43  ;;  %v15064_v63 = vld [vmem:[#allocation2 + $0x384] ss:$16 sps:$4 sm:$0xff]  }
 0x42f   :  { %v13116_v11 = vadd.f32 %v5007_v25, %v19131_v47  ;;  %v13180_v46 = vadd.f32 %v5393_v12, %v19134_v52  ;;  %v5009_v38 = vpop.f32.mrb[87].mxu0  ;;  %v5395_v45 = vpop.f32.mrb[87].mxu1  ;;  %6563 = vmatprep.subr.bf16.mxu0 %v15037_v31  ;;  %6949 = vmatprep.subr.bf16.mxu1 %v15070_v14  ;;  %v15085_v31 = vld [vmem:[#allocation2 + $0x38c] ss:$16 sps:$4 sm:$0xff]   ;;  %v15062_v12 = vld [vmem:[#allocation2 + $0x380] ss:$16 sps:$4 sm:$0xff]  }
 0x430   :  { %v13117_v48 = vadd.f32 %v5009_v38, %v19137_v36  ;;  %v13181_v37 = vadd.f32 %v5395_v45, %v19140_v43 }
 0x431   :  { %v5518_v7 = vpack.c.bf16 %v13116_v11, %v13114_v9  ;;  %v19210_v59 = vpack.c.bf16 %v13180_v46, %v13178_v10  ;;  %v15073_v10 = vld [vmem:[#allocation2 + $0x3a4] ss:$16 sps:$4 sm:$0xff]   ;;  %v15088_v11 = vld [vmem:[#allocation2 + $0x3ac] ss:$16 sps:$4 sm:$0xff]  }
 0x432   :  { %v5519_v51 = vpack.c.bf16 %v13117_v48, %v13115_v1  ;;  %6564 = vmatpush1.bf16.msra.mxu0 %v15035_v0  ;;  %6950 = vmatpush1.bf16.msra.mxu1 %v15068_v53  ;;  %v19212_v18 = vpack.c.bf16 %v13181_v37, %v13179_v40  ;;  %v15083_v0 = vld [vmem:[#allocation2 + $0x388] ss:$16 sps:$4 sm:$0xff]   ;;  %v15071_v48 = vld [vmem:[#allocation2 + $0x3a0] ss:$16 sps:$4 sm:$0xff]  }
 0x433   :  { %6565 = vmatprep.subr.bf16.mxu0 %v15046_v15  ;;  %6951 = vmatprep.subr.bf16.mxu1 %v15076_v19  ;;  %v15086_v37 = vld [vmem:[#allocation2 + $0x3a8] ss:$16 sps:$4 sm:$0xff]  }
 0x434   :  { %v5013_v21 = vpop.f32.mrb[88].mxu0  ;;  %v5399_v22 = vpop.f32.mrb[88].mxu1  ;;  %6434 = vmatprep.mubr.bf16.mxu0 %v5519_v51  ;;  %6820 = vmatprep.mubr.bf16.mxu1 %v5519_v51 }
 0x435   :  { %v5015_v23 = vpop.f32.mrb[89].mxu0  ;;  %v5401_v24 = vpop.f32.mrb[89].mxu1  ;;  %6435 = vmatmul.mubr.bf16.gmra.mrb[148].mxu0 %v5518_v7  ;;  %6821 = vmatmul.mubr.bf16.gmra.mrb[148].mxu1 %v5518_v7  ;;  %v13118_v26 = vadd.f32 %v5013_v21, %v19131_v47  ;;  %v13182_v61 = vadd.f32 %v5399_v22, %v19134_v52  ;;  %v15094_v21 = vld [vmem:[#allocation2 + $0x3cc] ss:$16 sps:$4 sm:$0xff]  }
 0x436   :  { %v5017_v27 = vpop.f32.mrb[90].mxu0  ;;  %v5403_v35 = vpop.f32.mrb[90].mxu1  ;;  %6566 = vmatpush1.bf16.msra.mxu0 %v15044_v16  ;;  %6952 = vmatpush1.bf16.msra.mxu1 %v15074_v17  ;;  %v13119_v14 = vadd.f32 %v5015_v23, %v19137_v36  ;;  %v13183_v8 = vadd.f32 %v5401_v24, %v19140_v43 }
 0x437   :  { %v13120_v28 = vadd.f32 %v5017_v27, %v19131_v47  ;;  %v13184_v20 = vadd.f32 %v5403_v35, %v19134_v52  ;;  %v5019_v33 = vpop.f32.mrb[91].mxu0  ;;  %v5405_v2 = vpop.f32.mrb[91].mxu1  ;;  %6567 = vmatprep.subr.bf16.mxu0 %v15055_v5  ;;  %6953 = vmatprep.subr.bf16.mxu1 %v15079_v50  ;;  %v15082_v50 = vld [vmem:[#allocation2 + $0x3c4] ss:$16 sps:$4 sm:$0xff]  }
 0x438   :  { %v13121_v39 = vadd.f32 %v5019_v33, %v19137_v36  ;;  %v13185_v3 = vadd.f32 %v5405_v2, %v19140_v43  ;;  %v15097_v33 = vld [vmem:[#allocation2 + $0x3ec] ss:$16 sps:$4 sm:$0xff]  }
 0x439   :  { %v5522_v49 = vpack.c.bf16 %v13120_v28, %v13118_v26  ;;  %v19222_v9 = vpack.c.bf16 %v13184_v20, %v13182_v61  ;;  %v15092_v61 = vld [vmem:[#allocation2 + $0x3c8] ss:$16 sps:$4 sm:$0xff]   ;;  %v15091_v20 = vld [vmem:[#allocation2 + $0x3e4] ss:$16 sps:$4 sm:$0xff]  }
 0x43a   :  { %v5523_v25 = vpack.c.bf16 %v13121_v39, %v13119_v14  ;;  %6568 = vmatpush1.bf16.msra.mxu0 %v15053_v41  ;;  %6954 = vmatpush1.bf16.msra.mxu1 %v15077_v60  ;;  %v19224_v53 = vpack.c.bf16 %v13185_v3, %v13183_v8  ;;  %v15080_v60 = vld [vmem:[#allocation2 + $0x3c0] ss:$16 sps:$4 sm:$0xff]  }
 0x43b   :  { %6569 = vmatprep.subr.bf16.mxu0 %v15064_v63  ;;  %6955 = vmatprep.subr.bf16.mxu1 %v15085_v31 }
 0x43c   :  { %v5023_v46 = vpop.f32.mrb[92].mxu0  ;;  %v5409_v38 = vpop.f32.mrb[92].mxu1  ;;  %6444 = vmatprep.mubr.bf16.mxu0 %v5523_v25  ;;  %6830 = vmatprep.mubr.bf16.mxu1 %v5523_v25  ;;  %v15095_v25 = vld [vmem:[#allocation2 + $0x3e8] ss:$16 sps:$4 sm:$0xff]  }
 0x43d   :  { %v5025_v45 = vpop.f32.mrb[93].mxu0  ;;  %v5411_v15 = vpop.f32.mrb[93].mxu1  ;;  %6445 = vmatmul.mubr.bf16.gmra.mrb[152].mxu0 %v5522_v49  ;;  %6831 = vmatmul.mubr.bf16.gmra.mrb[152].mxu1 %v5522_v49  ;;  %v13122_v19 = vadd.f32 %v5023_v46, %v19131_v47  ;;  %v13186_v7 = vadd.f32 %v5409_v38, %v19134_v52  ;;  %v15089_v49 = vld [vmem:[#allocation2 + $0x3e0] ss:$16 sps:$4 sm:$0xff]  }
 0x43e   :  { %v5027_v1 = vpop.f32.mrb[94].mxu0  ;;  %v5413_v40 = vpop.f32.mrb[94].mxu1  ;;  %6570 = vmatpush1.bf16.msra.mxu0 %v15062_v12  ;;  %6956 = vmatpush1.bf16.msra.mxu1 %v15083_v0  ;;  %v13123_v22 = vadd.f32 %v5025_v45, %v19137_v36  ;;  %v13187_v23 = vadd.f32 %v5411_v15, %v19140_v43 }
 0x43f   :  { %v13124_v51 = vadd.f32 %v5027_v1, %v19131_v47  ;;  %v13188_v16 = vadd.f32 %v5413_v40, %v19134_v52  ;;  %v5029_v17 = vpop.f32.mrb[95].mxu0  ;;  %v5415_v5 = vpop.f32.mrb[95].mxu1  ;;  %6571 = vmatprep.subr.bf16.mxu0 %v15073_v10  ;;  %6957 = vmatprep.subr.bf16.mxu1 %v15088_v11 }
 0x440   :  { %v13125_v24 = vadd.f32 %v5029_v17, %v19137_v36  ;;  %v13189_v26 = vadd.f32 %v5415_v5, %v19140_v43 }
 0x441   :  { %v5526_v27 = vpack.c.bf16 %v13124_v51, %v13122_v19  ;;  %v19234_v35 = vpack.c.bf16 %v13188_v16, %v13186_v7 }
 0x442   :  { %v5527_v41 = vpack.c.bf16 %v13125_v24, %v13123_v22  ;;  %6572 = vmatpush1.bf16.msra.mxu0 %v15071_v48  ;;  %6958 = vmatpush1.bf16.msra.mxu1 %v15086_v37  ;;  %v19236_v28 = vpack.c.bf16 %v13189_v26, %v13187_v23 }
 0x443   :  { %6573 = vmatprep.subr.bf16.mxu0 %v15082_v50  ;;  %6959 = vmatprep.subr.bf16.mxu1 %v15094_v21 }
 0x444   :  { %v5033_v2 = vpop.f32.mrb[96].mxu0  ;;  %v5419_v63 = vpop.f32.mrb[96].mxu1  ;;  %6454 = vmatprep.mubr.bf16.mxu0 %v5527_v41  ;;  %6840 = vmatprep.mubr.bf16.mxu1 %v5527_v41 }
 0x445   :  { %v5035_v31 = vpop.f32.mrb[97].mxu0  ;;  %v5421_v14 = vpop.f32.mrb[97].mxu1  ;;  %6455 = vmatmul.mubr.bf16.gmra.mrb[156].mxu0 %v5526_v27  ;;  %6841 = vmatmul.mubr.bf16.gmra.mrb[156].mxu1 %v5526_v27  ;;  %v13126_v8 = vadd.f32 %v5033_v2, %v19131_v47  ;;  %v13190_v12 = vadd.f32 %v5419_v63, %v19134_v52 }
 0x446   :  { %v5037_v39 = vpop.f32.mrb[98].mxu0  ;;  %v5423_v3 = vpop.f32.mrb[98].mxu1  ;;  %6574 = vmatpush1.bf16.msra.mxu0 %v15080_v60  ;;  %6960 = vmatpush1.bf16.msra.mxu1 %v15092_v61  ;;  %v13127_v38 = vadd.f32 %v5035_v31, %v19137_v36  ;;  %v13191_v45 = vadd.f32 %v5421_v14, %v19140_v43 }
 0x447   :  { %v13128_v0 = vadd.f32 %v5037_v39, %v19131_v47  ;;  %v13192_v10 = vadd.f32 %v5423_v3, %v19134_v52  ;;  %v5039_v11 = vpop.f32.mrb[99].mxu0  ;;  %v5425_v46 = vpop.f32.mrb[99].mxu1  ;;  %6575 = vmatprep.subr.bf16.mxu0 %v15091_v20  ;;  %6961 = vmatprep.subr.bf16.mxu1 %v15097_v33 }
 0x448   :  { %v13129_v15 = vadd.f32 %v5039_v11, %v19137_v36  ;;  %v13193_v19 = vadd.f32 %v5425_v46, %v19140_v43 }
 0x449   :  { %v5530_v1 = vpack.c.bf16 %v13128_v0, %v13126_v8  ;;  %v19246_v40 = vpack.c.bf16 %v13192_v10, %v13190_v12 }
 0x44a   :  { %v5531_v48 = vpack.c.bf16 %v13129_v15, %v13127_v38  ;;  %6576 = vmatpush1.bf16.msra.mxu0 %v15089_v49  ;;  %6962 = vmatpush1.bf16.msra.mxu1 %v15095_v25  ;;  %v19248_v37 = vpack.c.bf16 %v13193_v19, %v13191_v45 }
 0x44c   :  { %v5043_v7 = vpop.f32.mrb[100].mxu0  ;;  %v5429_v51 = vpop.f32.mrb[100].mxu1  ;;  %6464 = vmatprep.mubr.bf16.mxu0 %v5531_v48  ;;  %6850 = vmatprep.mubr.bf16.mxu1 %v5531_v48 }
 0x44d   :  { %v5045_v16 = vpop.f32.mrb[101].mxu0  ;;  %v5431_v17 = vpop.f32.mrb[101].mxu1  ;;  %6465 = vmatmul.mubr.bf16.gmra.mrb[160].mxu0 %v5530_v1  ;;  %6851 = vmatmul.mubr.bf16.gmra.mrb[160].mxu1 %v5530_v1  ;;  %v13130_v21 = vadd.f32 %v5043_v7, %v19131_v47  ;;  %v13194_v22 = vadd.f32 %v5429_v51, %v19134_v52 }
 0x44e   :  { %v5047_v5 = vpop.f32.mrb[102].mxu0  ;;  %v5433_v50 = vpop.f32.mrb[102].mxu1  ;;  %v13131_v41 = vadd.f32 %v5045_v16, %v19137_v36  ;;  %v13195_v60 = vadd.f32 %v5431_v17, %v19140_v43 }
 0x44f   :  { %v13132_v23 = vadd.f32 %v5047_v5, %v19131_v47  ;;  %v13196_v24 = vadd.f32 %v5433_v50, %v19134_v52  ;;  %v5049_v26 = vpop.f32.mrb[103].mxu0  ;;  %v5435_v27 = vpop.f32.mrb[103].mxu1 }
 0x450   :  { %v13133_v61 = vadd.f32 %v5049_v26, %v19137_v36  ;;  %v13197_v20 = vadd.f32 %v5435_v27, %v19140_v43 }
 0x451   :  { %v5534_v33 = vpack.c.bf16 %v13132_v23, %v13130_v21  ;;  %v19258_v2 = vpack.c.bf16 %v13196_v24, %v13194_v22 }
 0x452   :  { %v5535_v63 = vpack.c.bf16 %v13133_v61, %v13131_v41  ;;  %v19260_v31 = vpack.c.bf16 %v13197_v20, %v13195_v60 }
 0x454   :  { %v5053_v14 = vpop.f32.mrb[104].mxu0  ;;  %v5439_v8 = vpop.f32.mrb[104].mxu1  ;;  %6474 = vmatprep.mubr.bf16.mxu0 %v5535_v63  ;;  %6860 = vmatprep.mubr.bf16.mxu1 %v5535_v63 }
 0x455   :  { %v5055_v39 = vpop.f32.mrb[105].mxu0  ;;  %v5441_v3 = vpop.f32.mrb[105].mxu1  ;;  %6475 = vmatmul.mubr.bf16.gmra.mrb[164].mxu0 %v5534_v33  ;;  %6861 = vmatmul.mubr.bf16.gmra.mrb[164].mxu1 %v5534_v33  ;;  %v13134_v12 = vadd.f32 %v5053_v14, %v19131_v47  ;;  %v13198_v0 = vadd.f32 %v5439_v8, %v19134_v52 }
 0x456   :  { %v5057_v49 = vpop.f32.mrb[106].mxu0  ;;  %v5443_v25 = vpop.f32.mrb[106].mxu1  ;;  %v13135_v45 = vadd.f32 %v5055_v39, %v19137_v36  ;;  %v13199_v15 = vadd.f32 %v5441_v3, %v19140_v43 }
 0x457   :  { %v13136_v10 = vadd.f32 %v5057_v49, %v19131_v47  ;;  %v13200_v11 = vadd.f32 %v5443_v25, %v19134_v52  ;;  %v5059_v46 = vpop.f32.mrb[107].mxu0  ;;  %v5445_v38 = vpop.f32.mrb[107].mxu1 }
 0x458   :  { %v13137_v19 = vadd.f32 %v5059_v46, %v19137_v36  ;;  %v13201_v1 = vadd.f32 %v5445_v38, %v19140_v43  ;;  %v15100_v38 = vld [vmem:[%s22161_s8 + $0xc] ss:$28 sps:$4 sm:$0xff]  }
 0x459   :  { %v5538_v48 = vpack.c.bf16 %v13136_v10, %v13134_v12  ;;  %v19270_v7 = vpack.c.bf16 %v13200_v11, %v13198_v0  ;;  %9147 = vmatprep.subr.bf16.mxu1 %v15100_v38 }
 0x45a   :  { %v5539_v51 = vpack.c.bf16 %v13137_v19, %v13135_v45  ;;  %v19272_v16 = vpack.c.bf16 %v13201_v1, %v13199_v15 }
 0x45c   :  { %v5063_v17 = vpop.f32.mrb[108].mxu0  ;;  %v5449_v5 = vpop.f32.mrb[108].mxu1  ;;  %6484 = vmatprep.mubr.bf16.mxu0 %v5539_v51  ;;  %6870 = vmatprep.mubr.bf16.mxu1 %v5539_v51 }
 0x45d   :  { %v5065_v50 = vpop.f32.mrb[109].mxu0  ;;  %v5451_v21 = vpop.f32.mrb[109].mxu1  ;;  %6485 = vmatmul.mubr.bf16.gmra.mrb[168].mxu0 %v5538_v48  ;;  %6871 = vmatmul.mubr.bf16.gmra.mrb[168].mxu1 %v5538_v48  ;;  %v13138_v24 = vadd.f32 %v5063_v17, %v19131_v47  ;;  %v13202_v26 = vadd.f32 %v5449_v5, %v19134_v52 }
 0x45e   :  { %v5067_v22 = vpop.f32.mrb[110].mxu0  ;;  %v5453_v23 = vpop.f32.mrb[110].mxu1  ;;  %v13139_v20 = vadd.f32 %v5065_v50, %v19137_v36  ;;  %v13203_v33 = vadd.f32 %v5451_v21, %v19140_v43 }
 0x45f   :  { %v13140_v27 = vadd.f32 %v5067_v22, %v19131_v47  ;;  %v13204_v41 = vadd.f32 %v5453_v23, %v19134_v52  ;;  %v5069_v60 = vpop.f32.mrb[111].mxu0  ;;  %v5455_v61 = vpop.f32.mrb[111].mxu1 }
 0x460   :  { %v13141_v63 = vadd.f32 %v5069_v60, %v19137_v36  ;;  %v13205_v14 = vadd.f32 %v5455_v61, %v19140_v43 }
 0x461   :  { %v5542_v8 = vpack.c.bf16 %v13140_v27, %v13138_v24  ;;  %v19282_v39 = vpack.c.bf16 %v13204_v41, %v13202_v26 }
 0x462   :  { %v5543_v3 = vpack.c.bf16 %v13141_v63, %v13139_v20  ;;  %v19284_v49 = vpack.c.bf16 %v13205_v14, %v13203_v33  ;;  %v15103_v20 = vld [vmem:[%s22161_s8 + $0x4] ss:$28 sps:$4 sm:$0xff]  }
 0x463   :  { %8761 = vmatprep.subr.bf16.mxu0 %v15103_v20 }
 0x464   :  { %v5073_v25 = vpop.f32.mrb[112].mxu0  ;;  %v5459_v12 = vpop.f32.mrb[112].mxu1  ;;  %6494 = vmatprep.mubr.bf16.mxu0 %v5543_v3  ;;  %6880 = vmatprep.mubr.bf16.mxu1 %v5543_v3 }
 0x465   :  { %v5075_v0 = vpop.f32.mrb[113].mxu0  ;;  %v5461_v10 = vpop.f32.mrb[113].mxu1  ;;  %6495 = vmatmul.mubr.bf16.gmra.mrb[172].mxu0 %v5542_v8  ;;  %6881 = vmatmul.mubr.bf16.gmra.mrb[172].mxu1 %v5542_v8  ;;  %v13142_v45 = vadd.f32 %v5073_v25, %v19131_v47  ;;  %v13206_v15 = vadd.f32 %v5459_v12, %v19134_v52 }
 0x466   :  { %v5077_v11 = vpop.f32.mrb[114].mxu0  ;;  %v5463_v46 = vpop.f32.mrb[114].mxu1  ;;  %v13143_v17 = vadd.f32 %v5075_v0, %v19137_v36  ;;  %v13207_v5 = vadd.f32 %v5461_v10, %v19140_v43 }
 0x467   :  { %v13144_v19 = vadd.f32 %v5077_v11, %v19131_v47  ;;  %v13208_v1 = vadd.f32 %v5463_v46, %v19134_v52  ;;  %v5079_v48 = vpop.f32.mrb[115].mxu0  ;;  %v5465_v51 = vpop.f32.mrb[115].mxu1 }
 0x468   :  { %v13145_v50 = vadd.f32 %v5079_v48, %v19137_v36  ;;  %v13209_v21 = vadd.f32 %v5465_v51, %v19140_v43 }
 0x469   :  { %v5546_v22 = vpack.c.bf16 %v13144_v19, %v13142_v45  ;;  %v19297_v23 = vpack.c.bf16 %v13208_v1, %v13206_v15 }
 0x46a   :  { %v5547_v24 = vpack.c.bf16 %v13145_v50, %v13143_v17  ;;  %v19299_v26 = vpack.c.bf16 %v13209_v21, %v13207_v5 }
 0x46c   :  { %v5083_v27 = vpop.f32.mrb[116].mxu0  ;;  %v5469_v41 = vpop.f32.mrb[116].mxu1  ;;  %6504 = vmatprep.mubr.bf16.mxu0 %v5547_v24  ;;  %6890 = vmatprep.mubr.bf16.mxu1 %v5547_v24 }
 0x46d   :  { %v5085_v60 = vpop.f32.mrb[117].mxu0  ;;  %v5471_v61 = vpop.f32.mrb[117].mxu1  ;;  %6505 = vmatmul.mubr.bf16.gmra.mrb[176].mxu0 %v5546_v22  ;;  %6891 = vmatmul.mubr.bf16.gmra.mrb[176].mxu1 %v5546_v22  ;;  %v13146_v14 = vadd.f32 %v5083_v27, %v19131_v47  ;;  %v13210_v8 = vadd.f32 %v5469_v41, %v19134_v52 }
 0x46e   :  { %v5087_v33 = vpop.f32.mrb[118].mxu0  ;;  %v5473_v63 = vpop.f32.mrb[118].mxu1  ;;  %v13147_v10 = vadd.f32 %v5085_v60, %v19137_v36  ;;  %v13211_v11 = vadd.f32 %v5471_v61, %v19140_v43 }
 0x46f   :  { %v13148_v3 = vadd.f32 %v5087_v33, %v19131_v47  ;;  %v13212_v25 = vadd.f32 %v5473_v63, %v19134_v52  ;;  %v5089_v12 = vpop.f32.mrb[119].mxu0  ;;  %v5475_v0 = vpop.f32.mrb[119].mxu1 }
 0x470   :  { %v13149_v46 = vadd.f32 %v5089_v12, %v19137_v36  ;;  %v13213_v38 = vadd.f32 %v5475_v0, %v19140_v43 }
 0x471   :  { %v5550_v45 = vpack.c.bf16 %v13148_v3, %v13146_v14  ;;  %v19312_v15 = vpack.c.bf16 %v13212_v25, %v13210_v8 }
 0x472   :  { %v5551_v19 = vpack.c.bf16 %v13149_v46, %v13147_v10  ;;  %v19314_v1 = vpack.c.bf16 %v13213_v38, %v13211_v11 }
 0x474   :  { %v5093_v48 = vpop.f32.mrb[120].mxu0  ;;  %v5479_v51 = vpop.f32.mrb[120].mxu1  ;;  %6514 = vmatprep.mubr.bf16.mxu0 %v5551_v19  ;;  %6900 = vmatprep.mubr.bf16.mxu1 %v5551_v19 }
 0x475   :  { %v5095_v17 = vpop.f32.mrb[121].mxu0  ;;  %v5481_v5 = vpop.f32.mrb[121].mxu1  ;;  %6515 = vmatmul.mubr.bf16.gmra.mrb[180].mxu0 %v5550_v45  ;;  %6901 = vmatmul.mubr.bf16.gmra.mrb[180].mxu1 %v5550_v45  ;;  %v13150_v22 = vadd.f32 %v5093_v48, %v19131_v47  ;;  %v13214_v24 = vadd.f32 %v5479_v51, %v19134_v52 }
 0x476   :  { %v5097_v50 = vpop.f32.mrb[122].mxu0  ;;  %v5483_v21 = vpop.f32.mrb[122].mxu1  ;;  %v13151_v20 = vadd.f32 %v5095_v17, %v19137_v36  ;;  %v13215_v33 = vadd.f32 %v5481_v5, %v19140_v43 }
 0x477   :  { %v13152_v27 = vadd.f32 %v5097_v50, %v19131_v47  ;;  %v13216_v41 = vadd.f32 %v5483_v21, %v19134_v52  ;;  %v5099_v60 = vpop.f32.mrb[123].mxu0  ;;  %v5485_v61 = vpop.f32.mrb[123].mxu1 }
 0x478   :  { %v13153_v63 = vadd.f32 %v5099_v60, %v19137_v36  ;;  %v13217_v14 = vadd.f32 %v5485_v61, %v19140_v43 }
 0x479   :  { %v5554_v8 = vpack.c.bf16 %v13152_v27, %v13150_v22  ;;  %v19324_v3 = vpack.c.bf16 %v13216_v41, %v13214_v24 }
 0x47a   :  { %v5555_v25 = vpack.c.bf16 %v13153_v63, %v13151_v20  ;;  %v19326_v12 = vpack.c.bf16 %v13217_v14, %v13215_v33  ;;  %v15107_v33 = vld [vmem:[%s22161_s8 + $0x38] ss:$28 sps:$4 sm:$0xff]   ;;  %v15113_v14 = vld [vmem:[%s22161_s8 + $0x70] ss:$28 sps:$4 sm:$0xff]  }
 0x47b   :  { %v15110_v63 = vld [vmem:[%s22161_s8 + $0x78] ss:$28 sps:$4 sm:$0xff]  }
 0x47c   :  { %v5103_v0 = vpop.f32.mrb[124].mxu0  ;;  %v5489_v10 = vpop.f32.mrb[124].mxu1  ;;  %6524 = vmatprep.mubr.bf16.mxu0 %v5555_v25  ;;  %6910 = vmatprep.mubr.bf16.mxu1 %v5555_v25  ;;  %v15121_v25 = vld [vmem:[%s22161_s8 + $0xac] ss:$28 sps:$4 sm:$0xff]  }
 0x47d   :  { %v5105_v11 = vpop.f32.mrb[125].mxu0  ;;  %v5491_v46 = vpop.f32.mrb[125].mxu1  ;;  %6525 = vmatmul.mubr.bf16.gmra.mrb[184].mxu0 %v5554_v8  ;;  %6911 = vmatmul.mubr.bf16.gmra.mrb[184].mxu1 %v5554_v8  ;;  %v13154_v19 = vadd.f32 %v5103_v0, %v19131_v47  ;;  %v13218_v48 = vadd.f32 %v5489_v10, %v19134_v52  ;;  %v15118_v8 = vld [vmem:[%s22161_s8 + $0xb4] ss:$28 sps:$4 sm:$0xff]   ;;  %v15119_v10 = vld [vmem:[%s22161_s8 + $0xa8] ss:$28 sps:$4 sm:$0xff]  }
 0x47e   :  { %v5107_v38 = vpop.f32.mrb[126].mxu0  ;;  %v5493_v45 = vpop.f32.mrb[126].mxu1  ;;  %v13155_v21 = vadd.f32 %v5105_v11, %v19137_v36  ;;  %v13219_v22 = vadd.f32 %v5491_v46, %v19140_v43  ;;  %v15116_v0 = vld [vmem:[%s22161_s8 + $0xb0] ss:$28 sps:$4 sm:$0xff]   ;;  %v15122_v11 = vld [vmem:[%s22161_s8 + $0xe8] ss:$28 sps:$4 sm:$0xff]  }
 0x47f   :  { %v13156_v51 = vadd.f32 %v5107_v38, %v19131_v47  ;;  %v13220_v17 = vadd.f32 %v5493_v45, %v19134_v52  ;;  %v5109_v5 = vpop.f32.mrb[127].mxu0  ;;  %v5495_v50 = vpop.f32.mrb[127].mxu1  ;;  %v15098_v47 = vld [vmem:[%s22161_s8 + $0x8] ss:$28 sps:$4 sm:$0xff]   ;;  %v15101_v52 = vld [vmem:[%s22161_s8] ss:$28 sps:$4 sm:$0xff]  }
 0x480   :  { %v13157_v24 = vadd.f32 %v5109_v5, %v19137_v36  ;;  %v13221_v27 = vadd.f32 %v5495_v50, %v19140_v43  ;;  %v15106_v36 = vld [vmem:[%s22161_s8 + $0x44] ss:$28 sps:$4 sm:$0xff]   ;;  %v15109_v43 = vld [vmem:[%s22161_s8 + $0x3c] ss:$28 sps:$4 sm:$0xff]   ;;  %v15142_v5 = vld [vmem:[%s22161_s8 + $0x194] ss:$28 sps:$4 sm:$0xff]  }
 0x481   :  { %v5558_v41 = vpack.c.bf16 %v13156_v51, %v13154_v19  ;;  %v19336_v60 = vpack.c.bf16 %v13220_v17, %v13218_v48  ;;  %v15125_v46 = vld [vmem:[%s22161_s8 + $0xe0] ss:$28 sps:$4 sm:$0xff]   ;;  %v15131_v48 = vld [vmem:[%s22161_s8 + $0x118] ss:$28 sps:$4 sm:$0xff]   ;;  %v15137_v17 = vld [vmem:[%s22161_s8 + $0x150] ss:$28 sps:$4 sm:$0xff]  }
 0x482   :  { %v5559_v61 = vpack.c.bf16 %v13157_v24, %v13155_v21  ;;  %v19338_v20 = vpack.c.bf16 %v13221_v27, %v13219_v22  ;;  %v15130_v38 = vld [vmem:[%s22161_s8 + $0x124] ss:$28 sps:$4 sm:$0xff]   ;;  %v15133_v45 = vld [vmem:[%s22161_s8 + $0x11c] ss:$28 sps:$4 sm:$0xff]   ;;  %v15145_v50 = vld [vmem:[%s22161_s8 + $0x18c] ss:$28 sps:$4 sm:$0xff]  }
 0x483   :  { %v15128_v19 = vld [vmem:[%s22161_s8 + $0x120] ss:$28 sps:$4 sm:$0xff]   ;;  %v15134_v51 = vld [vmem:[%s22161_s8 + $0x158] ss:$28 sps:$4 sm:$0xff]   ;;  %v15140_v21 = vld [vmem:[%s22161_s8 + $0x190] ss:$28 sps:$4 sm:$0xff]  }
 0x484   :  { %6534 = vmatprep.mubr.bf16.mxu0 %v5559_v61  ;;  %6920 = vmatprep.mubr.bf16.mxu1 %v5559_v61  ;;  %v15143_v22 = vld [vmem:[%s22161_s8 + $0x188] ss:$28 sps:$4 sm:$0xff]   ;;  %v15149_v27 = vld [vmem:[%s22161_s8 + $0x1c0] ss:$28 sps:$4 sm:$0xff]  }
 0x485   :  { %6535 = vmatmul.mubr.bf16.gmra.mrb[188].mxu0 %v5558_v41  ;;  %6921 = vmatmul.mubr.bf16.gmra.mrb[188].mxu1 %v5558_v41  ;;  %v15146_v24 = vld [vmem:[%s22161_s8 + $0x1c8] ss:$28 sps:$4 sm:$0xff]   ;;  %v15157_v61 = vld [vmem:[%s22161_s8 + $0x1fc] ss:$28 sps:$4 sm:$0xff]  }
 0x486   :  { %6577 = vmatprep.mubr.bf16.mxu0 %v19152_v42  ;;  %6963 = vmatprep.mubr.bf16.mxu1 %v19152_v42  ;;  %v15104_v42 = vld [vmem:[%s22161_s8 + $0x40] ss:$28 sps:$4 sm:$0xff]  }
 0x487   :  { %v15154_v41 = vld [vmem:[%s22161_s8 + $0x204] ss:$28 sps:$4 sm:$0xff]  }
 0x48d   :  { %6578 = vmatmul.mubr.bf16.vlgmr.msra.gmra.mrb[128].mxu0 %v19150_v44  ;;  %6964 = vmatmul.mubr.bf16.vlgmr.msra.gmra.mrb[128].mxu1 %v19150_v44  ;;  %v15112_v44 = vld [vmem:[%s22161_s8 + $0x7c] ss:$28 sps:$4 sm:$0xff]  }
 0x48e   :  { %6587 = vmatprep.mubr.bf16.mxu0 %v19164_v29  ;;  %6973 = vmatprep.mubr.bf16.mxu1 %v19164_v29  ;;  %v15115_v29 = vld [vmem:[%s22161_s8 + $0x74] ss:$28 sps:$4 sm:$0xff]  }
 0x48f   :  { %9148 = vmatpush1.bf16.msra.mxu1 %v15098_v47  ;;  %8762 = vmatpush1.bf16.msra.mxu0 %v15101_v52  ;;  %v15152_v47 = vld [vmem:[%s22161_s8 + $0x200] ss:$28 sps:$4 sm:$0xff]   ;;  %v15155_v52 = vld [vmem:[%s22161_s8 + $0x1f8] ss:$28 sps:$4 sm:$0xff]  }
 0x490   :  { %9149 = vmatprep.subr.bf16.mxu1 %v15106_v36  ;;  %8763 = vmatprep.subr.bf16.mxu0 %v15109_v43  ;;  %v15158_v36 = vld [vmem:[%s22161_s8 + $0x238] ss:$28 sps:$4 sm:$0xff]   ;;  %v15161_v43 = vld [vmem:[%s22161_s8 + $0x230] ss:$28 sps:$4 sm:$0xff]  }
 0x493   :  { %9150 = vmatpush1.bf16.msra.mxu1 %v15104_v42  ;;  %8764 = vmatpush1.bf16.msra.mxu0 %v15107_v33  ;;  %v15166_v42 = vld [vmem:[%s22161_s8 + $0x274] ss:$28 sps:$4 sm:$0xff]   ;;  %v15169_v33 = vld [vmem:[%s22161_s8 + $0x26c] ss:$28 sps:$4 sm:$0xff]  }
 0x494   :  { %9151 = vmatprep.subr.bf16.mxu1 %v15112_v44  ;;  %8765 = vmatprep.subr.bf16.mxu0 %v15115_v29  ;;  %v15164_v44 = vld [vmem:[%s22161_s8 + $0x270] ss:$28 sps:$4 sm:$0xff]   ;;  %v15167_v29 = vld [vmem:[%s22161_s8 + $0x268] ss:$28 sps:$4 sm:$0xff]  }
 0x495   :  { %6588 = vmatmul.mubr.bf16.gmra.mrb[132].mxu0 %v19162_v13  ;;  %6974 = vmatmul.mubr.bf16.gmra.mrb[132].mxu1 %v19162_v13  ;;  %v15124_v13 = vld [vmem:[%s22161_s8 + $0xec] ss:$28 sps:$4 sm:$0xff]  }
 0x496   :  { %6597 = vmatprep.mubr.bf16.mxu0 %v19176_v62  ;;  %6983 = vmatprep.mubr.bf16.mxu1 %v19176_v62  ;;  %v15127_v62 = vld [vmem:[%s22161_s8 + $0xe4] ss:$28 sps:$4 sm:$0xff]  }
 0x497   :  { %9152 = vmatpush1.bf16.msra.mxu1 %v15110_v63  ;;  %8766 = vmatpush1.bf16.msra.mxu0 %v15113_v14  ;;  %v15170_v63 = vld [vmem:[%s22161_s8 + $0x2a8] ss:$28 sps:$4 sm:$0xff]   ;;  %v15173_v14 = vld [vmem:[%s22161_s8 + $0x2a0] ss:$28 sps:$4 sm:$0xff]  }
 0x498   :  { %9153 = vmatprep.subr.bf16.mxu1 %v15118_v8  ;;  %8767 = vmatprep.subr.bf16.mxu0 %v15121_v25  ;;  %v15178_v8 = vld [vmem:[%s22161_s8 + $0x2e4] ss:$28 sps:$4 sm:$0xff]   ;;  %v15181_v25 = vld [vmem:[%s22161_s8 + $0x2dc] ss:$28 sps:$4 sm:$0xff]  }
 0x49b   :  { %9154 = vmatpush1.bf16.msra.mxu1 %v15116_v0  ;;  %8768 = vmatpush1.bf16.msra.mxu0 %v15119_v10  ;;  %v15176_v0 = vld [vmem:[%s22161_s8 + $0x2e0] ss:$28 sps:$4 sm:$0xff]   ;;  %v15179_v10 = vld [vmem:[%s22161_s8 + $0x2d8] ss:$28 sps:$4 sm:$0xff]  }
 0x49c   :  { %9155 = vmatprep.subr.bf16.mxu1 %v15124_v13  ;;  %8769 = vmatprep.subr.bf16.mxu0 %v15127_v62  ;;  %v15182_v13 = vld [vmem:[%s22161_s8 + $0x318] ss:$28 sps:$4 sm:$0xff]   ;;  %v15185_v62 = vld [vmem:[%s22161_s8 + $0x310] ss:$28 sps:$4 sm:$0xff]  }
 0x49d   :  { %6598 = vmatmul.mubr.bf16.gmra.mrb[136].mxu0 %v19174_v30  ;;  %6984 = vmatmul.mubr.bf16.gmra.mrb[136].mxu1 %v19174_v30  ;;  %v15136_v30 = vld [vmem:[%s22161_s8 + $0x15c] ss:$28 sps:$4 sm:$0xff]  }
 0x49e   :  { %6607 = vmatprep.mubr.bf16.mxu0 %v19188_v6  ;;  %6993 = vmatprep.mubr.bf16.mxu1 %v19188_v6  ;;  %v15139_v6 = vld [vmem:[%s22161_s8 + $0x154] ss:$28 sps:$4 sm:$0xff]  }
 0x49f   :  { %9156 = vmatpush1.bf16.msra.mxu1 %v15122_v11  ;;  %8770 = vmatpush1.bf16.msra.mxu0 %v15125_v46 }
 0x4a0   :  { %9157 = vmatprep.subr.bf16.mxu1 %v15130_v38  ;;  %8771 = vmatprep.subr.bf16.mxu0 %v15133_v45 }
 0x4a3   :  { %9158 = vmatpush1.bf16.msra.mxu1 %v15128_v19  ;;  %8772 = vmatpush1.bf16.msra.mxu0 %v15131_v48 }
 0x4a4   :  { %9159 = vmatprep.subr.bf16.mxu1 %v15136_v30  ;;  %8773 = vmatprep.subr.bf16.mxu0 %v15139_v6 }
 0x4a5   :  { %6608 = vmatmul.mubr.bf16.gmra.mrb[140].mxu0 %v19186_v34  ;;  %6994 = vmatmul.mubr.bf16.gmra.mrb[140].mxu1 %v19186_v34  ;;  %v15148_v34 = vld [vmem:[%s22161_s8 + $0x1cc] ss:$28 sps:$4 sm:$0xff]  }
 0x4a6   :  { %6617 = vmatprep.mubr.bf16.mxu0 %v19200_v4  ;;  %7003 = vmatprep.mubr.bf16.mxu1 %v19200_v4  ;;  %v15151_v4 = vld [vmem:[%s22161_s8 + $0x1c4] ss:$28 sps:$4 sm:$0xff]  }
 0x4a7   :  { %9160 = vmatpush1.bf16.msra.mxu1 %v15134_v51  ;;  %8774 = vmatpush1.bf16.msra.mxu0 %v15137_v17 }
 0x4a8   :  { %9161 = vmatprep.subr.bf16.mxu1 %v15142_v5  ;;  %8775 = vmatprep.subr.bf16.mxu0 %v15145_v50 }
 0x4ab   :  { %9162 = vmatpush1.bf16.msra.mxu1 %v15140_v21  ;;  %8776 = vmatpush1.bf16.msra.mxu0 %v15143_v22 }
 0x4ac   :  { %9163 = vmatprep.subr.bf16.mxu1 %v15148_v34  ;;  %8777 = vmatprep.subr.bf16.mxu0 %v15151_v4 }
 0x4ad   :  { %6618 = vmatmul.mubr.bf16.gmra.mrb[144].mxu0 %v19198_v32  ;;  %7004 = vmatmul.mubr.bf16.gmra.mrb[144].mxu1 %v19198_v32  ;;  %v15160_v32 = vld [vmem:[%s22161_s8 + $0x23c] ss:$28 sps:$4 sm:$0xff]  }
 0x4ae   :  { %6627 = vmatprep.mubr.bf16.mxu0 %v19212_v18  ;;  %7013 = vmatprep.mubr.bf16.mxu1 %v19212_v18  ;;  %v15163_v18 = vld [vmem:[%s22161_s8 + $0x234] ss:$28 sps:$4 sm:$0xff]  }
 0x4af   :  { %9164 = vmatpush1.bf16.msra.mxu1 %v15146_v24  ;;  %8778 = vmatpush1.bf16.msra.mxu0 %v15149_v27 }
 0x4b0   :  { %9165 = vmatprep.subr.bf16.mxu1 %v15154_v41  ;;  %8779 = vmatprep.subr.bf16.mxu0 %v15157_v61 }
 0x4b3   :  { %9166 = vmatpush1.bf16.msra.mxu1 %v15152_v47  ;;  %8780 = vmatpush1.bf16.msra.mxu0 %v15155_v52 }
 0x4b4   :  { %9167 = vmatprep.subr.bf16.mxu1 %v15160_v32  ;;  %8781 = vmatprep.subr.bf16.mxu0 %v15163_v18 }
 0x4b5   :  { %6628 = vmatmul.mubr.bf16.gmra.mrb[148].mxu0 %v19210_v59  ;;  %7014 = vmatmul.mubr.bf16.gmra.mrb[148].mxu1 %v19210_v59  ;;  %v15172_v59 = vld [vmem:[%s22161_s8 + $0x2ac] ss:$28 sps:$4 sm:$0xff]  }
 0x4b6   :  { %6637 = vmatprep.mubr.bf16.mxu0 %v19224_v53  ;;  %7023 = vmatprep.mubr.bf16.mxu1 %v19224_v53  ;;  %v15175_v53 = vld [vmem:[%s22161_s8 + $0x2a4] ss:$28 sps:$4 sm:$0xff]  }
 0x4b7   :  { %9168 = vmatpush1.bf16.msra.mxu1 %v15158_v36  ;;  %8782 = vmatpush1.bf16.msra.mxu0 %v15161_v43  ;;  %v15194_v36 = vld [vmem:[%s22161_s8 + $0x388] ss:$28 sps:$4 sm:$0xff]   ;;  %v15197_v43 = vld [vmem:[%s22161_s8 + $0x380] ss:$28 sps:$4 sm:$0xff]  }
 0x4b8   :  { %9169 = vmatprep.subr.bf16.mxu1 %v15166_v42  ;;  %8783 = vmatprep.subr.bf16.mxu0 %v15169_v33 }
 0x4bb   :  { %9170 = vmatpush1.bf16.msra.mxu1 %v15164_v44  ;;  %8784 = vmatpush1.bf16.msra.mxu0 %v15167_v29 }
 0x4bc   :  { %9171 = vmatprep.subr.bf16.mxu1 %v15172_v59  ;;  %8785 = vmatprep.subr.bf16.mxu0 %v15175_v53  ;;  %v15202_v59 = vld [vmem:[%s22161_s8 + $0x3c4] ss:$28 sps:$4 sm:$0xff]   ;;  %v15205_v53 = vld [vmem:[%s22161_s8 + $0x3bc] ss:$28 sps:$4 sm:$0xff]  }
 0x4bd   :  { %6638 = vmatmul.mubr.bf16.gmra.mrb[152].mxu0 %v19222_v9  ;;  %7024 = vmatmul.mubr.bf16.gmra.mrb[152].mxu1 %v19222_v9  ;;  %v15184_v9 = vld [vmem:[%s22161_s8 + $0x31c] ss:$28 sps:$4 sm:$0xff]  }
 0x4be   :  { %6647 = vmatprep.mubr.bf16.mxu0 %v19236_v28  ;;  %7033 = vmatprep.mubr.bf16.mxu1 %v19236_v28  ;;  %v15187_v28 = vld [vmem:[%s22161_s8 + $0x314] ss:$28 sps:$4 sm:$0xff]  }
 0x4bf   :  { %9172 = vmatpush1.bf16.msra.mxu1 %v15170_v63  ;;  %8786 = vmatpush1.bf16.msra.mxu0 %v15173_v14 }
 0x4c0   :  { %9173 = vmatprep.subr.bf16.mxu1 %v15178_v8  ;;  %8787 = vmatprep.subr.bf16.mxu0 %v15181_v25 }
 0x4c3   :  { %9174 = vmatpush1.bf16.msra.mxu1 %v15176_v0  ;;  %8788 = vmatpush1.bf16.msra.mxu0 %v15179_v10 }
 0x4c4   :  { %9175 = vmatprep.subr.bf16.mxu1 %v15184_v9  ;;  %8789 = vmatprep.subr.bf16.mxu0 %v15187_v28 }
 0x4c5   :  { %6648 = vmatmul.mubr.bf16.gmra.mrb[156].mxu0 %v19234_v35  ;;  %7034 = vmatmul.mubr.bf16.gmra.mrb[156].mxu1 %v19234_v35  ;;  %v15190_v35 = vld [vmem:[%s22161_s8 + $0x354] ss:$28 sps:$4 sm:$0xff]  }
 0x4c6   :  { %6657 = vmatprep.mubr.bf16.mxu0 %v19248_v37  ;;  %7043 = vmatprep.mubr.bf16.mxu1 %v19248_v37  ;;  %v15188_v37 = vld [vmem:[%s22161_s8 + $0x350] ss:$28 sps:$4 sm:$0xff]  }
 0x4c7   :  { %9176 = vmatpush1.bf16.msra.mxu1 %v15182_v13  ;;  %8790 = vmatpush1.bf16.msra.mxu0 %v15185_v62 }
 0x4c8   :  { %9177 = vmatprep.subr.bf16.mxu1 %v15190_v35  ;;  %v15200_v35 = vld [vmem:[%s22161_s8 + $0x3c0] ss:$28 sps:$4 sm:$0xff]  }
 0x4cb   :  { %9178 = vmatpush1.bf16.msra.mxu1 %v15188_v37  ;;  %v15208_v37 = vld [vmem:[%s22161_s8 + $0x3fc] ss:$28 sps:$4 sm:$0xff]  }
 0x4cd   :  { %6658 = vmatmul.mubr.bf16.gmra.mrb[160].mxu0 %v19246_v40  ;;  %7044 = vmatmul.mubr.bf16.gmra.mrb[160].mxu1 %v19246_v40  ;;  %v15193_v40 = vld [vmem:[%s22161_s8 + $0x34c] ss:$28 sps:$4 sm:$0xff]  }
 0x4ce   :  { %6667 = vmatprep.mubr.bf16.mxu0 %v19260_v31  ;;  %7053 = vmatprep.mubr.bf16.mxu1 %v19260_v31  ;;  %v15196_v31 = vld [vmem:[%s22161_s8 + $0x38c] ss:$28 sps:$4 sm:$0xff]  }
 0x4cf   :  { %8791 = vmatprep.subr.bf16.mxu0 %v15193_v40  ;;  %9340 = vmatprep.subr.bf16.mxu1 %v15196_v31  ;;  %v15203_v40 = vld [vmem:[%s22161_s8 + $0x3b8] ss:$28 sps:$4 sm:$0xff]  }
 0x4d5   :  { %6668 = vmatmul.mubr.bf16.gmra.mrb[164].mxu0 %v19258_v2  ;;  %7054 = vmatmul.mubr.bf16.gmra.mrb[164].mxu1 %v19258_v2  ;;  %v15191_v2 = vld [vmem:[%s22161_s8 + $0x348] ss:$28 sps:$4 sm:$0xff]  }
 0x4d6   :  { %6677 = vmatprep.mubr.bf16.mxu0 %v19272_v16  ;;  %7063 = vmatprep.mubr.bf16.mxu1 %v19272_v16  ;;  %v5690_v16 = vld [vmem:[%s22160_s7] sm:$0xf] }
 0x4d7   :  { %8792 = vmatpush1.bf16.msra.mxu0 %v15191_v2 }
 0x4dd   :  { %6678 = vmatmul.mubr.bf16.gmra.mrb[168].mxu0 %v19270_v7  ;;  %7064 = vmatmul.mubr.bf16.gmra.mrb[168].mxu1 %v19270_v7  ;;  %v15199_v7 = vld [vmem:[%s22161_s8 + $0x384] ss:$28 sps:$4 sm:$0xff]  }
 0x4de   :  { %6687 = vmatprep.mubr.bf16.mxu0 %v19284_v49  ;;  %7073 = vmatprep.mubr.bf16.mxu1 %v19284_v49  ;;  %v19603_v49 = vrot.slane %v5690_v16, %v18662_v56 }
 0x4df   :  { %8954 = vmatprep.subr.bf16.mxu0 %v15199_v7 }
 0x4e5   :  { %6688 = vmatmul.mubr.bf16.gmra.mrb[172].mxu0 %v19282_v39  ;;  %7074 = vmatmul.mubr.bf16.gmra.mrb[172].mxu1 %v19282_v39  ;;  %v19600_v39 = vrot.slane %v5690_v16, %v18659_v55 }
 0x4e6   :  { %6697 = vmatprep.mubr.bf16.mxu0 %v19299_v26  ;;  %7083 = vmatprep.mubr.bf16.mxu1 %v19299_v26  ;;  %v19609_v26 = vrot.slane %v5690_v16, %v18671_v58 }
 0x4ed   :  { %6698 = vmatmul.mubr.bf16.gmra.mrb[176].mxu0 %v19297_v23  ;;  %7084 = vmatmul.mubr.bf16.gmra.mrb[176].mxu1 %v19297_v23  ;;  %v19606_v23 = vrot.slane %v5690_v16, %v18668_v57 }
 0x4ee   :  { %6707 = vmatprep.mubr.bf16.mxu0 %v19314_v1  ;;  %7093 = vmatprep.mubr.bf16.mxu1 %v19314_v1 }
 0x4f5   :  { %6708 = vmatmul.mubr.bf16.gmra.mrb[180].mxu0 %v19312_v15  ;;  %7094 = vmatmul.mubr.bf16.gmra.mrb[180].mxu1 %v19312_v15 }
 0x4f6   :  { %6717 = vmatprep.mubr.bf16.mxu0 %v19326_v12  ;;  %7103 = vmatprep.mubr.bf16.mxu1 %v19326_v12 }
 0x4fd   :  { %6718 = vmatmul.mubr.bf16.gmra.mrb[184].mxu0 %v19324_v3  ;;  %7104 = vmatmul.mubr.bf16.gmra.mrb[184].mxu1 %v19324_v3 }
 0x4fe   :  { %6727 = vmatprep.mubr.bf16.mxu0 %v19338_v20  ;;  %7113 = vmatprep.mubr.bf16.mxu1 %v19338_v20 }
 0x505   :  { %6728 = vmatmul.mubr.bf16.gmra.mrb[188].mxu0 %v19336_v60  ;;  %7114 = vmatmul.mubr.bf16.gmra.mrb[188].mxu1 %v19336_v60 }
 0x560   :  { %v6579_v15 = vpop.f32.mrb[128].mxu0  ;;  %v6965_v1 = vpop.f32.mrb[128].mxu1 }
 0x561   :  { %v13222_v3 = vadd.f32 %v6579_v15, %v19600_v39  ;;  %v13286_v12 = vadd.f32 %v6965_v1, %v19603_v49  ;;  %v6581_v60 = vpop.f32.mrb[129].mxu0  ;;  %v6967_v20 = vpop.f32.mrb[129].mxu1  ;;  %v15211_v15 = vld [vmem:[%s22161_s8 + $0x3f4] ss:$28 sps:$4 sm:$0xff]  }
 0x562   :  { %v13223_v11 = vadd.f32 %v6581_v60, %v19606_v23  ;;  %v13287_v46 = vadd.f32 %v6967_v20, %v19609_v26  ;;  %v6583_v38 = vpop.f32.mrb[130].mxu0  ;;  %v6969_v45 = vpop.f32.mrb[130].mxu1 }
 0x563   :  { %v13224_v19 = vadd.f32 %v6583_v38, %v19600_v39  ;;  %v13288_v48 = vadd.f32 %v6969_v45, %v19603_v49  ;;  %v6585_v30 = vpop.f32.mrb[131].mxu0  ;;  %v6971_v6 = vpop.f32.mrb[131].mxu1  ;;  %v7124_v5 = vmax.f32 %v13222_v3, 0.0  ;;  %v7126_v50 = vmax.f32 %v13286_v12, 0.0 }
 0x564   :  { %v13225_v51 = vadd.f32 %v6585_v30, %v19606_v23  ;;  %v13289_v17 = vadd.f32 %v6971_v6, %v19609_v26  ;;  %v7125_v34 = vmax.f32 %v13223_v11, 0.0  ;;  %v7127_v4 = vmax.f32 %v13287_v46, 0.0  ;;  %v15209_v30 = vld [vmem:[%s22161_s8 + $0x3f0] ss:$28 sps:$4 sm:$0xff]  }
 0x565   :  { %v7128_v21 = vmax.f32 %v13224_v19, 0.0  ;;  %v7130_v22 = vmax.f32 %v13288_v48, 0.0  ;;  %v15206_v48 = vld [vmem:[%s22161_s8 + $0x3f8] ss:$28 sps:$4 sm:$0xff]  }
 0x566   :  { %v7129_v24 = vmax.f32 %v13225_v51, 0.0  ;;  %v7131_v27 = vmax.f32 %v13289_v17, 0.0 }
 0x567   :  { %v19619_v41 = vpack.c.bf16 %v7128_v21, %v7124_v5  ;;  %v19621_v61 = vpack.c.bf16 %v7130_v22, %v7126_v50  ;;  %v15214_v50 = vld [vmem:[%s22161_s8 + $0x434] ss:$28 sps:$4 sm:$0xff]   ;;  %v15217_v21 = vld [vmem:[%s22161_s8 + $0x42c] ss:$28 sps:$4 sm:$0xff]  }
 0x568   :  { %v19623_v47 = vpack.c.bf16 %v7129_v24, %v7125_v34  ;;  %v19625_v52 = vpack.c.bf16 %v7131_v27, %v7127_v4  ;;  %v6589_v32 = vpop.f32.mrb[132].mxu0  ;;  %v6975_v18 = vpop.f32.mrb[132].mxu1 }
 0x569   :  { %v13226_v42 = vadd.f32 %v6589_v32, %v19600_v39  ;;  %v13290_v33 = vadd.f32 %v6975_v18, %v19603_v49  ;;  %v6591_v44 = vpop.f32.mrb[133].mxu0  ;;  %v6977_v29 = vpop.f32.mrb[133].mxu1 }
 0x56a   :  { %v13227_v63 = vadd.f32 %v6591_v44, %v19606_v23  ;;  %v13291_v14 = vadd.f32 %v6977_v29, %v19609_v26  ;;  %v6593_v8 = vpop.f32.mrb[134].mxu0  ;;  %v6979_v25 = vpop.f32.mrb[134].mxu1  ;;  %8793 = vmatprep.mubr.bf16.mxu0 %v19623_v47  ;;  %9179 = vmatprep.mubr.bf16.mxu1 %v19623_v47  ;;  %v15215_v44 = vld [vmem:[%s22161_s8 + $0x428] ss:$28 sps:$4 sm:$0xff]  }
 0x56b   :  { %v13228_v0 = vadd.f32 %v6593_v8, %v19600_v39  ;;  %v13292_v10 = vadd.f32 %v6979_v25, %v19603_v49  ;;  %v6595_v9 = vpop.f32.mrb[135].mxu0  ;;  %v6981_v28 = vpop.f32.mrb[135].mxu1  ;;  %8794 = vmatmul.mubr.bf16.vlgmr.msra.gmra.mrb[192].mxu0 %v19619_v41  ;;  %9180 = vmatmul.mubr.bf16.vlgmr.msra.gmra.mrb[192].mxu1 %v19619_v41  ;;  %v7132_v2 = vmax.f32 %v13226_v42, 0.0  ;;  %v7134_v31 = vmax.f32 %v13290_v33, 0.0  ;;  %v15212_v33 = vld [vmem:[%s22161_s8 + $0x430] ss:$28 sps:$4 sm:$0xff]  }
 0x56c   :  { %v13229_v13 = vadd.f32 %v6595_v9, %v19606_v23  ;;  %v13293_v62 = vadd.f32 %v6981_v28, %v19609_v26  ;;  %9341 = vmatpush1.bf16.msra.mxu1 %v15194_v36  ;;  %8955 = vmatpush1.bf16.msra.mxu0 %v15197_v43  ;;  %v7133_v1 = vmax.f32 %v13227_v63, 0.0  ;;  %v7135_v3 = vmax.f32 %v13291_v14, 0.0  ;;  %v15220_v29 = vld [vmem:[%s22161_s8 + $0x46c] ss:$28 sps:$4 sm:$0xff]   ;;  %v15223_v8 = vld [vmem:[%s22161_s8 + $0x464] ss:$28 sps:$4 sm:$0xff]  }
 0x56d   :  { %v7136_v7 = vmax.f32 %v13228_v0, 0.0  ;;  %v7138_v16 = vmax.f32 %v13292_v10, 0.0  ;;  %9342 = vmatprep.subr.bf16.mxu1 %v15202_v59  ;;  %8956 = vmatprep.subr.bf16.mxu0 %v15205_v53 }
 0x56e   :  { %v7137_v12 = vmax.f32 %v13229_v13, 0.0  ;;  %v7139_v60 = vmax.f32 %v13293_v62, 0.0 }
 0x56f   :  { %v19663_v20 = vpack.c.bf16 %v7136_v7, %v7132_v2  ;;  %v19665_v11 = vpack.c.bf16 %v7138_v16, %v7134_v31  ;;  %v15218_v2 = vld [vmem:[%s22161_s8 + $0x468] ss:$28 sps:$4 sm:$0xff]   ;;  %v15221_v31 = vld [vmem:[%s22161_s8 + $0x460] ss:$28 sps:$4 sm:$0xff]  }
 0x570   :  { %v19667_v46 = vpack.c.bf16 %v7137_v12, %v7133_v1  ;;  %v19669_v38 = vpack.c.bf16 %v7139_v60, %v7135_v3  ;;  %v6599_v45 = vpop.f32.mrb[136].mxu0  ;;  %v6985_v19 = vpop.f32.mrb[136].mxu1  ;;  %9343 = vmatpush1.bf16.msra.mxu1 %v15200_v35  ;;  %8957 = vmatpush1.bf16.msra.mxu0 %v15203_v40  ;;  %v15226_v3 = vld [vmem:[%s22161_s8 + $0x4a4] ss:$28 sps:$4 sm:$0xff]   ;;  %v15229_v12 = vld [vmem:[%s22161_s8 + $0x49c] ss:$28 sps:$4 sm:$0xff]  }
 0x571   :  { %v13230_v6 = vadd.f32 %v6599_v45, %v19600_v39  ;;  %v13294_v51 = vadd.f32 %v6985_v19, %v19603_v49  ;;  %v6601_v17 = vpop.f32.mrb[137].mxu0  ;;  %v6987_v5 = vpop.f32.mrb[137].mxu1  ;;  %9344 = vmatprep.subr.bf16.mxu1 %v15208_v37  ;;  %8958 = vmatprep.subr.bf16.mxu0 %v15211_v15 }
 0x572   :  { %v13231_v22 = vadd.f32 %v6601_v17, %v19606_v23  ;;  %v13295_v34 = vadd.f32 %v6987_v5, %v19609_v26  ;;  %v6603_v4 = vpop.f32.mrb[138].mxu0  ;;  %v6989_v24 = vpop.f32.mrb[138].mxu1  ;;  %8803 = vmatprep.mubr.bf16.mxu0 %v19667_v46  ;;  %9189 = vmatprep.mubr.bf16.mxu1 %v19667_v46 }
 0x573   :  { %v13232_v27 = vadd.f32 %v6603_v4, %v19600_v39  ;;  %v13296_v32 = vadd.f32 %v6989_v24, %v19603_v49  ;;  %v6605_v18 = vpop.f32.mrb[139].mxu0  ;;  %v6991_v36 = vpop.f32.mrb[139].mxu1  ;;  %8804 = vmatmul.mubr.bf16.gmra.mrb[196].mxu0 %v19663_v20  ;;  %9190 = vmatmul.mubr.bf16.gmra.mrb[196].mxu1 %v19663_v20  ;;  %v7140_v59 = vmax.f32 %v13230_v6, 0.0  ;;  %v7142_v53 = vmax.f32 %v13294_v51, 0.0 }
 0x574   :  { %v13233_v43 = vadd.f32 %v6605_v18, %v19606_v23  ;;  %v13297_v42 = vadd.f32 %v6991_v36, %v19609_v26  ;;  %9345 = vmatpush1.bf16.msra.mxu1 %v15206_v48  ;;  %8959 = vmatpush1.bf16.msra.mxu0 %v15209_v30  ;;  %v7141_v25 = vmax.f32 %v13231_v22, 0.0  ;;  %v7143_v0 = vmax.f32 %v13295_v34, 0.0  ;;  %v15227_v22 = vld [vmem:[%s22161_s8 + $0x498] ss:$28 sps:$4 sm:$0xff]  }
 0x575   :  { %v7144_v63 = vmax.f32 %v13232_v27, 0.0  ;;  %v7146_v14 = vmax.f32 %v13296_v32, 0.0  ;;  %9346 = vmatprep.subr.bf16.mxu1 %v15214_v50  ;;  %8960 = vmatprep.subr.bf16.mxu0 %v15217_v21  ;;  %v15224_v21 = vld [vmem:[%s22161_s8 + $0x4a0] ss:$28 sps:$4 sm:$0xff]   ;;  %v15235_v18 = vld [vmem:[%s22161_s8 + $0x4d4] ss:$28 sps:$4 sm:$0xff]  }
 0x576   :  { %v7145_v10 = vmax.f32 %v13233_v43, 0.0  ;;  %v7147_v9 = vmax.f32 %v13297_v42, 0.0  ;;  %v15232_v34 = vld [vmem:[%s22161_s8 + $0x4dc] ss:$28 sps:$4 sm:$0xff]  }
 0x577   :  { %v19707_v28 = vpack.c.bf16 %v7144_v63, %v7140_v59  ;;  %v19709_v13 = vpack.c.bf16 %v7146_v14, %v7142_v53 }
 0x578   :  { %v19711_v62 = vpack.c.bf16 %v7145_v10, %v7141_v25  ;;  %v19713_v35 = vpack.c.bf16 %v7147_v9, %v7143_v0  ;;  %v6609_v40 = vpop.f32.mrb[140].mxu0  ;;  %v6995_v37 = vpop.f32.mrb[140].mxu1  ;;  %9347 = vmatpush1.bf16.msra.mxu1 %v15212_v33  ;;  %8961 = vmatpush1.bf16.msra.mxu0 %v15215_v44  ;;  %v15233_v25 = vld [vmem:[%s22161_s8 + $0x4d0] ss:$28 sps:$4 sm:$0xff]  }
 0x579   :  { %v13234_v7 = vadd.f32 %v6609_v40, %v19600_v39  ;;  %v13298_v16 = vadd.f32 %v6995_v37, %v19603_v49  ;;  %v6611_v15 = vpop.f32.mrb[141].mxu0  ;;  %v6997_v1 = vpop.f32.mrb[141].mxu1  ;;  %9348 = vmatprep.subr.bf16.mxu1 %v15220_v29  ;;  %8962 = vmatprep.subr.bf16.mxu0 %v15223_v8  ;;  %v15230_v8 = vld [vmem:[%s22161_s8 + $0x4d8] ss:$28 sps:$4 sm:$0xff]  }
 0x57a   :  { %v13235_v60 = vadd.f32 %v6611_v15, %v19606_v23  ;;  %v13299_v45 = vadd.f32 %v6997_v1, %v19609_v26  ;;  %v6613_v19 = vpop.f32.mrb[142].mxu0  ;;  %v6999_v48 = vpop.f32.mrb[142].mxu1  ;;  %8813 = vmatprep.mubr.bf16.mxu0 %v19711_v62  ;;  %9199 = vmatprep.mubr.bf16.mxu1 %v19711_v62  ;;  %v15238_v37 = vld [vmem:[%s22161_s8 + $0x514] ss:$28 sps:$4 sm:$0xff]  }
 0x57b   :  { %v13236_v30 = vadd.f32 %v6613_v19, %v19600_v39  ;;  %v13300_v6 = vadd.f32 %v6999_v48, %v19603_v49  ;;  %v6615_v51 = vpop.f32.mrb[143].mxu0  ;;  %v7001_v17 = vpop.f32.mrb[143].mxu1  ;;  %8814 = vmatmul.mubr.bf16.gmra.mrb[200].mxu0 %v19707_v28  ;;  %9200 = vmatmul.mubr.bf16.gmra.mrb[200].mxu1 %v19707_v28  ;;  %v7148_v4 = vmax.f32 %v13234_v7, 0.0  ;;  %v7150_v24 = vmax.f32 %v13298_v16, 0.0  ;;  %v15236_v48 = vld [vmem:[%s22161_s8 + $0x510] ss:$28 sps:$4 sm:$0xff]  }
 0x57c   :  { %v13237_v5 = vadd.f32 %v6615_v51, %v19606_v23  ;;  %v13301_v50 = vadd.f32 %v7001_v17, %v19609_v26  ;;  %9349 = vmatpush1.bf16.msra.mxu1 %v15218_v2  ;;  %8963 = vmatpush1.bf16.msra.mxu0 %v15221_v31  ;;  %v7149_v36 = vmax.f32 %v13235_v60, 0.0  ;;  %v7151_v43 = vmax.f32 %v13299_v45, 0.0  ;;  %v15241_v2 = vld [vmem:[%s22161_s8 + $0x50c] ss:$28 sps:$4 sm:$0xff]  }
 0x57d   :  { %v7152_v27 = vmax.f32 %v13236_v30, 0.0  ;;  %v7154_v32 = vmax.f32 %v13300_v6, 0.0  ;;  %9350 = vmatprep.subr.bf16.mxu1 %v15226_v3  ;;  %8964 = vmatprep.subr.bf16.mxu0 %v15229_v12  ;;  %v15239_v30 = vld [vmem:[%s22161_s8 + $0x508] ss:$28 sps:$4 sm:$0xff]  }
 0x57e   :  { %v7153_v42 = vmax.f32 %v13237_v5, 0.0  ;;  %v7155_v33 = vmax.f32 %v13301_v50, 0.0  ;;  %v15244_v6 = vld [vmem:[%s22161_s8 + $0x54c] ss:$28 sps:$4 sm:$0xff]  }
 0x57f   :  { %v19751_v44 = vpack.c.bf16 %v7152_v27, %v7148_v4  ;;  %v19753_v29 = vpack.c.bf16 %v7154_v32, %v7150_v24 }
 0x580   :  { %v19755_v59 = vpack.c.bf16 %v7153_v42, %v7149_v36  ;;  %v19757_v53 = vpack.c.bf16 %v7155_v33, %v7151_v43  ;;  %v6619_v63 = vpop.f32.mrb[144].mxu0  ;;  %v7005_v14 = vpop.f32.mrb[144].mxu1  ;;  %9351 = vmatpush1.bf16.msra.mxu1 %v15224_v21  ;;  %8965 = vmatpush1.bf16.msra.mxu0 %v15227_v22  ;;  %v15247_v21 = vld [vmem:[%s22161_s8 + $0x544] ss:$28 sps:$4 sm:$0xff]  }
 0x581   :  { %v13238_v0 = vadd.f32 %v6619_v63, %v19600_v39  ;;  %v13302_v10 = vadd.f32 %v7005_v14, %v19603_v49  ;;  %v6621_v9 = vpop.f32.mrb[145].mxu0  ;;  %v7007_v40 = vpop.f32.mrb[145].mxu1  ;;  %9352 = vmatprep.subr.bf16.mxu1 %v15232_v34  ;;  %8966 = vmatprep.subr.bf16.mxu0 %v15235_v18  ;;  %v15242_v33 = vld [vmem:[%s22161_s8 + $0x548] ss:$28 sps:$4 sm:$0xff]   ;;  %v15245_v63 = vld [vmem:[%s22161_s8 + $0x540] ss:$28 sps:$4 sm:$0xff]  }
 0x582   :  { %v13239_v31 = vadd.f32 %v6621_v9, %v19606_v23  ;;  %v13303_v7 = vadd.f32 %v7007_v40, %v19609_v26  ;;  %v6623_v16 = vpop.f32.mrb[146].mxu0  ;;  %v7009_v15 = vpop.f32.mrb[146].mxu1  ;;  %8823 = vmatprep.mubr.bf16.mxu0 %v19755_v59  ;;  %9209 = vmatprep.mubr.bf16.mxu1 %v19755_v59  ;;  %v15253_v9 = vld [vmem:[%s22161_s8 + $0x57c] ss:$28 sps:$4 sm:$0xff]  }
 0x583   :  { %v13240_v1 = vadd.f32 %v6623_v16, %v19600_v39  ;;  %v13304_v3 = vadd.f32 %v7009_v15, %v19603_v49  ;;  %v6625_v12 = vpop.f32.mrb[147].mxu0  ;;  %v7011_v60 = vpop.f32.mrb[147].mxu1  ;;  %8824 = vmatmul.mubr.bf16.gmra.mrb[204].mxu0 %v19751_v44  ;;  %9210 = vmatmul.mubr.bf16.gmra.mrb[204].mxu1 %v19751_v44  ;;  %v7156_v51 = vmax.f32 %v13238_v0, 0.0  ;;  %v7158_v17 = vmax.f32 %v13302_v10, 0.0  ;;  %v15250_v10 = vld [vmem:[%s22161_s8 + $0x584] ss:$28 sps:$4 sm:$0xff]  }
 0x584   :  { %v13241_v45 = vadd.f32 %v6625_v12, %v19606_v23  ;;  %v13305_v19 = vadd.f32 %v7011_v60, %v19609_v26  ;;  %9353 = vmatpush1.bf16.msra.mxu1 %v15230_v8  ;;  %8967 = vmatpush1.bf16.msra.mxu0 %v15233_v25  ;;  %v7157_v22 = vmax.f32 %v13239_v31, 0.0  ;;  %v7159_v34 = vmax.f32 %v13303_v7, 0.0  ;;  %v15248_v60 = vld [vmem:[%s22161_s8 + $0x580] ss:$28 sps:$4 sm:$0xff]  }
 0x585   :  { %v7160_v5 = vmax.f32 %v13240_v1, 0.0  ;;  %v7162_v50 = vmax.f32 %v13304_v3, 0.0  ;;  %9354 = vmatprep.subr.bf16.mxu1 %v15238_v37  ;;  %8968 = vmatprep.subr.bf16.mxu0 %v15241_v2 }
 0x586   :  { %v7161_v4 = vmax.f32 %v13241_v45, 0.0  ;;  %v7163_v24 = vmax.f32 %v13305_v19, 0.0  ;;  %v15251_v45 = vld [vmem:[%s22161_s8 + $0x578] ss:$28 sps:$4 sm:$0xff]  }
 0x587   :  { %v19795_v27 = vpack.c.bf16 %v7160_v5, %v7156_v51  ;;  %v19797_v32 = vpack.c.bf16 %v7162_v50, %v7158_v17  ;;  %v15256_v19 = vld [vmem:[%s22161_s8 + $0x5bc] ss:$28 sps:$4 sm:$0xff]   ;;  %v15259_v17 = vld [vmem:[%s22161_s8 + $0x5b4] ss:$28 sps:$4 sm:$0xff]  }
 0x588   :  { %v19799_v18 = vpack.c.bf16 %v7161_v4, %v7157_v22  ;;  %v19801_v36 = vpack.c.bf16 %v7163_v24, %v7159_v34  ;;  %v6629_v43 = vpop.f32.mrb[148].mxu0  ;;  %v7015_v42 = vpop.f32.mrb[148].mxu1  ;;  %9355 = vmatpush1.bf16.msra.mxu1 %v15236_v48  ;;  %8969 = vmatpush1.bf16.msra.mxu0 %v15239_v30 }
 0x589   :  { %22235 = vst [vmem:[#allocation10_spill] sm:$0xff] %v19795_v27  ;;  %v13242_v14 = vadd.f32 %v6629_v43, %v19600_v39  ;;  %v13306_v8 = vadd.f32 %v7015_v42, %v19603_v49  ;;  %v6631_v25 = vpop.f32.mrb[149].mxu0  ;;  %v7017_v0 = vpop.f32.mrb[149].mxu1  ;;  %9356 = vmatprep.subr.bf16.mxu1 %v15244_v6  ;;  %8970 = vmatprep.subr.bf16.mxu0 %v15247_v21 }
 0x58a   :  { %v13243_v40 = vadd.f32 %v6631_v25, %v19606_v23  ;;  %v13307_v37 = vadd.f32 %v7017_v0, %v19609_v26  ;;  %v6633_v2 = vpop.f32.mrb[150].mxu0  ;;  %v7019_v31 = vpop.f32.mrb[150].mxu1  ;;  %8833 = vmatprep.mubr.bf16.mxu0 %v19799_v18  ;;  %9219 = vmatprep.mubr.bf16.mxu1 %v19799_v18 }
 0x58b   :  { %v13244_v7 = vadd.f32 %v6633_v2, %v19600_v39  ;;  %v13308_v16 = vadd.f32 %v7019_v31, %v19603_v49  ;;  %v6635_v15 = vpop.f32.mrb[151].mxu0  ;;  %v7021_v1 = vpop.f32.mrb[151].mxu1  ;;  %8834 = vmatmul.mubr.bf16.gmra.mrb[208].mxu0 %v19795_v27  ;;  %9220 = vmatmul.mubr.bf16.gmra.mrb[208].mxu1 %v19795_v27  ;;  %v7164_v48 = vmax.f32 %v13242_v14, 0.0  ;;  %v7166_v30 = vmax.f32 %v13306_v8, 0.0  ;;  %v15257_v14 = vld [vmem:[%s22161_s8 + $0x5b0] ss:$28 sps:$4 sm:$0xff]  }
 0x58c   :  { %v13245_v3 = vadd.f32 %v6635_v15, %v19606_v23  ;;  %v13309_v12 = vadd.f32 %v7021_v1, %v19609_v26  ;;  %9357 = vmatpush1.bf16.msra.mxu1 %v15242_v33  ;;  %8971 = vmatpush1.bf16.msra.mxu0 %v15245_v63  ;;  %v7165_v5 = vmax.f32 %v13243_v40, 0.0  ;;  %v7167_v50 = vmax.f32 %v13307_v37, 0.0  ;;  %v15254_v63 = vld [vmem:[%s22161_s8 + $0x5b8] ss:$28 sps:$4 sm:$0xff]   ;;  %v15265_v40 = vld [vmem:[%s22161_s8 + $0x5ec] ss:$28 sps:$4 sm:$0xff]  }
 0x58d   :  { %v7168_v6 = vmax.f32 %v13244_v7, 0.0  ;;  %v7170_v51 = vmax.f32 %v13308_v16, 0.0  ;;  %9358 = vmatprep.subr.bf16.mxu1 %v15250_v10  ;;  %8972 = vmatprep.subr.bf16.mxu0 %v15253_v9  ;;  %v15262_v9 = vld [vmem:[%s22161_s8 + $0x5f4] ss:$28 sps:$4 sm:$0xff]  }
 0x58e   :  { %v7169_v21 = vmax.f32 %v13245_v3, 0.0  ;;  %v7171_v22 = vmax.f32 %v13309_v12, 0.0 }
 0x58f   :  { %v19839_v34 = vpack.c.bf16 %v7168_v6, %v7164_v48  ;;  %v19841_v4 = vpack.c.bf16 %v7170_v51, %v7166_v30  ;;  %v15268_v48 = vld [vmem:[%s22161_s8 + $0x62c] ss:$28 sps:$4 sm:$0xff]  }
 0x590   :  { %v19843_v24 = vpack.c.bf16 %v7169_v21, %v7165_v5  ;;  %v19845_v43 = vpack.c.bf16 %v7171_v22, %v7167_v50  ;;  %v6639_v42 = vpop.f32.mrb[152].mxu0  ;;  %v7025_v33 = vpop.f32.mrb[152].mxu1  ;;  %9359 = vmatpush1.bf16.msra.mxu1 %v15248_v60  ;;  %8973 = vmatpush1.bf16.msra.mxu0 %v15251_v45  ;;  %v15260_v45 = vld [vmem:[%s22161_s8 + $0x5f0] ss:$28 sps:$4 sm:$0xff]   ;;  %v15271_v5 = vld [vmem:[%s22161_s8 + $0x624] ss:$28 sps:$4 sm:$0xff]  }
 0x591   :  { %22236 = vst [vmem:[#allocation11_spill] sm:$0xff] %v19839_v34  ;;  %v13246_v8 = vadd.f32 %v6639_v42, %v19600_v39  ;;  %v13310_v25 = vadd.f32 %v7025_v33, %v19603_v49  ;;  %v6641_v0 = vpop.f32.mrb[153].mxu0  ;;  %v7027_v10 = vpop.f32.mrb[153].mxu1  ;;  %9360 = vmatprep.subr.bf16.mxu1 %v15256_v19  ;;  %8974 = vmatprep.subr.bf16.mxu0 %v15259_v17  ;;  %v15263_v19 = vld [vmem:[%s22161_s8 + $0x5e8] ss:$28 sps:$4 sm:$0xff]  }
 0x592   :  { %22237 = vst [vmem:[#allocation12_spill] sm:$0xff] %v19843_v24  ;;  %v13247_v37 = vadd.f32 %v6641_v0, %v19606_v23  ;;  %v13311_v2 = vadd.f32 %v7027_v10, %v19609_v26  ;;  %v6643_v31 = vpop.f32.mrb[154].mxu0  ;;  %v7029_v7 = vpop.f32.mrb[154].mxu1  ;;  %8843 = vmatprep.mubr.bf16.mxu0 %v19843_v24  ;;  %9229 = vmatprep.mubr.bf16.mxu1 %v19843_v24  ;;  %v15266_v10 = vld [vmem:[%s22161_s8 + $0x628] ss:$28 sps:$4 sm:$0xff]  }
 0x593   :  { %v13248_v16 = vadd.f32 %v6643_v31, %v19600_v39  ;;  %v13312_v15 = vadd.f32 %v7029_v7, %v19603_v49  ;;  %v6645_v1 = vpop.f32.mrb[155].mxu0  ;;  %v7031_v3 = vpop.f32.mrb[155].mxu1  ;;  %8844 = vmatmul.mubr.bf16.gmra.mrb[212].mxu0 %v19839_v34  ;;  %9230 = vmatmul.mubr.bf16.gmra.mrb[212].mxu1 %v19839_v34  ;;  %v7172_v30 = vmax.f32 %v13246_v8, 0.0  ;;  %v7174_v6 = vmax.f32 %v13310_v25, 0.0  ;;  %v15274_v7 = vld [vmem:[%s22161_s8 + $0x664] ss:$28 sps:$4 sm:$0xff]  }
 0x594   :  { %v13249_v12 = vadd.f32 %v6645_v1, %v19606_v23  ;;  %v13313_v60 = vadd.f32 %v7031_v3, %v19609_v26  ;;  %9361 = vmatpush1.bf16.msra.mxu1 %v15254_v63  ;;  %8975 = vmatpush1.bf16.msra.mxu0 %v15257_v14  ;;  %v7173_v50 = vmax.f32 %v13247_v37, 0.0  ;;  %v7175_v21 = vmax.f32 %v13311_v2, 0.0 }
 0x595   :  { %v7176_v51 = vmax.f32 %v13248_v16, 0.0  ;;  %v7178_v17 = vmax.f32 %v13312_v15, 0.0  ;;  %9362 = vmatprep.subr.bf16.mxu1 %v15262_v9  ;;  %8976 = vmatprep.subr.bf16.mxu0 %v15265_v40  ;;  %v15269_v9 = vld [vmem:[%s22161_s8 + $0x620] ss:$28 sps:$4 sm:$0xff]  }
 0x596   :  { %v7177_v22 = vmax.f32 %v13249_v12, 0.0  ;;  %v7179_v42 = vmax.f32 %v13313_v60, 0.0  ;;  %v15277_v16 = vld [vmem:[%s22161_s8 + $0x65c] ss:$28 sps:$4 sm:$0xff]  }
 0x597   :  { %v19883_v33 = vpack.c.bf16 %v7176_v51, %v7172_v30  ;;  %v19885_v63 = vpack.c.bf16 %v7178_v17, %v7174_v6  ;;  %v15272_v51 = vld [vmem:[%s22161_s8 + $0x660] ss:$28 sps:$4 sm:$0xff]   ;;  %v15275_v17 = vld [vmem:[%s22161_s8 + $0x658] ss:$28 sps:$4 sm:$0xff]  }
 0x598   :  { %v19887_v14 = vpack.c.bf16 %v7177_v22, %v7173_v50  ;;  %v19889_v8 = vpack.c.bf16 %v7179_v42, %v7175_v21  ;;  %v6649_v25 = vpop.f32.mrb[156].mxu0  ;;  %v7035_v0 = vpop.f32.mrb[156].mxu1  ;;  %9363 = vmatpush1.bf16.msra.mxu1 %v15260_v45  ;;  %8977 = vmatpush1.bf16.msra.mxu0 %v15263_v19 }
 0x599   :  { %22238 = vst [vmem:[#allocation13_spill] sm:$0xff] %v19883_v33  ;;  %v13250_v40 = vadd.f32 %v6649_v25, %v19600_v39  ;;  %v13314_v37 = vadd.f32 %v7035_v0, %v19603_v49  ;;  %v6651_v2 = vpop.f32.mrb[157].mxu0  ;;  %v7037_v31 = vpop.f32.mrb[157].mxu1  ;;  %9364 = vmatprep.subr.bf16.mxu1 %v15268_v48  ;;  %8978 = vmatprep.subr.bf16.mxu0 %v15271_v5  ;;  %v15280_v5 = vld [vmem:[%s22161_s8 + $0x69c] ss:$28 sps:$4 sm:$0xff]  }
 0x59a   :  { %22239 = vst [vmem:[#allocation14_spill] sm:$0xff] %v19887_v14  ;;  %v13251_v15 = vadd.f32 %v6651_v2, %v19606_v23  ;;  %v13315_v1 = vadd.f32 %v7037_v31, %v19609_v26  ;;  %v6653_v3 = vpop.f32.mrb[158].mxu0  ;;  %v7039_v12 = vpop.f32.mrb[158].mxu1  ;;  %8853 = vmatprep.mubr.bf16.mxu0 %v19887_v14  ;;  %9239 = vmatprep.mubr.bf16.mxu1 %v19887_v14  ;;  %v15283_v25 = vld [vmem:[%s22161_s8 + $0x694] ss:$28 sps:$4 sm:$0xff]  }
 0x59b   :  { %v13252_v60 = vadd.f32 %v6653_v3, %v19600_v39  ;;  %v13316_v45 = vadd.f32 %v7039_v12, %v19603_v49  ;;  %v6655_v19 = vpop.f32.mrb[159].mxu0  ;;  %v7041_v48 = vpop.f32.mrb[159].mxu1  ;;  %8854 = vmatmul.mubr.bf16.gmra.mrb[216].mxu0 %v19883_v33  ;;  %9240 = vmatmul.mubr.bf16.gmra.mrb[216].mxu1 %v19883_v33  ;;  %v7180_v50 = vmax.f32 %v13250_v40, 0.0  ;;  %v7182_v21 = vmax.f32 %v13314_v37, 0.0 }
 0x59c   :  { %v13253_v30 = vadd.f32 %v6655_v19, %v19606_v23  ;;  %v13317_v6 = vadd.f32 %v7041_v48, %v19609_v26  ;;  %9365 = vmatpush1.bf16.msra.mxu1 %v15266_v10  ;;  %8979 = vmatpush1.bf16.msra.mxu0 %v15269_v9  ;;  %v7181_v0 = vmax.f32 %v13251_v15, 0.0  ;;  %v7183_v10 = vmax.f32 %v13315_v1, 0.0  ;;  %v15286_v48 = vld [vmem:[%s22161_s8 + $0x6d4] ss:$28 sps:$4 sm:$0xff]  }
 0x59d   :  { %v7184_v22 = vmax.f32 %v13252_v60, 0.0  ;;  %v7186_v42 = vmax.f32 %v13316_v45, 0.0  ;;  %9366 = vmatprep.subr.bf16.mxu1 %v15274_v7  ;;  %8980 = vmatprep.subr.bf16.mxu0 %v15277_v16  ;;  %v15278_v7 = vld [vmem:[%s22161_s8 + $0x698] ss:$28 sps:$4 sm:$0xff]   ;;  %v15281_v16 = vld [vmem:[%s22161_s8 + $0x690] ss:$28 sps:$4 sm:$0xff]  }
 0x59e   :  { %v7185_v9 = vmax.f32 %v13253_v30, 0.0  ;;  %v7187_v2 = vmax.f32 %v13317_v6, 0.0  ;;  %v15289_v30 = vld [vmem:[%s22161_s8 + $0x6cc] ss:$28 sps:$4 sm:$0xff]  }
 0x59f   :  { %v19927_v31 = vpack.c.bf16 %v7184_v22, %v7180_v50  ;;  %v19929_v3 = vpack.c.bf16 %v7186_v42, %v7182_v21 }
 0x5a0   :  { %v19931_v12 = vpack.c.bf16 %v7185_v9, %v7181_v0  ;;  %v19933_v40 = vpack.c.bf16 %v7187_v2, %v7183_v10  ;;  %v6659_v37 = vpop.f32.mrb[160].mxu0  ;;  %v7045_v60 = vpop.f32.mrb[160].mxu1  ;;  %9367 = vmatpush1.bf16.msra.mxu1 %v15272_v51  ;;  %8981 = vmatpush1.bf16.msra.mxu0 %v15275_v17  ;;  %v15284_v10 = vld [vmem:[%s22161_s8 + $0x6d0] ss:$28 sps:$4 sm:$0xff]   ;;  %v15287_v9 = vld [vmem:[%s22161_s8 + $0x6c8] ss:$28 sps:$4 sm:$0xff]  }
 0x5a1   :  { %22240 = vst [vmem:[#allocation15_spill] sm:$0xff] %v19927_v31  ;;  %v13254_v15 = vadd.f32 %v6659_v37, %v19600_v39  ;;  %v13318_v1 = vadd.f32 %v7045_v60, %v19603_v49  ;;  %v6661_v45 = vpop.f32.mrb[161].mxu0  ;;  %v7047_v19 = vpop.f32.mrb[161].mxu1  ;;  %9368 = vmatprep.subr.bf16.mxu1 %v15280_v5  ;;  %8982 = vmatprep.subr.bf16.mxu0 %v15283_v25  ;;  %v15290_v2 = vld [vmem:[%s22161_s8 + $0x1d8] ss:$28 sps:$4 sm:$0xff]  }
 0x5a2   :  { %22241 = vst [vmem:[#allocation16_spill] sm:$0xff] %v19931_v12  ;;  %v13255_v6 = vadd.f32 %v6661_v45, %v19606_v23  ;;  %v13319_v51 = vadd.f32 %v7047_v19, %v19609_v26  ;;  %v6663_v17 = vpop.f32.mrb[162].mxu0  ;;  %v7049_v50 = vpop.f32.mrb[162].mxu1  ;;  %8863 = vmatprep.mubr.bf16.mxu0 %v19931_v12  ;;  %9249 = vmatprep.mubr.bf16.mxu1 %v19931_v12 }
 0x5a3   :  { %v13256_v5 = vadd.f32 %v6663_v17, %v19600_v39  ;;  %v13320_v21 = vadd.f32 %v7049_v50, %v19603_v49  ;;  %v6665_v22 = vpop.f32.mrb[163].mxu0  ;;  %v7051_v42 = vpop.f32.mrb[163].mxu1  ;;  %8864 = vmatmul.mubr.bf16.gmra.mrb[220].mxu0 %v19927_v31  ;;  %9250 = vmatmul.mubr.bf16.gmra.mrb[220].mxu1 %v19927_v31  ;;  %v7188_v37 = vmax.f32 %v13254_v15, 0.0  ;;  %v7190_v60 = vmax.f32 %v13318_v1, 0.0 }
 0x5a4   :  { %v13257_v25 = vadd.f32 %v6665_v22, %v19606_v23  ;;  %v13321_v0 = vadd.f32 %v7051_v42, %v19609_v26  ;;  %9369 = vmatpush1.bf16.msra.mxu1 %v15278_v7  ;;  %8983 = vmatpush1.bf16.msra.mxu0 %v15281_v16  ;;  %v15294_v7 = vld [vmem:[%s22161_s8 + $0x14] ss:$28 sps:$4 sm:$0xff]   ;;  %v7189_v16 = vmax.f32 %v13255_v6, 0.0  ;;  %v7191_v17 = vmax.f32 %v13319_v51, 0.0 }
 0x5a5   :  { %v7192_v45 = vmax.f32 %v13256_v5, 0.0  ;;  %v7194_v19 = vmax.f32 %v13320_v21, 0.0  ;;  %9370 = vmatprep.subr.bf16.mxu1 %v15286_v48  ;;  %8984 = vmatprep.subr.bf16.mxu0 %v15289_v30 }
 0x5a6   :  { %v7193_v50 = vmax.f32 %v13257_v25, 0.0  ;;  %v7195_v22 = vmax.f32 %v13321_v0, 0.0 }
 0x5a7   :  { %v19971_v42 = vpack.c.bf16 %v7192_v45, %v7188_v37  ;;  %v19973_v54 = vpack.c.bf16 %v7194_v19, %v7190_v60 }
 0x5a8   :  { %v19975_v58 = vpack.c.bf16 %v7193_v50, %v7189_v16  ;;  %v19977_v15 = vpack.c.bf16 %v7195_v22, %v7191_v17  ;;  %v6669_v1 = vpop.f32.mrb[164].mxu0  ;;  %v7055_v5 = vpop.f32.mrb[164].mxu1  ;;  %9371 = vmatpush1.bf16.msra.mxu1 %v15284_v10  ;;  %8985 = vmatpush1.bf16.msra.mxu0 %v15287_v9 }
 0x5a9   :  { %22242 = vst [vmem:[#allocation17_spill] sm:$0xff] %v19971_v42  ;;  %v13258_v48 = vadd.f32 %v6669_v1, %v19600_v39  ;;  %v13322_v30 = vadd.f32 %v7055_v5, %v19603_v49  ;;  %v6671_v6 = vpop.f32.mrb[165].mxu0  ;;  %v7057_v51 = vpop.f32.mrb[165].mxu1  ;;  %12742 = vmatprep.subr.bf16.mxu1 %v15290_v2  ;;  %9533 = vmatprep.subr.bf16.mxu0 %v15294_v7 }
 0x5aa   :  { %22243 = vst [vmem:[#allocation18_spill] sm:$0xff] %v19975_v58  ;;  %v13259_v21 = vadd.f32 %v6671_v6, %v19606_v23  ;;  %v13323_v25 = vadd.f32 %v7057_v51, %v19609_v26  ;;  %v6673_v0 = vpop.f32.mrb[166].mxu0  ;;  %v7059_v37 = vpop.f32.mrb[166].mxu1  ;;  %8873 = vmatprep.mubr.bf16.mxu0 %v19975_v58  ;;  %9259 = vmatprep.mubr.bf16.mxu1 %v19975_v58 }
 0x5ab   :  { %v13260_v10 = vadd.f32 %v6673_v0, %v19600_v39  ;;  %v13324_v9 = vadd.f32 %v7059_v37, %v19603_v49  ;;  %v6675_v60 = vpop.f32.mrb[167].mxu0  ;;  %v7061_v45 = vpop.f32.mrb[167].mxu1  ;;  %8874 = vmatmul.mubr.bf16.gmra.mrb[224].mxu0 %v19971_v42  ;;  %9260 = vmatmul.mubr.bf16.gmra.mrb[224].mxu1 %v19971_v42  ;;  %v7196_v7 = vmax.f32 %v13258_v48, 0.0  ;;  %v7198_v16 = vmax.f32 %v13322_v30, 0.0 }
 0x5ac   :  { %v13261_v2 = vadd.f32 %v6675_v60, %v19606_v23  ;;  %v13325_v19 = vadd.f32 %v7061_v45, %v19609_v26  ;;  %v7197_v22 = vmax.f32 %v13259_v21, 0.0  ;;  %v7199_v1 = vmax.f32 %v13323_v25, 0.0 }
 0x5ad   :  { %v7200_v17 = vmax.f32 %v13260_v10, 0.0  ;;  %v7202_v50 = vmax.f32 %v13324_v9, 0.0 }
 0x5ae   :  { %v7201_v5 = vmax.f32 %v13261_v2, 0.0  ;;  %v7203_v6 = vmax.f32 %v13325_v19, 0.0 }
 0x5af   :  { %v19991_v51 = vpack.c.bf16 %v7200_v17, %v7196_v7  ;;  %v19993_v0 = vpack.c.bf16 %v7202_v50, %v7198_v16 }
 0x5b0   :  { %v19995_v37 = vpack.c.bf16 %v7201_v5, %v7197_v22  ;;  %v19997_v57 = vpack.c.bf16 %v7203_v6, %v7199_v1  ;;  %v6679_v56 = vpop.f32.mrb[168].mxu0  ;;  %v7065_v60 = vpop.f32.mrb[168].mxu1 }
 0x5b1   :  { %22244 = vst [vmem:[#allocation19_spill] sm:$0xff] %v19991_v51  ;;  %v13262_v45 = vadd.f32 %v6679_v56, %v19600_v39  ;;  %v13326_v48 = vadd.f32 %v7065_v60, %v19603_v49  ;;  %v6681_v30 = vpop.f32.mrb[169].mxu0  ;;  %v7067_v10 = vpop.f32.mrb[169].mxu1 }
 0x5b2   :  { %22245 = vst [vmem:[#allocation20_spill] sm:$0xff] %v19995_v37  ;;  %v13263_v21 = vadd.f32 %v6681_v30, %v19606_v23  ;;  %v13327_v25 = vadd.f32 %v7067_v10, %v19609_v26  ;;  %v6683_v9 = vpop.f32.mrb[170].mxu0  ;;  %v7069_v2 = vpop.f32.mrb[170].mxu1  ;;  %8883 = vmatprep.mubr.bf16.mxu0 %v19995_v37  ;;  %9269 = vmatprep.mubr.bf16.mxu1 %v19995_v37 }
 0x5b3   :  { %v13264_v19 = vadd.f32 %v6683_v9, %v19600_v39  ;;  %v13328_v7 = vadd.f32 %v7069_v2, %v19603_v49  ;;  %v6685_v16 = vpop.f32.mrb[171].mxu0  ;;  %v7071_v56 = vpop.f32.mrb[171].mxu1  ;;  %8884 = vmatmul.mubr.bf16.gmra.mrb[228].mxu0 %v19991_v51  ;;  %9270 = vmatmul.mubr.bf16.gmra.mrb[228].mxu1 %v19991_v51  ;;  %v7204_v22 = vmax.f32 %v13262_v45, 0.0  ;;  %v7206_v1 = vmax.f32 %v13326_v48, 0.0 }
 0x5b4   :  { %v13265_v17 = vadd.f32 %v6685_v16, %v19606_v23  ;;  %v13329_v50 = vadd.f32 %v7071_v56, %v19609_v26  ;;  %v7205_v60 = vmax.f32 %v13263_v21, 0.0  ;;  %v7207_v30 = vmax.f32 %v13327_v25, 0.0 }
 0x5b5   :  { %v7208_v5 = vmax.f32 %v13264_v19, 0.0  ;;  %v7210_v6 = vmax.f32 %v13328_v7, 0.0 }
 0x5b6   :  { %v7209_v10 = vmax.f32 %v13265_v17, 0.0  ;;  %v7211_v9 = vmax.f32 %v13329_v50, 0.0 }
 0x5b7   :  { %v20011_v55 = vpack.c.bf16 %v7208_v5, %v7204_v22  ;;  %v20013_v2 = vpack.c.bf16 %v7210_v6, %v7206_v1 }
 0x5b8   :  { %v20015_v37 = vpack.c.bf16 %v7209_v10, %v7205_v60  ;;  %v20017_v42 = vpack.c.bf16 %v7211_v9, %v7207_v30  ;;  %v6689_v51 = vpop.f32.mrb[172].mxu0  ;;  %v7075_v16 = vpop.f32.mrb[172].mxu1 }
 0x5b9   :  { %22246 = vst [vmem:[#allocation21_spill] sm:$0xff] %v20011_v55  ;;  %v13266_v56 = vadd.f32 %v6689_v51, %v19600_v39  ;;  %v13330_v45 = vadd.f32 %v7075_v16, %v19603_v49  ;;  %v6691_v48 = vpop.f32.mrb[173].mxu0  ;;  %v7077_v19 = vpop.f32.mrb[173].mxu1 }
 0x5ba   :  { %22247 = vst [vmem:[#allocation22_spill] sm:$0xff] %v20015_v37  ;;  %v13267_v21 = vadd.f32 %v6691_v48, %v19606_v23  ;;  %v13331_v25 = vadd.f32 %v7077_v19, %v19609_v26  ;;  %v6693_v7 = vpop.f32.mrb[174].mxu0  ;;  %v7079_v17 = vpop.f32.mrb[174].mxu1  ;;  %8893 = vmatprep.mubr.bf16.mxu0 %v20015_v37  ;;  %9279 = vmatprep.mubr.bf16.mxu1 %v20015_v37 }
 0x5bb   :  { %v13268_v50 = vadd.f32 %v6693_v7, %v19600_v39  ;;  %v13332_v22 = vadd.f32 %v7079_v17, %v19603_v49  ;;  %v6695_v1 = vpop.f32.mrb[175].mxu0  ;;  %v7081_v51 = vpop.f32.mrb[175].mxu1  ;;  %8894 = vmatmul.mubr.bf16.gmra.mrb[232].mxu0 %v20011_v55  ;;  %9280 = vmatmul.mubr.bf16.gmra.mrb[232].mxu1 %v20011_v55  ;;  %v7212_v60 = vmax.f32 %v13266_v56, 0.0  ;;  %v7214_v30 = vmax.f32 %v13330_v45, 0.0 }
 0x5bc   :  { %v13269_v5 = vadd.f32 %v6695_v1, %v19606_v23  ;;  %v13333_v6 = vadd.f32 %v7081_v51, %v19609_v26  ;;  %v7213_v16 = vmax.f32 %v13267_v21, 0.0  ;;  %v7215_v48 = vmax.f32 %v13331_v25, 0.0 }
 0x5bd   :  { %v7216_v10 = vmax.f32 %v13268_v50, 0.0  ;;  %v7218_v9 = vmax.f32 %v13332_v22, 0.0 }
 0x5be   :  { %v7217_v19 = vmax.f32 %v13269_v5, 0.0  ;;  %v7219_v7 = vmax.f32 %v13333_v6, 0.0 }
 0x5bf   :  { %v20031_v37 = vpack.c.bf16 %v7216_v10, %v7212_v60  ;;  %v20033_v17 = vpack.c.bf16 %v7218_v9, %v7214_v30 }
 0x5c0   :  { %v20035_v58 = vpack.c.bf16 %v7217_v19, %v7213_v16  ;;  %v20037_v31 = vpack.c.bf16 %v7219_v7, %v7215_v48  ;;  %v6699_v55 = vpop.f32.mrb[176].mxu0  ;;  %v7085_v1 = vpop.f32.mrb[176].mxu1 }
 0x5c1   :  { %22248 = vst [vmem:[#allocation23_spill] sm:$0xff] %v20031_v37  ;;  %22249 = vst [vmem:[#allocation24_spill] sm:$0xff] %v20033_v17  ;;  %v13270_v51 = vadd.f32 %v6699_v55, %v19600_v39  ;;  %v13334_v56 = vadd.f32 %v7085_v1, %v19603_v49  ;;  %v6701_v45 = vpop.f32.mrb[177].mxu0  ;;  %v7087_v50 = vpop.f32.mrb[177].mxu1 }
 0x5c2   :  { %22250 = vst [vmem:[#allocation25_spill] sm:$0xff] %v20035_v58  ;;  %22251 = vst [vmem:[#allocation26_spill] sm:$0xff] %v20037_v31  ;;  %v13271_v21 = vadd.f32 %v6701_v45, %v19606_v23  ;;  %v13335_v25 = vadd.f32 %v7087_v50, %v19609_v26  ;;  %v6703_v22 = vpop.f32.mrb[178].mxu0  ;;  %v7089_v5 = vpop.f32.mrb[178].mxu1  ;;  %8903 = vmatprep.mubr.bf16.mxu0 %v20035_v58  ;;  %9289 = vmatprep.mubr.bf16.mxu1 %v20035_v58 }
 0x5c3   :  { %v13272_v6 = vadd.f32 %v6703_v22, %v19600_v39  ;;  %v13336_v60 = vadd.f32 %v7089_v5, %v19603_v49  ;;  %v6705_v30 = vpop.f32.mrb[179].mxu0  ;;  %v7091_v55 = vpop.f32.mrb[179].mxu1  ;;  %8904 = vmatmul.mubr.bf16.gmra.mrb[236].mxu0 %v20031_v37  ;;  %9290 = vmatmul.mubr.bf16.gmra.mrb[236].mxu1 %v20031_v37  ;;  %v7220_v16 = vmax.f32 %v13270_v51, 0.0  ;;  %v7222_v48 = vmax.f32 %v13334_v56, 0.0 }
 0x5c4   :  { %v13273_v10 = vadd.f32 %v6705_v30, %v19606_v23  ;;  %v13337_v9 = vadd.f32 %v7091_v55, %v19609_v26  ;;  %v7221_v1 = vmax.f32 %v13271_v21, 0.0  ;;  %v7223_v45 = vmax.f32 %v13335_v25, 0.0 }
 0x5c5   :  { %v7224_v19 = vmax.f32 %v13272_v6, 0.0  ;;  %v7226_v7 = vmax.f32 %v13336_v60, 0.0 }
 0x5c6   :  { %v7225_v50 = vmax.f32 %v13273_v10, 0.0  ;;  %v7227_v22 = vmax.f32 %v13337_v9, 0.0 }
 0x5c7   :  { %v20051_v58 = vpack.c.bf16 %v7224_v19, %v7220_v16  ;;  %v20053_v5 = vpack.c.bf16 %v7226_v7, %v7222_v48 }
 0x5c8   :  { %v20055_v12 = vpack.c.bf16 %v7225_v50, %v7221_v1  ;;  %v20057_v33 = vpack.c.bf16 %v7227_v22, %v7223_v45  ;;  %v6709_v37 = vpop.f32.mrb[180].mxu0  ;;  %v7095_v30 = vpop.f32.mrb[180].mxu1 }
 0x5c9   :  { %22252 = vst [vmem:[#allocation27_spill] sm:$0xff] %v20051_v58  ;;  %22253 = vst [vmem:[#allocation28_spill] sm:$0xff] %v20053_v5  ;;  %v13274_v55 = vadd.f32 %v6709_v37, %v19600_v39  ;;  %v13338_v51 = vadd.f32 %v7095_v30, %v19603_v49  ;;  %v6711_v56 = vpop.f32.mrb[181].mxu0  ;;  %v7097_v6 = vpop.f32.mrb[181].mxu1 }
 0x5ca   :  { %22254 = vst [vmem:[#allocation29_spill] sm:$0xff] %v20055_v12  ;;  %22255 = vst [vmem:[#allocation30_spill] sm:$0xff] %v20057_v33  ;;  %v13275_v21 = vadd.f32 %v6711_v56, %v19606_v23  ;;  %v13339_v25 = vadd.f32 %v7097_v6, %v19609_v26  ;;  %v6713_v60 = vpop.f32.mrb[182].mxu0  ;;  %v7099_v10 = vpop.f32.mrb[182].mxu1  ;;  %8913 = vmatprep.mubr.bf16.mxu0 %v20055_v12  ;;  %9299 = vmatprep.mubr.bf16.mxu1 %v20055_v12 }
 0x5cb   :  { %v13276_v9 = vadd.f32 %v6713_v60, %v19600_v39  ;;  %v13340_v16 = vadd.f32 %v7099_v10, %v19603_v49  ;;  %v6715_v48 = vpop.f32.mrb[183].mxu0  ;;  %v7101_v37 = vpop.f32.mrb[183].mxu1  ;;  %8914 = vmatmul.mubr.bf16.gmra.mrb[240].mxu0 %v20051_v58  ;;  %9300 = vmatmul.mubr.bf16.gmra.mrb[240].mxu1 %v20051_v58  ;;  %v7228_v1 = vmax.f32 %v13274_v55, 0.0  ;;  %v7230_v45 = vmax.f32 %v13338_v51, 0.0 }
 0x5cc   :  { %v13277_v19 = vadd.f32 %v6715_v48, %v19606_v23  ;;  %v13341_v7 = vadd.f32 %v7101_v37, %v19609_v26  ;;  %v7229_v30 = vmax.f32 %v13275_v21, 0.0  ;;  %v7231_v56 = vmax.f32 %v13339_v25, 0.0 }
 0x5cd   :  { %v7232_v50 = vmax.f32 %v13276_v9, 0.0  ;;  %v7234_v22 = vmax.f32 %v13340_v16, 0.0 }
 0x5ce   :  { %v7233_v6 = vmax.f32 %v13277_v19, 0.0  ;;  %v7235_v60 = vmax.f32 %v13341_v7, 0.0 }
 0x5cf   :  { %v20071_v12 = vpack.c.bf16 %v7232_v50, %v7228_v1  ;;  %v20073_v10 = vpack.c.bf16 %v7234_v22, %v7230_v45 }
 0x5d0   :  { %v20075_v14 = vpack.c.bf16 %v7233_v6, %v7229_v30  ;;  %v20077_v34 = vpack.c.bf16 %v7235_v60, %v7231_v56  ;;  %v6719_v58 = vpop.f32.mrb[184].mxu0  ;;  %v7105_v48 = vpop.f32.mrb[184].mxu1 }
 0x5d1   :  { %22256 = vst [vmem:[#allocation31_spill] sm:$0xff] %v20071_v12  ;;  %22257 = vst [vmem:[#allocation32_spill] sm:$0xff] %v20073_v10  ;;  %v13278_v37 = vadd.f32 %v6719_v58, %v19600_v39  ;;  %v13342_v55 = vadd.f32 %v7105_v48, %v19603_v49  ;;  %v6721_v51 = vpop.f32.mrb[185].mxu0  ;;  %v7107_v9 = vpop.f32.mrb[185].mxu1 }
 0x5d2   :  { %22258 = vst [vmem:[#allocation33_spill] sm:$0xff] %v20075_v14  ;;  %22259 = vst [vmem:[#allocation34_spill] sm:$0xff] %v20077_v34  ;;  %v13279_v21 = vadd.f32 %v6721_v51, %v19606_v23  ;;  %v13343_v25 = vadd.f32 %v7107_v9, %v19609_v26  ;;  %v6723_v16 = vpop.f32.mrb[186].mxu0  ;;  %v7109_v19 = vpop.f32.mrb[186].mxu1  ;;  %8923 = vmatprep.mubr.bf16.mxu0 %v20075_v14  ;;  %9309 = vmatprep.mubr.bf16.mxu1 %v20075_v14 }
 0x5d3   :  { %v13280_v7 = vadd.f32 %v6723_v16, %v19600_v39  ;;  %v13344_v1 = vadd.f32 %v7109_v19, %v19603_v49  ;;  %v6725_v45 = vpop.f32.mrb[187].mxu0  ;;  %v7111_v58 = vpop.f32.mrb[187].mxu1  ;;  %8924 = vmatmul.mubr.bf16.gmra.mrb[244].mxu0 %v20071_v12  ;;  %9310 = vmatmul.mubr.bf16.gmra.mrb[244].mxu1 %v20071_v12  ;;  %v7236_v30 = vmax.f32 %v13278_v37, 0.0  ;;  %v7238_v56 = vmax.f32 %v13342_v55, 0.0 }
 0x5d4   :  { %v13281_v50 = vadd.f32 %v6725_v45, %v19606_v23  ;;  %v13345_v22 = vadd.f32 %v7111_v58, %v19609_v26  ;;  %v7237_v48 = vmax.f32 %v13279_v21, 0.0  ;;  %v7239_v51 = vmax.f32 %v13343_v25, 0.0 }
 0x5d5   :  { %v7240_v6 = vmax.f32 %v13280_v7, 0.0  ;;  %v7242_v60 = vmax.f32 %v13344_v1, 0.0 }
 0x5d6   :  { %v7241_v9 = vmax.f32 %v13281_v50, 0.0  ;;  %v7243_v16 = vmax.f32 %v13345_v22, 0.0 }
 0x5d7   :  { %v20091_v14 = vpack.c.bf16 %v7240_v6, %v7236_v30  ;;  %v20093_v19 = vpack.c.bf16 %v7242_v60, %v7238_v56 }
 0x5d8   :  { %v20095_v24 = vpack.c.bf16 %v7241_v9, %v7237_v48  ;;  %v20097_v27 = vpack.c.bf16 %v7243_v16, %v7239_v51  ;;  %v6729_v12 = vpop.f32.mrb[188].mxu0  ;;  %v7115_v45 = vpop.f32.mrb[188].mxu1 }
 0x5d9   :  { %22260 = vst [vmem:[#allocation35_spill] sm:$0xff] %v20093_v19  ;;  %v13282_v58 = vadd.f32 %v6729_v12, %v19600_v39  ;;  %v13346_v37 = vadd.f32 %v7115_v45, %v19603_v49  ;;  %v6731_v55 = vpop.f32.mrb[189].mxu0  ;;  %v7117_v7 = vpop.f32.mrb[189].mxu1 }
 0x5da   :  { %22261 = vst [vmem:[#allocation36_spill] sm:$0xff] %v20095_v24  ;;  %22262 = vst [vmem:[#allocation37_spill] sm:$0xff] %v20097_v27  ;;  %v13283_v21 = vadd.f32 %v6731_v55, %v19606_v23  ;;  %v13347_v25 = vadd.f32 %v7117_v7, %v19609_v26  ;;  %v6733_v1 = vpop.f32.mrb[190].mxu0  ;;  %v7119_v50 = vpop.f32.mrb[190].mxu1  ;;  %8933 = vmatprep.mubr.bf16.mxu0 %v20095_v24  ;;  %9319 = vmatprep.mubr.bf16.mxu1 %v20095_v24 }
 0x5db   :  { %v13284_v22 = vadd.f32 %v6733_v1, %v19600_v39  ;;  %v13348_v30 = vadd.f32 %v7119_v50, %v19603_v49  ;;  %v6735_v56 = vpop.f32.mrb[191].mxu0  ;;  %v7121_v12 = vpop.f32.mrb[191].mxu1  ;;  %8934 = vmatmul.mubr.bf16.gmra.mrb[248].mxu0 %v20091_v14  ;;  %9320 = vmatmul.mubr.bf16.gmra.mrb[248].mxu1 %v20091_v14  ;;  %v7244_v48 = vmax.f32 %v13282_v58, 0.0  ;;  %v7246_v51 = vmax.f32 %v13346_v37, 0.0  ;;  %v15297_v58 = vld [vmem:[%s22161_s8 + $0x4c] ss:$28 sps:$4 sm:$0xff]  }
 0x5dc   :  { %v13285_v6 = vadd.f32 %v6735_v56, %v19606_v23  ;;  %v13349_v60 = vadd.f32 %v7121_v12, %v19609_v26  ;;  %v7245_v45 = vmax.f32 %v13283_v21, 0.0  ;;  %v7247_v55 = vmax.f32 %v13347_v25, 0.0  ;;  %v15291_v23 = vld [vmem:[%s22161_s8 + $0x18] ss:$28 sps:$4 sm:$0xff]   ;;  %v15292_v26 = vld [vmem:[%s22161_s8 + $0x10] ss:$28 sps:$4 sm:$0xff]  }
 0x5dd   :  { %v7248_v9 = vmax.f32 %v13284_v22, 0.0  ;;  %v7250_v16 = vmax.f32 %v13348_v30, 0.0  ;;  %v15298_v37 = vld [vmem:[%s22161_s8 + $0x210] ss:$28 sps:$4 sm:$0xff]   ;;  %v15295_v21 = vld [vmem:[%s22161_s8 + $0x48] ss:$28 sps:$4 sm:$0xff]  }
 0x5de   :  { %v7249_v7 = vmax.f32 %v13285_v6, 0.0  ;;  %v7251_v39 = vmax.f32 %v13349_v60, 0.0  ;;  %v15299_v25 = vld [vmem:[%s22161_s8 + $0x50] ss:$28 sps:$4 sm:$0xff]   ;;  %v15302_v22 = vld [vmem:[%s22161_s8 + $0x84] ss:$28 sps:$4 sm:$0xff]  }
 0x5df   :  { %v20111_v1 = vpack.c.bf16 %v7248_v9, %v7244_v48  ;;  %v20113_v49 = vpack.c.bf16 %v7250_v16, %v7246_v51  ;;  %v15306_v30 = vld [vmem:[%s22161_s8 + $0x248] ss:$28 sps:$4 sm:$0xff]   ;;  %v15300_v56 = vld [vmem:[%s22161_s8 + $0x80] ss:$28 sps:$4 sm:$0xff]   ;;  %v15303_v48 = vld [vmem:[%s22161_s8 + $0xb8] ss:$28 sps:$4 sm:$0xff]  }
 0x5e0   :  { %v20115_v50 = vpack.c.bf16 %v7249_v7, %v7245_v45  ;;  %v20117_v24 = vpack.c.bf16 %v7251_v39, %v7247_v55  ;;  %v15307_v12 = vld [vmem:[%s22161_s8 + $0x88] ss:$28 sps:$4 sm:$0xff]   ;;  %v15305_v6 = vld [vmem:[%s22161_s8 + $0xbc] ss:$28 sps:$4 sm:$0xff]   ;;  %v15310_v9 = vld [vmem:[%s22161_s8 + $0xf4] ss:$28 sps:$4 sm:$0xff]  }
 0x5e1   :  { %22263 = vst [vmem:[#allocation38_spill] sm:$0xff] %v20113_v49  ;;  %v15314_v60 = vld [vmem:[%s22161_s8 + $0x280] ss:$28 sps:$4 sm:$0xff]   ;;  %v15322_v16 = vld [vmem:[%s22161_s8 + $0x2b8] ss:$28 sps:$4 sm:$0xff]  }
 0x5e2   :  { %22264 = vst [vmem:[#allocation39_spill] sm:$0xff] %v20117_v24  ;;  %8943 = vmatprep.mubr.bf16.mxu0 %v20115_v50  ;;  %9329 = vmatprep.mubr.bf16.mxu1 %v20115_v50  ;;  %v15315_v51 = vld [vmem:[%s22161_s8 + $0xc0] ss:$28 sps:$4 sm:$0xff]   ;;  %v15308_v45 = vld [vmem:[%s22161_s8 + $0xf0] ss:$28 sps:$4 sm:$0xff]  }
 0x5e3   :  { %8944 = vmatmul.mubr.bf16.gmra.mrb[252].mxu0 %v20111_v1  ;;  %9330 = vmatmul.mubr.bf16.gmra.mrb[252].mxu1 %v20111_v1  ;;  %v15323_v55 = vld [vmem:[%s22161_s8 + $0xf8] ss:$28 sps:$4 sm:$0xff]   ;;  %v15313_v7 = vld [vmem:[%s22161_s8 + $0x12c] ss:$28 sps:$4 sm:$0xff]  }
 0x5e4   :  { %8986 = vmatprep.mubr.bf16.mxu0 %v19625_v52  ;;  %9372 = vmatprep.mubr.bf16.mxu1 %v19625_v52  ;;  %v15330_v39 = vld [vmem:[%s22161_s8 + $0x2f0] ss:$28 sps:$4 sm:$0xff]  }
 0x5eb   :  { %8987 = vmatmul.mubr.bf16.vlgmr.msra.gmra.mrb[192].mxu0 %v19621_v61  ;;  %9373 = vmatmul.mubr.bf16.vlgmr.msra.gmra.mrb[192].mxu1 %v19621_v61 }
 0x5ec   :  { %8996 = vmatprep.mubr.bf16.mxu0 %v19669_v38  ;;  %9382 = vmatprep.mubr.bf16.mxu1 %v19669_v38 }
 0x5ed   :  { %12743 = vmatpush3.bf16.msra.mxu1 %v15291_v23  ;;  %9534 = vmatpush1.bf16.msra.mxu0 %v15292_v26  ;;  %v15311_v23 = vld [vmem:[%s22161_s8 + $0x128] ss:$28 sps:$4 sm:$0xff]   ;;  %v15331_v26 = vld [vmem:[%s22161_s8 + $0x130] ss:$28 sps:$4 sm:$0xff]  }
 0x5ee   :  { %9535 = vmatprep.subr.bf16.mxu0 %v15297_v58  ;;  %12744 = vmatprep.subr.bf16.mxu1 %v15298_v37  ;;  %v15318_v58 = vld [vmem:[%s22161_s8 + $0x164] ss:$28 sps:$4 sm:$0xff]  }
 0x5ef   :  { %v15338_v37 = vld [vmem:[%s22161_s8 + $0x328] ss:$28 sps:$4 sm:$0xff]  }
 0x5f1   :  { %9536 = vmatpush1.bf16.msra.mxu0 %v15295_v21  ;;  %12745 = vmatpush3.bf16.msra.mxu1 %v15299_v25  ;;  %v15316_v21 = vld [vmem:[%s22161_s8 + $0x160] ss:$28 sps:$4 sm:$0xff]   ;;  %v15339_v25 = vld [vmem:[%s22161_s8 + $0x168] ss:$28 sps:$4 sm:$0xff]  }
 0x5f2   :  { %9537 = vmatprep.subr.bf16.mxu0 %v15302_v22  ;;  %12746 = vmatprep.subr.bf16.mxu1 %v15306_v30  ;;  %v15321_v22 = vld [vmem:[%s22161_s8 + $0x19c] ss:$28 sps:$4 sm:$0xff]  }
 0x5f3   :  { %8997 = vmatmul.mubr.bf16.gmra.mrb[196].mxu0 %v19665_v11  ;;  %9383 = vmatmul.mubr.bf16.gmra.mrb[196].mxu1 %v19665_v11  ;;  %v15346_v30 = vld [vmem:[%s22161_s8 + $0x360] ss:$28 sps:$4 sm:$0xff]  }
 0x5f4   :  { %9006 = vmatprep.mubr.bf16.mxu0 %v19713_v35  ;;  %9392 = vmatprep.mubr.bf16.mxu1 %v19713_v35 }
 0x5f5   :  { %9538 = vmatpush1.bf16.msra.mxu0 %v15300_v56  ;;  %12747 = vmatpush3.bf16.msra.mxu1 %v15307_v12  ;;  %v15319_v56 = vld [vmem:[%s22161_s8 + $0x198] ss:$28 sps:$4 sm:$0xff]   ;;  %v15347_v12 = vld [vmem:[%s22161_s8 + $0x1a0] ss:$28 sps:$4 sm:$0xff]  }
 0x5f6   :  { %9539 = vmatprep.subr.bf16.mxu0 %v15305_v6  ;;  %12748 = vmatprep.subr.bf16.mxu1 %v15314_v60  ;;  %v15326_v6 = vld [vmem:[%s22161_s8 + $0x1d4] ss:$28 sps:$4 sm:$0xff]  }
 0x5f7   :  { %v15354_v60 = vld [vmem:[%s22161_s8 + $0x558] ss:$28 sps:$4 sm:$0xff]  }
 0x5f9   :  { %9540 = vmatpush1.bf16.msra.mxu0 %v15303_v48  ;;  %12749 = vmatpush3.bf16.msra.mxu1 %v15315_v51  ;;  %v15324_v48 = vld [vmem:[%s22161_s8 + $0x1d0] ss:$28 sps:$4 sm:$0xff]  }
 0x5fa   :  { %9541 = vmatprep.subr.bf16.mxu0 %v15310_v9  ;;  %12750 = vmatprep.subr.bf16.mxu1 %v15322_v16  ;;  %v15329_v51 = vld [vmem:[%s22161_s8 + $0x20c] ss:$28 sps:$4 sm:$0xff]   ;;  %v15334_v16 = vld [vmem:[%s22161_s8 + $0x244] ss:$28 sps:$4 sm:$0xff]  }
 0x5fb   :  { %9007 = vmatmul.mubr.bf16.gmra.mrb[200].mxu0 %v19709_v13  ;;  %9393 = vmatmul.mubr.bf16.gmra.mrb[200].mxu1 %v19709_v13  ;;  %v15327_v9 = vld [vmem:[%s22161_s8 + $0x208] ss:$28 sps:$4 sm:$0xff]  }
 0x5fc   :  { %9016 = vmatprep.mubr.bf16.mxu0 %v19757_v53  ;;  %9402 = vmatprep.mubr.bf16.mxu1 %v19757_v53 }
 0x5fd   :  { %9542 = vmatpush1.bf16.msra.mxu0 %v15308_v45  ;;  %12751 = vmatpush3.bf16.msra.mxu1 %v15323_v55  ;;  %v15332_v45 = vld [vmem:[%s22161_s8 + $0x240] ss:$28 sps:$4 sm:$0xff]  }
 0x5fe   :  { %9543 = vmatprep.subr.bf16.mxu0 %v15313_v7  ;;  %12752 = vmatprep.subr.bf16.mxu1 %v15330_v39  ;;  %v15337_v55 = vld [vmem:[%s22161_s8 + $0x27c] ss:$28 sps:$4 sm:$0xff]   ;;  %v15342_v39 = vld [vmem:[%s22161_s8 + $0x2b4] ss:$28 sps:$4 sm:$0xff]  }
 0x5ff   :  { %v15335_v7 = vld [vmem:[%s22161_s8 + $0x278] ss:$28 sps:$4 sm:$0xff]  }
 0x601   :  { %9544 = vmatpush1.bf16.msra.mxu0 %v15311_v23  ;;  %12753 = vmatpush3.bf16.msra.mxu1 %v15331_v26  ;;  %v15340_v23 = vld [vmem:[%s22161_s8 + $0x2b0] ss:$28 sps:$4 sm:$0xff]  }
 0x602   :  { %9545 = vmatprep.subr.bf16.mxu0 %v15318_v58  ;;  %12754 = vmatprep.subr.bf16.mxu1 %v15338_v37  ;;  %v15345_v26 = vld [vmem:[%s22161_s8 + $0x2ec] ss:$28 sps:$4 sm:$0xff]   ;;  %v15350_v37 = vld [vmem:[%s22161_s8 + $0x324] ss:$28 sps:$4 sm:$0xff]  }
 0x603   :  { %9017 = vmatmul.mubr.bf16.gmra.mrb[204].mxu0 %v19753_v29  ;;  %9403 = vmatmul.mubr.bf16.gmra.mrb[204].mxu1 %v19753_v29  ;;  %v15343_v58 = vld [vmem:[%s22161_s8 + $0x2e8] ss:$28 sps:$4 sm:$0xff]  }
 0x604   :  { %9026 = vmatprep.mubr.bf16.mxu0 %v19801_v36  ;;  %9412 = vmatprep.mubr.bf16.mxu1 %v19801_v36 }
 0x605   :  { %9546 = vmatpush1.bf16.msra.mxu0 %v15316_v21  ;;  %12755 = vmatpush3.bf16.msra.mxu1 %v15339_v25  ;;  %v15348_v21 = vld [vmem:[%s22161_s8 + $0x320] ss:$28 sps:$4 sm:$0xff]  }
 0x606   :  { %9547 = vmatprep.subr.bf16.mxu0 %v15321_v22  ;;  %12756 = vmatprep.subr.bf16.mxu1 %v15346_v30  ;;  %v15353_v25 = vld [vmem:[%s22161_s8 + $0x35c] ss:$28 sps:$4 sm:$0xff]   ;;  %v15358_v30 = vld [vmem:[%s22161_s8 + $0x394] ss:$28 sps:$4 sm:$0xff]  }
 0x607   :  { %v15351_v22 = vld [vmem:[%s22161_s8 + $0x358] ss:$28 sps:$4 sm:$0xff]  }
 0x609   :  { %9548 = vmatpush1.bf16.msra.mxu0 %v15319_v56  ;;  %12757 = vmatpush3.bf16.msra.mxu1 %v15347_v12  ;;  %v15355_v56 = vld [vmem:[%s22161_s8 + $0x398] ss:$28 sps:$4 sm:$0xff]   ;;  %v15356_v12 = vld [vmem:[%s22161_s8 + $0x390] ss:$28 sps:$4 sm:$0xff]  }
 0x60a   :  { %9549 = vmatprep.subr.bf16.mxu0 %v15326_v6  ;;  %12854 = vmatprep.subr.bf16.mxu1 %v15354_v60  ;;  %v15361_v6 = vld [vmem:[%s22161_s8 + $0x3cc] ss:$28 sps:$4 sm:$0xff]  }
 0x60b   :  { %9027 = vmatmul.mubr.bf16.gmra.mrb[208].mxu0 %v19797_v32  ;;  %9413 = vmatmul.mubr.bf16.gmra.mrb[208].mxu1 %v19797_v32  ;;  %v15362_v60 = vld [vmem:[%s22161_s8 + $0x590] ss:$28 sps:$4 sm:$0xff]  }
 0x60c   :  { %9036 = vmatprep.mubr.bf16.mxu0 %v19845_v43  ;;  %9422 = vmatprep.mubr.bf16.mxu1 %v19845_v43 }
 0x60d   :  { %9550 = vmatpush1.bf16.msra.mxu0 %v15324_v48  ;;  %v15363_v48 = vld [vmem:[%s22161_s8 + $0x3d0] ss:$28 sps:$4 sm:$0xff]  }
 0x60e   :  { %9551 = vmatprep.subr.bf16.mxu0 %v15329_v51  ;;  %v15364_v51 = vld [vmem:[%s22161_s8 + $0x400] ss:$28 sps:$4 sm:$0xff]  }
 0x611   :  { %9552 = vmatpush1.bf16.msra.mxu0 %v15327_v9  ;;  %v15371_v9 = vld [vmem:[%s22161_s8 + $0x408] ss:$28 sps:$4 sm:$0xff]  }
 0x612   :  { %9553 = vmatprep.subr.bf16.mxu0 %v15334_v16  ;;  %v15369_v16 = vld [vmem:[%s22161_s8 + $0x43c] ss:$28 sps:$4 sm:$0xff]  }
 0x613   :  { %9037 = vmatmul.mubr.bf16.gmra.mrb[212].mxu0 %v19841_v4  ;;  %9423 = vmatmul.mubr.bf16.gmra.mrb[212].mxu1 %v19841_v4 }
 0x614   :  { %9046 = vmatprep.mubr.bf16.mxu0 %v19889_v8  ;;  %9432 = vmatprep.mubr.bf16.mxu1 %v19889_v8 }
 0x615   :  { %9554 = vmatpush1.bf16.msra.mxu0 %v15332_v45  ;;  %v15378_v45 = vld [vmem:[%s22161_s8 + $0x600] ss:$28 sps:$4 sm:$0xff]  }
 0x616   :  { %9555 = vmatprep.subr.bf16.mxu0 %v15337_v55  ;;  %v15367_v55 = vld [vmem:[%s22161_s8 + $0x438] ss:$28 sps:$4 sm:$0xff]  }
 0x619   :  { %9556 = vmatpush1.bf16.msra.mxu0 %v15335_v7  ;;  %v15379_v7 = vld [vmem:[%s22161_s8 + $0x440] ss:$28 sps:$4 sm:$0xff]  }
 0x61a   :  { %9557 = vmatprep.subr.bf16.mxu0 %v15342_v39  ;;  %v15374_v39 = vld [vmem:[%s22161_s8 + $0x474] ss:$28 sps:$4 sm:$0xff]  }
 0x61b   :  { %9047 = vmatmul.mubr.bf16.gmra.mrb[216].mxu0 %v19885_v63  ;;  %9433 = vmatmul.mubr.bf16.gmra.mrb[216].mxu1 %v19885_v63 }
 0x61c   :  { %9056 = vmatprep.mubr.bf16.mxu0 %v19933_v40  ;;  %9442 = vmatprep.mubr.bf16.mxu1 %v19933_v40 }
 0x61d   :  { %9558 = vmatpush1.bf16.msra.mxu0 %v15340_v23  ;;  %v15387_v23 = vld [vmem:[%s22161_s8 + $0x478] ss:$28 sps:$4 sm:$0xff]  }
 0x61e   :  { %9559 = vmatprep.subr.bf16.mxu0 %v15345_v26  ;;  %v15377_v26 = vld [vmem:[%s22161_s8 + $0x4ac] ss:$28 sps:$4 sm:$0xff]  }
 0x621   :  { %9560 = vmatpush1.bf16.msra.mxu0 %v15343_v58  ;;  %v15394_v58 = vld [vmem:[%s22161_s8 + $0x670] ss:$28 sps:$4 sm:$0xff]  }
 0x622   :  { %9561 = vmatprep.subr.bf16.mxu0 %v15350_v37  ;;  %v15375_v37 = vld [vmem:[%s22161_s8 + $0x4a8] ss:$28 sps:$4 sm:$0xff]  }
 0x623   :  { %9057 = vmatmul.mubr.bf16.gmra.mrb[220].mxu0 %v19929_v3  ;;  %9443 = vmatmul.mubr.bf16.gmra.mrb[220].mxu1 %v19929_v3 }
 0x624   :  { %9066 = vmatprep.mubr.bf16.mxu0 %v19977_v15  ;;  %9452 = vmatprep.mubr.bf16.mxu1 %v19977_v15 }
 0x625   :  { %9562 = vmatpush1.bf16.msra.mxu0 %v15348_v21  ;;  %v15395_v21 = vld [vmem:[%s22161_s8 + $0x4b0] ss:$28 sps:$4 sm:$0xff]  }
 0x626   :  { %9563 = vmatprep.subr.bf16.mxu0 %v15353_v25  ;;  %v15382_v25 = vld [vmem:[%s22161_s8 + $0x4e4] ss:$28 sps:$4 sm:$0xff]  }
 0x629   :  { %9564 = vmatpush1.bf16.msra.mxu0 %v15351_v22  ;;  %v15403_v22 = vld [vmem:[%s22161_s8 + $0x4e8] ss:$28 sps:$4 sm:$0xff]  }
 0x62a   :  { %9726 = vmatprep.subr.bf16.mxu0 %v15358_v30  ;;  %v15385_v30 = vld [vmem:[%s22161_s8 + $0x51c] ss:$28 sps:$4 sm:$0xff]  }
 0x62b   :  { %9067 = vmatmul.mubr.bf16.gmra.mrb[224].mxu0 %v19973_v54  ;;  %9453 = vmatmul.mubr.bf16.gmra.mrb[224].mxu1 %v19973_v54 }
 0x62c   :  { %9076 = vmatprep.mubr.bf16.mxu0 %v19997_v57  ;;  %9462 = vmatprep.mubr.bf16.mxu1 %v19997_v57 }
 0x633   :  { %9077 = vmatmul.mubr.bf16.gmra.mrb[228].mxu0 %v19993_v0  ;;  %9463 = vmatmul.mubr.bf16.gmra.mrb[228].mxu1 %v19993_v0 }
 0x634   :  { %9086 = vmatprep.mubr.bf16.mxu0 %v20017_v42  ;;  %9472 = vmatprep.mubr.bf16.mxu1 %v20017_v42 }
 0x63b   :  { %9087 = vmatmul.mubr.bf16.gmra.mrb[232].mxu0 %v20013_v2  ;;  %9473 = vmatmul.mubr.bf16.gmra.mrb[232].mxu1 %v20013_v2 }
 0x63c   :  { %9096 = vmatprep.mubr.bf16.mxu0 %v20037_v31  ;;  %9482 = vmatprep.mubr.bf16.mxu1 %v20037_v31 }
 0x643   :  { %9097 = vmatmul.mubr.bf16.gmra.mrb[236].mxu0 %v20033_v17  ;;  %9483 = vmatmul.mubr.bf16.gmra.mrb[236].mxu1 %v20033_v17 }
 0x644   :  { %9106 = vmatprep.mubr.bf16.mxu0 %v20057_v33  ;;  %9492 = vmatprep.mubr.bf16.mxu1 %v20057_v33 }
 0x64b   :  { %9107 = vmatmul.mubr.bf16.gmra.mrb[240].mxu0 %v20053_v5  ;;  %9493 = vmatmul.mubr.bf16.gmra.mrb[240].mxu1 %v20053_v5 }
 0x64c   :  { %9116 = vmatprep.mubr.bf16.mxu0 %v20077_v34  ;;  %9502 = vmatprep.mubr.bf16.mxu1 %v20077_v34 }
 0x653   :  { %9117 = vmatmul.mubr.bf16.gmra.mrb[244].mxu0 %v20073_v10  ;;  %9503 = vmatmul.mubr.bf16.gmra.mrb[244].mxu1 %v20073_v10 }
 0x654   :  { %9126 = vmatprep.mubr.bf16.mxu0 %v20097_v27  ;;  %9512 = vmatprep.mubr.bf16.mxu1 %v20097_v27 }
 0x65b   :  { %9127 = vmatmul.mubr.bf16.gmra.mrb[248].mxu0 %v20093_v19  ;;  %9513 = vmatmul.mubr.bf16.gmra.mrb[248].mxu1 %v20093_v19 }
 0x65c   :  { %9136 = vmatprep.mubr.bf16.mxu0 %v20117_v24  ;;  %9522 = vmatprep.mubr.bf16.mxu1 %v20117_v24 }
 0x663   :  { %9137 = vmatmul.mubr.bf16.gmra.mrb[252].mxu0 %v20113_v49  ;;  %9523 = vmatmul.mubr.bf16.gmra.mrb[252].mxu1 %v20113_v49 }
 0x664   :  { %9565 = vmatprep.mubr.bf16.mxu0 %v19623_v47  ;;  %9951 = vmatprep.mubr.bf16.mxu1 %v19623_v47  ;;  %v15359_v47 = vld [vmem:[%s22161_s8 + $0x3c8] ss:$28 sps:$4 sm:$0xff]  }
 0x66b   :  { %9566 = vmatmul.mubr.bf16.vlgmr.msra.gmra.mrb[0].mxu0 %v19619_v41  ;;  %9952 = vmatmul.mubr.bf16.vlgmr.msra.gmra.mrb[0].mxu1 %v19619_v41  ;;  %v15366_v41 = vld [vmem:[%s22161_s8 + $0x404] ss:$28 sps:$4 sm:$0xff]  }
 0x66c   :  { %9575 = vmatprep.mubr.bf16.mxu0 %v19667_v46  ;;  %9959 = vmatprep.mubr.bf16.mxu1 %v19667_v46  ;;  %v15370_v46 = vld [vmem:[%s22161_s8 + $0x5c8] ss:$28 sps:$4 sm:$0xff]  }
 0x66d   :  { %12855 = vmatpush3.bf16.msra.mxu1 %v15355_v56  ;;  %9727 = vmatpush1.bf16.msra.mxu0 %v15356_v12  ;;  %v15410_v56 = vld [vmem:[%s22161_s8 + $0x6e0] ss:$28 sps:$4 sm:$0xff]   ;;  %v15383_v12 = vld [vmem:[%s22161_s8 + $0x518] ss:$28 sps:$4 sm:$0xff]  }
 0x66e   :  { %9728 = vmatprep.subr.bf16.mxu0 %v15361_v6  ;;  %12856 = vmatprep.subr.bf16.mxu1 %v15362_v60  ;;  %v15411_v6 = vld [vmem:[%s22161_s8 + $0x520] ss:$28 sps:$4 sm:$0xff]   ;;  %v15393_v60 = vld [vmem:[%s22161_s8 + $0x58c] ss:$28 sps:$4 sm:$0xff]  }
 0x671   :  { %9729 = vmatpush1.bf16.msra.mxu0 %v15359_v47  ;;  %12857 = vmatpush3.bf16.msra.mxu1 %v15363_v48  ;;  %v22265_v47 = vld [vmem:[#allocation10_spill] sm:$0xff]  ;;  %v22266_v48 = vld [vmem:[#allocation12_spill] sm:$0xff] }
 0x672   :  { %9730 = vmatprep.subr.bf16.mxu0 %v15366_v41  ;;  %12858 = vmatprep.subr.bf16.mxu1 %v15370_v46  ;;  %v15391_v41 = vld [vmem:[%s22161_s8 + $0x588] ss:$28 sps:$4 sm:$0xff]  }
 0x673   :  { %9576 = vmatmul.mubr.bf16.gmra.mrb[4].mxu0 %v19663_v20  ;;  %9960 = vmatmul.mubr.bf16.gmra.mrb[4].mxu1 %v19663_v20  ;;  %v15386_v20 = vld [vmem:[%s22161_s8 + $0x638] ss:$28 sps:$4 sm:$0xff]   ;;  %v15398_v46 = vld [vmem:[%s22161_s8 + $0x5c4] ss:$28 sps:$4 sm:$0xff]  }
 0x674   :  { %9585 = vmatprep.mubr.bf16.mxu0 %v19711_v62  ;;  %9967 = vmatprep.mubr.bf16.mxu1 %v19711_v62  ;;  %v15372_v62 = vld [vmem:[%s22161_s8 + $0x470] ss:$28 sps:$4 sm:$0xff]  }
 0x675   :  { %9731 = vmatpush1.bf16.msra.mxu0 %v15364_v51  ;;  %12859 = vmatpush3.bf16.msra.mxu1 %v15371_v9  ;;  %v15396_v51 = vld [vmem:[%s22161_s8 + $0x5c0] ss:$28 sps:$4 sm:$0xff]  }
 0x676   :  { %9732 = vmatprep.subr.bf16.mxu0 %v15369_v16  ;;  %12860 = vmatprep.subr.bf16.mxu1 %v15378_v45  ;;  %v15401_v9 = vld [vmem:[%s22161_s8 + $0x5fc] ss:$28 sps:$4 sm:$0xff]   ;;  %v22267_v16 = vld [vmem:[#allocation11_spill] sm:$0xff]  ;;  %v22268_v45 = vld [vmem:[#allocation14_spill] sm:$0xff] }
 0x679   :  { %9733 = vmatpush1.bf16.msra.mxu0 %v15367_v55  ;;  %12861 = vmatpush3.bf16.msra.mxu1 %v15379_v7  ;;  %v15399_v55 = vld [vmem:[%s22161_s8 + $0x5f8] ss:$28 sps:$4 sm:$0xff]  }
 0x67a   :  { %9734 = vmatprep.subr.bf16.mxu0 %v15374_v39  ;;  %12862 = vmatprep.subr.bf16.mxu1 %v15386_v20  ;;  %v15406_v7 = vld [vmem:[%s22161_s8 + $0x634] ss:$28 sps:$4 sm:$0xff]   ;;  %v15409_v20 = vld [vmem:[%s22161_s8 + $0x66c] ss:$28 sps:$4 sm:$0xff]  }
 0x67b   :  { %9586 = vmatmul.mubr.bf16.gmra.mrb[8].mxu0 %v19707_v28  ;;  %9968 = vmatmul.mubr.bf16.gmra.mrb[8].mxu1 %v19707_v28  ;;  %v15402_v28 = vld [vmem:[%s22161_s8 + $0x6a8] ss:$28 sps:$4 sm:$0xff]   ;;  %v15404_v39 = vld [vmem:[%s22161_s8 + $0x630] ss:$28 sps:$4 sm:$0xff]  }
 0x67c   :  { %9595 = vmatprep.mubr.bf16.mxu0 %v19755_v59  ;;  %9975 = vmatprep.mubr.bf16.mxu1 %v19755_v59  ;;  %v15380_v59 = vld [vmem:[%s22161_s8 + $0x4e0] ss:$28 sps:$4 sm:$0xff]  }
 0x67d   :  { %9735 = vmatpush1.bf16.msra.mxu0 %v15372_v62  ;;  %12863 = vmatpush3.bf16.msra.mxu1 %v15387_v23  ;;  %v22269_v62 = vld [vmem:[#allocation13_spill] sm:$0xff]  ;;  %v22270_v23 = vld [vmem:[#allocation16_spill] sm:$0xff] }
 0x67e   :  { %9736 = vmatprep.subr.bf16.mxu0 %v15377_v26  ;;  %12864 = vmatprep.subr.bf16.mxu1 %v15394_v58  ;;  %v15407_v26 = vld [vmem:[%s22161_s8 + $0x668] ss:$28 sps:$4 sm:$0xff]  }
 0x67f   :  { %v15414_v58 = vld [vmem:[%s22161_s8 + $0x6a4] ss:$28 sps:$4 sm:$0xff]  }
 0x681   :  { %9737 = vmatpush1.bf16.msra.mxu0 %v15375_v37  ;;  %12865 = vmatpush3.bf16.msra.mxu1 %v15395_v21  ;;  %v15412_v37 = vld [vmem:[%s22161_s8 + $0x6a0] ss:$28 sps:$4 sm:$0xff]  }
 0x682   :  { %9738 = vmatprep.subr.bf16.mxu0 %v15382_v25  ;;  %12866 = vmatprep.subr.bf16.mxu1 %v15402_v28  ;;  %v15417_v21 = vld [vmem:[%s22161_s8 + $0x6dc] ss:$28 sps:$4 sm:$0xff]   ;;  %v22271_v25 = vld [vmem:[#allocation15_spill] sm:$0xff]  ;;  %v22272_v28 = vld [vmem:[#allocation18_spill] sm:$0xff] }
 0x683   :  { %9596 = vmatmul.mubr.bf16.gmra.mrb[12].mxu0 %v19751_v44  ;;  %9976 = vmatmul.mubr.bf16.gmra.mrb[12].mxu1 %v19751_v44  ;;  %v15390_v44 = vld [vmem:[%s22161_s8 + $0x554] ss:$28 sps:$4 sm:$0xff]  }
 0x684   :  { %9605 = vmatprep.mubr.bf16.mxu0 %v19799_v18  ;;  %9983 = vmatprep.mubr.bf16.mxu1 %v19799_v18  ;;  %v15388_v18 = vld [vmem:[%s22161_s8 + $0x550] ss:$28 sps:$4 sm:$0xff]  }
 0x685   :  { %9739 = vmatpush1.bf16.msra.mxu0 %v15380_v59  ;;  %12867 = vmatpush3.bf16.msra.mxu1 %v15403_v22  ;;  %v15415_v59 = vld [vmem:[%s22161_s8 + $0x6d8] ss:$28 sps:$4 sm:$0xff]   ;;  %v22273_v22 = vld [vmem:[#allocation17_spill] sm:$0xff] }
 0x686   :  { %9740 = vmatprep.subr.bf16.mxu0 %v15385_v30  ;;  %12868 = vmatprep.subr.bf16.mxu1 %v15410_v56  ;;  %v22274_v30 = vld [vmem:[#allocation20_spill] sm:$0xff]  ;;  %v22275_v56 = vld [vmem:[#allocation19_spill] sm:$0xff] }
 0x689   :  { %9741 = vmatpush1.bf16.msra.mxu0 %v15383_v12  ;;  %12869 = vmatpush3.bf16.msra.mxu1 %v15411_v6  ;;  %v22276_v12 = vld [vmem:[#allocation22_spill] sm:$0xff]  ;;  %v7572_v6 = vld [vmem:[%s22162_s9] sm:$0xff] }
 0x68a   :  { %9742 = vmatprep.subr.bf16.mxu0 %v15390_v44  ;;  %v22277_v44 = vld [vmem:[#allocation21_spill] sm:$0xff] }
 0x68b   :  { %9606 = vmatmul.mubr.bf16.gmra.mrb[16].mxu0 %v22265_v47  ;;  %9984 = vmatmul.mubr.bf16.gmra.mrb[16].mxu1 %v22265_v47  ;;  %v22279_v47 = vld [vmem:[#allocation7_spill] sm:$0xff] }
 0x68c   :  { %9615 = vmatprep.mubr.bf16.mxu0 %v22266_v48  ;;  %9991 = vmatprep.mubr.bf16.mxu1 %v22266_v48  ;;  %v20520_v48 = vrot.slane %v7572_v6, %v22279_v47  ;;  %v22283_v47 = vld [vmem:[#allocation23_spill] sm:$0xff] }
 0x68d   :  { %9743 = vmatpush1.bf16.msra.mxu0 %v15388_v18  ;;  %v22278_v18 = vld [vmem:[#allocation6_spill] sm:$0xff] }
 0x68e   :  { %9744 = vmatprep.subr.bf16.mxu0 %v15393_v60  ;;  %v20517_v60 = vrot.slane %v7572_v6, %v22278_v18 }
 0x691   :  { %9745 = vmatpush1.bf16.msra.mxu0 %v15391_v41  ;;  %v22280_v41 = vld [vmem:[#allocation25_spill] sm:$0xff] }
 0x692   :  { %9746 = vmatprep.subr.bf16.mxu0 %v15398_v46  ;;  %v22281_v46 = vld [vmem:[#allocation8_spill] sm:$0xff] }
 0x693   :  { %9616 = vmatmul.mubr.bf16.gmra.mrb[20].mxu0 %v22267_v16  ;;  %9992 = vmatmul.mubr.bf16.gmra.mrb[20].mxu1 %v22267_v16 }
 0x694   :  { %9625 = vmatprep.mubr.bf16.mxu0 %v22268_v45  ;;  %9999 = vmatprep.mubr.bf16.mxu1 %v22268_v45 }
 0x695   :  { %9747 = vmatpush1.bf16.msra.mxu0 %v15396_v51  ;;  %v20525_v51 = vrot.slane %v7572_v6, %v22281_v46  ;;  %v22284_v46 = vld [vmem:[#allocation29_spill] sm:$0xff] }
 0x696   :  { %9748 = vmatprep.subr.bf16.mxu0 %v15401_v9  ;;  %v22282_v9 = vld [vmem:[#allocation9_spill] sm:$0xff] }
 0x697   :  { %v20528_v16 = vrot.slane %v7572_v6, %v22282_v9 }
 0x699   :  { %9749 = vmatpush1.bf16.msra.mxu0 %v15399_v55 }
 0x69a   :  { %9750 = vmatprep.subr.bf16.mxu0 %v15406_v7 }
 0x69b   :  { %9626 = vmatmul.mubr.bf16.gmra.mrb[24].mxu0 %v22269_v62  ;;  %10000 = vmatmul.mubr.bf16.gmra.mrb[24].mxu1 %v22269_v62 }
 0x69c   :  { %9635 = vmatprep.mubr.bf16.mxu0 %v22270_v23  ;;  %10007 = vmatprep.mubr.bf16.mxu1 %v22270_v23 }
 0x69d   :  { %9751 = vmatpush1.bf16.msra.mxu0 %v15404_v39 }
 0x69e   :  { %9752 = vmatprep.subr.bf16.mxu0 %v15409_v20 }
 0x6a1   :  { %9753 = vmatpush1.bf16.msra.mxu0 %v15407_v26 }
 0x6a2   :  { %9754 = vmatprep.subr.bf16.mxu0 %v15414_v58 }
 0x6a3   :  { %9636 = vmatmul.mubr.bf16.gmra.mrb[28].mxu0 %v22271_v25  ;;  %10008 = vmatmul.mubr.bf16.gmra.mrb[28].mxu1 %v22271_v25 }
 0x6a4   :  { %9645 = vmatprep.mubr.bf16.mxu0 %v22272_v28  ;;  %10015 = vmatprep.mubr.bf16.mxu1 %v22272_v28 }
 0x6a5   :  { %9755 = vmatpush1.bf16.msra.mxu0 %v15412_v37 }
 0x6a6   :  { %9756 = vmatprep.subr.bf16.mxu0 %v15417_v21 }
 0x6a9   :  { %9757 = vmatpush1.bf16.msra.mxu0 %v15415_v59 }
 0x6ab   :  { %9646 = vmatmul.mubr.bf16.gmra.mrb[32].mxu0 %v22273_v22  ;;  %10016 = vmatmul.mubr.bf16.gmra.mrb[32].mxu1 %v22273_v22 }
 0x6ac   :  { %9655 = vmatprep.mubr.bf16.mxu0 %v22274_v30  ;;  %10023 = vmatprep.mubr.bf16.mxu1 %v22274_v30 }
 0x6b3   :  { %9656 = vmatmul.mubr.bf16.gmra.mrb[36].mxu0 %v22275_v56  ;;  %10024 = vmatmul.mubr.bf16.gmra.mrb[36].mxu1 %v22275_v56 }
 0x6b4   :  { %9665 = vmatprep.mubr.bf16.mxu0 %v22276_v12  ;;  %10031 = vmatprep.mubr.bf16.mxu1 %v22276_v12 }
 0x6bb   :  { %9666 = vmatmul.mubr.bf16.gmra.mrb[40].mxu0 %v22277_v44  ;;  %10032 = vmatmul.mubr.bf16.gmra.mrb[40].mxu1 %v22277_v44 }
 0x6bc   :  { %9675 = vmatprep.mubr.bf16.mxu0 %v22280_v41  ;;  %10039 = vmatprep.mubr.bf16.mxu1 %v22280_v41 }
 0x6be   :  { %v8988_v45 = vpop.f32.mrb[192].mxu0  ;;  %v9374_v55 = vpop.f32.mrb[192].mxu1 }
 0x6bf   :  { %v13350_v7 = vadd.f32 %v8988_v45, %v20517_v60  ;;  %v13414_v39 = vadd.f32 %v9374_v55, %v20520_v48  ;;  %v8990_v20 = vpop.f32.mrb[193].mxu0  ;;  %v9376_v62 = vpop.f32.mrb[193].mxu1 }
 0x6c0   :  { %v13351_v23 = vadd.f32 %v8990_v20, %v20525_v51  ;;  %v13415_v26 = vadd.f32 %v9376_v62, %v20528_v16  ;;  %v8992_v58 = vpop.f32.mrb[194].mxu0  ;;  %v9378_v37 = vpop.f32.mrb[194].mxu1 }
 0x6c1   :  { %v12518_v21 = vmul.f32 -1.442695, %v13350_v7  ;;  %v12520_v25 = vmul.f32 -1.442695, %v13414_v39  ;;  %v13352_v28 = vadd.f32 %v8992_v58, %v20517_v60  ;;  %v13416_v59 = vadd.f32 %v9378_v37, %v20520_v48  ;;  %v8994_v22 = vpop.f32.mrb[195].mxu0  ;;  %v9380_v30 = vpop.f32.mrb[195].mxu1 }
 0x6c2   :  { %v12519_v56 = vmul.f32 -1.442695, %v13351_v23  ;;  %v12521_v12 = vmul.f32 -1.442695, %v13415_v26  ;;  %v13353_v6 = vadd.f32 %v8994_v22, %v20525_v51  ;;  %v13417_v44 = vadd.f32 %v9380_v30, %v20528_v16 }
 0x6c3   :  { %15418 = vpow2.f32 %v12518_v21  ;;  %v12525_v18 = vmul.f32 -1.442695, %v13352_v28  ;;  %9676 = vmatmul.mubr.bf16.gmra.mrb[44].mxu0 %v22283_v47  ;;  %10040 = vmatmul.mubr.bf16.gmra.mrb[44].mxu1 %v22283_v47  ;;  %v12527_v41 = vmul.f32 -1.442695, %v13416_v59 }
 0x6c4   :  { %15420 = vpow2.f32 %v12520_v25  ;;  %9685 = vmatprep.mubr.bf16.mxu0 %v22284_v46  ;;  %10047 = vmatprep.mubr.bf16.mxu1 %v22284_v46  ;;  %v12526_v9 = vmul.f32 -1.442695, %v13353_v6  ;;  %v12528_v45 = vmul.f32 -1.442695, %v13417_v44  ;;  %v22285_v44 = vld [vmem:[#allocation27_spill] sm:$0xff] }
 0x6c5   :  { %15422 = vpow2.f32 %v12519_v56 }
 0x6c6   :  { %15424 = vpow2.f32 %v12521_v12  ;;  %v8998_v55 = vpop.f32.mrb[196].mxu0  ;;  %v9384_v7 = vpop.f32.mrb[196].mxu1 }
 0x6c7   :  { %15426 = vpow2.f32 %v12525_v18  ;;  %v13354_v39 = vadd.f32 %v8998_v55, %v20517_v60  ;;  %v13418_v20 = vadd.f32 %v9384_v7, %v20520_v48  ;;  %v9000_v62 = vpop.f32.mrb[197].mxu0  ;;  %v9386_v23 = vpop.f32.mrb[197].mxu1  ;;  %v22286_v18 = vld [vmem:[#allocation33_spill] sm:$0xff] }
 0x6c8   :  { %15428 = vpow2.f32 %v12527_v41  ;;  %v13355_v26 = vadd.f32 %v9000_v62, %v20525_v51  ;;  %v13419_v58 = vadd.f32 %v9386_v23, %v20528_v16  ;;  %v9002_v37 = vpop.f32.mrb[198].mxu0  ;;  %v9388_v21 = vpop.f32.mrb[198].mxu1 }
 0x6c9   :  { %15430 = vpow2.f32 %v12526_v9  ;;  %v12532_v25 = vmul.f32 -1.442695, %v13354_v39  ;;  %v12534_v28 = vmul.f32 -1.442695, %v13418_v20  ;;  %v13356_v59 = vadd.f32 %v9002_v37, %v20517_v60  ;;  %v9004_v22 = vpop.f32.mrb[199].mxu0  ;;  %v9390_v30 = vpop.f32.mrb[199].mxu1 }
 0x6ca   :  { %15432 = vpow2.f32 %v12528_v45  ;;  %v12533_v56 = vmul.f32 -1.442695, %v13355_v26  ;;  %v12535_v12 = vmul.f32 -1.442695, %v13419_v58 }
 0x6cb   :  { %15434 = vpow2.f32 %v12532_v25  ;;  %v12539_v6 = vmul.f32 -1.442695, %v13356_v59  ;;  %9686 = vmatmul.mubr.bf16.gmra.mrb[48].mxu0 %v22285_v44  ;;  %10048 = vmatmul.mubr.bf16.gmra.mrb[48].mxu1 %v22285_v44 }
 0x6cc   :  { %15436 = vpow2.f32 %v12534_v28  ;;  %9695 = vmatprep.mubr.bf16.mxu0 %v22286_v18  ;;  %10055 = vmatprep.mubr.bf16.mxu1 %v22286_v18  ;;  %v22287_v18 = vld [vmem:[#allocation31_spill] sm:$0xff] }
 0x6cd   :  { %v15419_v47 = vpop.eup %15418  ;;  %15438 = vpow2.f32 %v12533_v56 }
 0x6ce   :  { %v15421_v41 = vpop.eup %15420  ;;  %v10913_v46 = vadd.f32 1.0, %v15419_v47  ;;  %15440 = vpow2.f32 %v12535_v12  ;;  %v9008_v9 = vpop.f32.mrb[200].mxu0 }
 0x6cf   :  { %v9394_v45 = vpop.f32.mrb[200].mxu1  ;;  %v15423_v55 = vpop.eup %15422  ;;  %v10915_v7 = vadd.f32 1.0, %v15421_v41  ;;  %15442 = vpow2.f32 %v12539_v6 }
 0x6d0   :  { %v9010_v39 = vpop.f32.mrb[201].mxu0  ;;  %v9396_v20 = vpop.f32.mrb[201].mxu1  ;;  %15444 = vrcp.f32 %v10913_v46  ;;  %v10914_v23 = vadd.f32 1.0, %v15423_v55  ;;  %v22288_v46 = vld [vmem:[#allocation36_spill] sm:$0xff] }
 0x6d1   :  { %v15425_v62 = vpop.eup %15424  ;;  %v20551_v26 = vpop.f32.mrb[202].mxu0  ;;  %15446 = vrcp.f32 %v10915_v7 }
 0x6d2   :  { %v20553_v58 = vpop.f32.mrb[202].mxu1  ;;  %v15427_v37 = vpop.eup %15426  ;;  %v10916_v25 = vadd.f32 1.0, %v15425_v62  ;;  %15448 = vrcp.f32 %v10914_v23  ;;  %v13420_v62 = vadd.f32 %v9388_v21, %v20520_v48  ;;  %v13358_v21 = vadd.f32 %v9008_v9, %v20517_v60 }
 0x6d3   :  { %v20555_v28 = vpop.f32.mrb[203].mxu0  ;;  %v15429_v59 = vpop.eup %15428  ;;  %v10920_v56 = vadd.f32 1.0, %v15427_v37  ;;  %9696 = vmatmul.mubr.bf16.gmra.mrb[52].mxu0 %v22287_v18  ;;  %10056 = vmatmul.mubr.bf16.gmra.mrb[52].mxu1 %v22287_v18  ;;  %v13359_v9 = vadd.f32 %v9010_v39, %v20525_v51 }
 0x6d4   :  { %v20557_v12 = vpop.f32.mrb[203].mxu1  ;;  %v15431_v6 = vpop.eup %15430  ;;  %15450 = vrcp.f32 %v10916_v25  ;;  %v10922_v44 = vadd.f32 1.0, %v15429_v59  ;;  %9705 = vmatprep.mubr.bf16.mxu0 %v22288_v46  ;;  %10063 = vmatprep.mubr.bf16.mxu1 %v22288_v46  ;;  %v13357_v25 = vadd.f32 %v9004_v22, %v20525_v51  ;;  %v12546_v39 = vmul.f32 -1.442695, %v13358_v21 }
 0x6d5   :  { %v15433_v47 = vpop.eup %15432  ;;  %15452 = vrcp.f32 %v10920_v56  ;;  %v10921_v41 = vadd.f32 1.0, %v15431_v6  ;;  %v13421_v6 = vadd.f32 %v9390_v30, %v20528_v16 }
 0x6d6   :  { %v15435_v55 = vpop.eup %15434  ;;  %15454 = vrcp.f32 %v10922_v44  ;;  %v10923_v7 = vadd.f32 1.0, %v15433_v47  ;;  %v20565_v59 = vpop.f32.mrb[204].mxu0 }
 0x6d7   :  { %v15437_v23 = vpop.eup %15436  ;;  %15456 = vrcp.f32 %v10921_v41  ;;  %v10927_v37 = vadd.f32 1.0, %v15435_v55  ;;  %v20568_v49 = vpop.f32.mrb[204].mxu1 }
 0x6d8   :  { %v15439_v18 = vpop.eup %15438  ;;  %15458 = vrcp.f32 %v10923_v7  ;;  %v10929_v56 = vadd.f32 1.0, %v15437_v23  ;;  %v20570_v46 = vpop.f32.mrb[205].mxu0  ;;  %v12541_v7 = vmul.f32 -1.442695, %v13420_v62  ;;  %v13422_v23 = vadd.f32 %v9394_v45, %v20520_v48 }
 0x6d9   :  { %v15441_v44 = vpop.eup %15440  ;;  %15460 = vrcp.f32 %v10927_v37  ;;  %v10928_v47 = vadd.f32 1.0, %v15439_v18  ;;  %v20573_v41 = vpop.f32.mrb[205].mxu1  ;;  %v12540_v18 = vmul.f32 -1.442695, %v13357_v25  ;;  %v12542_v62 = vmul.f32 -1.442695, %v13421_v6 }
 0x6da   :  { %v20575_v55 = vpop.f32.mrb[206].mxu0  ;;  %v15443_v22 = vpop.eup %15442  ;;  %15462 = vrcp.f32 %v10929_v56  ;;  %v10930_v24 = vadd.f32 1.0, %v15441_v44  ;;  %v13423_v45 = vadd.f32 %v9396_v20, %v20528_v16  ;;  %v13360_v25 = vadd.f32 %v20551_v26, %v20517_v60 }
 0x6db   :  { %v20578_v30 = vpop.f32.mrb[206].mxu1  ;;  %v20580_v19 = vpop.f32.mrb[207].mxu0  ;;  %15464 = vrcp.f32 %v10928_v47  ;;  %v10934_v37 = vadd.f32 1.0, %v15443_v22  ;;  %9706 = vmatmul.mubr.bf16.gmra.mrb[56].mxu0 %v20091_v14  ;;  %10064 = vmatmul.mubr.bf16.gmra.mrb[56].mxu1 %v20091_v14  ;;  %v13424_v14 = vadd.f32 %v20553_v58, %v20520_v48  ;;  %v12547_v20 = vmul.f32 -1.442695, %v13359_v9 }
 0x6dc   :  { %v15445_v27 = vpop.eup %15444  ;;  %v20583_v10 = vpop.f32.mrb[207].mxu1  ;;  %15466 = vrcp.f32 %v10930_v24  ;;  %9715 = vmatprep.mubr.bf16.mxu0 %v20115_v50  ;;  %10071 = vmatprep.mubr.bf16.mxu1 %v20115_v50  ;;  %v12548_v24 = vmul.f32 -1.442695, %v13422_v23  ;;  %v13361_v50 = vadd.f32 %v20555_v28, %v20525_v51  ;;  %v12549_v58 = vmul.f32 -1.442695, %v13423_v45 }
 0x6dd   :  { %v15447_v34 = vpop.eup %15446  ;;  %11585 = vst [vmem:[%s22163_s10] sm:$0xff] %v15445_v27  ;;  %15468 = vrcp.f32 %v10934_v37  ;;  %v13425_v47 = vadd.f32 %v20557_v12, %v20528_v16  ;;  %v12553_v28 = vmul.f32 -1.442695, %v13360_v25  ;;  %v13362_v23 = vadd.f32 %v20565_v59, %v20517_v60 }
 0x6de   :  { %v15449_v56 = vpop.eup %15448  ;;  %11587 = vst [vmem:[%s22163_s10 + $0x10] sm:$0xff] %v15447_v34  ;;  %15470 = vpow2.f32 %v12541_v7  ;;  %v20608_v26 = vpop.f32.mrb[208].mxu0  ;;  %v12555_v12 = vmul.f32 -1.442695, %v13424_v14  ;;  %v12554_v59 = vmul.f32 -1.442695, %v13361_v50 }
 0x6df   :  { %v15451_v27 = vpop.eup %15450  ;;  %11586 = vst [vmem:[%s22163_s10 + $0x8] sm:$0xff] %v15449_v56  ;;  %15472 = vpow2.f32 %v12540_v18  ;;  %v20610_v6 = vpop.f32.mrb[208].mxu1 }
 0x6e0   :  { %v15453_v34 = vpop.eup %15452  ;;  %11588 = vst [vmem:[%s22163_s10 + $0x18] sm:$0xff] %v15451_v27  ;;  %15474 = vpow2.f32 %v12542_v62  ;;  %v20617_v21 = vpop.f32.mrb[209].mxu0  ;;  %v13426_v62 = vadd.f32 %v20568_v49, %v20520_v48  ;;  %v12556_v27 = vmul.f32 -1.442695, %v13425_v47 }
 0x6e1   :  { %v15455_v44 = vpop.eup %15454  ;;  %11592 = vst [vmem:[%s22163_s10 + $0x38] sm:$0xff] %v15453_v34  ;;  %v20619_v22 = vpop.f32.mrb[209].mxu1  ;;  %15476 = vpow2.f32 %v12546_v39 }
 0x6e2   :  { %v15457_v7 = vpop.eup %15456  ;;  %11594 = vst [vmem:[%s22163_s10 + $0x48] sm:$0xff] %v15455_v44  ;;  %v20626_v37 = vpop.f32.mrb[210].mxu0  ;;  %15478 = vpow2.f32 %v12548_v24  ;;  %v12560_v24 = vmul.f32 -1.442695, %v13362_v23  ;;  %v12562_v34 = vmul.f32 -1.442695, %v13426_v62 }
 0x6e3   :  { %v20628_v18 = vpop.f32.mrb[210].mxu1  ;;  %v15459_v9 = vpop.eup %15458  ;;  %11593 = vst [vmem:[%s22163_s10 + $0x40] sm:$0xff] %v15457_v7  ;;  %15480 = vpow2.f32 %v12547_v20  ;;  %9716 = vmatmul.mubr.bf16.gmra.mrb[60].mxu0 %v20111_v1  ;;  %10072 = vmatmul.mubr.bf16.gmra.mrb[60].mxu1 %v20111_v1 }
 0x6e4   :  { %v20635_v45 = vpop.f32.mrb[211].mxu0  ;;  %v20637_v56 = vpop.f32.mrb[211].mxu1  ;;  %11595 = vst [vmem:[%s22163_s10 + $0x50] sm:$0xff] %v15459_v9  ;;  %15482 = vpow2.f32 %v12549_v58  ;;  %9758 = vmatprep.mubr.bf16.mxu0 %v19625_v52  ;;  %10112 = vmatprep.mubr.bf16.mxu1 %v19625_v52 }
 0x6e5   :  { %v15461_v39 = vpop.eup %15460  ;;  %15484 = vpow2.f32 %v12553_v28 }
 0x6e6   :  { %v15463_v25 = vpop.eup %15462  ;;  %11599 = vst [vmem:[%s22163_s10 + $0x70] sm:$0xff] %v15461_v39  ;;  %15486 = vpow2.f32 %v12555_v12  ;;  %v20658_v1 = vpop.f32.mrb[212].mxu0 }
 0x6e7   :  { %v15465_v49 = vpop.eup %15464  ;;  %11601 = vst [vmem:[%s22163_s10 + $0x80] sm:$0xff] %v15463_v25  ;;  %15488 = vpow2.f32 %v12554_v59  ;;  %v20660_v50 = vpop.f32.mrb[212].mxu1 }
 0x6e8   :  { %v15467_v14 = vpop.eup %15466  ;;  %11600 = vst [vmem:[%s22163_s10 + $0x78] sm:$0xff] %v15465_v49  ;;  %15490 = vpow2.f32 %v12556_v27  ;;  %v20665_v52 = vpop.f32.mrb[213].mxu0 }
 0x6e9   :  { %v15469_v20 = vpop.eup %15468  ;;  %11602 = vst [vmem:[%s22163_s10 + $0x88] sm:$0xff] %v15467_v14  ;;  %v20667_v58 = vpop.f32.mrb[213].mxu1  ;;  %15492 = vpow2.f32 %v12560_v24 }
 0x6ea   :  { %v15471_v44 = vpop.eup %15470  ;;  %11606 = vst [vmem:[%s22163_s10 + $0xa8] sm:$0xff] %v15469_v20  ;;  %v20669_v28 = vpop.f32.mrb[214].mxu0  ;;  %15494 = vpow2.f32 %v12562_v34 }
 0x6eb   :  { %v15473_v47 = vpop.eup %15472  ;;  %v10936_v7 = vadd.f32 1.0, %v15471_v44  ;;  %v20671_v23 = vpop.f32.mrb[214].mxu1  ;;  %9759 = vmatmul.mubr.bf16.vlgmr.msra.gmra.mrb[0].mxu0 %v19621_v61  ;;  %10113 = vmatmul.mubr.bf16.vlgmr.msra.gmra.mrb[64].mxu1 %v19621_v61  ;;  %v13363_v61 = vadd.f32 %v20570_v46, %v20525_v51  ;;  %v13364_v46 = vadd.f32 %v20575_v55, %v20517_v60 }
 0x6ec   :  { %v15475_v9 = vpop.eup %15474  ;;  %v10935_v12 = vadd.f32 1.0, %v15473_v47  ;;  %v20673_v62 = vpop.f32.mrb[215].mxu0  ;;  %9768 = vmatprep.mubr.bf16.mxu0 %v19669_v38  ;;  %10120 = vmatprep.mubr.bf16.mxu1 %v19669_v38 }
 0x6ed   :  { %v15477_v39 = vpop.eup %15476  ;;  %15496 = vrcp.f32 %v10936_v7  ;;  %v10937_v59 = vadd.f32 1.0, %v15475_v9  ;;  %v20675_v25 = vpop.f32.mrb[215].mxu1 }
 0x6ee   :  { %v15479_v27 = vpop.eup %15478  ;;  %15498 = vrcp.f32 %v10935_v12  ;;  %v10941_v49 = vadd.f32 1.0, %v15477_v39  ;;  %v20681_v7 = vpop.f32.mrb[216].mxu0 }
 0x6ef   :  { %v15481_v24 = vpop.eup %15480  ;;  %15500 = vrcp.f32 %v10937_v59  ;;  %v10943_v14 = vadd.f32 1.0, %v15479_v27  ;;  %v20685_v39 = vpop.f32.mrb[216].mxu1 }
 0x6f0   :  { %v15483_v34 = vpop.eup %15482  ;;  %15502 = vrcp.f32 %v10941_v49  ;;  %v10942_v20 = vadd.f32 1.0, %v15481_v24  ;;  %v20687_v59 = vpop.f32.mrb[217].mxu0  ;;  %v13427_v49 = vadd.f32 %v20573_v41, %v20528_v16  ;;  %v13428_v41 = vadd.f32 %v20578_v30, %v20520_v48 }
 0x6f1   :  { %v15485_v44 = vpop.eup %15484  ;;  %15504 = vrcp.f32 %v10943_v14  ;;  %v10944_v47 = vadd.f32 1.0, %v15483_v34  ;;  %v20691_v24 = vpop.f32.mrb[217].mxu1  ;;  %v13429_v30 = vadd.f32 %v20583_v10, %v20528_v16 }
 0x6f2   :  { %v15487_v9 = vpop.eup %15486  ;;  %15506 = vrcp.f32 %v10942_v20  ;;  %v10948_v12 = vadd.f32 1.0, %v15485_v44  ;;  %v20693_v14 = vpop.f32.mrb[218].mxu0 }
 0x6f3   :  { %v15489_v27 = vpop.eup %15488  ;;  %15508 = vrcp.f32 %v10944_v47  ;;  %v10950_v38 = vadd.f32 1.0, %v15487_v9  ;;  %v20697_v44 = vpop.f32.mrb[218].mxu1  ;;  %9769 = vmatmul.mubr.bf16.gmra.mrb[4].mxu0 %v19665_v11  ;;  %10121 = vmatmul.mubr.bf16.gmra.mrb[68].mxu1 %v19665_v11  ;;  %v13366_v11 = vadd.f32 %v20608_v26, %v20517_v60  ;;  %v13367_v26 = vadd.f32 %v20617_v21, %v20525_v51 }
 0x6f4   :  { %v15491_v34 = vpop.eup %15490  ;;  %15510 = vrcp.f32 %v10948_v12  ;;  %v10949_v20 = vadd.f32 1.0, %v15489_v27  ;;  %v20699_v5 = vpop.f32.mrb[219].mxu0  ;;  %v12561_v12 = vmul.f32 -1.442695, %v13363_v61  ;;  %v13365_v27 = vadd.f32 %v20580_v19, %v20525_v51  ;;  %9778 = vmatprep.mubr.bf16.mxu0 %v19713_v35  ;;  %10128 = vmatprep.mubr.bf16.mxu1 %v19713_v35 }
 0x6f5   :  { %v15493_v33 = vpop.eup %15492  ;;  %15512 = vrcp.f32 %v10950_v38  ;;  %v10951_v47 = vadd.f32 1.0, %v15491_v34  ;;  %v20703_v9 = vpop.f32.mrb[219].mxu1  ;;  %v12563_v34 = vmul.f32 -1.442695, %v13427_v49  ;;  %v12567_v19 = vmul.f32 -1.442695, %v13364_v46 }
 0x6f6   :  { %v15495_v17 = vpop.eup %15494  ;;  %15514 = vrcp.f32 %v10949_v20  ;;  %v10955_v31 = vadd.f32 1.0, %v15493_v33  ;;  %v13430_v35 = vadd.f32 %v20610_v6, %v20520_v48  ;;  %v20723_v10 = vpop.f32.mrb[220].mxu0  ;;  %v12570_v6 = vmul.f32 -1.442695, %v13429_v30 }
 0x6f7   :  { %v15497_v55 = vpop.eup %15496  ;;  %15516 = vrcp.f32 %v10951_v47  ;;  %v10957_v38 = vadd.f32 1.0, %v15495_v17  ;;  %v12569_v17 = vmul.f32 -1.442695, %v13428_v41  ;;  %v20725_v49 = vpop.f32.mrb[220].mxu1  ;;  %v12574_v21 = vmul.f32 -1.442695, %v13366_v11 }
 0x6f8   :  { %v15499_v33 = vpop.eup %15498  ;;  %11608 = vst [vmem:[%s22163_s10 + $0xb8] sm:$0xff] %v15497_v55  ;;  %15518 = vrcp.f32 %v10955_v31  ;;  %v12568_v31 = vmul.f32 -1.442695, %v13365_v27  ;;  %v20732_v46 = vpop.f32.mrb[221].mxu0  ;;  %v13431_v55 = vadd.f32 %v20619_v22, %v20528_v16  ;;  %v12576_v22 = vmul.f32 -1.442695, %v13430_v35 }
 0x6f9   :  { %v15501_v61 = vpop.eup %15500  ;;  %11607 = vst [vmem:[%s22163_s10 + $0xb0] sm:$0xff] %v15499_v33  ;;  %15520 = vrcp.f32 %v10957_v38  ;;  %v20734_v47 = vpop.f32.mrb[221].mxu1  ;;  %v13368_v33 = vadd.f32 %v20626_v37, %v20517_v60  ;;  %v12575_v37 = vmul.f32 -1.442695, %v13367_v26 }
 0x6fa   :  { %v15503_v20 = vpop.eup %15502  ;;  %11609 = vst [vmem:[%s22163_s10 + $0xc0] sm:$0xff] %v15501_v61  ;;  %15522 = vpow2.f32 %v12561_v12  ;;  %v20741_v38 = vpop.f32.mrb[222].mxu0 }
 0x6fb   :  { %v15505_v41 = vpop.eup %15504  ;;  %11613 = vst [vmem:[%s22163_s10 + $0xe0] sm:$0xff] %v15503_v20  ;;  %15524 = vpow2.f32 %v12563_v34  ;;  %v20743_v12 = vpop.f32.mrb[222].mxu1  ;;  %v13432_v20 = vadd.f32 %v20628_v18, %v20520_v48  ;;  %9779 = vmatmul.mubr.bf16.gmra.mrb[8].mxu0 %v19709_v13  ;;  %10129 = vmatmul.mubr.bf16.gmra.mrb[72].mxu1 %v19709_v13  ;;  %v12577_v18 = vmul.f32 -1.442695, %v13431_v55 }
 0x6fc   :  { %v15507_v27 = vpop.eup %15506  ;;  %11615 = vst [vmem:[%s22163_s10 + $0xf0] sm:$0xff] %v15505_v41  ;;  %15526 = vpow2.f32 %v12567_v19  ;;  %v20750_v61 = vpop.f32.mrb[223].mxu0  ;;  %v13369_v19 = vadd.f32 %v20635_v45, %v20525_v51  ;;  %9788 = vmatprep.mubr.bf16.mxu0 %v19757_v53  ;;  %10136 = vmatprep.mubr.bf16.mxu1 %v19757_v53  ;;  %v12581_v45 = vmul.f32 -1.442695, %v13368_v33 }
 0x6fd   :  { %v20752_v34 = vpop.f32.mrb[223].mxu1  ;;  %v15509_v30 = vpop.eup %15508  ;;  %11614 = vst [vmem:[%s22163_s10 + $0xe8] sm:$0xff] %v15507_v27  ;;  %15528 = vpow2.f32 %v12569_v17  ;;  %v12583_v13 = vmul.f32 -1.442695, %v13432_v20 }
 0x6fe   :  { %v15511_v41 = vpop.eup %15510  ;;  %11616 = vst [vmem:[%s22163_s10 + $0xf8] sm:$0xff] %v15509_v30  ;;  %15530 = vpow2.f32 %v12568_v31  ;;  %v20777_v31 = vpop.f32.mrb[224].mxu0  ;;  %v12582_v53 = vmul.f32 -1.442695, %v13369_v19 }
 0x6ff   :  { %v15513_v11 = vpop.eup %15512  ;;  %11620 = vst [vmem:[%s22163_s10 + $0x118] sm:$0xff] %v15511_v41  ;;  %15532 = vpow2.f32 %v12570_v6  ;;  %v20779_v26 = vpop.f32.mrb[224].mxu1 }
 0x700   :  { %v15515_v17 = vpop.eup %15514  ;;  %11622 = vst [vmem:[%s22163_s10 + $0x128] sm:$0xff] %v15513_v11  ;;  %15534 = vpow2.f32 %v12574_v21  ;;  %v20784_v55 = vpop.f32.mrb[225].mxu0 }
 0x701   :  { %v15517_v35 = vpop.eup %15516  ;;  %11621 = vst [vmem:[%s22163_s10 + $0x120] sm:$0xff] %v15515_v17  ;;  %15536 = vpow2.f32 %v12576_v22  ;;  %v20786_v27 = vpop.f32.mrb[225].mxu1 }
 0x702   :  { %v15519_v6 = vpop.eup %15518  ;;  %11623 = vst [vmem:[%s22163_s10 + $0x130] sm:$0xff] %v15517_v35  ;;  %15538 = vpow2.f32 %v12575_v37  ;;  %v20791_v33 = vpop.f32.mrb[226].mxu0 }
 0x703   :  { %v15521_v21 = vpop.eup %15520  ;;  %11627 = vst [vmem:[%s22163_s10 + $0x150] sm:$0xff] %v15519_v6  ;;  %15540 = vpow2.f32 %v12577_v18  ;;  %v20793_v30 = vpop.f32.mrb[226].mxu1  ;;  %9789 = vmatmul.mubr.bf16.gmra.mrb[12].mxu0 %v19753_v29  ;;  %10137 = vmatmul.mubr.bf16.gmra.mrb[76].mxu1 %v19753_v29 }
 0x704   :  { %v15523_v22 = vpop.eup %15522  ;;  %11629 = vst [vmem:[%s22163_s10 + $0x160] sm:$0xff] %v15521_v21  ;;  %15542 = vpow2.f32 %v12581_v45  ;;  %v20798_v20 = vpop.f32.mrb[227].mxu0  ;;  %9798 = vmatprep.mubr.bf16.mxu0 %v19801_v36  ;;  %10144 = vmatprep.mubr.bf16.mxu1 %v19801_v36 }
 0x705   :  { %22289 = vst [vmem:[#allocation10_spill] sm:$0xff] %v20798_v20  ;;  %v20800_v41 = vpop.f32.mrb[227].mxu1  ;;  %v15525_v37 = vpop.eup %15524  ;;  %v10956_v19 = vadd.f32 1.0, %v15523_v22  ;;  %15544 = vpow2.f32 %v12583_v13 }
 0x706   :  { %22290 = vst [vmem:[#allocation12_spill] sm:$0xff] %v20800_v41  ;;  %v15527_v11 = vpop.eup %15526  ;;  %v10958_v17 = vadd.f32 1.0, %v15525_v37  ;;  %15546 = vpow2.f32 %v12582_v53  ;;  %v20806_v22 = vpop.f32.mrb[228].mxu0 }
 0x707   :  { %v15529_v18 = vpop.eup %15528  ;;  %15548 = vrcp.f32 %v10956_v19  ;;  %v10962_v35 = vadd.f32 1.0, %v15527_v11  ;;  %v20808_v41 = vpop.f32.mrb[228].mxu1 }
 0x708   :  { %v15531_v45 = vpop.eup %15530  ;;  %15550 = vrcp.f32 %v10958_v17  ;;  %v10964_v6 = vadd.f32 1.0, %v15529_v18  ;;  %v20810_v29 = vpop.f32.mrb[229].mxu0 }
 0x709   :  { %v15533_v21 = vpop.eup %15532  ;;  %15552 = vrcp.f32 %v10962_v35  ;;  %v10963_v13 = vadd.f32 1.0, %v15531_v45  ;;  %22291 = vst [vmem:[#allocation11_spill] sm:$0xff] %v20810_v29  ;;  %v20812_v20 = vpop.f32.mrb[229].mxu1  ;;  %v13433_v35 = vadd.f32 %v20637_v56, %v20528_v16 }
 0x70a   :  { %v15535_v53 = vpop.eup %15534  ;;  %15554 = vrcp.f32 %v10964_v6  ;;  %v10965_v37 = vadd.f32 1.0, %v15533_v21  ;;  %22292 = vst [vmem:[#allocation14_spill] sm:$0xff] %v20812_v20  ;;  %v20814_v36 = vpop.f32.mrb[230].mxu0 }
 0x70b   :  { %v15537_v19 = vpop.eup %15536  ;;  %15556 = vrcp.f32 %v10963_v13  ;;  %v10969_v11 = vadd.f32 1.0, %v15535_v53  ;;  %22293 = vst [vmem:[#allocation13_spill] sm:$0xff] %v20814_v36  ;;  %v20818_v45 = vpop.f32.mrb[230].mxu1  ;;  %v13370_v13 = vadd.f32 %v20658_v1, %v20517_v60  ;;  %9799 = vmatmul.mubr.bf16.gmra.mrb[16].mxu0 %v19797_v32  ;;  %10145 = vmatmul.mubr.bf16.gmra.mrb[80].mxu1 %v19797_v32 }
 0x70c   :  { %v15539_v17 = vpop.eup %15538  ;;  %15558 = vrcp.f32 %v10965_v37  ;;  %v10971_v18 = vadd.f32 1.0, %v15537_v19  ;;  %v20820_v6 = vpop.f32.mrb[231].mxu0  ;;  %v13434_v37 = vadd.f32 %v20660_v50, %v20520_v48  ;;  %9808 = vmatprep.mubr.bf16.mxu0 %v19845_v43  ;;  %10152 = vmatprep.mubr.bf16.mxu1 %v19845_v43  ;;  %v13435_v50 = vadd.f32 %v20667_v58, %v20528_v16 }
 0x70d   :  { %v15541_v21 = vpop.eup %15540  ;;  %15560 = vrcp.f32 %v10969_v11  ;;  %v10970_v29 = vadd.f32 1.0, %v15539_v17  ;;  %v20824_v53 = vpop.f32.mrb[231].mxu1  ;;  %v13371_v11 = vadd.f32 %v20665_v52, %v20525_v51 }
 0x70e   :  { %22294 = vst [vmem:[#allocation16_spill] sm:$0xff] %v20824_v53  ;;  %v15543_v20 = vpop.eup %15542  ;;  %15562 = vrcp.f32 %v10971_v18  ;;  %v10972_v36 = vadd.f32 1.0, %v15541_v21  ;;  %v12584_v18 = vmul.f32 -1.442695, %v13433_v35  ;;  %v12588_v53 = vmul.f32 -1.442695, %v13370_v13 }
 0x70f   :  { %v15545_v56 = vpop.eup %15544  ;;  %15564 = vrcp.f32 %v10970_v29  ;;  %v10976_v19 = vadd.f32 1.0, %v15543_v20  ;;  %v13372_v20 = vadd.f32 %v20669_v28, %v20517_v60  ;;  %v20838_v29 = vpop.f32.mrb[232].mxu0  ;;  %v12590_v43 = vmul.f32 -1.442695, %v13434_v37 }
 0x710   :  { %v15547_v1 = vpop.eup %15546  ;;  %15566 = vrcp.f32 %v10972_v36  ;;  %v10978_v17 = vadd.f32 1.0, %v15545_v56  ;;  %v13436_v36 = vadd.f32 %v20671_v23, %v20520_v48  ;;  %v20845_v58 = vpop.f32.mrb[232].mxu1  ;;  %v12589_v28 = vmul.f32 -1.442695, %v13371_v11 }
 0x711   :  { %v15549_v21 = vpop.eup %15548  ;;  %15568 = vrcp.f32 %v10976_v19  ;;  %v10977_v32 = vadd.f32 1.0, %v15547_v1  ;;  %v20847_v35 = vpop.f32.mrb[233].mxu0  ;;  %v13373_v56 = vadd.f32 %v20673_v62, %v20525_v51  ;;  %v12591_v23 = vmul.f32 -1.442695, %v13435_v50 }
 0x712   :  { %v15551_v52 = vpop.eup %15550  ;;  %11628 = vst [vmem:[%s22163_s10 + $0x158] sm:$0xff] %v15549_v21  ;;  %15570 = vrcp.f32 %v10978_v17  ;;  %v20854_v19 = vpop.f32.mrb[233].mxu1  ;;  %v13437_v17 = vadd.f32 %v20675_v25, %v20528_v16  ;;  %v12595_v62 = vmul.f32 -1.442695, %v13372_v20  ;;  %v12597_v25 = vmul.f32 -1.442695, %v13436_v36 }
 0x713   :  { %v15553_v13 = vpop.eup %15552  ;;  %11630 = vst [vmem:[%s22163_s10 + $0x168] sm:$0xff] %v15551_v52  ;;  %15572 = vrcp.f32 %v10977_v32  ;;  %v20856_v37 = vpop.f32.mrb[234].mxu0  ;;  %v13374_v52 = vadd.f32 %v20681_v7, %v20517_v60  ;;  %v13438_v50 = vadd.f32 %v20685_v39, %v20520_v48  ;;  %9809 = vmatmul.mubr.bf16.gmra.mrb[20].mxu0 %v19841_v4  ;;  %10153 = vmatmul.mubr.bf16.gmra.mrb[84].mxu1 %v19841_v4  ;;  %v12596_v7 = vmul.f32 -1.442695, %v13373_v56 }
 0x714   :  { %v15555_v1 = vpop.eup %15554  ;;  %11634 = vst [vmem:[%s22163_s10 + $0x188] sm:$0xff] %v15553_v13  ;;  %15574 = vpow2.f32 %v12584_v18  ;;  %v20863_v21 = vpop.f32.mrb[234].mxu1  ;;  %v13375_v20 = vadd.f32 %v20687_v59, %v20525_v51  ;;  %9818 = vmatprep.mubr.bf16.mxu0 %v19889_v8  ;;  %10160 = vmatprep.mubr.bf16.mxu1 %v19889_v8  ;;  %v12598_v4 = vmul.f32 -1.442695, %v13437_v17  ;;  %v13439_v39 = vadd.f32 %v20691_v24, %v20528_v16 }
 0x715   :  { %v20865_v11 = vpop.f32.mrb[235].mxu0  ;;  %v15557_v32 = vpop.eup %15556  ;;  %11636 = vst [vmem:[%s22163_s10 + $0x198] sm:$0xff] %v15555_v1  ;;  %15576 = vpow2.f32 %v12588_v53  ;;  %v12602_v59 = vmul.f32 -1.442695, %v13374_v52  ;;  %v12604_v1 = vmul.f32 -1.442695, %v13438_v50 }
 0x716   :  { %v20872_v13 = vpop.f32.mrb[235].mxu1  ;;  %v15559_v18 = vpop.eup %15558  ;;  %11635 = vst [vmem:[%s22163_s10 + $0x190] sm:$0xff] %v15557_v32  ;;  %15578 = vpow2.f32 %v12590_v43  ;;  %v12603_v32 = vmul.f32 -1.442695, %v13375_v20 }
 0x717   :  { %v15561_v53 = vpop.eup %15560  ;;  %11637 = vst [vmem:[%s22163_s10 + $0x1a0] sm:$0xff] %v15559_v18  ;;  %15580 = vpow2.f32 %v12589_v28  ;;  %v20896_v28 = vpop.f32.mrb[236].mxu0 }
 0x718   :  { %v15563_v43 = vpop.eup %15562  ;;  %11641 = vst [vmem:[%s22163_s10 + $0x1c0] sm:$0xff] %v15561_v53  ;;  %15582 = vpow2.f32 %v12591_v23  ;;  %v20898_v8 = vpop.f32.mrb[236].mxu1 }
 0x719   :  { %v15565_v36 = vpop.eup %15564  ;;  %11643 = vst [vmem:[%s22163_s10 + $0x1d0] sm:$0xff] %v15563_v43  ;;  %15584 = vpow2.f32 %v12595_v62  ;;  %v20903_v23 = vpop.f32.mrb[237].mxu0 }
 0x71a   :  { %v15567_v56 = vpop.eup %15566  ;;  %11642 = vst [vmem:[%s22163_s10 + $0x1c8] sm:$0xff] %v15565_v36  ;;  %15586 = vpow2.f32 %v12597_v25  ;;  %v20905_v24 = vpop.f32.mrb[237].mxu1  ;;  %v12605_v25 = vmul.f32 -1.442695, %v13439_v39 }
 0x71b   :  { %v15569_v17 = vpop.eup %15568  ;;  %11644 = vst [vmem:[%s22163_s10 + $0x1d8] sm:$0xff] %v15567_v56  ;;  %15588 = vpow2.f32 %v12596_v7  ;;  %v20910_v62 = vpop.f32.mrb[238].mxu0  ;;  %9819 = vmatmul.mubr.bf16.gmra.mrb[24].mxu0 %v19885_v63  ;;  %10161 = vmatmul.mubr.bf16.gmra.mrb[88].mxu1 %v19885_v63 }
 0x71c   :  { %v20912_v52 = vpop.f32.mrb[238].mxu1  ;;  %v15571_v18 = vpop.eup %15570  ;;  %11648 = vst [vmem:[%s22163_s10 + $0x1f8] sm:$0xff] %v15569_v17  ;;  %15590 = vpow2.f32 %v12598_v4  ;;  %9828 = vmatprep.mubr.bf16.mxu0 %v19933_v40  ;;  %10168 = vmatprep.mubr.bf16.mxu1 %v19933_v40 }
 0x71d   :  { %v20917_v50 = vpop.f32.mrb[239].mxu0  ;;  %v20919_v53 = vpop.f32.mrb[239].mxu1  ;;  %11650 = vst [vmem:[%s22163_s10 + $0x208] sm:$0xff] %v15571_v18  ;;  %15592 = vpow2.f32 %v12602_v59 }
 0x71e   :  { %22295 = vst [vmem:[#allocation15_spill] sm:$0xff] %v20919_v53  ;;  %v15573_v43 = vpop.eup %15572  ;;  %15594 = vpow2.f32 %v12604_v1  ;;  %v20931_v17 = vpop.f32.mrb[240].mxu0 }
 0x71f   :  { %v15575_v7 = vpop.eup %15574  ;;  %11649 = vst [vmem:[%s22163_s10 + $0x200] sm:$0xff] %v15573_v43  ;;  %15596 = vpow2.f32 %v12603_v32  ;;  %v20933_v1 = vpop.f32.mrb[240].mxu1 }
 0x720   :  { %v15577_v20 = vpop.eup %15576  ;;  %v10979_v4 = vadd.f32 1.0, %v15575_v7  ;;  %15598 = vpow2.f32 %v12605_v25  ;;  %22296 = vst [vmem:[#allocation18_spill] sm:$0xff] %v20933_v1  ;;  %v20935_v43 = vpop.f32.mrb[241].mxu0 }
 0x721   :  { %v15579_v39 = vpop.eup %15578  ;;  %v10983_v36 = vadd.f32 1.0, %v15577_v20  ;;  %22297 = vst [vmem:[#allocation17_spill] sm:$0xff] %v20935_v43  ;;  %v20937_v32 = vpop.f32.mrb[241].mxu1 }
 0x722   :  { %v15581_v59 = vpop.eup %15580  ;;  %15600 = vrcp.f32 %v10979_v4  ;;  %v10985_v56 = vadd.f32 1.0, %v15579_v39  ;;  %22298 = vst [vmem:[#allocation20_spill] sm:$0xff] %v20937_v32  ;;  %v20939_v53 = vpop.f32.mrb[242].mxu0 }
 0x723   :  { %v15583_v18 = vpop.eup %15582  ;;  %15602 = vrcp.f32 %v10983_v36  ;;  %v10984_v63 = vadd.f32 1.0, %v15581_v59  ;;  %v20941_v25 = vpop.f32.mrb[242].mxu1  ;;  %9829 = vmatmul.mubr.bf16.gmra.mrb[28].mxu0 %v19929_v3  ;;  %10169 = vmatmul.mubr.bf16.gmra.mrb[92].mxu1 %v19929_v3  ;;  %v13441_v3 = vadd.f32 %v20703_v9, %v20528_v16  ;;  %v13442_v9 = vadd.f32 %v20725_v49, %v20520_v48 }
 0x724   :  { %v15585_v7 = vpop.eup %15584  ;;  %15604 = vrcp.f32 %v10985_v56  ;;  %v10986_v40 = vadd.f32 1.0, %v15583_v18  ;;  %v20943_v39 = vpop.f32.mrb[243].mxu0  ;;  %v13376_v56 = vadd.f32 %v20693_v14, %v20517_v60  ;;  %9838 = vmatprep.mubr.bf16.mxu0 %v19977_v15  ;;  %10176 = vmatprep.mubr.bf16.mxu1 %v19977_v15  ;;  %v13377_v14 = vadd.f32 %v20699_v5, %v20525_v51 }
 0x725   :  { %v15587_v20 = vpop.eup %15586  ;;  %15606 = vrcp.f32 %v10984_v63  ;;  %v10990_v4 = vadd.f32 1.0, %v15585_v7  ;;  %22299 = vst [vmem:[#allocation19_spill] sm:$0xff] %v20943_v39  ;;  %v20945_v59 = vpop.f32.mrb[243].mxu1  ;;  %v13440_v7 = vadd.f32 %v20697_v44, %v20520_v48  ;;  %v13378_v15 = vadd.f32 %v20723_v10, %v20517_v60 }
 0x726   :  { %v15589_v1 = vpop.eup %15588  ;;  %15608 = vrcp.f32 %v10986_v40  ;;  %v10992_v36 = vadd.f32 1.0, %v15587_v20  ;;  %22300 = vst [vmem:[#allocation22_spill] sm:$0xff] %v20945_v59  ;;  %v12609_v59 = vmul.f32 -1.442695, %v13376_v56  ;;  %v12610_v10 = vmul.f32 -1.442695, %v13377_v14 }
 0x727   :  { %v15591_v43 = vpop.eup %15590  ;;  %15610 = vrcp.f32 %v10990_v4  ;;  %v10991_v32 = vadd.f32 1.0, %v15589_v1  ;;  %v13379_v56 = vadd.f32 %v20732_v46, %v20525_v51  ;;  %v12612_v49 = vmul.f32 -1.442695, %v13441_v3 }
 0x728   :  { %v15593_v18 = vpop.eup %15592  ;;  %15612 = vrcp.f32 %v10992_v36  ;;  %v10993_v63 = vadd.f32 1.0, %v15591_v43  ;;  %v20959_v43 = vpop.f32.mrb[244].mxu0  ;;  %v12616_v46 = vmul.f32 -1.442695, %v13378_v15 }
 0x729   :  { %v15595_v40 = vpop.eup %15594  ;;  %15614 = vrcp.f32 %v10991_v32  ;;  %v10997_v1 = vadd.f32 1.0, %v15593_v18  ;;  %22301 = vst [vmem:[#allocation21_spill] sm:$0xff] %v20959_v43  ;;  %v20963_v32 = vpop.f32.mrb[244].mxu1 }
 0x72a   :  { %v15597_v20 = vpop.eup %15596  ;;  %15616 = vrcp.f32 %v10993_v63  ;;  %v10999_v4 = vadd.f32 1.0, %v15595_v40  ;;  %v20965_v18 = vpop.f32.mrb[245].mxu0  ;;  %v12611_v40 = vmul.f32 -1.442695, %v13440_v7 }
 0x72b   :  { %v15599_v36 = vpop.eup %15598  ;;  %15618 = vrcp.f32 %v10997_v1  ;;  %v10998_v44 = vadd.f32 1.0, %v15597_v20  ;;  %v20969_v39 = vpop.f32.mrb[245].mxu1  ;;  %9839 = vmatmul.mubr.bf16.gmra.mrb[32].mxu0 %v19973_v54  ;;  %10177 = vmatmul.mubr.bf16.gmra.mrb[96].mxu1 %v19973_v54  ;;  %v12617_v54 = vmul.f32 -1.442695, %v13379_v56 }
 0x72c   :  { %v15601_v5 = vpop.eup %15600  ;;  %15620 = vrcp.f32 %v10999_v4  ;;  %v11000_v63 = vadd.f32 1.0, %v15599_v36  ;;  %v20971_v43 = vpop.f32.mrb[246].mxu0  ;;  %v13443_v36 = vadd.f32 %v20734_v47, %v20528_v16  ;;  %v12618_v47 = vmul.f32 -1.442695, %v13442_v9  ;;  %9848 = vmatprep.mubr.bf16.mxu0 %v19997_v57  ;;  %10184 = vmatprep.mubr.bf16.mxu1 %v19997_v57 }
 0x72d   :  { %v15603_v1 = vpop.eup %15602  ;;  %11651 = vst [vmem:[%s22163_s10 + $0x210] sm:$0xff] %v15601_v5  ;;  %15622 = vrcp.f32 %v10998_v44  ;;  %v20978_v20 = vpop.f32.mrb[246].mxu1  ;;  %v13380_v44 = vadd.f32 %v20741_v38, %v20517_v60  ;;  %v13381_v38 = vadd.f32 %v20750_v61, %v20525_v51  ;;  %v13445_v57 = vadd.f32 %v20752_v34, %v20528_v16 }
 0x72e   :  { %v20980_v7 = vpop.f32.mrb[247].mxu0  ;;  %v15605_v4 = vpop.eup %15604  ;;  %11655 = vst [vmem:[%s22163_s10 + $0x230] sm:$0xff] %v15603_v1  ;;  %15624 = vrcp.f32 %v11000_v63  ;;  %v13444_v63 = vadd.f32 %v20743_v12, %v20520_v48  ;;  %v12619_v12 = vmul.f32 -1.442695, %v13443_v36 }
 0x72f   :  { %v20987_v5 = vpop.f32.mrb[247].mxu1  ;;  %v15607_v14 = vpop.eup %15606  ;;  %11657 = vst [vmem:[%s22163_s10 + $0x240] sm:$0xff] %v15605_v4  ;;  %15626 = vpow2.f32 %v12609_v59  ;;  %v12623_v61 = vmul.f32 -1.442695, %v13380_v44 }
 0x730   :  { %v15609_v3 = vpop.eup %15608  ;;  %11656 = vst [vmem:[%s22163_s10 + $0x238] sm:$0xff] %v15607_v14  ;;  %15628 = vpow2.f32 %v12611_v40  ;;  %v21013_v40 = vpop.f32.mrb[248].mxu0  ;;  %v12625_v34 = vmul.f32 -1.442695, %v13444_v63 }
 0x731   :  { %v15611_v59 = vpop.eup %15610  ;;  %11658 = vst [vmem:[%s22163_s10 + $0x248] sm:$0xff] %v15609_v3  ;;  %15630 = vpow2.f32 %v12610_v10  ;;  %v21015_v9 = vpop.f32.mrb[248].mxu1  ;;  %v13382_v10 = vadd.f32 %v20777_v31, %v20517_v60  ;;  %v12624_v31 = vmul.f32 -1.442695, %v13381_v38 }
 0x732   :  { %v15613_v15 = vpop.eup %15612  ;;  %11662 = vst [vmem:[%s22163_s10 + $0x268] sm:$0xff] %v15611_v59  ;;  %15632 = vpow2.f32 %v12612_v49  ;;  %v21022_v56 = vpop.f32.mrb[249].mxu0 }
 0x733   :  { %v15615_v1 = vpop.eup %15614  ;;  %11664 = vst [vmem:[%s22163_s10 + $0x278] sm:$0xff] %v15613_v15  ;;  %15634 = vpow2.f32 %v12616_v46  ;;  %v21024_v4 = vpop.f32.mrb[249].mxu1  ;;  %v12630_v15 = vmul.f32 -1.442695, %v13382_v10  ;;  %9849 = vmatmul.mubr.bf16.gmra.mrb[36].mxu0 %v19993_v0  ;;  %10185 = vmatmul.mubr.bf16.gmra.mrb[100].mxu1 %v19993_v0 }
 0x734   :  { %v15617_v49 = vpop.eup %15616  ;;  %11663 = vst [vmem:[%s22163_s10 + $0x270] sm:$0xff] %v15615_v1  ;;  %15636 = vpow2.f32 %v12618_v47  ;;  %v21029_v36 = vpop.f32.mrb[250].mxu0  ;;  %v12626_v47 = vmul.f32 -1.442695, %v13445_v57  ;;  %9858 = vmatprep.mubr.bf16.mxu0 %v20017_v42  ;;  %10192 = vmatprep.mubr.bf16.mxu1 %v20017_v42 }
 0x735   :  { %v21031_v14 = vpop.f32.mrb[250].mxu1  ;;  %v15619_v46 = vpop.eup %15618  ;;  %11665 = vst [vmem:[%s22163_s10 + $0x280] sm:$0xff] %v15617_v49  ;;  %15638 = vpow2.f32 %v12617_v54 }
 0x736   :  { %v21036_v44 = vpop.f32.mrb[251].mxu0  ;;  %v21038_v3 = vpop.f32.mrb[251].mxu1  ;;  %11669 = vst [vmem:[%s22163_s10 + $0x2a0] sm:$0xff] %v15619_v46  ;;  %15640 = vpow2.f32 %v12619_v12 }
 0x737   :  { %v15621_v59 = vpop.eup %15620  ;;  %15642 = vpow2.f32 %v12623_v61  ;;  %v21056_v0 = vpop.f32.mrb[252].mxu0 }
 0x738   :  { %v15623_v63 = vpop.eup %15622  ;;  %11671 = vst [vmem:[%s22163_s10 + $0x2b0] sm:$0xff] %v15621_v59  ;;  %15644 = vpow2.f32 %v12625_v34  ;;  %22302 = vst [vmem:[#allocation6_spill] sm:$0xff] %v21056_v0  ;;  %v21058_v1 = vpop.f32.mrb[252].mxu1 }
 0x739   :  { %v15625_v54 = vpop.eup %15624  ;;  %11670 = vst [vmem:[%s22163_s10 + $0x2a8] sm:$0xff] %v15623_v63  ;;  %15646 = vpow2.f32 %v12624_v31  ;;  %22303 = vst [vmem:[#allocation7_spill] sm:$0xff] %v21058_v1  ;;  %v21060_v49 = vpop.f32.mrb[253].mxu0 }
 0x73a   :  { %v15627_v38 = vpop.eup %15626  ;;  %11672 = vst [vmem:[%s22163_s10 + $0x2b8] sm:$0xff] %v15625_v54  ;;  %15648 = vpow2.f32 %v12626_v47  ;;  %22304 = vst [vmem:[#allocation25_spill] sm:$0xff] %v21060_v49  ;;  %v21062_v34 = vpop.f32.mrb[253].mxu1 }
 0x73b   :  { %v15629_v12 = vpop.eup %15628  ;;  %v11004_v57 = vadd.f32 1.0, %v15627_v38  ;;  %15650 = vpow2.f32 %v12630_v15  ;;  %22305 = vst [vmem:[#allocation8_spill] sm:$0xff] %v21062_v34  ;;  %v21064_v59 = vpop.f32.mrb[254].mxu0  ;;  %9859 = vmatmul.mubr.bf16.gmra.mrb[40].mxu0 %v20013_v2  ;;  %10193 = vmatmul.mubr.bf16.gmra.mrb[104].mxu1 %v20013_v2 }
 0x73c   :  { %v15631_v61 = vpop.eup %15630  ;;  %v11006_v10 = vadd.f32 1.0, %v15629_v12  ;;  %22306 = vst [vmem:[#allocation9_spill] sm:$0xff] %v21064_v59  ;;  %v21066_v31 = vpop.f32.mrb[254].mxu1 }
 0x73d   :  { %v15633_v42 = vpop.eup %15632  ;;  %15652 = vrcp.f32 %v11004_v57  ;;  %v11005_v46 = vadd.f32 1.0, %v15631_v61  ;;  %22307 = vst [vmem:[#allocation23_spill] sm:$0xff] %v21066_v31  ;;  %v21068_v54 = vpop.f32.mrb[255].mxu0  ;;  %v13446_v57 = vadd.f32 %v20779_v26, %v20520_v48 }
 0x73e   :  { %v15635_v63 = vpop.eup %15634  ;;  %15654 = vrcp.f32 %v11006_v10  ;;  %v11007_v47 = vadd.f32 1.0, %v15633_v42  ;;  %22308 = vst [vmem:[#allocation29_spill] sm:$0xff] %v21068_v54  ;;  %v21070_v15 = vpop.f32.mrb[255].mxu1  ;;  %v22310_v42 = vld [vmem:[#allocation26_spill] sm:$0xff] }
 0x73f   :  { %v15637_v38 = vpop.eup %15636  ;;  %15656 = vrcp.f32 %v11005_v46  ;;  %v11011_v12 = vadd.f32 1.0, %v15635_v63  ;;  %22309 = vst [vmem:[#allocation27_spill] sm:$0xff] %v21070_v15  ;;  %9868 = vmatprep.mubr.bf16.mxu0 %v22310_v42  ;;  %10200 = vmatprep.mubr.bf16.mxu1 %v22310_v42  ;;  %v12758_v15 = vpop.f32.mrb[0].mxu1  ;;  %v12632_v31 = vmul.f32 -1.442695, %v13446_v57  ;;  %v13448_v57 = vadd.f32 %v20793_v30, %v20520_v48  ;;  %v22313_v30 = vld [vmem:[#allocation24_spill] sm:$0xff] }
 0x740   :  { %v15639_v49 = vpop.eup %15638  ;;  %15658 = vrcp.f32 %v11007_v47  ;;  %v11013_v34 = vadd.f32 1.0, %v15637_v38  ;;  %v13383_v47 = vadd.f32 %v20784_v55, %v20525_v51 }
 0x741   :  { %v15641_v61 = vpop.eup %15640  ;;  %15660 = vrcp.f32 %v11011_v12  ;;  %v11012_v10 = vadd.f32 1.0, %v15639_v49  ;;  %v13447_v49 = vadd.f32 %v20786_v27, %v20528_v16  ;;  %v12759_v12 = vpop.f32.mrb[1].mxu1 }
 0x742   :  { %v15643_v46 = vpop.eup %15642  ;;  %15662 = vrcp.f32 %v11013_v34  ;;  %v11014_v63 = vadd.f32 1.0, %v15641_v61  ;;  %v13384_v34 = vadd.f32 %v20791_v33, %v20517_v60  ;;  %v21084_v61 = vadd.f32 %v12759_v12, %v12758_v15  ;;  %v12761_v55 = vpop.f32.mrb[2].mxu1  ;;  %v22312_v15 = vld [vmem:[#allocation12_spill] sm:$0xff] }
 0x743   :  { %v15645_v38 = vpop.eup %15644  ;;  %15664 = vrcp.f32 %v11012_v10  ;;  %v11018_v26 = vadd.f32 1.0, %v15643_v46  ;;  %v12631_v1 = vmul.f32 -1.442695, %v13383_v47  ;;  %v13449_v47 = vadd.f32 %v22312_v15, %v20528_v16  ;;  %9869 = vmatmul.mubr.bf16.gmra.mrb[44].mxu0 %v22313_v30  ;;  %10201 = vmatmul.mubr.bf16.gmra.mrb[108].mxu1 %v22313_v30 }
 0x744   :  { %v15647_v54 = vpop.eup %15646  ;;  %15666 = vrcp.f32 %v11014_v63  ;;  %v11020_v2 = vadd.f32 1.0, %v15645_v38  ;;  %v12762_v63 = vpop.f32.mrb[3].mxu1  ;;  %v12637_v12 = vmul.f32 -1.442695, %v13384_v34  ;;  %v22315_v34 = vld [vmem:[#allocation11_spill] sm:$0xff] }
 0x745   :  { %v15649_v59 = vpop.eup %15648  ;;  %15668 = vrcp.f32 %v11018_v26  ;;  %v11019_v42 = vadd.f32 1.0, %v15647_v54  ;;  %v22311_v26 = vld [vmem:[#allocation10_spill] sm:$0xff]  ;;  %v21090_v0 = vadd.f32 %v12762_v63, %v12761_v55 }
 0x746   :  { %v15651_v10 = vpop.eup %15650  ;;  %15670 = vrcp.f32 %v11020_v2  ;;  %v11021_v46 = vadd.f32 1.0, %v15649_v59  ;;  %v13385_v54 = vadd.f32 %v22311_v26, %v20525_v51  ;;  %v12633_v59 = vmul.f32 -1.442695, %v13447_v49  ;;  %v22314_v55 = vld [vmem:[#allocation30_spill] sm:$0xff] }
 0x747   :  { %v15653_v38 = vpop.eup %15652  ;;  %15672 = vrcp.f32 %v11019_v42  ;;  %v11025_v27 = vadd.f32 1.0, %v15651_v10  ;;  %v13386_v42 = vadd.f32 %v20806_v22, %v20517_v60  ;;  %9878 = vmatprep.mubr.bf16.mxu0 %v22314_v55  ;;  %10208 = vmatprep.mubr.bf16.mxu1 %v22314_v55  ;;  %v12639_v10 = vmul.f32 -1.442695, %v13448_v57 }
 0x748   :  { %v15655_v33 = vpop.eup %15654  ;;  %11676 = vst [vmem:[%s22163_s10 + $0x2d8] sm:$0xff] %v15653_v38  ;;  %15674 = vrcp.f32 %v11021_v46  ;;  %v13450_v46 = vadd.f32 %v20808_v41, %v20520_v48  ;;  %v12638_v22 = vmul.f32 -1.442695, %v13385_v54  ;;  %v13387_v38 = vadd.f32 %v22315_v34, %v20525_v51  ;;  %v22316_v41 = vld [vmem:[#allocation14_spill] sm:$0xff]  ;;  %v22317_v54 = vld [vmem:[#allocation13_spill] sm:$0xff] }
 0x749   :  { %v15657_v2 = vpop.eup %15656  ;;  %11678 = vst [vmem:[%s22163_s10 + $0x2e8] sm:$0xff] %v15655_v33  ;;  %15676 = vrcp.f32 %v11025_v27  ;;  %v12764_v27 = vpop.f32.mrb[4].mxu1  ;;  %v13451_v57 = vadd.f32 %v22316_v41, %v20528_v16  ;;  %v13388_v30 = vadd.f32 %v22317_v54, %v20517_v60 }
 0x74a   :  { %v15659_v49 = vpop.eup %15658  ;;  %11677 = vst [vmem:[%s22163_s10 + $0x2e0] sm:$0xff] %v15657_v2  ;;  %15678 = vpow2.f32 %v12632_v31  ;;  %v12640_v31 = vmul.f32 -1.442695, %v13449_v47  ;;  %v12765_v33 = vpop.f32.mrb[5].mxu1  ;;  %v13452_v47 = vadd.f32 %v20818_v45, %v20520_v48 }
 0x74b   :  { %v15661_v63 = vpop.eup %15660  ;;  %11679 = vst [vmem:[%s22163_s10 + $0x2f0] sm:$0xff] %v15659_v49  ;;  %15680 = vpow2.f32 %v12631_v1  ;;  %v12644_v1 = vmul.f32 -1.442695, %v13386_v42  ;;  %v21126_v2 = vadd.f32 %v12765_v33, %v12764_v27  ;;  %v12767_v55 = vpop.f32.mrb[6].mxu1 }
 0x74c   :  { %v15663_v26 = vpop.eup %15662  ;;  %11683 = vst [vmem:[%s22163_s10 + $0x310] sm:$0xff] %v15661_v63  ;;  %15682 = vpow2.f32 %v12633_v59  ;;  %v12646_v59 = vmul.f32 -1.442695, %v13450_v46  ;;  %v12768_v63 = vpop.f32.mrb[7].mxu1  ;;  %v22318_v46 = vld [vmem:[#allocation28_spill] sm:$0xff] }
 0x74d   :  { %v15665_v15 = vpop.eup %15664  ;;  %11685 = vst [vmem:[%s22163_s10 + $0x320] sm:$0xff] %v15663_v26  ;;  %15684 = vpow2.f32 %v12637_v12  ;;  %v12645_v12 = vmul.f32 -1.442695, %v13387_v38  ;;  %v21136_v42 = vadd.f32 %v12768_v63, %v12767_v55  ;;  %9879 = vmatmul.mubr.bf16.gmra.mrb[48].mxu0 %v22318_v46  ;;  %10209 = vmatmul.mubr.bf16.gmra.mrb[112].mxu1 %v22318_v46  ;;  %v22319_v38 = vld [vmem:[#allocation34_spill] sm:$0xff] }
 0x74e   :  { %v15667_v49 = vpop.eup %15666  ;;  %11684 = vst [vmem:[%s22163_s10 + $0x318] sm:$0xff] %v15665_v15  ;;  %15686 = vpow2.f32 %v12639_v10  ;;  %v12647_v10 = vmul.f32 -1.442695, %v13451_v57  ;;  %9888 = vmatprep.mubr.bf16.mxu0 %v22319_v38  ;;  %10216 = vmatprep.mubr.bf16.mxu1 %v22319_v38  ;;  %v12770_v57 = vpop.f32.mrb[8].mxu1  ;;  %v22321_v38 = vld [vmem:[#allocation37_spill] sm:$0xff] }
 0x74f   :  { %v15669_v34 = vpop.eup %15668  ;;  %11686 = vst [vmem:[%s22163_s10 + $0x328] sm:$0xff] %v15667_v49  ;;  %15688 = vpow2.f32 %v12638_v22  ;;  %v12651_v22 = vmul.f32 -1.442695, %v13388_v30  ;;  %v12771_v15 = vpop.f32.mrb[9].mxu1 }
 0x750   :  { %v15671_v27 = vpop.eup %15670  ;;  %11690 = vst [vmem:[%s22163_s10 + $0x348] sm:$0xff] %v15669_v34  ;;  %15690 = vpow2.f32 %v12640_v31  ;;  %v12653_v31 = vmul.f32 -1.442695, %v13452_v47  ;;  %v21157_v30 = vadd.f32 %v12771_v15, %v12770_v57  ;;  %v12773_v55 = vpop.f32.mrb[10].mxu1 }
 0x751   :  { %v15673_v45 = vpop.eup %15672  ;;  %11692 = vst [vmem:[%s22163_s10 + $0x358] sm:$0xff] %v15671_v27  ;;  %15692 = vpow2.f32 %v12644_v1  ;;  %v12774_v47 = vpop.f32.mrb[11].mxu1 }
 0x752   :  { %v15675_v26 = vpop.eup %15674  ;;  %11691 = vst [vmem:[%s22163_s10 + $0x350] sm:$0xff] %v15673_v45  ;;  %15694 = vpow2.f32 %v12646_v59 }
 0x753   :  { %v15677_v41 = vpop.eup %15676  ;;  %11693 = vst [vmem:[%s22163_s10 + $0x360] sm:$0xff] %v15675_v26  ;;  %15696 = vpow2.f32 %v12645_v12  ;;  %v21159_v12 = vadd.f32 %v12774_v47, %v12773_v55  ;;  %v22322_v47 = vld [vmem:[#allocation16_spill] sm:$0xff] }
 0x754   :  { %v15679_v33 = vpop.eup %15678  ;;  %11697 = vst [vmem:[%s22163_s10 + $0x380] sm:$0xff] %v15677_v41  ;;  %15698 = vpow2.f32 %v12647_v10  ;;  %v22320_v10 = vld [vmem:[#allocation32_spill] sm:$0xff] }
 0x755   :  { %v15681_v1 = vpop.eup %15680  ;;  %v11027_v54 = vadd.f32 1.0, %v15679_v33  ;;  %15700 = vpow2.f32 %v12651_v22  ;;  %9889 = vmatmul.mubr.bf16.gmra.mrb[52].mxu0 %v22320_v10  ;;  %10217 = vmatmul.mubr.bf16.gmra.mrb[116].mxu1 %v22320_v10 }
 0x756   :  { %v15683_v49 = vpop.eup %15682  ;;  %v11026_v59 = vadd.f32 1.0, %v15681_v1  ;;  %15702 = vpow2.f32 %v12653_v31  ;;  %9898 = vmatprep.mubr.bf16.mxu0 %v22321_v38  ;;  %10224 = vmatprep.mubr.bf16.mxu1 %v22321_v38  ;;  %v12776_v33 = vpop.f32.mrb[12].mxu1 }
 0x757   :  { %v15685_v63 = vpop.eup %15684  ;;  %15704 = vrcp.f32 %v11027_v54  ;;  %v11028_v34 = vadd.f32 1.0, %v15683_v49  ;;  %v13389_v54 = vadd.f32 %v20820_v6, %v20525_v51  ;;  %v12777_v55 = vpop.f32.mrb[13].mxu1 }
 0x758   :  { %v15687_v27 = vpop.eup %15686  ;;  %15706 = vrcp.f32 %v11026_v59  ;;  %v11032_v46 = vadd.f32 1.0, %v15685_v63  ;;  %v13453_v63 = vadd.f32 %v22322_v47, %v20528_v16 }
 0x759   :  { %v15689_v45 = vpop.eup %15688  ;;  %15708 = vrcp.f32 %v11028_v34  ;;  %v11034_v22 = vadd.f32 1.0, %v15687_v27  ;;  %v21169_v34 = vadd.f32 %v12777_v55, %v12776_v33  ;;  %v12779_v27 = vpop.f32.mrb[14].mxu1  ;;  %v12652_v33 = vmul.f32 -1.442695, %v13389_v54 }
 0x75a   :  { %v15691_v26 = vpop.eup %15690  ;;  %15710 = vrcp.f32 %v11032_v46  ;;  %v11033_v31 = vadd.f32 1.0, %v15689_v45  ;;  %v13390_v45 = vadd.f32 %v20838_v29, %v20517_v60  ;;  %v13392_v54 = vadd.f32 %v20856_v37, %v20517_v60 }
 0x75b   :  { %v15693_v41 = vpop.eup %15692  ;;  %15712 = vrcp.f32 %v11034_v22  ;;  %v11035_v57 = vadd.f32 1.0, %v15691_v26  ;;  %v12780_v22 = vpop.f32.mrb[15].mxu1  ;;  %v13454_v26 = vadd.f32 %v20845_v58, %v20520_v48  ;;  %v13455_v58 = vadd.f32 %v20854_v19, %v20528_v16 }
 0x75c   :  { %v15695_v15 = vpop.eup %15694  ;;  %15714 = vrcp.f32 %v11033_v31  ;;  %v11039_v1 = vadd.f32 1.0, %v15693_v41  ;;  %v21175_v31 = vadd.f32 %v12780_v22, %v12779_v27  ;;  %v13393_v37 = vadd.f32 %v20865_v11, %v20525_v51 }
 0x75d   :  { %v15697_v49 = vpop.eup %15696  ;;  %15716 = vrcp.f32 %v11035_v57  ;;  %v11041_v59 = vadd.f32 1.0, %v15695_v15  ;;  %v13391_v15 = vadd.f32 %v20847_v35, %v20525_v51  ;;  %v12658_v35 = vmul.f32 -1.442695, %v13390_v45 }
 0x75e   :  { %v15699_v46 = vpop.eup %15698  ;;  %15718 = vrcp.f32 %v11039_v1  ;;  %v11040_v10 = vadd.f32 1.0, %v15697_v49  ;;  %v22323_v1 = vld [vmem:[#allocation35_spill] sm:$0xff]  ;;  %v12654_v49 = vmul.f32 -1.442695, %v13453_v63  ;;  %v12660_v19 = vmul.f32 -1.442695, %v13454_v26 }
 0x75f   :  { %v15701_v38 = vpop.eup %15700  ;;  %15720 = vrcp.f32 %v11041_v59  ;;  %v11042_v6 = vadd.f32 1.0, %v15699_v46  ;;  %9899 = vmatmul.mubr.bf16.gmra.mrb[56].mxu0 %v22323_v1  ;;  %10225 = vmatmul.mubr.bf16.gmra.mrb[120].mxu1 %v22323_v1  ;;  %v22324_v59 = vld [vmem:[#allocation39_spill] sm:$0xff]  ;;  %v13456_v63 = vadd.f32 %v20863_v21, %v20520_v48  ;;  %v12782_v46 = vpop.f32.mrb[16].mxu1  ;;  %v12659_v45 = vmul.f32 -1.442695, %v13391_v15 }
 0x760   :  { %v15703_v41 = vpop.eup %15702  ;;  %15722 = vrcp.f32 %v11040_v10  ;;  %v11046_v57 = vadd.f32 1.0, %v15701_v38  ;;  %9908 = vmatprep.mubr.bf16.mxu0 %v22324_v59  ;;  %10232 = vmatprep.mubr.bf16.mxu1 %v22324_v59  ;;  %v12783_v22 = vpop.f32.mrb[17].mxu1  ;;  %v13457_v21 = vadd.f32 %v20872_v13, %v20528_v16  ;;  %v12665_v11 = vmul.f32 -1.442695, %v13392_v54  ;;  %v22325_v59 = vld [vmem:[#allocation38_spill] sm:$0xff] }
 0x761   :  { %v15705_v29 = vpop.eup %15704  ;;  %15724 = vrcp.f32 %v11042_v6  ;;  %v11048_v55 = vadd.f32 1.0, %v15703_v41  ;;  %v12661_v6 = vmul.f32 -1.442695, %v13455_v58  ;;  %v21205_v26 = vadd.f32 %v12783_v22, %v12782_v46  ;;  %v12785_v41 = vpop.f32.mrb[18].mxu1 }
 0x762   :  { %v15707_v47 = vpop.eup %15706  ;;  %11699 = vst [vmem:[%s22163_s10 + $0x390] sm:$0xff] %v15705_v29  ;;  %15726 = vrcp.f32 %v11046_v57  ;;  %v12786_v15 = vpop.f32.mrb[19].mxu1  ;;  %v12667_v13 = vmul.f32 -1.442695, %v13456_v63  ;;  %v13458_v29 = vadd.f32 %v20898_v8, %v20520_v48  ;;  %v13395_v58 = vadd.f32 %v20903_v23, %v20525_v51 }
 0x763   :  { %v15709_v27 = vpop.eup %15708  ;;  %11698 = vst [vmem:[%s22163_s10 + $0x388] sm:$0xff] %v15707_v47  ;;  %15728 = vrcp.f32 %v11048_v55  ;;  %v21217_v55 = vadd.f32 %v12786_v15, %v12785_v41  ;;  %v12668_v8 = vmul.f32 -1.442695, %v13457_v21 }
 0x764   :  { %v15711_v10 = vpop.eup %15710  ;;  %11700 = vst [vmem:[%s22163_s10 + $0x398] sm:$0xff] %v15709_v27  ;;  %15730 = vpow2.f32 %v12652_v33  ;;  %v13394_v33 = vadd.f32 %v20896_v28, %v20517_v60  ;;  %v12666_v28 = vmul.f32 -1.442695, %v13393_v37  ;;  %v12674_v23 = vmul.f32 -1.442695, %v13458_v29 }
 0x765   :  { %v15713_v38 = vpop.eup %15712  ;;  %11704 = vst [vmem:[%s22163_s10 + $0x3b8] sm:$0xff] %v15711_v10  ;;  %15732 = vpow2.f32 %v12654_v49  ;;  %v12673_v46 = vmul.f32 -1.442695, %v13395_v58 }
 0x766   :  { %v15715_v57 = vpop.eup %15714  ;;  %11706 = vst [vmem:[%s22163_s10 + $0x3c8] sm:$0xff] %v15713_v38  ;;  %15734 = vpow2.f32 %v12658_v35  ;;  %v12672_v54 = vmul.f32 -1.442695, %v13394_v33 }
 0x767   :  { %v15717_v1 = vpop.eup %15716  ;;  %11705 = vst [vmem:[%s22163_s10 + $0x3c0] sm:$0xff] %v15715_v57  ;;  %15736 = vpow2.f32 %v12660_v19  ;;  %9909 = vmatmul.mubr.bf16.gmra.mrb[60].mxu0 %v22325_v59  ;;  %10233 = vmatmul.mubr.bf16.gmra.mrb[124].mxu1 %v22325_v59  ;;  %v12788_v19 = vpop.f32.mrb[20].mxu1 }
 0x768   :  { %v15719_v49 = vpop.eup %15718  ;;  %11707 = vst [vmem:[%s22163_s10 + $0x3d0] sm:$0xff] %v15717_v1  ;;  %15738 = vpow2.f32 %v12659_v45  ;;  %v12789_v10 = vpop.f32.mrb[21].mxu1 }
 0x769   :  { %v15721_v47 = vpop.eup %15720  ;;  %11711 = vst [vmem:[%s22163_s10 + $0x3f0] sm:$0xff] %v15719_v49  ;;  %15740 = vpow2.f32 %v12661_v6  ;;  %v21241_v37 = vadd.f32 %v12789_v10, %v12788_v19  ;;  %v12791_v22 = vpop.f32.mrb[22].mxu1 }
 0x76a   :  { %v15723_v35 = vpop.eup %15722  ;;  %11713 = vst [vmem:[%s22163_s10 + $0x400] sm:$0xff] %v15721_v47  ;;  %15742 = vpow2.f32 %v12665_v11  ;;  %v12792_v6 = vpop.f32.mrb[23].mxu1 }
 0x76b   :  { %v15725_v27 = vpop.eup %15724  ;;  %11712 = vst [vmem:[%s22163_s10 + $0x3f8] sm:$0xff] %v15723_v35  ;;  %15744 = vpow2.f32 %v12667_v13  ;;  %v21246_v57 = vadd.f32 %v12792_v6, %v12791_v22 }
 0x76c   :  { %v15727_v63 = vpop.eup %15726  ;;  %11714 = vst [vmem:[%s22163_s10 + $0x408] sm:$0xff] %v15725_v27  ;;  %15746 = vpow2.f32 %v12666_v28 }
 0x76d   :  { %v15729_v45 = vpop.eup %15728  ;;  %11718 = vst [vmem:[%s22163_s10 + $0x428] sm:$0xff] %v15727_v63  ;;  %15748 = vpow2.f32 %v12668_v8 }
 0x76e   :  { %v15731_v38 = vpop.eup %15730  ;;  %11720 = vst [vmem:[%s22163_s10 + $0x438] sm:$0xff] %v15729_v45  ;;  %15750 = vpow2.f32 %v12672_v54  ;;  %v12794_v58 = vpop.f32.mrb[24].mxu1 }
 0x76f   :  { %v15733_v21 = vpop.eup %15732  ;;  %v11047_v41 = vadd.f32 1.0, %v15731_v38  ;;  %15752 = vpow2.f32 %v12674_v23  ;;  %v12795_v8 = vpop.f32.mrb[25].mxu1  ;;  %v13396_v38 = vadd.f32 %v20910_v62, %v20517_v60  ;;  %v22326_v62 = vld [vmem:[#allocation15_spill] sm:$0xff] }
 0x770   :  { %v15735_v11 = vpop.eup %15734  ;;  %v11049_v33 = vadd.f32 1.0, %v15733_v21  ;;  %15754 = vpow2.f32 %v12673_v46  ;;  %v21248_v27 = vadd.f32 %v12795_v8, %v12794_v58  ;;  %v12797_v23 = vpop.f32.mrb[26].mxu1  ;;  %v13459_v46 = vadd.f32 %v20905_v24, %v20528_v16 }
 0x771   :  { %v15737_v15 = vpop.eup %15736  ;;  %15756 = vrcp.f32 %v11047_v41  ;;  %v11053_v1 = vadd.f32 1.0, %v15735_v11  ;;  %v12798_v10 = vpop.f32.mrb[27].mxu1  ;;  %v13460_v11 = vadd.f32 %v20912_v52, %v20520_v48  ;;  %v13397_v24 = vadd.f32 %v20917_v50, %v20525_v51 }
 0x772   :  { %v15739_v13 = vpop.eup %15738  ;;  %15758 = vrcp.f32 %v11049_v33  ;;  %v11055_v29 = vadd.f32 1.0, %v15737_v15  ;;  %v21254_v6 = vadd.f32 %v12798_v10, %v12797_v23  ;;  %v13398_v52 = vadd.f32 %v20931_v17, %v20517_v60  ;;  %v22328_v17 = vld [vmem:[#allocation17_spill] sm:$0xff] }
 0x773   :  { %v15741_v49 = vpop.eup %15740  ;;  %15760 = vrcp.f32 %v11053_v1  ;;  %v11054_v28 = vadd.f32 1.0, %v15739_v13  ;;  %v12681_v50 = vmul.f32 -1.442695, %v13460_v11 }
 0x774   :  { %v15743_v59 = vpop.eup %15742  ;;  %15762 = vrcp.f32 %v11055_v29  ;;  %v11056_v47 = vadd.f32 1.0, %v15741_v49  ;;  %v12675_v29 = vmul.f32 -1.442695, %v13459_v46  ;;  %v13461_v49 = vadd.f32 %v22326_v62, %v20528_v16 }
 0x775   :  { %v15745_v35 = vpop.eup %15744  ;;  %15764 = vrcp.f32 %v11054_v28  ;;  %v11060_v54 = vadd.f32 1.0, %v15743_v59  ;;  %v12679_v59 = vmul.f32 -1.442695, %v13396_v38  ;;  %v13399_v46 = vadd.f32 %v22328_v17, %v20525_v51 }
 0x776   :  { %v15747_v19 = vpop.eup %15746  ;;  %15766 = vrcp.f32 %v11056_v47  ;;  %v11062_v63 = vadd.f32 1.0, %v15745_v35  ;;  %v12800_v47 = vpop.f32.mrb[28].mxu1  ;;  %v22327_v35 = vld [vmem:[#allocation18_spill] sm:$0xff]  ;;  %v12682_v38 = vmul.f32 -1.442695, %v13461_v49  ;;  %v13464_v62 = vadd.f32 %v20941_v25, %v20520_v48 }
 0x777   :  { %v15749_v45 = vpop.eup %15748  ;;  %15768 = vrcp.f32 %v11060_v54  ;;  %v11061_v22 = vadd.f32 1.0, %v15747_v19  ;;  %v13462_v54 = vadd.f32 %v22327_v35, %v20520_v48  ;;  %v12801_v23 = vpop.f32.mrb[29].mxu1 }
 0x778   :  { %v15751_v21 = vpop.eup %15750  ;;  %15770 = vrcp.f32 %v11062_v63  ;;  %v11063_v41 = vadd.f32 1.0, %v15749_v45  ;;  %v12680_v63 = vmul.f32 -1.442695, %v13397_v24  ;;  %v21274_v10 = vadd.f32 %v12801_v23, %v12800_v47  ;;  %v12803_v45 = vpop.f32.mrb[30].mxu1  ;;  %v22331_v47 = vld [vmem:[#allocation22_spill] sm:$0xff] }
 0x779   :  { %v15753_v33 = vpop.eup %15752  ;;  %15772 = vrcp.f32 %v11061_v22  ;;  %v11067_v15 = vadd.f32 1.0, %v15751_v21  ;;  %v22329_v21 = vld [vmem:[#allocation20_spill] sm:$0xff]  ;;  %v12804_v11 = vpop.f32.mrb[31].mxu1  ;;  %v13400_v24 = vadd.f32 %v20939_v53, %v20517_v60  ;;  %v22330_v53 = vld [vmem:[#allocation19_spill] sm:$0xff]  ;;  %v13465_v25 = vadd.f32 %v22331_v47, %v20528_v16 }
 0x77a   :  { %v15755_v1 = vpop.eup %15754  ;;  %15774 = vrcp.f32 %v11063_v41  ;;  %v11069_v13 = vadd.f32 1.0, %v15753_v33  ;;  %v13463_v41 = vadd.f32 %v22329_v21, %v20528_v16  ;;  %v12695_v23 = vmul.f32 -1.442695, %v13464_v62 }
 0x77b   :  { %v15757_v28 = vpop.eup %15756  ;;  %15776 = vrcp.f32 %v11067_v15  ;;  %v11068_v58 = vadd.f32 1.0, %v15755_v1  ;;  %v12686_v15 = vmul.f32 -1.442695, %v13398_v52  ;;  %v21286_v1 = vadd.f32 %v12804_v11, %v12803_v45 }
 0x77c   :  { %v15759_v8 = vpop.eup %15758  ;;  %11719 = vst [vmem:[%s22163_s10 + $0x430] sm:$0xff] %v15757_v28  ;;  %15778 = vrcp.f32 %v11069_v13  ;;  %v12687_v28 = vmul.f32 -1.442695, %v13399_v46  ;;  %v12689_v52 = vmul.f32 -1.442695, %v13463_v41 }
 0x77d   :  { %v15761_v19 = vpop.eup %15760  ;;  %11721 = vst [vmem:[%s22163_s10 + $0x440] sm:$0xff] %v15759_v8  ;;  %15780 = vrcp.f32 %v11068_v58  ;;  %v13401_v58 = vadd.f32 %v22330_v53, %v20525_v51 }
 0x77e   :  { %v15763_v22 = vpop.eup %15762  ;;  %11725 = vst [vmem:[%s22163_s10 + $0x460] sm:$0xff] %v15761_v19  ;;  %15782 = vpow2.f32 %v12675_v29  ;;  %v12688_v29 = vmul.f32 -1.442695, %v13462_v54  ;;  %v12806_v35 = vpop.f32.mrb[32].mxu1 }
 0x77f   :  { %v15765_v33 = vpop.eup %15764  ;;  %11727 = vst [vmem:[%s22163_s10 + $0x470] sm:$0xff] %v15763_v22  ;;  %15784 = vpow2.f32 %v12679_v59  ;;  %v12807_v19 = vpop.f32.mrb[33].mxu1  ;;  %v12694_v17 = vmul.f32 -1.442695, %v13401_v58 }
 0x780   :  { %v15767_v13 = vpop.eup %15766  ;;  %11726 = vst [vmem:[%s22163_s10 + $0x468] sm:$0xff] %v15765_v33  ;;  %15786 = vpow2.f32 %v12681_v50  ;;  %v12693_v50 = vmul.f32 -1.442695, %v13400_v24  ;;  %v21312_v46 = vadd.f32 %v12807_v19, %v12806_v35  ;;  %v12809_v45 = vpop.f32.mrb[34].mxu1 }
 0x781   :  { %v15769_v49 = vpop.eup %15768  ;;  %11728 = vst [vmem:[%s22163_s10 + $0x478] sm:$0xff] %v15767_v13  ;;  %15788 = vpow2.f32 %v12680_v63  ;;  %v12810_v21 = vpop.f32.mrb[35].mxu1 }
 0x782   :  { %v15771_v59 = vpop.eup %15770  ;;  %11732 = vst [vmem:[%s22163_s10 + $0x498] sm:$0xff] %v15769_v49  ;;  %15790 = vpow2.f32 %v12682_v38  ;;  %v12696_v38 = vmul.f32 -1.442695, %v13465_v25  ;;  %v21320_v11 = vadd.f32 %v12810_v21, %v12809_v45  ;;  %v13466_v21 = vadd.f32 %v20963_v32, %v20520_v48 }
 0x783   :  { %v15773_v8 = vpop.eup %15772  ;;  %11734 = vst [vmem:[%s22163_s10 + $0x4a8] sm:$0xff] %v15771_v59  ;;  %15792 = vpow2.f32 %v12686_v15 }
 0x784   :  { %v15775_v54 = vpop.eup %15774  ;;  %11733 = vst [vmem:[%s22163_s10 + $0x4a0] sm:$0xff] %v15773_v8  ;;  %15794 = vpow2.f32 %v12688_v29 }
 0x785   :  { %v15777_v63 = vpop.eup %15776  ;;  %11735 = vst [vmem:[%s22163_s10 + $0x4b0] sm:$0xff] %v15775_v54  ;;  %15796 = vpow2.f32 %v12687_v28 }
 0x786   :  { %v15779_v22 = vpop.eup %15778  ;;  %11739 = vst [vmem:[%s22163_s10 + $0x4d0] sm:$0xff] %v15777_v63  ;;  %15798 = vpow2.f32 %v12689_v52  ;;  %v12812_v28 = vpop.f32.mrb[36].mxu1  ;;  %v22332_v63 = vld [vmem:[#allocation21_spill] sm:$0xff] }
 0x787   :  { %v15781_v41 = vpop.eup %15780  ;;  %11741 = vst [vmem:[%s22163_s10 + $0x4e0] sm:$0xff] %v15779_v22  ;;  %15800 = vpow2.f32 %v12693_v50  ;;  %v12813_v59 = vpop.f32.mrb[37].mxu1 }
 0x788   :  { %v15783_v33 = vpop.eup %15782  ;;  %11740 = vst [vmem:[%s22163_s10 + $0x4d8] sm:$0xff] %v15781_v41  ;;  %15802 = vpow2.f32 %v12695_v23  ;;  %v21325_v25 = vadd.f32 %v12813_v59, %v12812_v28  ;;  %v12815_v8 = vpop.f32.mrb[38].mxu1  ;;  %v13467_v28 = vadd.f32 %v20969_v39, %v20528_v16  ;;  %v12702_v59 = vmul.f32 -1.442695, %v13466_v21 }
 0x789   :  { %v15785_v15 = vpop.eup %15784  ;;  %v11070_v24 = vadd.f32 1.0, %v15783_v33  ;;  %15804 = vpow2.f32 %v12694_v17  ;;  %v12816_v54 = vpop.f32.mrb[39].mxu1  ;;  %v13402_v17 = vadd.f32 %v22332_v63, %v20517_v60  ;;  %v13406_v21 = vadd.f32 %v21013_v40, %v20517_v60 }
 0x78a   :  { %v15787_v13 = vpop.eup %15786  ;;  %v11074_v29 = vadd.f32 1.0, %v15785_v15  ;;  %15806 = vpow2.f32 %v12696_v38  ;;  %v21329_v45 = vadd.f32 %v12816_v54, %v12815_v8  ;;  %v13407_v40 = vadd.f32 %v21022_v56, %v20525_v51 }
 0x78b   :  { %v15789_v62 = vpop.eup %15788  ;;  %15808 = vrcp.f32 %v11070_v24  ;;  %v11076_v49 = vadd.f32 1.0, %v15787_v13  ;;  %v13403_v13 = vadd.f32 %v20965_v18, %v20525_v51  ;;  %v13468_v18 = vadd.f32 %v20978_v20, %v20520_v48 }
 0x78c   :  { %v15791_v53 = vpop.eup %15790  ;;  %15810 = vrcp.f32 %v11074_v29  ;;  %v11075_v58 = vadd.f32 1.0, %v15789_v62  ;;  %v12703_v20 = vmul.f32 -1.442695, %v13467_v28  ;;  %v12714_v28 = vmul.f32 -1.442695, %v13406_v21 }
 0x78d   :  { %v15793_v52 = vpop.eup %15792  ;;  %15812 = vrcp.f32 %v11076_v49  ;;  %v11077_v47 = vadd.f32 1.0, %v15791_v53  ;;  %v12700_v49 = vmul.f32 -1.442695, %v13402_v17  ;;  %v12701_v39 = vmul.f32 -1.442695, %v13403_v13 }
 0x78e   :  { %v15795_v50 = vpop.eup %15794  ;;  %15814 = vrcp.f32 %v11075_v58  ;;  %v11081_v35 = vadd.f32 1.0, %v15793_v52  ;;  %v12818_v53 = vpop.f32.mrb[40].mxu1  ;;  %v13404_v52 = vadd.f32 %v20971_v43, %v20517_v60  ;;  %v13405_v43 = vadd.f32 %v20980_v7, %v20525_v51 }
 0x78f   :  { %v15797_v23 = vpop.eup %15796  ;;  %15816 = vrcp.f32 %v11077_v47  ;;  %v11083_v19 = vadd.f32 1.0, %v15795_v50  ;;  %v12819_v47 = vpop.f32.mrb[41].mxu1  ;;  %v13469_v17 = vadd.f32 %v20987_v5, %v20528_v16  ;;  %v13470_v5 = vadd.f32 %v21015_v9, %v20520_v48 }
 0x790   :  { %v15799_v22 = vpop.eup %15798  ;;  %15818 = vrcp.f32 %v11081_v35  ;;  %v11082_v38 = vadd.f32 1.0, %v15797_v23  ;;  %v21341_v35 = vadd.f32 %v12819_v47, %v12818_v53  ;;  %v12821_v54 = vpop.f32.mrb[42].mxu1  ;;  %v12707_v7 = vmul.f32 -1.442695, %v13404_v52 }
 0x791   :  { %v15801_v41 = vpop.eup %15800  ;;  %15820 = vrcp.f32 %v11083_v19  ;;  %v11084_v33 = vadd.f32 1.0, %v15799_v22  ;;  %v12822_v19 = vpop.f32.mrb[43].mxu1  ;;  %v13471_v9 = vadd.f32 %v21024_v4, %v20528_v16  ;;  %v13408_v56 = vadd.f32 %v21029_v36, %v20517_v60 }
 0x792   :  { %v15803_v15 = vpop.eup %15802  ;;  %15822 = vrcp.f32 %v11082_v38  ;;  %v11088_v24 = vadd.f32 1.0, %v15801_v41  ;;  %v21353_v22 = vadd.f32 %v12822_v19, %v12821_v54  ;;  %v12715_v47 = vmul.f32 -1.442695, %v13407_v40 }
 0x793   :  { %v15805_v29 = vpop.eup %15804  ;;  %15824 = vrcp.f32 %v11084_v33  ;;  %v11090_v62 = vadd.f32 1.0, %v15803_v15  ;;  %v12709_v33 = vmul.f32 -1.442695, %v13468_v18 }
 0x794   :  { %v15807_v58 = vpop.eup %15806  ;;  %15826 = vrcp.f32 %v11088_v24  ;;  %v11089_v32 = vadd.f32 1.0, %v15805_v29  ;;  %v12708_v24 = vmul.f32 -1.442695, %v13405_v43  ;;  %v12710_v29 = vmul.f32 -1.442695, %v13469_v17 }
 0x795   :  { %v15809_v8 = vpop.eup %15808  ;;  %15828 = vrcp.f32 %v11090_v62  ;;  %v11091_v50 = vadd.f32 1.0, %v15807_v58 }
 0x796   :  { %v15811_v23 = vpop.eup %15810  ;;  %11742 = vst [vmem:[%s22163_s10 + $0x4e8] sm:$0xff] %v15809_v8  ;;  %15830 = vrcp.f32 %v11089_v32  ;;  %v12824_v62 = vpop.f32.mrb[44].mxu1  ;;  %v12716_v32 = vmul.f32 -1.442695, %v13470_v5 }
 0x797   :  { %v15813_v63 = vpop.eup %15812  ;;  %11746 = vst [vmem:[%s22163_s10 + $0x508] sm:$0xff] %v15811_v23  ;;  %15832 = vrcp.f32 %v11091_v50  ;;  %v12825_v53 = vpop.f32.mrb[45].mxu1  ;;  %v12717_v50 = vmul.f32 -1.442695, %v13471_v9  ;;  %v12721_v23 = vmul.f32 -1.442695, %v13408_v56 }
 0x798   :  { %v15815_v38 = vpop.eup %15814  ;;  %11748 = vst [vmem:[%s22163_s10 + $0x518] sm:$0xff] %v15813_v63  ;;  %15834 = vpow2.f32 %v12700_v49  ;;  %v21383_v4 = vadd.f32 %v12825_v53, %v12824_v62 }
 0x799   :  { %v15817_v41 = vpop.eup %15816  ;;  %11747 = vst [vmem:[%s22163_s10 + $0x510] sm:$0xff] %v15815_v38  ;;  %15836 = vpow2.f32 %v12702_v59  ;;  %v12827_v59 = vpop.f32.mrb[46].mxu1 }
 0x79a   :  { %v15819_v15 = vpop.eup %15818  ;;  %11749 = vst [vmem:[%s22163_s10 + $0x520] sm:$0xff] %v15817_v41  ;;  %15838 = vpow2.f32 %v12701_v39  ;;  %v12828_v8 = vpop.f32.mrb[47].mxu1 }
 0x79b   :  { %v15821_v13 = vpop.eup %15820  ;;  %11753 = vst [vmem:[%s22163_s10 + $0x540] sm:$0xff] %v15819_v15  ;;  %15840 = vpow2.f32 %v12703_v20  ;;  %v21391_v18 = vadd.f32 %v12828_v8, %v12827_v59  ;;  %v13409_v59 = vadd.f32 %v21036_v44, %v20525_v51 }
 0x79c   :  { %v15823_v49 = vpop.eup %15822  ;;  %11755 = vst [vmem:[%s22163_s10 + $0x550] sm:$0xff] %v15821_v13  ;;  %15842 = vpow2.f32 %v12707_v7 }
 0x79d   :  { %v15825_v58 = vpop.eup %15824  ;;  %11754 = vst [vmem:[%s22163_s10 + $0x548] sm:$0xff] %v15823_v49  ;;  %15844 = vpow2.f32 %v12709_v33 }
 0x79e   :  { %v15827_v52 = vpop.eup %15826  ;;  %11756 = vst [vmem:[%s22163_s10 + $0x558] sm:$0xff] %v15825_v58  ;;  %15846 = vpow2.f32 %v12708_v24  ;;  %v12830_v20 = vpop.f32.mrb[48].mxu1 }
 0x79f   :  { %v15829_v36 = vpop.eup %15828  ;;  %11760 = vst [vmem:[%s22163_s10 + $0x578] sm:$0xff] %v15827_v52  ;;  %15848 = vpow2.f32 %v12710_v29  ;;  %v12831_v7 = vpop.f32.mrb[49].mxu1 }
 0x7a0   :  { %v15831_v54 = vpop.eup %15830  ;;  %11762 = vst [vmem:[%s22163_s10 + $0x588] sm:$0xff] %v15829_v36  ;;  %15850 = vpow2.f32 %v12714_v28  ;;  %v21402_v33 = vadd.f32 %v12831_v7, %v12830_v20  ;;  %v12833_v5 = vpop.f32.mrb[50].mxu1  ;;  %v13472_v28 = vadd.f32 %v21031_v14, %v20520_v48  ;;  %v13473_v14 = vadd.f32 %v21038_v3, %v20528_v16 }
 0x7a1   :  { %v15833_v39 = vpop.eup %15832  ;;  %11761 = vst [vmem:[%s22163_s10 + $0x580] sm:$0xff] %v15831_v54  ;;  %15852 = vpow2.f32 %v12716_v32  ;;  %v12834_v40 = vpop.f32.mrb[51].mxu1  ;;  %v12722_v7 = vmul.f32 -1.442695, %v13409_v59 }
 0x7a2   :  { %v15835_v43 = vpop.eup %15834  ;;  %11763 = vst [vmem:[%s22163_s10 + $0x590] sm:$0xff] %v15833_v39  ;;  %15854 = vpow2.f32 %v12715_v47  ;;  %v21404_v9 = vadd.f32 %v12834_v40, %v12833_v5  ;;  %v12723_v54 = vmul.f32 -1.442695, %v13472_v28 }
 0x7a3   :  { %v15837_v19 = vpop.eup %15836  ;;  %v11095_v63 = vadd.f32 1.0, %v15835_v43  ;;  %15856 = vpow2.f32 %v12717_v50 }
 0x7a4   :  { %v15839_v17 = vpop.eup %15838  ;;  %v11097_v38 = vadd.f32 1.0, %v15837_v19  ;;  %15858 = vpow2.f32 %v12721_v23  ;;  %v22333_v19 = vld [vmem:[#allocation6_spill] sm:$0xff] }
 0x7a5   :  { %v15841_v21 = vpop.eup %15840  ;;  %15860 = vrcp.f32 %v11095_v63  ;;  %v11096_v41 = vadd.f32 1.0, %v15839_v17  ;;  %v13410_v63 = vadd.f32 %v22333_v19, %v20517_v60 }
 0x7a6   :  { %v15843_v15 = vpop.eup %15842  ;;  %15862 = vrcp.f32 %v11097_v38  ;;  %v11098_v24 = vadd.f32 1.0, %v15841_v21  ;;  %v12836_v8 = vpop.f32.mrb[52].mxu1  ;;  %v22334_v21 = vld [vmem:[#allocation7_spill] sm:$0xff] }
 0x7a7   :  { %v15845_v13 = vpop.eup %15844  ;;  %15864 = vrcp.f32 %v11096_v41  ;;  %v11102_v29 = vadd.f32 1.0, %v15843_v15  ;;  %v12837_v23 = vpop.f32.mrb[53].mxu1  ;;  %v13474_v41 = vadd.f32 %v22334_v21, %v20520_v48 }
 0x7a8   :  { %v15847_v62 = vpop.eup %15846  ;;  %15866 = vrcp.f32 %v11098_v24  ;;  %v11104_v49 = vadd.f32 1.0, %v15845_v13  ;;  %v21414_v20 = vadd.f32 %v12837_v23, %v12836_v8  ;;  %v12839_v44 = vpop.f32.mrb[54].mxu1  ;;  %v22335_v24 = vld [vmem:[#allocation25_spill] sm:$0xff] }
 0x7a9   :  { %v15849_v56 = vpop.eup %15848  ;;  %15868 = vrcp.f32 %v11102_v29  ;;  %v11103_v53 = vadd.f32 1.0, %v15847_v62  ;;  %v12840_v5 = vpop.f32.mrb[55].mxu1  ;;  %v13411_v40 = vadd.f32 %v22335_v24, %v20525_v51  ;;  %v12724_v62 = vmul.f32 -1.442695, %v13473_v14  ;;  %v22339_v14 = vld [vmem:[#allocation29_spill] sm:$0xff] }
 0x7aa   :  { %v15851_v58 = vpop.eup %15850  ;;  %15870 = vrcp.f32 %v11104_v49  ;;  %v11105_v32 = vadd.f32 1.0, %v15849_v56  ;;  %v21420_v13 = vadd.f32 %v12840_v5, %v12839_v44  ;;  %v22336_v49 = vld [vmem:[#allocation8_spill] sm:$0xff] }
 0x7ab   :  { %v15853_v52 = vpop.eup %15852  ;;  %15872 = vrcp.f32 %v11103_v53  ;;  %v11109_v47 = vadd.f32 1.0, %v15851_v58  ;;  %v13475_v28 = vadd.f32 %v22336_v49, %v20528_v16  ;;  %v12728_v53 = vmul.f32 -1.442695, %v13410_v63  ;;  %v22337_v58 = vld [vmem:[#allocation9_spill] sm:$0xff] }
 0x7ac   :  { %v15855_v36 = vpop.eup %15854  ;;  %15874 = vrcp.f32 %v11105_v32  ;;  %v11111_v50 = vadd.f32 1.0, %v15853_v52  ;;  %v13412_v32 = vadd.f32 %v22337_v58, %v20517_v60  ;;  %v12730_v52 = vmul.f32 -1.442695, %v13474_v41 }
 0x7ad   :  { %v15857_v39 = vpop.eup %15856  ;;  %15876 = vrcp.f32 %v11109_v47  ;;  %v11110_v43 = vadd.f32 1.0, %v15855_v36  ;;  %v22338_v47 = vld [vmem:[#allocation23_spill] sm:$0xff]  ;;  %v13413_v60 = vadd.f32 %v22339_v14, %v20525_v51 }
 0x7ae   :  { %v15859_v17 = vpop.eup %15858  ;;  %15878 = vrcp.f32 %v11111_v50  ;;  %v11112_v38 = vadd.f32 1.0, %v15857_v39  ;;  %v13476_v8 = vadd.f32 %v22338_v47, %v20520_v48  ;;  %v12729_v50 = vmul.f32 -1.442695, %v13411_v40  ;;  %v12842_v23 = vpop.f32.mrb[56].mxu1  ;;  %v22340_v48 = vld [vmem:[#allocation27_spill] sm:$0xff] }
 0x7af   :  { %v15861_v15 = vpop.eup %15860  ;;  %15880 = vrcp.f32 %v11110_v43  ;;  %v11116_v3 = vadd.f32 1.0, %v15859_v17  ;;  %v13477_v43 = vadd.f32 %v22340_v48, %v20528_v16  ;;  %v12843_v19 = vpop.f32.mrb[57].mxu1  ;;  %v12735_v44 = vmul.f32 -1.442695, %v13412_v32 }
 0x7b0   :  { %v15863_v29 = vpop.eup %15862  ;;  %11767 = vst [vmem:[%s22163_s10 + $0x5b0] sm:$0xff] %v15861_v15  ;;  %15882 = vrcp.f32 %v11112_v38  ;;  %v21450_v51 = vadd.f32 %v12843_v19, %v12842_v23  ;;  %v12845_v17 = vpop.f32.mrb[58].mxu1  ;;  %v12736_v41 = vmul.f32 -1.442695, %v13413_v60 }
 0x7b1   :  { %v15865_v56 = vpop.eup %15864  ;;  %11769 = vst [vmem:[%s22163_s10 + $0x5c0] sm:$0xff] %v15863_v29  ;;  %15884 = vrcp.f32 %v11116_v3  ;;  %v12846_v21 = vpop.f32.mrb[59].mxu1  ;;  %v12738_v3 = vmul.f32 -1.442695, %v13477_v43  ;;  %v16314_v43 = vld [vmem:[%s22162_s9] sm:$0xff] }
 0x7b2   :  { %v15867_v59 = vpop.eup %15866  ;;  %11768 = vst [vmem:[%s22163_s10 + $0x5b8] sm:$0xff] %v15865_v56  ;;  %15886 = vpow2.f32 %v12723_v54  ;;  %v12731_v54 = vmul.f32 -1.442695, %v13475_v28  ;;  %v21458_v5 = vadd.f32 %v12846_v21, %v12845_v17  ;;  %v22341_v28 = vld [vmem:[#allocation5_spill] sm:$0xff] }
 0x7b3   :  { %v15869_v36 = vpop.eup %15868  ;;  %11770 = vst [vmem:[%s22163_s10 + $0x5c8] sm:$0xff] %v15867_v59  ;;  %15888 = vpow2.f32 %v12722_v7  ;;  %v12737_v7 = vmul.f32 -1.442695, %v13476_v8  ;;  %v7600_v56 = vsub.s32 6, %v22341_v28  ;;  %v7592_v58 = vsub.s32 4, %v22341_v28 }
 0x7b4   :  { %v15871_v39 = vpop.eup %15870  ;;  %11774 = vst [vmem:[%s22163_s10 + $0x5e8] sm:$0xff] %v15869_v36  ;;  %15890 = vpow2.f32 %v12724_v62  ;;  %v7596_v8 = vsub.s32 5, %v22341_v28 }
 0x7b5   :  { %v15873_v63 = vpop.eup %15872  ;;  %11776 = vst [vmem:[%s22163_s10 + $0x5f8] sm:$0xff] %v15871_v39  ;;  %15892 = vpow2.f32 %v12728_v53  ;;  %v21485_v19 = vrot.slane %v16314_v43, %v7600_v56 }
 0x7b6   :  { %v15875_v38 = vpop.eup %15874  ;;  %11775 = vst [vmem:[%s22163_s10 + $0x5f0] sm:$0xff] %v15873_v63  ;;  %15894 = vpow2.f32 %v12730_v52  ;;  %v12848_v62 = vpop.f32.mrb[60].mxu1  ;;  %v21487_v63 = vrot.slane %v16314_v43, %v7592_v58 }
 0x7b7   :  { %v15877_v16 = vpop.eup %15876  ;;  %11777 = vst [vmem:[%s22163_s10 + $0x600] sm:$0xff] %v15875_v38  ;;  %15896 = vpow2.f32 %v12729_v50  ;;  %v12849_v53 = vpop.f32.mrb[61].mxu1  ;;  %v21489_v38 = vrot.slane %v16314_v43, %v7596_v8  ;;  %v9957_v43 = vadd.f32 %v21090_v0, %v21485_v19 }
 0x7b8   :  { %v15879_v15 = vpop.eup %15878  ;;  %11781 = vst [vmem:[%s22163_s10 + $0x620] sm:$0xff] %v15877_v16  ;;  %15898 = vpow2.f32 %v12731_v54  ;;  %v21477_v52 = vadd.f32 %v12849_v53, %v12848_v62  ;;  %v12851_v47 = vpop.f32.mrb[62].mxu1 }
 0x7b9   :  { %v15881_v24 = vpop.eup %15880  ;;  %11783 = vst [vmem:[%s22163_s10 + $0x630] sm:$0xff] %v15879_v15  ;;  %15900 = vpow2.f32 %v12735_v44  ;;  %v12852_v14 = vpop.f32.mrb[63].mxu1 }
 0x7ba   :  { %v15883_v40 = vpop.eup %15882  ;;  %11782 = vst [vmem:[%s22163_s10 + $0x628] sm:$0xff] %v15881_v24  ;;  %15902 = vpow2.f32 %v12737_v7  ;;  %v21480_v39 = vadd.f32 %v12852_v14, %v12851_v47 }
 0x7bb   :  { %v15885_v29 = vpop.eup %15884  ;;  %11784 = vst [vmem:[%s22163_s10 + $0x638] sm:$0xff] %v15883_v40  ;;  %15904 = vpow2.f32 %v12736_v41 }
 0x7bc   :  { %v15887_v49 = vpop.eup %15886  ;;  %11788 = vst [vmem:[%s22163_s10 + $0x658] sm:$0xff] %v15885_v29  ;;  %15906 = vpow2.f32 %v12738_v3  ;;  %v9954_v29 = vadd.f32 %v21084_v61, %v21485_v19 }
 0x7bd   :  { %v15889_v32 = vpop.eup %15888  ;;  %v11118_v59 = vadd.f32 1.0, %v15887_v49 }
 0x7be   :  { %v15891_v36 = vpop.eup %15890  ;;  %v11117_v50 = vadd.f32 1.0, %v15889_v32  ;;  %v9760_v15 = vpop.f32.mrb[0].mxu0 }
 0x7bf   :  { %v15893_v60 = vpop.eup %15892  ;;  %15908 = vrcp.f32 %v11118_v59  ;;  %v11119_v23 = vadd.f32 1.0, %v15891_v36  ;;  %v12870_v3 = vpop.f32.mrb[64].mxu1  ;;  %v13478_v62 = vadd.f32 %v9760_v15, %v21487_v63 }
 0x7c0   :  { %v15895_v54 = vpop.eup %15894  ;;  %15910 = vrcp.f32 %v11117_v50  ;;  %v11123_v48 = vadd.f32 1.0, %v15893_v60  ;;  %v9762_v49 = vpop.f32.mrb[1].mxu0 }
 0x7c1   :  { %v15897_v44 = vpop.eup %15896  ;;  %15912 = vrcp.f32 %v11119_v23  ;;  %v11125_v17 = vadd.f32 1.0, %v15895_v54  ;;  %v12871_v28 = vpop.f32.mrb[65].mxu1  ;;  %v13479_v58 = vadd.f32 %v9762_v49, %v21489_v38  ;;  %v12522_v50 = vmul.f32 -1.442695, %v13478_v62 }
 0x7c2   :  { %v15899_v7 = vpop.eup %15898  ;;  %15914 = vrcp.f32 %v11123_v48  ;;  %v11124_v21 = vadd.f32 1.0, %v15897_v44  ;;  %v12872_v32 = vadd.f32 %v12871_v28, %v12870_v3  ;;  %v9764_v59 = vpop.f32.mrb[2].mxu0 }
 0x7c3   :  { %v15901_v16 = vpop.eup %15900  ;;  %15916 = vrcp.f32 %v11125_v17  ;;  %v11126_v41 = vadd.f32 1.0, %v15899_v7  ;;  %v12873_v47 = vpop.f32.mrb[66].mxu1  ;;  %v13480_v14 = vadd.f32 %v9764_v59, %v21487_v63  ;;  %v12523_v54 = vmul.f32 -1.442695, %v13479_v58 }
 0x7c4   :  { %v15903_v24 = vpop.eup %15902  ;;  %15918 = vrcp.f32 %v11124_v21  ;;  %v11130_v40 = vadd.f32 1.0, %v15901_v16  ;;  %v9766_v60 = vpop.f32.mrb[3].mxu0  ;;  %v10115_v48 = vadd.f32 %v12872_v32, %v9954_v29  ;;  %v9962_v58 = vadd.f32 %v21126_v2, %v21485_v19 }
 0x7c5   :  { %v15905_v56 = vpop.eup %15904  ;;  %15920 = vrcp.f32 %v11126_v41  ;;  %v11132_v53 = vadd.f32 1.0, %v15903_v24  ;;  %v12874_v61 = vpop.f32.mrb[67].mxu1  ;;  %v13481_v44 = vadd.f32 %v9766_v60, %v21489_v38  ;;  %v12529_v16 = vmul.f32 -1.442695, %v13480_v14 }
 0x7c6   :  { %v15907_v8 = vpop.eup %15906  ;;  %15922 = vrcp.f32 %v11130_v40  ;;  %v11131_v36 = vadd.f32 1.0, %v15905_v56  ;;  %v12875_v17 = vadd.f32 %v12874_v61, %v12873_v47  ;;  %v12524_v21 = vmul.f32 -1.442695, %v10115_v48  ;;  %v9770_v0 = vpop.f32.mrb[4].mxu0 }
 0x7c7   :  { %15924 = vrcp.f32 %v11132_v53  ;;  %v11133_v23 = vadd.f32 1.0, %v15907_v8  ;;  %v12530_v15 = vmul.f32 -1.442695, %v13481_v44  ;;  %v12876_v40 = vpop.f32.mrb[68].mxu1  ;;  %v13482_v49 = vadd.f32 %v9770_v0, %v21487_v63  ;;  %v9772_v28 = vpop.f32.mrb[5].mxu0 }
 0x7c8   :  { %15926 = vrcp.f32 %v11131_v36  ;;  %v10118_v3 = vadd.f32 %v12875_v17, %v9957_v43  ;;  %v12877_v56 = vpop.f32.mrb[69].mxu1  ;;  %v13483_v32 = vadd.f32 %v9772_v28, %v21489_v38  ;;  %v9774_v47 = vpop.f32.mrb[6].mxu0  ;;  %v9965_v44 = vadd.f32 %v21136_v42, %v21485_v19 }
 0x7c9   :  { %v15909_v7 = vpop.eup %15908  ;;  %15928 = vrcp.f32 %v11133_v23  ;;  %v12878_v59 = vadd.f32 %v12877_v56, %v12876_v40  ;;  %v12879_v8 = vpop.f32.mrb[70].mxu1  ;;  %v13484_v14 = vadd.f32 %v9774_v47, %v21487_v63  ;;  %v9970_v56 = vadd.f32 %v21157_v30, %v21485_v19 }
 0x7ca   :  { %v15911_v41 = vpop.eup %15910  ;;  %11790 = vst [vmem:[%s22163_s10 + $0x668] sm:$0xff] %v15909_v7  ;;  %15930 = vpow2.f32 %v12522_v50  ;;  %v12531_v62 = vmul.f32 -1.442695, %v10118_v3  ;;  %v12536_v50 = vmul.f32 -1.442695, %v13482_v49  ;;  %v9776_v60 = vpop.f32.mrb[7].mxu0 }
 0x7cb   :  { %v15913_v24 = vpop.eup %15912  ;;  %11789 = vst [vmem:[%s22163_s10 + $0x660] sm:$0xff] %v15911_v41  ;;  %15932 = vpow2.f32 %v12523_v54  ;;  %v12880_v61 = vpop.f32.mrb[71].mxu1  ;;  %v12537_v2 = vmul.f32 -1.442695, %v13483_v32  ;;  %v10123_v54 = vadd.f32 %v12878_v59, %v9962_v58  ;;  %v13485_v48 = vadd.f32 %v9776_v60, %v21489_v38 }
 0x7cc   :  { %v15915_v29 = vpop.eup %15914  ;;  %11791 = vst [vmem:[%s22163_s10 + $0x670] sm:$0xff] %v15913_v24  ;;  %15934 = vpow2.f32 %v12524_v21  ;;  %v12543_v17 = vmul.f32 -1.442695, %v13484_v14  ;;  %v12881_v7 = vadd.f32 %v12880_v61, %v12879_v8 }
 0x7cd   :  { %v15917_v53 = vpop.eup %15916  ;;  %11795 = vst [vmem:[%s22163_s10 + $0x690] sm:$0xff] %v15915_v29  ;;  %15936 = vpow2.f32 %v12529_v16  ;;  %v12538_v16 = vmul.f32 -1.442695, %v10123_v54  ;;  %v12544_v41 = vmul.f32 -1.442695, %v13485_v48 }
 0x7ce   :  { %v15919_v36 = vpop.eup %15918  ;;  %11797 = vst [vmem:[%s22163_s10 + $0x6a0] sm:$0xff] %v15917_v53  ;;  %15938 = vpow2.f32 %v12530_v15  ;;  %v10126_v3 = vadd.f32 %v12881_v7, %v9965_v44  ;;  %v9780_v42 = vpop.f32.mrb[8].mxu0 }
 0x7cf   :  { %v15921_v23 = vpop.eup %15920  ;;  %11796 = vst [vmem:[%s22163_s10 + $0x698] sm:$0xff] %v15919_v36  ;;  %15940 = vpow2.f32 %v12531_v62  ;;  %v12882_v0 = vpop.f32.mrb[72].mxu1 }
 0x7d0   :  { %v15923_v43 = vpop.eup %15922  ;;  %11798 = vst [vmem:[%s22163_s10 + $0x6a8] sm:$0xff] %v15921_v23  ;;  %15942 = vpow2.f32 %v12536_v50  ;;  %v12545_v29 = vmul.f32 -1.442695, %v10126_v3  ;;  %v9782_v62 = vpop.f32.mrb[9].mxu0 }
 0x7d1   :  { %v15925_v21 = vpop.eup %15924  ;;  %11802 = vst [vmem:[%s22163_s10 + $0x6c8] sm:$0xff] %v15923_v43  ;;  %15944 = vpow2.f32 %v12537_v2  ;;  %v12883_v49 = vpop.f32.mrb[73].mxu1  ;;  %v9973_v2 = vadd.f32 %v21159_v12, %v21485_v19  ;;  %v13486_v43 = vadd.f32 %v9780_v42, %v21487_v63  ;;  %v9978_v42 = vadd.f32 %v21169_v34, %v21485_v19 }
 0x7d2   :  { %v15927_v15 = vpop.eup %15926  ;;  %11804 = vst [vmem:[%s22163_s10 + $0x6d8] sm:$0xff] %v15925_v21  ;;  %15946 = vpow2.f32 %v12543_v17  ;;  %v12884_v58 = vadd.f32 %v12883_v49, %v12882_v0  ;;  %v9784_v32 = vpop.f32.mrb[10].mxu0  ;;  %v13487_v0 = vadd.f32 %v9782_v62, %v21489_v38  ;;  %v9981_v62 = vadd.f32 %v21175_v31, %v21485_v19 }
 0x7d3   :  { %v15929_v24 = vpop.eup %15928  ;;  %11803 = vst [vmem:[%s22163_s10 + $0x6d0] sm:$0xff] %v15927_v15  ;;  %15948 = vpow2.f32 %v12538_v16  ;;  %v12885_v59 = vpop.f32.mrb[74].mxu1 }
 0x7d4   :  { %v15931_v40 = vpop.eup %15930  ;;  %11805 = vst [vmem:[%s22163_s10 + $0x6e0] sm:$0xff] %v15929_v24  ;;  %15950 = vpow2.f32 %v12544_v41  ;;  %v9786_v36 = vpop.f32.mrb[11].mxu0  ;;  %v10131_v61 = vadd.f32 %v12884_v58, %v9970_v56  ;;  %v12550_v56 = vmul.f32 -1.442695, %v13486_v43 }
 0x7d5   :  { %v15933_v28 = vpop.eup %15932  ;;  %v10917_v53 = vadd.f32 1.0, %v15931_v40  ;;  %15952 = vpow2.f32 %v12545_v29  ;;  %v12886_v50 = vpop.f32.mrb[75].mxu1  ;;  %v13489_v34 = vadd.f32 %v9786_v36, %v21489_v38 }
 0x7d6   :  { %v15935_v47 = vpop.eup %15934  ;;  %v10918_v8 = vadd.f32 1.0, %v15933_v28  ;;  %v12887_v44 = vadd.f32 %v12886_v50, %v12885_v59  ;;  %v9790_v15 = vpop.f32.mrb[12].mxu0 }
 0x7d7   :  { %v15937_v14 = vpop.eup %15936  ;;  %15954 = vrcp.f32 %v10917_v53  ;;  %v10919_v60 = vadd.f32 1.0, %v15935_v47  ;;  %v12888_v3 = vpop.f32.mrb[76].mxu1 }
 0x7d8   :  { %v15939_v23 = vpop.eup %15938  ;;  %15956 = vrcp.f32 %v10918_v8  ;;  %v10924_v54 = vadd.f32 1.0, %v15937_v14  ;;  %v10134_v41 = vadd.f32 %v12887_v44, %v9973_v2  ;;  %v9792_v40 = vpop.f32.mrb[13].mxu0  ;;  %v13488_v8 = vadd.f32 %v9784_v32, %v21487_v63 }
 0x7d9   :  { %v15941_v30 = vpop.eup %15940  ;;  %15958 = vrcp.f32 %v10919_v60  ;;  %v10925_v48 = vadd.f32 1.0, %v15939_v23  ;;  %v12889_v29 = vpop.f32.mrb[77].mxu1  ;;  %v13490_v32 = vadd.f32 %v9790_v15, %v21487_v63  ;;  %v13491_v36 = vadd.f32 %v9792_v40, %v21489_v38 }
 0x7da   :  { %v15943_v17 = vpop.eup %15942  ;;  %15960 = vrcp.f32 %v10924_v54  ;;  %v10926_v7 = vadd.f32 1.0, %v15941_v30  ;;  %v9794_v53 = vpop.f32.mrb[14].mxu0  ;;  %v12890_v50 = vadd.f32 %v12889_v29, %v12888_v3  ;;  %v12551_v54 = vmul.f32 -1.442695, %v13487_v0 }
 0x7db   :  { %v15945_v21 = vpop.eup %15944  ;;  %15962 = vrcp.f32 %v10925_v48  ;;  %v10931_v16 = vadd.f32 1.0, %v15943_v17  ;;  %v12891_v58 = vpop.f32.mrb[78].mxu1  ;;  %v12552_v17 = vmul.f32 -1.442695, %v10131_v61  ;;  %v12557_v31 = vmul.f32 -1.442695, %v13488_v8 }
 0x7dc   :  { %v15947_v24 = vpop.eup %15946  ;;  %15964 = vrcp.f32 %v10926_v7  ;;  %v10932_v12 = vadd.f32 1.0, %v15945_v21  ;;  %v9796_v14 = vpop.f32.mrb[15].mxu0  ;;  %v10139_v30 = vadd.f32 %v12890_v50, %v9978_v42  ;;  %v12558_v3 = vmul.f32 -1.442695, %v13489_v34 }
 0x7dd   :  { %v15949_v49 = vpop.eup %15948  ;;  %15966 = vrcp.f32 %v10931_v16  ;;  %v10938_v28 = vadd.f32 1.0, %v15947_v24  ;;  %v12892_v60 = vpop.f32.mrb[79].mxu1  ;;  %v12559_v0 = vmul.f32 -1.442695, %v10134_v41  ;;  %v13492_v40 = vadd.f32 %v9794_v53, %v21487_v63 }
 0x7de   :  { %v15951_v59 = vpop.eup %15950  ;;  %15968 = vrcp.f32 %v10932_v12  ;;  %v10933_v47 = vadd.f32 1.0, %v15949_v49  ;;  %v12893_v48 = vadd.f32 %v12892_v60, %v12891_v58  ;;  %v9800_v61 = vpop.f32.mrb[16].mxu0  ;;  %v9986_v12 = vadd.f32 %v21205_v26, %v21485_v19 }
 0x7df   :  { %15970 = vrcp.f32 %v10938_v28  ;;  %v10939_v23 = vadd.f32 1.0, %v15951_v59  ;;  %v15953_v2 = vpop.eup %15952  ;;  %v12894_v24 = vpop.f32.mrb[80].mxu1  ;;  %v12564_v28 = vmul.f32 -1.442695, %v13490_v32  ;;  %v13493_v26 = vadd.f32 %v9796_v14, %v21489_v38 }
 0x7e0   :  { %15972 = vrcp.f32 %v10933_v47  ;;  %v10940_v44 = vadd.f32 1.0, %v15953_v2  ;;  %v10142_v21 = vadd.f32 %v12893_v48, %v9981_v62  ;;  %v21566_v29 = vpop.f32.mrb[17].mxu0  ;;  %v12895_v49 = vpop.f32.mrb[81].mxu1  ;;  %v12565_v41 = vmul.f32 -1.442695, %v13491_v36 }
 0x7e1   :  { %v15955_v43 = vpop.eup %15954  ;;  %15974 = vrcp.f32 %v10939_v23  ;;  %v21572_v58 = vpop.f32.mrb[18].mxu0  ;;  %v9989_v60 = vadd.f32 %v21217_v55, %v21485_v19  ;;  %v12566_v14 = vmul.f32 -1.442695, %v10139_v30  ;;  %v12571_v34 = vmul.f32 -1.442695, %v13492_v40 }
 0x7e2   :  { %v15957_v7 = vpop.eup %15956  ;;  %11589 = vst [vmem:[%s22163_s10 + $0x20] sm:$0xff] %v15955_v43  ;;  %15976 = vpow2.f32 %v12550_v56  ;;  %v12896_v56 = vadd.f32 %v12895_v49, %v12894_v24  ;;  %v12897_v59 = vpop.f32.mrb[82].mxu1  ;;  %v13494_v2 = vadd.f32 %v9800_v61, %v21487_v63  ;;  %v12572_v55 = vmul.f32 -1.442695, %v13493_v26 }
 0x7e3   :  { %v15959_v16 = vpop.eup %15958  ;;  %11590 = vst [vmem:[%s22163_s10 + $0x28] sm:$0xff] %v15957_v7  ;;  %15978 = vrcp.f32 %v10940_v44  ;;  %v21577_v53 = vpop.f32.mrb[19].mxu0  ;;  %v12573_v43 = vmul.f32 -1.442695, %v10142_v21  ;;  %v9994_v61 = vadd.f32 %v21241_v37, %v21485_v19 }
 0x7e4   :  { %v15961_v15 = vpop.eup %15960  ;;  %11591 = vst [vmem:[%s22163_s10 + $0x30] sm:$0xff] %v15959_v16  ;;  %15980 = vpow2.f32 %v12551_v54  ;;  %v12898_v8 = vpop.f32.mrb[83].mxu1  ;;  %v21584_v62 = vadd.f32 %v12896_v56, %v9986_v12  ;;  %v12578_v36 = vmul.f32 -1.442695, %v13494_v2  ;;  %v13495_v2 = vadd.f32 %v21566_v29, %v21489_v38 }
 0x7e5   :  { %v15963_v42 = vpop.eup %15962  ;;  %11596 = vst [vmem:[%s22163_s10 + $0x58] sm:$0xff] %v15961_v15  ;;  %15982 = vpow2.f32 %v12552_v17  ;;  %v12899_v54 = vadd.f32 %v12898_v8, %v12897_v59 }
 0x7e6   :  { %v15965_v47 = vpop.eup %15964  ;;  %11597 = vst [vmem:[%s22163_s10 + $0x60] sm:$0xff] %v15963_v42  ;;  %15984 = vpow2.f32 %v12557_v31  ;;  %v21601_v32 = vpop.f32.mrb[20].mxu0 }
 0x7e7   :  { %v15967_v50 = vpop.eup %15966  ;;  %11598 = vst [vmem:[%s22163_s10 + $0x68] sm:$0xff] %v15965_v47  ;;  %15986 = vpow2.f32 %v12558_v3  ;;  %v21596_v44 = vadd.f32 %v12899_v54, %v9989_v60  ;;  %v12900_v7 = vpop.f32.mrb[84].mxu1 }
 0x7e8   :  { %v15969_v23 = vpop.eup %15968  ;;  %11603 = vst [vmem:[%s22163_s10 + $0x90] sm:$0xff] %v15967_v50  ;;  %15988 = vpow2.f32 %v12559_v0  ;;  %v21606_v16 = vpop.f32.mrb[21].mxu0 }
 0x7e9   :  { %v15971_v48 = vpop.eup %15970  ;;  %11604 = vst [vmem:[%s22163_s10 + $0x98] sm:$0xff] %v15969_v23  ;;  %15990 = vpow2.f32 %v12564_v28  ;;  %v12901_v21 = vpop.f32.mrb[85].mxu1 }
 0x7ea   :  { %v15973_v30 = vpop.eup %15972  ;;  %11610 = vst [vmem:[%s22163_s10 + $0xc8] sm:$0xff] %v15971_v48  ;;  %15992 = vpow2.f32 %v12565_v41  ;;  %v12902_v15 = vadd.f32 %v12901_v21, %v12900_v7  ;;  %v21610_v12 = vpop.f32.mrb[22].mxu0  ;;  %v9997_v41 = vadd.f32 %v21246_v57, %v21485_v19 }
 0x7eb   :  { %v15975_v17 = vpop.eup %15974  ;;  %11605 = vst [vmem:[%s22163_s10 + $0xa0] sm:$0xff] %v15973_v30  ;;  %15994 = vpow2.f32 %v12566_v14  ;;  %v12903_v0 = vpop.f32.mrb[86].mxu1 }
 0x7ec   :  { %v15977_v31 = vpop.eup %15976  ;;  %11611 = vst [vmem:[%s22163_s10 + $0xd0] sm:$0xff] %v15975_v17  ;;  %15996 = vpow2.f32 %v12571_v34  ;;  %v21615_v49 = vpop.f32.mrb[23].mxu0  ;;  %v21617_v56 = vadd.f32 %v12902_v15, %v9994_v61 }
 0x7ed   :  { %v15979_v3 = vpop.eup %15978  ;;  %v10945_v24 = vadd.f32 1.0, %v15977_v31  ;;  %15998 = vpow2.f32 %v12572_v55  ;;  %v12904_v42 = vpop.f32.mrb[87].mxu1  ;;  %v10002_v31 = vadd.f32 %v21248_v27, %v21485_v19 }
 0x7ee   :  { %v15981_v40 = vpop.eup %15980  ;;  %11612 = vst [vmem:[%s22163_s10 + $0xd8] sm:$0xff] %v15979_v3  ;;  %16000 = vpow2.f32 %v12573_v43  ;;  %v12905_v50 = vadd.f32 %v12904_v42, %v12903_v0  ;;  %v21625_v48 = vpop.f32.mrb[24].mxu0 }
 0x7ef   :  { %v15983_v28 = vpop.eup %15982  ;;  %16002 = vrcp.f32 %v10945_v24  ;;  %v10946_v26 = vadd.f32 1.0, %v15981_v40  ;;  %v12906_v55 = vpop.f32.mrb[88].mxu1  ;;  %v13496_v24 = vadd.f32 %v21572_v58, %v21487_v63  ;;  %v10005_v58 = vadd.f32 %v21254_v6, %v21485_v19 }
 0x7f0   :  { %v15985_v37 = vpop.eup %15984  ;;  %v10947_v59 = vadd.f32 1.0, %v15983_v28  ;;  %16004 = vpow2.f32 %v12578_v36  ;;  %v21623_v54 = vadd.f32 %v12905_v50, %v9997_v41  ;;  %v21627_v43 = vpop.f32.mrb[25].mxu0  ;;  %v13499_v6 = vadd.f32 %v21606_v16, %v21489_v38 }
 0x7f1   :  { %v15987_v47 = vpop.eup %15986  ;;  %16006 = vrcp.f32 %v10946_v26  ;;  %v10952_v8 = vadd.f32 1.0, %v15985_v37  ;;  %v12907_v17 = vpop.f32.mrb[89].mxu1  ;;  %v12579_v26 = vmul.f32 -1.442695, %v13495_v2  ;;  %v12587_v16 = vmul.f32 -1.442695, %v21596_v44 }
 0x7f2   :  { %v15989_v60 = vpop.eup %15988  ;;  %16008 = vrcp.f32 %v10947_v59  ;;  %v10953_v14 = vadd.f32 1.0, %v15987_v47  ;;  %v21631_v21 = vpop.f32.mrb[26].mxu0  ;;  %v12908_v15 = vadd.f32 %v12907_v17, %v12906_v55  ;;  %v13497_v59 = vadd.f32 %v21577_v53, %v21489_v38 }
 0x7f3   :  { %v15991_v23 = vpop.eup %15990  ;;  %16010 = vrcp.f32 %v10952_v8  ;;  %v10954_v34 = vadd.f32 1.0, %v15989_v60  ;;  %v12909_v29 = vpop.f32.mrb[90].mxu1  ;;  %v13498_v53 = vadd.f32 %v21601_v32, %v21487_v63 }
 0x7f4   :  { %v15993_v30 = vpop.eup %15992  ;;  %16012 = vrcp.f32 %v10953_v14  ;;  %v10959_v57 = vadd.f32 1.0, %v15991_v23  ;;  %v21635_v0 = vpop.f32.mrb[27].mxu0  ;;  %v21639_v47 = vadd.f32 %v12908_v15, %v10002_v31  ;;  %v12580_v14 = vmul.f32 -1.442695, %v21584_v62 }
 0x7f5   :  { %v15995_v7 = vpop.eup %15994  ;;  %16014 = vrcp.f32 %v10954_v34  ;;  %v10960_v36 = vadd.f32 1.0, %v15993_v30  ;;  %v12910_v40 = vpop.f32.mrb[91].mxu1  ;;  %v12585_v23 = vmul.f32 -1.442695, %v13496_v24  ;;  %v12586_v62 = vmul.f32 -1.442695, %v13497_v59 }
 0x7f6   :  { %v15997_v3 = vpop.eup %15996  ;;  %16016 = vrcp.f32 %v10959_v57  ;;  %v10961_v61 = vadd.f32 1.0, %v15995_v7  ;;  %v12911_v50 = vadd.f32 %v12910_v40, %v12909_v29  ;;  %v21653_v30 = vpop.f32.mrb[28].mxu0  ;;  %v10010_v7 = vadd.f32 %v21274_v10, %v21485_v19 }
 0x7f7   :  { %v15999_v42 = vpop.eup %15998  ;;  %16018 = vrcp.f32 %v10960_v36  ;;  %v10966_v28 = vadd.f32 1.0, %v15997_v3  ;;  %v12912_v57 = vpop.f32.mrb[92].mxu1  ;;  %v13500_v10 = vadd.f32 %v21610_v12, %v21487_v63  ;;  %v12592_v15 = vmul.f32 -1.442695, %v13498_v53 }
 0x7f8   :  { %v16001_v27 = vpop.eup %16000  ;;  %16020 = vrcp.f32 %v10961_v61  ;;  %v10967_v37 = vadd.f32 1.0, %v15999_v42  ;;  %v21651_v55 = vadd.f32 %v12911_v50, %v10005_v58  ;;  %v21660_v32 = vpop.f32.mrb[29].mxu0  ;;  %v13501_v40 = vadd.f32 %v21615_v49, %v21489_v38 }
 0x7f9   :  { %v16003_v41 = vpop.eup %16002  ;;  %16022 = vrcp.f32 %v10966_v28  ;;  %v10968_v8 = vadd.f32 1.0, %v16001_v27  ;;  %v12913_v31 = vpop.f32.mrb[93].mxu1  ;;  %v10013_v12 = vadd.f32 %v21286_v1, %v21485_v19  ;;  %v12594_v49 = vmul.f32 -1.442695, %v21617_v56 }
 0x7fa   :  { %v16005_v60 = vpop.eup %16004  ;;  %11617 = vst [vmem:[%s22163_s10 + $0x100] sm:$0xff] %v16003_v41  ;;  %16024 = vrcp.f32 %v10967_v37  ;;  %v12914_v29 = vadd.f32 %v12913_v31, %v12912_v57  ;;  %v21668_v3 = vpop.f32.mrb[30].mxu0  ;;  %v13502_v59 = vadd.f32 %v21625_v48, %v21487_v63  ;;  %v12599_v58 = vmul.f32 -1.442695, %v13500_v10 }
 0x7fb   :  { %v16007_v34 = vpop.eup %16006  ;;  %16026 = vrcp.f32 %v10968_v8  ;;  %v10973_v2 = vadd.f32 1.0, %v16005_v60  ;;  %v12915_v61 = vpop.f32.mrb[94].mxu1  ;;  %v12600_v50 = vmul.f32 -1.442695, %v13501_v40  ;;  %v13503_v56 = vadd.f32 %v21627_v43, %v21489_v38 }
 0x7fc   :  { %v16009_v17 = vpop.eup %16008  ;;  %11618 = vst [vmem:[%s22163_s10 + $0x108] sm:$0xff] %v16007_v34  ;;  %16028 = vpow2.f32 %v12579_v26  ;;  %v21675_v42 = vpop.f32.mrb[31].mxu0  ;;  %v12593_v26 = vmul.f32 -1.442695, %v13499_v6  ;;  %v21682_v27 = vadd.f32 %v12914_v29, %v10010_v7  ;;  %v12606_v43 = vmul.f32 -1.442695, %v13502_v59 }
 0x7fd   :  { %v16011_v36 = vpop.eup %16010  ;;  %11619 = vst [vmem:[%s22163_s10 + $0x110] sm:$0xff] %v16009_v17  ;;  %16030 = vrcp.f32 %v10973_v2  ;;  %v12916_v44 = vpop.f32.mrb[95].mxu1  ;;  %v10018_v17 = vadd.f32 %v21312_v46, %v21485_v19 }
 0x7fe   :  { %v16013_v24 = vpop.eup %16012  ;;  %11624 = vst [vmem:[%s22163_s10 + $0x138] sm:$0xff] %v16011_v36  ;;  %16032 = vpow2.f32 %v12580_v14  ;;  %v12917_v1 = vadd.f32 %v12916_v44, %v12915_v61  ;;  %v12601_v14 = vmul.f32 -1.442695, %v21623_v54  ;;  %v12918_v53 = vpop.f32.mrb[96].mxu1  ;;  %v12607_v36 = vmul.f32 -1.442695, %v13503_v56 }
 0x7ff   :  { %v16015_v28 = vpop.eup %16014  ;;  %11625 = vst [vmem:[%s22163_s10 + $0x140] sm:$0xff] %v16013_v24  ;;  %16034 = vpow2.f32 %v12585_v23  ;;  %v21704_v23 = vpop.f32.mrb[32].mxu0 }
 0x800   :  { %v16017_v37 = vpop.eup %16016  ;;  %11626 = vst [vmem:[%s22163_s10 + $0x148] sm:$0xff] %v16015_v28  ;;  %16036 = vpow2.f32 %v12586_v62  ;;  %v21698_v60 = vadd.f32 %v12917_v1, %v10013_v12  ;;  %v21709_v2 = vpop.f32.mrb[33].mxu0 }
 0x801   :  { %v16019_v41 = vpop.eup %16018  ;;  %11631 = vst [vmem:[%s22163_s10 + $0x170] sm:$0xff] %v16017_v37  ;;  %16038 = vpow2.f32 %v12587_v16  ;;  %v12919_v6 = vpop.f32.mrb[97].mxu1 }
 0x802   :  { %v16021_v8 = vpop.eup %16020  ;;  %11632 = vst [vmem:[%s22163_s10 + $0x178] sm:$0xff] %v16019_v41  ;;  %16040 = vpow2.f32 %v12592_v15  ;;  %v12920_v54 = vadd.f32 %v12919_v6, %v12918_v53  ;;  %v21716_v7 = vpop.f32.mrb[34].mxu0  ;;  %v10021_v15 = vadd.f32 %v21320_v11, %v21485_v19 }
 0x803   :  { %v16023_v48 = vpop.eup %16022  ;;  %11633 = vst [vmem:[%s22163_s10 + $0x180] sm:$0xff] %v16021_v8  ;;  %16042 = vpow2.f32 %v12593_v26  ;;  %v12921_v62 = vpop.f32.mrb[98].mxu1 }
 0x804   :  { %v16025_v34 = vpop.eup %16024  ;;  %11638 = vst [vmem:[%s22163_s10 + $0x1a8] sm:$0xff] %v16023_v48  ;;  %16044 = vpow2.f32 %v12594_v49  ;;  %v21721_v16 = vpop.f32.mrb[35].mxu0  ;;  %v21723_v61 = vadd.f32 %v12920_v54, %v10018_v17  ;;  %v10026_v48 = vadd.f32 %v21325_v25, %v21485_v19  ;;  %v10029_v25 = vadd.f32 %v21329_v45, %v21485_v19 }
 0x805   :  { %v16027_v57 = vpop.eup %16026  ;;  %11639 = vst [vmem:[%s22163_s10 + $0x1b0] sm:$0xff] %v16025_v34  ;;  %16046 = vpow2.f32 %v12599_v58  ;;  %v12922_v10 = vpop.f32.mrb[99].mxu1 }
 0x806   :  { %v16029_v31 = vpop.eup %16028  ;;  %11640 = vst [vmem:[%s22163_s10 + $0x1b8] sm:$0xff] %v16027_v57  ;;  %16048 = vpow2.f32 %v12600_v50  ;;  %v12923_v40 = vadd.f32 %v12922_v10, %v12921_v62  ;;  %v21732_v1 = vpop.f32.mrb[36].mxu0 }
 0x807   :  { %v16031_v46 = vpop.eup %16030  ;;  %v10974_v29 = vadd.f32 1.0, %v16029_v31  ;;  %16050 = vpow2.f32 %v12601_v14  ;;  %v12924_v11 = vpop.f32.mrb[100].mxu1 }
 0x808   :  { %v16033_v24 = vpop.eup %16032  ;;  %11645 = vst [vmem:[%s22163_s10 + $0x1e0] sm:$0xff] %v16031_v46  ;;  %16052 = vpow2.f32 %v12606_v43  ;;  %v21730_v37 = vadd.f32 %v12923_v40, %v10021_v15  ;;  %v21734_v8 = vpop.f32.mrb[37].mxu0  ;;  %v13505_v40 = vadd.f32 %v21635_v0, %v21489_v38  ;;  %v10034_v0 = vadd.f32 %v21341_v35, %v21485_v19 }
 0x809   :  { %v16035_v44 = vpop.eup %16034  ;;  %16054 = vrcp.f32 %v10974_v29  ;;  %v10975_v28 = vadd.f32 1.0, %v16033_v24  ;;  %v12925_v50 = vpop.f32.mrb[101].mxu1  ;;  %v13504_v29 = vadd.f32 %v21631_v21, %v21487_v63 }
 0x80a   :  { %v16037_v12 = vpop.eup %16036  ;;  %v10980_v26 = vadd.f32 1.0, %v16035_v44  ;;  %16056 = vpow2.f32 %v12607_v36  ;;  %v12926_v53 = vadd.f32 %v12925_v50, %v12924_v11  ;;  %v21738_v34 = vpop.f32.mrb[38].mxu0  ;;  %v13507_v50 = vadd.f32 %v21660_v32, %v21489_v38 }
 0x80b   :  { %v16039_v49 = vpop.eup %16038  ;;  %16058 = vrcp.f32 %v10975_v28  ;;  %v10981_v59 = vadd.f32 1.0, %v16037_v12  ;;  %v12927_v43 = vpop.f32.mrb[102].mxu1  ;;  %v12615_v32 = vmul.f32 -1.442695, %v21651_v55 }
 0x80c   :  { %v16041_v41 = vpop.eup %16040  ;;  %16060 = vrcp.f32 %v10980_v26  ;;  %v10982_v58 = vadd.f32 1.0, %v16039_v49  ;;  %v21740_v17 = vpop.f32.mrb[39].mxu0  ;;  %v21742_v36 = vadd.f32 %v12926_v53, %v10026_v48  ;;  %v12608_v26 = vmul.f32 -1.442695, %v21639_v47 }
 0x80d   :  { %v16043_v56 = vpop.eup %16042  ;;  %16062 = vrcp.f32 %v10981_v59  ;;  %v10987_v14 = vadd.f32 1.0, %v16041_v41  ;;  %v12928_v54 = vpop.f32.mrb[103].mxu1  ;;  %v13506_v59 = vadd.f32 %v21653_v30, %v21487_v63  ;;  %v12613_v47 = vmul.f32 -1.442695, %v13504_v29 }
 0x80e   :  { %v16045_v6 = vpop.eup %16044  ;;  %16064 = vrcp.f32 %v10982_v58  ;;  %v10988_v57 = vadd.f32 1.0, %v16043_v56  ;;  %v12929_v44 = vadd.f32 %v12928_v54, %v12927_v43  ;;  %v21755_v21 = vpop.f32.mrb[40].mxu0  ;;  %v12614_v43 = vmul.f32 -1.442695, %v13505_v40 }
 0x80f   :  { %v16047_v62 = vpop.eup %16046  ;;  %16066 = vrcp.f32 %v10987_v14  ;;  %v10989_v31 = vadd.f32 1.0, %v16045_v6  ;;  %v12930_v41 = vpop.f32.mrb[104].mxu1  ;;  %v10037_v14 = vadd.f32 %v21353_v22, %v21485_v19  ;;  %v13508_v54 = vadd.f32 %v21668_v3, %v21487_v63 }
 0x810   :  { %v16049_v10 = vpop.eup %16048  ;;  %16068 = vrcp.f32 %v10988_v57  ;;  %v10994_v46 = vadd.f32 1.0, %v16047_v62  ;;  %v21753_v11 = vadd.f32 %v12929_v44, %v10029_v25  ;;  %v21764_v56 = vpop.f32.mrb[41].mxu0  ;;  %v12620_v25 = vmul.f32 -1.442695, %v13506_v59 }
 0x811   :  { %v16051_v24 = vpop.eup %16050  ;;  %16070 = vrcp.f32 %v10989_v31  ;;  %v10995_v15 = vadd.f32 1.0, %v16049_v10  ;;  %v12931_v30 = vpop.f32.mrb[105].mxu1  ;;  %v12621_v55 = vmul.f32 -1.442695, %v13507_v50  ;;  %v12622_v40 = vmul.f32 -1.442695, %v21682_v27 }
 0x812   :  { %v16053_v28 = vpop.eup %16052  ;;  %16072 = vrcp.f32 %v10994_v46  ;;  %v10996_v12 = vadd.f32 1.0, %v16051_v24  ;;  %v21768_v35 = vpop.f32.mrb[42].mxu0  ;;  %v12932_v62 = vadd.f32 %v12931_v30, %v12930_v41  ;;  %v13509_v46 = vadd.f32 %v21675_v42, %v21489_v38 }
 0x813   :  { %v16055_v49 = vpop.eup %16054  ;;  %16074 = vrcp.f32 %v10995_v15  ;;  %v11001_v45 = vadd.f32 1.0, %v16053_v28  ;;  %v12933_v6 = vpop.f32.mrb[106].mxu1  ;;  %v13510_v42 = vadd.f32 %v21704_v23, %v21487_v63  ;;  %v12629_v41 = vmul.f32 -1.442695, %v21698_v60 }
 0x814   :  { %v16057_v58 = vpop.eup %16056  ;;  %11646 = vst [vmem:[%s22163_s10 + $0x1e8] sm:$0xff] %v16055_v49  ;;  %16076 = vrcp.f32 %v10996_v12  ;;  %v21776_v31 = vpop.f32.mrb[43].mxu0  ;;  %v21786_v3 = vadd.f32 %v12932_v62, %v10034_v0  ;;  %v12627_v12 = vmul.f32 -1.442695, %v13508_v54  ;;  %v12628_v27 = vmul.f32 -1.442695, %v13509_v46 }
 0x815   :  { %v16059_v48 = vpop.eup %16058  ;;  %16078 = vrcp.f32 %v11001_v45  ;;  %v11002_v53 = vadd.f32 1.0, %v16057_v58  ;;  %v12934_v22 = vpop.f32.mrb[107].mxu1  ;;  %v12634_v50 = vmul.f32 -1.442695, %v13510_v42  ;;  %v10045_v54 = vadd.f32 %v21391_v18, %v21485_v19 }
 0x816   :  { %v16061_v57 = vpop.eup %16060  ;;  %11647 = vst [vmem:[%s22163_s10 + $0x1f0] sm:$0xff] %v16059_v48  ;;  %16080 = vpow2.f32 %v12608_v26  ;;  %v12935_v29 = vadd.f32 %v12934_v22, %v12933_v6  ;;  %v13511_v26 = vadd.f32 %v21709_v2, %v21489_v38  ;;  %v21804_v23 = vpop.f32.mrb[44].mxu0  ;;  %v12636_v62 = vmul.f32 -1.442695, %v21723_v61 }
 0x817   :  { %v16063_v10 = vpop.eup %16062  ;;  %11652 = vst [vmem:[%s22163_s10 + $0x218] sm:$0xff] %v16061_v57  ;;  %16082 = vrcp.f32 %v11002_v53  ;;  %v12936_v45 = vpop.f32.mrb[108].mxu1 }
 0x818   :  { %v16065_v24 = vpop.eup %16064  ;;  %11653 = vst [vmem:[%s22163_s10 + $0x220] sm:$0xff] %v16063_v10  ;;  %16084 = vpow2.f32 %v12613_v47  ;;  %v21794_v44 = vadd.f32 %v12935_v29, %v10037_v14  ;;  %v21810_v58 = vpop.f32.mrb[45].mxu0  ;;  %v10042_v47 = vadd.f32 %v21383_v4, %v21485_v19  ;;  %v12635_v60 = vmul.f32 -1.442695, %v13511_v26 }
 0x819   :  { %v16067_v15 = vpop.eup %16066  ;;  %11654 = vst [vmem:[%s22163_s10 + $0x228] sm:$0xff] %v16065_v24  ;;  %16086 = vpow2.f32 %v12614_v43  ;;  %v12937_v2 = vpop.f32.mrb[109].mxu1  ;;  %v10050_v26 = vadd.f32 %v21402_v33, %v21485_v19 }
 0x81a   :  { %v16069_v28 = vpop.eup %16068  ;;  %11659 = vst [vmem:[%s22163_s10 + $0x250] sm:$0xff] %v16067_v15  ;;  %16088 = vpow2.f32 %v12615_v32  ;;  %v12938_v30 = vadd.f32 %v12937_v2, %v12936_v45  ;;  %v21817_v48 = vpop.f32.mrb[46].mxu0 }
 0x81b   :  { %v16071_v49 = vpop.eup %16070  ;;  %11660 = vst [vmem:[%s22163_s10 + $0x258] sm:$0xff] %v16069_v28  ;;  %16090 = vpow2.f32 %v12620_v25  ;;  %v12939_v14 = vpop.f32.mrb[110].mxu1 }
 0x81c   :  { %v16073_v59 = vpop.eup %16072  ;;  %11661 = vst [vmem:[%s22163_s10 + $0x260] sm:$0xff] %v16071_v49  ;;  %16092 = vpow2.f32 %v12621_v55  ;;  %v21822_v43 = vpop.f32.mrb[47].mxu0  ;;  %v21827_v57 = vadd.f32 %v12938_v30, %v10042_v47 }
 0x81d   :  { %v16075_v0 = vpop.eup %16074  ;;  %11666 = vst [vmem:[%s22163_s10 + $0x288] sm:$0xff] %v16073_v59  ;;  %16094 = vpow2.f32 %v12622_v40  ;;  %v12940_v4 = vpop.f32.mrb[111].mxu1 }
 0x81e   :  { %v16077_v53 = vpop.eup %16076  ;;  %11667 = vst [vmem:[%s22163_s10 + $0x290] sm:$0xff] %v16075_v0  ;;  %16096 = vpow2.f32 %v12627_v12  ;;  %v12941_v22 = vadd.f32 %v12940_v4, %v12939_v14 }
 0x81f   :  { %v16079_v6 = vpop.eup %16078  ;;  %11668 = vst [vmem:[%s22163_s10 + $0x298] sm:$0xff] %v16077_v53  ;;  %16098 = vpow2.f32 %v12628_v27 }
 0x820   :  { %v16081_v32 = vpop.eup %16080  ;;  %11673 = vst [vmem:[%s22163_s10 + $0x2c0] sm:$0xff] %v16079_v6  ;;  %16100 = vpow2.f32 %v12629_v41  ;;  %v21838_v29 = vadd.f32 %v12941_v22, %v10045_v54  ;;  %v21840_v55 = vpop.f32.mrb[48].mxu0  ;;  %v10053_v6 = vadd.f32 %v21404_v9, %v21485_v19 }
 0x821   :  { %v16083_v10 = vpop.eup %16082  ;;  %v11003_v25 = vadd.f32 1.0, %v16081_v32  ;;  %16102 = vpow2.f32 %v12634_v50  ;;  %v12942_v15 = vpop.f32.mrb[112].mxu1 }
 0x822   :  { %v16085_v46 = vpop.eup %16084  ;;  %11674 = vst [vmem:[%s22163_s10 + $0x2c8] sm:$0xff] %v16083_v10  ;;  %16104 = vpow2.f32 %v12635_v60  ;;  %v21842_v42 = vpop.f32.mrb[49].mxu0  ;;  %v13512_v60 = vadd.f32 %v21716_v7, %v21487_v63  ;;  %v13513_v10 = vadd.f32 %v21721_v16, %v21489_v38 }
 0x823   :  { %v16087_v18 = vpop.eup %16086  ;;  %16106 = vrcp.f32 %v11003_v25  ;;  %v11008_v24 = vadd.f32 1.0, %v16085_v46  ;;  %v12943_v28 = vpop.f32.mrb[113].mxu1 }
 0x824   :  { %v16089_v40 = vpop.eup %16088  ;;  %v11009_v61 = vadd.f32 1.0, %v16087_v18  ;;  %16108 = vpow2.f32 %v12636_v62  ;;  %v12944_v27 = vadd.f32 %v12943_v28, %v12942_v15  ;;  %v21846_v45 = vpop.f32.mrb[50].mxu0  ;;  %v13514_v18 = vadd.f32 %v21732_v1, %v21487_v63 }
 0x825   :  { %v16091_v12 = vpop.eup %16090  ;;  %16110 = vrcp.f32 %v11008_v24  ;;  %v11010_v49 = vadd.f32 1.0, %v16089_v40  ;;  %v12945_v59 = vpop.f32.mrb[114].mxu1  ;;  %v10058_v40 = vadd.f32 %v21414_v20, %v21485_v19  ;;  %v12641_v28 = vmul.f32 -1.442695, %v13512_v60 }
 0x826   :  { %v16093_v41 = vpop.eup %16092  ;;  %16112 = vrcp.f32 %v11009_v61  ;;  %v11015_v2 = vadd.f32 1.0, %v16091_v12  ;;  %v21848_v0 = vpop.f32.mrb[51].mxu0  ;;  %v21850_v14 = vadd.f32 %v12944_v27, %v10050_v26  ;;  %v13515_v27 = vadd.f32 %v21734_v8, %v21489_v38 }
 0x827   :  { %v12946_v47 = vpop.f32.mrb[115].mxu1  ;;  %v16095_v50 = vpop.eup %16094  ;;  %16114 = vrcp.f32 %v11010_v49  ;;  %v11016_v30 = vadd.f32 1.0, %v16093_v41  ;;  %v10061_v49 = vadd.f32 %v21420_v13, %v21485_v19  ;;  %v12642_v20 = vmul.f32 -1.442695, %v13513_v10 }
 0x828   :  { %v16097_v53 = vpop.eup %16096  ;;  %16116 = vrcp.f32 %v11015_v2  ;;  %v11017_v33 = vadd.f32 1.0, %v16095_v50  ;;  %v12947_v54 = vadd.f32 %v12946_v47, %v12945_v59  ;;  %v21862_v24 = vpop.f32.mrb[52].mxu0  ;;  %v12643_v47 = vmul.f32 -1.442695, %v21730_v37 }
 0x829   :  { %v16099_v4 = vpop.eup %16098  ;;  %16118 = vrcp.f32 %v11016_v30  ;;  %v11022_v32 = vadd.f32 1.0, %v16097_v53  ;;  %v12948_v9 = vpop.f32.mrb[116].mxu1  ;;  %v12648_v8 = vmul.f32 -1.442695, %v13514_v18  ;;  %v13516_v60 = vadd.f32 %v21738_v34, %v21487_v63 }
 0x82a   :  { %v16101_v62 = vpop.eup %16100  ;;  %16120 = vrcp.f32 %v11017_v33  ;;  %v11023_v22 = vadd.f32 1.0, %v16099_v4  ;;  %v21860_v7 = vadd.f32 %v12947_v54, %v10053_v6  ;;  %v21866_v12 = vpop.f32.mrb[53].mxu0  ;;  %v13517_v37 = vadd.f32 %v21740_v17, %v21489_v38 }
 0x82b   :  { %v16103_v25 = vpop.eup %16102  ;;  %16122 = vrcp.f32 %v11022_v32  ;;  %v11024_v46 = vadd.f32 1.0, %v16101_v62  ;;  %v12949_v16 = vpop.f32.mrb[117].mxu1  ;;  %v12649_v62 = vmul.f32 -1.442695, %v13515_v27  ;;  %v13518_v17 = vadd.f32 %v21755_v21, %v21487_v63 }
 0x82c   :  { %v16105_v15 = vpop.eup %16104  ;;  %16124 = vrcp.f32 %v11023_v22  ;;  %v11029_v61 = vadd.f32 1.0, %v16103_v25  ;;  %v21872_v59 = vpop.f32.mrb[54].mxu0  ;;  %v12950_v50 = vadd.f32 %v12949_v16, %v12948_v9  ;;  %v12650_v22 = vmul.f32 -1.442695, %v21742_v36 }
 0x82d   :  { %v16107_v26 = vpop.eup %16106  ;;  %16126 = vrcp.f32 %v11024_v46  ;;  %v11030_v1 = vadd.f32 1.0, %v16105_v15  ;;  %v12951_v41 = vpop.f32.mrb[118].mxu1  ;;  %v12655_v46 = vmul.f32 -1.442695, %v13516_v60  ;;  %v13519_v18 = vadd.f32 %v21764_v56, %v21489_v38 }
 0x82e   :  { %v16109_v2 = vpop.eup %16108  ;;  %11675 = vst [vmem:[%s22163_s10 + $0x2d0] sm:$0xff] %v16107_v26  ;;  %16128 = vrcp.f32 %v11029_v61  ;;  %v21878_v30 = vpop.f32.mrb[55].mxu0  ;;  %v21887_v6 = vadd.f32 %v12950_v50, %v10058_v40  ;;  %v12656_v36 = vmul.f32 -1.442695, %v13517_v37  ;;  %v10066_v16 = vadd.f32 %v21450_v51, %v21485_v19 }
 0x82f   :  { %v12952_v13 = vpop.f32.mrb[119].mxu1  ;;  %v16111_v53 = vpop.eup %16110  ;;  %16130 = vrcp.f32 %v11030_v1  ;;  %v11031_v33 = vadd.f32 1.0, %v16109_v2  ;;  %v12657_v56 = vmul.f32 -1.442695, %v21753_v11  ;;  %v13520_v51 = vadd.f32 %v21768_v35, %v21487_v63 }
 0x830   :  { %v16113_v4 = vpop.eup %16112  ;;  %11680 = vst [vmem:[%s22163_s10 + $0x2f8] sm:$0xff] %v16111_v53  ;;  %16132 = vpow2.f32 %v12641_v28  ;;  %v12953_v32 = vadd.f32 %v12952_v13, %v12951_v41  ;;  %v12662_v41 = vmul.f32 -1.442695, %v13518_v17  ;;  %v12663_v11 = vmul.f32 -1.442695, %v13519_v18 }
 0x831   :  { %v16115_v54 = vpop.eup %16114  ;;  %11681 = vst [vmem:[%s22163_s10 + $0x300] sm:$0xff] %v16113_v4  ;;  %16134 = vrcp.f32 %v11031_v33  ;;  %v10069_v53 = vadd.f32 %v21458_v5, %v21485_v19  ;;  %v12664_v35 = vmul.f32 -1.442695, %v21786_v3  ;;  %v12669_v5 = vmul.f32 -1.442695, %v13520_v51 }
 0x832   :  { %v16117_v34 = vpop.eup %16116  ;;  %11682 = vst [vmem:[%s22163_s10 + $0x308] sm:$0xff] %v16115_v54  ;;  %16136 = vpow2.f32 %v12642_v20  ;;  %v21898_v10 = vadd.f32 %v12953_v32, %v10061_v49  ;;  %v21905_v9 = vpop.f32.mrb[56].mxu0  ;;  %v10077_v51 = vadd.f32 %v21480_v39, %v21485_v19 }
 0x833   :  { %v16119_v25 = vpop.eup %16118  ;;  %11687 = vst [vmem:[%s22163_s10 + $0x330] sm:$0xff] %v16117_v34  ;;  %16138 = vpow2.f32 %v12643_v47  ;;  %v12954_v15 = vpop.f32.mrb[120].mxu1 }
 0x834   :  { %v16121_v40 = vpop.eup %16120  ;;  %11688 = vst [vmem:[%s22163_s10 + $0x338] sm:$0xff] %v16119_v25  ;;  %16140 = vpow2.f32 %v12648_v8  ;;  %v21910_v21 = vpop.f32.mrb[57].mxu0  ;;  %v10074_v25 = vadd.f32 %v21477_v52, %v21485_v19  ;;  %v13522_v19 = vadd.f32 %v21804_v23, %v21487_v63  ;;  %v13524_v23 = vadd.f32 %v21817_v48, %v21487_v63 }
 0x835   :  { %v12955_v61 = vpop.f32.mrb[121].mxu1  ;;  %v16123_v28 = vpop.eup %16122  ;;  %11689 = vst [vmem:[%s22163_s10 + $0x340] sm:$0xff] %v16121_v40  ;;  %16142 = vpow2.f32 %v12649_v62  ;;  %v13526_v48 = vadd.f32 %v21840_v55, %v21487_v63  ;;  %v12685_v55 = vmul.f32 -1.442695, %v21838_v29  ;;  %v13529_v29 = vadd.f32 %v21848_v0, %v21489_v38 }
 0x836   :  { %v12956_v26 = vadd.f32 %v12955_v61, %v12954_v15  ;;  %v21918_v49 = vpop.f32.mrb[58].mxu0  ;;  %v12957_v1 = vpop.f32.mrb[122].mxu1  ;;  %11694 = vst [vmem:[%s22163_s10 + $0x368] sm:$0xff] %v16123_v28  ;;  %16144 = vpow2.f32 %v12650_v22 }
 0x837   :  { %v16125_v27 = vpop.eup %16124  ;;  %v21925_v2 = vpop.f32.mrb[59].mxu0  ;;  %16146 = vpow2.f32 %v12655_v46 }
 0x838   :  { %v12958_v20 = vpop.f32.mrb[123].mxu1  ;;  %v16127_v47 = vpop.eup %16126  ;;  %11695 = vst [vmem:[%s22163_s10 + $0x370] sm:$0xff] %v16125_v27  ;;  %v21930_v50 = vadd.f32 %v12956_v26, %v10066_v16  ;;  %16148 = vpow2.f32 %v12656_v36 }
 0x839   :  { %v16129_v13 = vpop.eup %16128  ;;  %11696 = vst [vmem:[%s22163_s10 + $0x378] sm:$0xff] %v16127_v47  ;;  %v12959_v33 = vadd.f32 %v12958_v20, %v12957_v1  ;;  %16150 = vpow2.f32 %v12657_v56 }
 0x83a   :  { %v16131_v8 = vpop.eup %16130  ;;  %11701 = vst [vmem:[%s22163_s10 + $0x3a0] sm:$0xff] %v16129_v13  ;;  %16152 = vpow2.f32 %v12662_v41  ;;  %v21946_v3 = vpop.f32.mrb[60].mxu0 }
 0x83b   :  { %v16133_v60 = vpop.eup %16132  ;;  %11702 = vst [vmem:[%s22163_s10 + $0x3a8] sm:$0xff] %v16131_v8  ;;  %v21944_v4 = vadd.f32 %v12959_v33, %v10069_v53  ;;  %16154 = vpow2.f32 %v12663_v11  ;;  %v12960_v54 = vpop.f32.mrb[124].mxu1  ;;  %v13521_v53 = vadd.f32 %v21776_v31, %v21489_v38  ;;  %v13523_v31 = vadd.f32 %v21810_v58, %v21489_v38 }
 0x83c   :  { %v16135_v37 = vpop.eup %16134  ;;  %v11036_v32 = vadd.f32 1.0, %v16133_v60  ;;  %16156 = vpow2.f32 %v12664_v35  ;;  %v21951_v34 = vpop.f32.mrb[61].mxu0  ;;  %v13525_v58 = vadd.f32 %v21822_v43, %v21489_v38  ;;  %v12683_v43 = vmul.f32 -1.442695, %v13524_v23 }
 0x83d   :  { %v16137_v62 = vpop.eup %16136  ;;  %11703 = vst [vmem:[%s22163_s10 + $0x3b0] sm:$0xff] %v16135_v37  ;;  %v12961_v22 = vpop.f32.mrb[125].mxu1 }
 0x83e   :  { %v16139_v17 = vpop.eup %16138  ;;  %16158 = vrcp.f32 %v11036_v32  ;;  %v11037_v46 = vadd.f32 1.0, %v16137_v62  ;;  %v12962_v18 = vadd.f32 %v12961_v22, %v12960_v54  ;;  %v21955_v15 = vpop.f32.mrb[62].mxu0  ;;  %v12670_v62 = vmul.f32 -1.442695, %v13521_v53 }
 0x83f   :  { %v12963_v40 = vpop.f32.mrb[126].mxu1  ;;  %v16141_v36 = vpop.eup %16140  ;;  %v11038_v61 = vadd.f32 1.0, %v16139_v17  ;;  %16160 = vpow2.f32 %v12669_v5 }
 0x840   :  { %v21957_v28 = vpop.f32.mrb[63].mxu0  ;;  %v12964_v16 = vpop.f32.mrb[127].mxu1  ;;  %16162 = vrcp.f32 %v11037_v46  ;;  %v11043_v26 = vadd.f32 1.0, %v16141_v36  ;;  %v21959_v1 = vadd.f32 %v12962_v18, %v10074_v25  ;;  %v12671_v46 = vmul.f32 -1.442695, %v21794_v44 }
 0x841   :  { %v16143_v56 = vpop.eup %16142  ;;  %16164 = vrcp.f32 %v11038_v61  ;;  %v12965_v47 = vadd.f32 %v12964_v16, %v12963_v40  ;;  %v12676_v36 = vmul.f32 -1.442695, %v13522_v19  ;;  %v12677_v16 = vmul.f32 -1.442695, %v13523_v31 }
 0x842   :  { %v16145_v27 = vpop.eup %16144  ;;  %v11044_v52 = vadd.f32 1.0, %v16143_v56  ;;  %16166 = vrcp.f32 %v11043_v26  ;;  %v12678_v44 = vmul.f32 -1.442695, %v21827_v57  ;;  %v12684_v57 = vmul.f32 -1.442695, %v13525_v58 }
 0x843   :  { %v16147_v41 = vpop.eup %16146  ;;  %v11045_v20 = vadd.f32 1.0, %v16145_v27  ;;  %v21965_v8 = vadd.f32 %v12965_v47, %v10077_v51  ;;  %v13527_v27 = vadd.f32 %v21842_v42, %v21489_v38  ;;  %v13528_v51 = vadd.f32 %v21846_v45, %v21487_v63 }
 0x844   :  { %v16149_v11 = vpop.eup %16148  ;;  %16168 = vrcp.f32 %v11044_v52  ;;  %v11050_v13 = vadd.f32 1.0, %v16147_v41  ;;  %v12690_v42 = vmul.f32 -1.442695, %v13526_v48  ;;  %v12692_v45 = vmul.f32 -1.442695, %v21850_v14 }
 0x845   :  { %v16151_v35 = vpop.eup %16150  ;;  %16170 = vrcp.f32 %v11045_v20  ;;  %v11051_v33 = vadd.f32 1.0, %v16149_v11  ;;  %v12691_v11 = vmul.f32 -1.442695, %v13527_v27  ;;  %v12698_v14 = vmul.f32 -1.442695, %v13529_v29 }
 0x846   :  { %v16153_v60 = vpop.eup %16152  ;;  %16172 = vrcp.f32 %v11050_v13  ;;  %v11052_v5 = vadd.f32 1.0, %v16151_v35  ;;  %v12697_v35 = vmul.f32 -1.442695, %v13528_v51  ;;  %v13531_v48 = vadd.f32 %v21866_v12, %v21489_v38 }
 0x847   :  { %v16155_v37 = vpop.eup %16154  ;;  %16174 = vrcp.f32 %v11051_v33  ;;  %v11057_v39 = vadd.f32 1.0, %v16153_v60  ;;  %v12699_v27 = vmul.f32 -1.442695, %v21860_v7  ;;  %v13533_v12 = vadd.f32 %v21878_v30, %v21489_v38 }
 0x848   :  { %v16157_v32 = vpop.eup %16156  ;;  %16176 = vrcp.f32 %v11052_v5  ;;  %v11058_v54 = vadd.f32 1.0, %v16155_v37  ;;  %v12705_v7 = vmul.f32 -1.442695, %v13531_v48  ;;  %v13535_v29 = vadd.f32 %v21910_v21, %v21489_v38 }
 0x849   :  { %v16159_v22 = vpop.eup %16158  ;;  %16178 = vrcp.f32 %v11057_v39  ;;  %v11059_v17 = vadd.f32 1.0, %v16157_v32 }
 0x84a   :  { %v16161_v25 = vpop.eup %16160  ;;  %11708 = vst [vmem:[%s22163_s10 + $0x3d8] sm:$0xff] %v16159_v22  ;;  %16180 = vrcp.f32 %v11058_v54 }
 0x84b   :  { %v16163_v18 = vpop.eup %16162  ;;  %16182 = vrcp.f32 %v11059_v17  ;;  %v11064_v40 = vadd.f32 1.0, %v16161_v25 }
 0x84c   :  { %v16165_v61 = vpop.eup %16164  ;;  %11709 = vst [vmem:[%s22163_s10 + $0x3e0] sm:$0xff] %v16163_v18  ;;  %16184 = vpow2.f32 %v12670_v62 }
 0x84d   :  { %v16167_v56 = vpop.eup %16166  ;;  %11710 = vst [vmem:[%s22163_s10 + $0x3e8] sm:$0xff] %v16165_v61  ;;  %16186 = vrcp.f32 %v11064_v40 }
 0x84e   :  { %v16169_v26 = vpop.eup %16168  ;;  %11715 = vst [vmem:[%s22163_s10 + $0x410] sm:$0xff] %v16167_v56  ;;  %16188 = vpow2.f32 %v12671_v46 }
 0x84f   :  { %v16171_v52 = vpop.eup %16170  ;;  %11716 = vst [vmem:[%s22163_s10 + $0x418] sm:$0xff] %v16169_v26  ;;  %16190 = vpow2.f32 %v12676_v36 }
 0x850   :  { %v16173_v41 = vpop.eup %16172  ;;  %11717 = vst [vmem:[%s22163_s10 + $0x420] sm:$0xff] %v16171_v52  ;;  %16192 = vpow2.f32 %v12677_v16  ;;  %v13530_v16 = vadd.f32 %v21862_v24, %v21487_v63 }
 0x851   :  { %v16175_v20 = vpop.eup %16174  ;;  %11722 = vst [vmem:[%s22163_s10 + $0x448] sm:$0xff] %v16173_v41  ;;  %16194 = vpow2.f32 %v12678_v44  ;;  %v13532_v41 = vadd.f32 %v21872_v59, %v21487_v63  ;;  %v12706_v59 = vmul.f32 -1.442695, %v21887_v6  ;;  %v12712_v6 = vmul.f32 -1.442695, %v13533_v12 }
 0x852   :  { %v16177_v47 = vpop.eup %16176  ;;  %11723 = vst [vmem:[%s22163_s10 + $0x450] sm:$0xff] %v16175_v20  ;;  %16196 = vpow2.f32 %v12683_v43  ;;  %v12704_v24 = vmul.f32 -1.442695, %v13530_v16  ;;  %v13538_v16 = vadd.f32 %v21946_v3, %v21487_v63 }
 0x853   :  { %v16179_v13 = vpop.eup %16178  ;;  %11724 = vst [vmem:[%s22163_s10 + $0x458] sm:$0xff] %v16177_v47  ;;  %16198 = vpow2.f32 %v12684_v57  ;;  %v13534_v47 = vadd.f32 %v21905_v9, %v21487_v63  ;;  %v12711_v30 = vmul.f32 -1.442695, %v13532_v41  ;;  %v12713_v9 = vmul.f32 -1.442695, %v21898_v10 }
 0x854   :  { %v16181_v53 = vpop.eup %16180  ;;  %11729 = vst [vmem:[%s22163_s10 + $0x480] sm:$0xff] %v16179_v13  ;;  %16200 = vpow2.f32 %v12685_v55  ;;  %v12719_v10 = vmul.f32 -1.442695, %v13535_v29 }
 0x855   :  { %v16183_v33 = vpop.eup %16182  ;;  %11730 = vst [vmem:[%s22163_s10 + $0x488] sm:$0xff] %v16181_v53  ;;  %16202 = vpow2.f32 %v12690_v42  ;;  %v13536_v53 = vadd.f32 %v21918_v49, %v21487_v63  ;;  %v12718_v21 = vmul.f32 -1.442695, %v13534_v47  ;;  %v12720_v49 = vmul.f32 -1.442695, %v21930_v50 }
 0x856   :  { %v16185_v0 = vpop.eup %16184  ;;  %11731 = vst [vmem:[%s22163_s10 + $0x490] sm:$0xff] %v16183_v33  ;;  %16204 = vpow2.f32 %v12691_v11  ;;  %v13537_v33 = vadd.f32 %v21925_v2, %v21489_v38 }
 0x857   :  { %v16187_v60 = vpop.eup %16186  ;;  %v11065_v5 = vadd.f32 1.0, %v16185_v0  ;;  %16206 = vpow2.f32 %v12692_v45  ;;  %v12725_v2 = vmul.f32 -1.442695, %v13536_v53 }
 0x858   :  { %v16189_v37 = vpop.eup %16188  ;;  %11736 = vst [vmem:[%s22163_s10 + $0x4b8] sm:$0xff] %v16187_v60  ;;  %16208 = vpow2.f32 %v12697_v35 }
 0x859   :  { %v16191_v39 = vpop.eup %16190  ;;  %16210 = vrcp.f32 %v11065_v5  ;;  %v11066_v19 = vadd.f32 1.0, %v16189_v37  ;;  %v12726_v37 = vmul.f32 -1.442695, %v13537_v33 }
 0x85a   :  { %v16193_v32 = vpop.eup %16192  ;;  %v11071_v54 = vadd.f32 1.0, %v16191_v39  ;;  %16212 = vpow2.f32 %v12698_v14 }
 0x85b   :  { %v16195_v62 = vpop.eup %16194  ;;  %16214 = vrcp.f32 %v11066_v19  ;;  %v11072_v31 = vadd.f32 1.0, %v16193_v32  ;;  %v12727_v19 = vmul.f32 -1.442695, %v21944_v4 }
 0x85c   :  { %v16197_v22 = vpop.eup %16196  ;;  %16216 = vrcp.f32 %v11071_v54  ;;  %v11073_v17 = vadd.f32 1.0, %v16195_v62 }
 0x85d   :  { %v16199_v25 = vpop.eup %16198  ;;  %16218 = vrcp.f32 %v11072_v31  ;;  %v11078_v46 = vadd.f32 1.0, %v16197_v22 }
 0x85e   :  { %v16201_v23 = vpop.eup %16200  ;;  %16220 = vrcp.f32 %v11073_v17  ;;  %v11079_v18 = vadd.f32 1.0, %v16199_v25 }
 0x85f   :  { %v16203_v40 = vpop.eup %16202  ;;  %16222 = vrcp.f32 %v11078_v46  ;;  %v11080_v36 = vadd.f32 1.0, %v16201_v23 }
 0x860   :  { %v16205_v58 = vpop.eup %16204  ;;  %16224 = vrcp.f32 %v11079_v18  ;;  %v11085_v61 = vadd.f32 1.0, %v16203_v40 }
 0x861   :  { %v16207_v56 = vpop.eup %16206  ;;  %16226 = vrcp.f32 %v11080_v36  ;;  %v11086_v44 = vadd.f32 1.0, %v16205_v58 }
 0x862   :  { %v16209_v26 = vpop.eup %16208  ;;  %16228 = vrcp.f32 %v11085_v61  ;;  %v11087_v43 = vadd.f32 1.0, %v16207_v56 }
 0x863   :  { %v16211_v52 = vpop.eup %16210  ;;  %16230 = vrcp.f32 %v11086_v44  ;;  %v11092_v57 = vadd.f32 1.0, %v16209_v26 }
 0x864   :  { %v16213_v55 = vpop.eup %16212  ;;  %11737 = vst [vmem:[%s22163_s10 + $0x4c0] sm:$0xff] %v16211_v52  ;;  %16232 = vrcp.f32 %v11087_v43  ;;  %v13539_v43 = vadd.f32 %v21951_v34, %v21489_v38 }
 0x865   :  { %v16215_v51 = vpop.eup %16214  ;;  %16234 = vrcp.f32 %v11092_v57  ;;  %v11093_v20 = vadd.f32 1.0, %v16213_v55  ;;  %v12732_v55 = vmul.f32 -1.442695, %v13538_v16 }
 0x866   :  { %v16217_v42 = vpop.eup %16216  ;;  %11738 = vst [vmem:[%s22163_s10 + $0x4c8] sm:$0xff] %v16215_v51  ;;  %16236 = vpow2.f32 %v12699_v27  ;;  %v13541_v51 = vadd.f32 %v21957_v28, %v21489_v38  ;;  %v12733_v34 = vmul.f32 -1.442695, %v13539_v43 }
 0x867   :  { %v16219_v11 = vpop.eup %16218  ;;  %11743 = vst [vmem:[%s22163_s10 + $0x4f0] sm:$0xff] %v16217_v42  ;;  %16238 = vrcp.f32 %v11093_v20 }
 0x868   :  { %v16221_v13 = vpop.eup %16220  ;;  %11744 = vst [vmem:[%s22163_s10 + $0x4f8] sm:$0xff] %v16219_v11  ;;  %16240 = vpow2.f32 %v12704_v24  ;;  %v13540_v24 = vadd.f32 %v21955_v15, %v21487_v63  ;;  %v12740_v15 = vmul.f32 -1.442695, %v13541_v51 }
 0x869   :  { %v16223_v45 = vpop.eup %16222  ;;  %11745 = vst [vmem:[%s22163_s10 + $0x500] sm:$0xff] %v16221_v13  ;;  %16242 = vpow2.f32 %v12705_v7 }
 0x86a   :  { %v16225_v35 = vpop.eup %16224  ;;  %11750 = vst [vmem:[%s22163_s10 + $0x528] sm:$0xff] %v16223_v45  ;;  %16244 = vpow2.f32 %v12706_v59  ;;  %v12734_v59 = vmul.f32 -1.442695, %v21959_v1  ;;  %v12739_v63 = vmul.f32 -1.442695, %v13540_v24 }
 0x86b   :  { %v16227_v0 = vpop.eup %16226  ;;  %11751 = vst [vmem:[%s22163_s10 + $0x530] sm:$0xff] %v16225_v35  ;;  %16246 = vpow2.f32 %v12711_v30  ;;  %v12741_v1 = vmul.f32 -1.442695, %v21965_v8 }
 0x86c   :  { %v16229_v14 = vpop.eup %16228  ;;  %11752 = vst [vmem:[%s22163_s10 + $0x538] sm:$0xff] %v16227_v0  ;;  %16248 = vpow2.f32 %v12712_v6 }
 0x86d   :  { %v16231_v60 = vpop.eup %16230  ;;  %11757 = vst [vmem:[%s22163_s10 + $0x560] sm:$0xff] %v16229_v14  ;;  %16250 = vpow2.f32 %v12713_v9 }
 0x86e   :  { %v16233_v5 = vpop.eup %16232  ;;  %11758 = vst [vmem:[%s22163_s10 + $0x568] sm:$0xff] %v16231_v60  ;;  %16252 = vpow2.f32 %v12718_v21 }
 0x86f   :  { %v16235_v39 = vpop.eup %16234  ;;  %11759 = vst [vmem:[%s22163_s10 + $0x570] sm:$0xff] %v16233_v5  ;;  %16254 = vpow2.f32 %v12719_v10 }
 0x870   :  { %v16237_v50 = vpop.eup %16236  ;;  %11764 = vst [vmem:[%s22163_s10 + $0x598] sm:$0xff] %v16235_v39  ;;  %16256 = vpow2.f32 %v12720_v49 }
 0x871   :  { %v16239_v32 = vpop.eup %16238  ;;  %v11094_v54 = vadd.f32 1.0, %v16237_v50  ;;  %16258 = vpow2.f32 %v12725_v2 }
 0x872   :  { %v16241_v62 = vpop.eup %16240  ;;  %11765 = vst [vmem:[%s22163_s10 + $0x5a0] sm:$0xff] %v16239_v32  ;;  %16260 = vpow2.f32 %v12726_v37 }
 0x873   :  { %v16243_v31 = vpop.eup %16242  ;;  %16262 = vrcp.f32 %v11094_v54  ;;  %v11099_v22 = vadd.f32 1.0, %v16241_v62 }
 0x874   :  { %v16245_v17 = vpop.eup %16244  ;;  %v11100_v25 = vadd.f32 1.0, %v16243_v31  ;;  %16264 = vpow2.f32 %v12727_v19 }
 0x875   :  { %v16247_v46 = vpop.eup %16246  ;;  %16266 = vrcp.f32 %v11099_v22  ;;  %v11101_v23 = vadd.f32 1.0, %v16245_v17 }
 0x876   :  { %v16249_v18 = vpop.eup %16248  ;;  %16268 = vrcp.f32 %v11100_v25  ;;  %v11106_v4 = vadd.f32 1.0, %v16247_v46 }
 0x877   :  { %v16251_v40 = vpop.eup %16250  ;;  %16270 = vrcp.f32 %v11101_v23  ;;  %v11107_v36 = vadd.f32 1.0, %v16249_v18 }
 0x878   :  { %v16253_v58 = vpop.eup %16252  ;;  %16272 = vrcp.f32 %v11106_v4  ;;  %v11108_v61 = vadd.f32 1.0, %v16251_v40 }
 0x879   :  { %v16255_v56 = vpop.eup %16254  ;;  %16274 = vrcp.f32 %v11107_v36  ;;  %v11113_v44 = vadd.f32 1.0, %v16253_v58 }
 0x87a   :  { %v16257_v48 = vpop.eup %16256  ;;  %16276 = vrcp.f32 %v11108_v61  ;;  %v11114_v26 = vadd.f32 1.0, %v16255_v56 }
 0x87b   :  { %v16259_v27 = vpop.eup %16258  ;;  %16278 = vrcp.f32 %v11113_v44  ;;  %v11115_v52 = vadd.f32 1.0, %v16257_v48 }
 0x87c   :  { %v16261_v57 = vpop.eup %16260  ;;  %16280 = vrcp.f32 %v11114_v26  ;;  %v11120_v41 = vadd.f32 1.0, %v16259_v27 }
 0x87d   :  { %v16263_v3 = vpop.eup %16262  ;;  %16282 = vrcp.f32 %v11115_v52  ;;  %v11121_v12 = vadd.f32 1.0, %v16261_v57 }
 0x87e   :  { %v16265_v20 = vpop.eup %16264  ;;  %11766 = vst [vmem:[%s22163_s10 + $0x5a8] sm:$0xff] %v16263_v3  ;;  %16284 = vrcp.f32 %v11120_v41 }
 0x87f   :  { %v16267_v7 = vpop.eup %16266  ;;  %16286 = vrcp.f32 %v11121_v12  ;;  %v11122_v42 = vadd.f32 1.0, %v16265_v20 }
 0x880   :  { %v16269_v47 = vpop.eup %16268  ;;  %11771 = vst [vmem:[%s22163_s10 + $0x5d0] sm:$0xff] %v16267_v7  ;;  %16288 = vpow2.f32 %v12732_v55 }
 0x881   :  { %v16271_v38 = vpop.eup %16270  ;;  %11772 = vst [vmem:[%s22163_s10 + $0x5d8] sm:$0xff] %v16269_v47  ;;  %16290 = vrcp.f32 %v11122_v42 }
 0x882   :  { %v16273_v28 = vpop.eup %16272  ;;  %11773 = vst [vmem:[%s22163_s10 + $0x5e0] sm:$0xff] %v16271_v38  ;;  %16292 = vpow2.f32 %v12733_v34 }
 0x883   :  { %v16275_v11 = vpop.eup %16274  ;;  %11778 = vst [vmem:[%s22163_s10 + $0x608] sm:$0xff] %v16273_v28  ;;  %16294 = vpow2.f32 %v12734_v59 }
 0x884   :  { %v16277_v30 = vpop.eup %16276  ;;  %11779 = vst [vmem:[%s22163_s10 + $0x610] sm:$0xff] %v16275_v11  ;;  %16296 = vpow2.f32 %v12739_v63 }
 0x885   :  { %v16279_v29 = vpop.eup %16278  ;;  %11780 = vst [vmem:[%s22163_s10 + $0x618] sm:$0xff] %v16277_v30  ;;  %16298 = vpow2.f32 %v12740_v15 }
 0x886   :  { %v16281_v13 = vpop.eup %16280  ;;  %11785 = vst [vmem:[%s22163_s10 + $0x640] sm:$0xff] %v16279_v29  ;;  %16300 = vpow2.f32 %v12741_v1 }
 0x887   :  { %v16283_v8 = vpop.eup %16282  ;;  %11786 = vst [vmem:[%s22163_s10 + $0x648] sm:$0xff] %v16281_v13 }
 0x888   :  { %v16285_v6 = vpop.eup %16284  ;;  %11787 = vst [vmem:[%s22163_s10 + $0x650] sm:$0xff] %v16283_v8 }
 0x889   :  { %v16287_v45 = vpop.eup %16286  ;;  %11792 = vst [vmem:[%s22163_s10 + $0x678] sm:$0xff] %v16285_v6 }
 0x88a   :  { %v16289_v9 = vpop.eup %16288  ;;  %11793 = vst [vmem:[%s22163_s10 + $0x680] sm:$0xff] %v16287_v45 }
 0x88b   :  { %v16291_v53 = vpop.eup %16290  ;;  %v11127_v35 = vadd.f32 1.0, %v16289_v9 }
 0x88c   :  { %v16293_v21 = vpop.eup %16292  ;;  %11794 = vst [vmem:[%s22163_s10 + $0x688] sm:$0xff] %v16291_v53 }
 0x88d   :  { %v16295_v33 = vpop.eup %16294  ;;  %16302 = vrcp.f32 %v11127_v35  ;;  %v11128_v0 = vadd.f32 1.0, %v16293_v21 }
 0x88e   :  { %v16297_v10 = vpop.eup %16296  ;;  %v11129_v14 = vadd.f32 1.0, %v16295_v33 }
 0x88f   :  { %v16299_v49 = vpop.eup %16298  ;;  %16304 = vrcp.f32 %v11128_v0  ;;  %v11134_v60 = vadd.f32 1.0, %v16297_v10 }
 0x890   :  { %v16301_v2 = vpop.eup %16300  ;;  %16306 = vrcp.f32 %v11129_v14  ;;  %v11135_v5 = vadd.f32 1.0, %v16299_v49 }
 0x891   :  { %16308 = vrcp.f32 %v11134_v60  ;;  %v11136_v37 = vadd.f32 1.0, %v16301_v2 }
 0x892   :  { %16310 = vrcp.f32 %v11135_v5 }
 0x893   :  { %16312 = vrcp.f32 %v11136_v37 }
 0x897   :  { %v16303_v39 = vpop.eup %16302 }
 0x898   :  { %11799 = vst [vmem:[%s22163_s10 + $0x6b0] sm:$0xff] %v16303_v39 }
 0x899   :  { %v16305_v50 = vpop.eup %16304 }
 0x89a   :  { %v16307_v19 = vpop.eup %16306  ;;  %11800 = vst [vmem:[%s22163_s10 + $0x6b8] sm:$0xff] %v16305_v50 }
 0x89b   :  { %v16309_v32 = vpop.eup %16308  ;;  %11801 = vst [vmem:[%s22163_s10 + $0x6c0] sm:$0xff] %v16307_v19 }
 0x89c   :  { %v16311_v54 = vpop.eup %16310  ;;  %11806 = vst [vmem:[%s22163_s10 + $0x6e8] sm:$0xff] %v16309_v32 }
 0x89d   :  { %v16313_v62 = vpop.eup %16312  ;;  %11807 = vst [vmem:[%s22163_s10 + $0x6f0] sm:$0xff] %v16311_v54 }
 0x89e   :  { %11808 = vst [vmem:[%s22163_s10 + $0x6f8] sm:$0xff] %v16313_v62 }
 0x89f   :  { %11813 = vsyncpa [#allocation3], 1 }

</bundles_post_ra>
